<compile_context>
chip_gen: v7x
topology: tpu7x:2x2x1
jax: 0.10.0
libtpu: 0.0.40
codegen_flags: <defaults>
</compile_context>

<pallas_src>
import jax
import jax.numpy as jnp
from jax.experimental import pallas as pl
from jax.experimental.pallas import tpu as pltpu

BN_EPS = 1e-5
EXPANSION = 4
LANE = 128


def _round_up(x, m):
    return ((x + m - 1) // m) * m


def _bn_relu(y, gamma, beta):
    """One-pass training-mode BN (biased variance, eps=1e-5) over rows of
    (M, C), fused with ReLU.  Single traversal: sum and sum-of-squares."""
    inv_m = 1.0 / y.shape[0]
    s1 = jnp.sum(y, axis=0, keepdims=True)
    s2 = jnp.sum(y * y, axis=0, keepdims=True)
    mean = s1 * inv_m
    var = s2 * inv_m - mean * mean
    scale = jax.lax.rsqrt(var + BN_EPS) * gamma      # rsqrt -> EUP slot
    return jnp.maximum((y - mean) * scale + beta, 0.0)


def bottleneck_kernel(x_ref, w1_ref, g1_ref, be1_ref,
                      w2_ref, g2_ref, be2_ref,
                      w3_ref, g3_ref, be3_ref,
                      out_ref, yp_ref):
    N, H, W, Cin = x_ref.shape
    Pp = w1_ref.shape[1]
    Wp = yp_ref.shape[2]
    Cout = w3_ref.shape[1]
    M = N * H * W

    # Kept in f32 for the residual add; bf16 copies feed the MXU.
    x2d = x_ref[...].reshape(M, Cin)

    # ---- conv1 (1x1) -> bn1 -> relu (conv bias folded away by train-mode BN)
    y = jnp.dot(x2d.astype(jnp.bfloat16), w1_ref[...],
                preferred_element_type=jnp.float32)
    y = _bn_relu(y, g1_ref[...], be1_ref[...])

    # ---- conv2 (3x3, pad=1): halo scratch + 9 accumulated MXU matmuls -------
    # Every scratch element is initialized: top/bottom rows (unmasked full-
    # width stores), left column, right strip (covers W+1..Wp-1), interior.
    zrow = jnp.zeros((N, 1, Wp, Pp), jnp.float32)
    yp_ref[:, 0:1, :, :] = zrow
    yp_ref[:, H + 1:H + 2, :, :] = zrow
    yp_ref[:, 1:H + 1, 0:1, :] = jnp.zeros((N, H, 1, Pp), jnp.float32)
    yp_ref[:, 1:H + 1, W + 1:Wp, :] = jnp.zeros((N, H, Wp - W - 1, Pp),
                                                jnp.float32)
    yp_ref[:, 1:H + 1, 1:W + 1, :] = y.reshape(N, H, W, Pp)

    # Accumulate-in-place instead of materializing the (M, 9*Pp) im2col slab:
    # each tap is a full 128-lane K=Pp matmul; f32 accumulation via the MXU.
    acc = jnp.zeros((M, Pp), jnp.float32)
    for ky in range(3):
        for kx in range(3):
            tap = (yp_ref[:, ky:ky + H, kx:kx + W, :]
                   .reshape(M, Pp).astype(jnp.bfloat16))
            acc = acc + jnp.dot(tap, w2_ref[ky * 3 + kx],
                                preferred_element_type=jnp.float32)
    y = _bn_relu(acc, g2_ref[...], be2_ref[...])

    # ---- conv3 (1x1) -> bn3 -> relu (output channels unpadded) --------------
    z = jnp.dot(y.astype(jnp.bfloat16), w3_ref[...],
                preferred_element_type=jnp.float32)
    z = _bn_relu(z, g3_ref[...], be3_ref[...])

    # ---- residual add (identity shortcut) -> relu ---------------------------
    out_ref[...] = jnp.maximum(z + x2d, 0.0).reshape(N, H, W, Cout)


def bottleneck_forward(x_nchw, params):
    # The NCHW<->NHWC transposes exist only to present the PyTorch interface;
    # in a real model keep activations NHWC end-to-end.
    x = jnp.transpose(x_nchw, (0, 2, 3, 1)).astype(jnp.float32)
    N, H, W, Cin = x.shape
    P = params["w1"].shape[1]
    Cout = params["w3"].shape[1]
    assert Cout == Cin, "identity shortcut requires inplanes == planes * 4"

    Pp = _round_up(P, LANE)        # padded mid channels (lane-dense matmuls)
    Wp = _round_up(W + 2, 8)       # halo scratch sublane dim, tile aligned
    M = N * H * W

    pad_c = lambda a, c: jnp.pad(a, ((0, 0), (0, c - a.shape[1])))

    # Weights: mid channels zero-padded to a lane-dense count; bf16 MXU
    # operands cast once here.  Conv biases are intentionally not passed — a
    # per-channel constant before training-mode BN is cancelled by the mean
    # subtraction (valid only for batch-stat BN; eval-mode BN would need the
    # biases folded into beta).
    w1 = jnp.pad(params["w1"], ((0, 0), (0, Pp - P))).astype(jnp.bfloat16)
    w2 = jnp.pad(params["w2"], ((0, 0), (0, 0), (0, Pp - P), (0, Pp - P)))
    w2f = w2.reshape(9, Pp, Pp).astype(jnp.bfloat16)       # (tap, cin, cout)
    w3 = jnp.pad(params["w3"], ((0, Pp - P), (0, 0))).astype(jnp.bfloat16)

    # NOTE: padded gamma/beta lanes MUST be zero (zero-pad, never ones) so the
    # padded mid channels stay exactly zero through BN+ReLU.
    g1, be1 = pad_c(params["g1"], Pp), pad_c(params["be1"], Pp)
    g2, be2 = pad_c(params["g2"], Pp), pad_c(params["be2"], Pp)
    g3, be3 = params["g3"], params["be3"]                  # unpadded (1, Cout)

    flat = (w1, g1, be1, w2f, g2, be2, w3, g3, be3)
    vmem = pl.BlockSpec(memory_space=pltpu.MemorySpace.VMEM)

    flops = 2 * M * (Cin * Pp + 9 * Pp * Pp + Pp * Cout) \
        + 10 * M * (2 * Pp + Cout)
    bytes_accessed = 4 * (x.size + M * Cout) \
        + 2 * (w1.size + w2f.size + w3.size) \
        + 4 * (g1.size + be1.size + g2.size + be2.size + g3.size + be3.size)
    cost = pl.CostEstimate(flops=int(flops),
                           transcendentals=int(2 * Pp + Cout),
                           bytes_accessed=int(bytes_accessed))

    out = pl.pallas_call(
        bottleneck_kernel,
        out_shape=jax.ShapeDtypeStruct((N, H, W, Cout), jnp.float32),
        in_specs=[vmem] * (1 + len(flat)),
        out_specs=vmem,
        scratch_shapes=[pltpu.VMEM((N, H + 2, Wp, Pp), jnp.float32)],
        compiler_params=pltpu.CompilerParams(
            vmem_limit_bytes=16 * 1024 * 1024),
        cost_estimate=cost,
    )(x, *flat)

    return jnp.transpose(out, (0, 3, 1, 2))                # NHWC -> NCHW


# ---------------------------- plain-JAX reference ----------------------------
def reference_forward(x, p, matmul_dtype=jnp.bfloat16):
    """Reference with the same MXU precision as the kernel (bf16 operands,
    f32 accumulation); BN / residual math in f32.  Conv biases are kept here
    (the spec module uses bias=True) — training-mode BN cancels them, which the
    final assert verifies against the bias-free kernel."""
    def conv(t, w_hwio, b, padding):
        y = jax.lax.conv_general_dilated(
            t.astype(matmul_dtype), w_hwio.astype(matmul_dtype),
            window_strides=(1, 1), padding=padding,
            dimension_numbers=("NCHW", "HWIO", "NCHW"),
            preferred_element_type=jnp.float32)
        return y + b.reshape(1, -1, 1, 1)

    def bn(t, g, be):
        mean = jnp.mean(t, axis=(0, 2, 3), keepdims=True)
        var = jnp.mean((t - mean) ** 2, axis=(0, 2, 3), keepdims=True)
        return (t - mean) * jax.lax.rsqrt(var + BN_EPS) * g.reshape(1, -1, 1, 1) \
            + be.reshape(1, -1, 1, 1)

    relu = lambda t: jnp.maximum(t, 0.0)
    Cin, P = p["w1"].shape
    sc = x
    y = relu(bn(conv(x, p["w1"].reshape(1, 1, Cin, P), p["b1"],
                     ((0, 0), (0, 0))), p["g1"], p["be1"]))
    y = relu(bn(conv(y, p["w2"], p["b2"], ((1, 1), (1, 1))), p["g2"], p["be2"]))
    y = relu(bn(conv(y, p["w3"].reshape(1, 1, P, P * EXPANSION), p["b3"],
                     ((0, 0), (0, 0))), p["g3"], p["be3"]))
    return relu(y + sc)


def init_params(key, inplanes, planes):
    ks = jax.random.split(key, 6)
    cout = planes * EXPANSION
    ones = lambda c: jnp.ones((1, c), jnp.float32)
    zeros = lambda c: jnp.zeros((1, c), jnp.float32)
    return dict(
        w1=jax.random.normal(ks[0], (inplanes, planes), jnp.float32)
        * (1.0 / jnp.sqrt(inplanes)),
        b1=jax.random.normal(ks[1], (1, planes), jnp.float32) * 0.05,
        g1=ones(planes), be1=zeros(planes),
        w2=jax.random.normal(ks[2], (3, 3, planes, planes), jnp.float32)
        * (1.0 / jnp.sqrt(9.0 * planes)),
        b2=jax.random.normal(ks[3], (1, planes), jnp.float32) * 0.05,
        g2=ones(planes), be2=zeros(planes),
        w3=jax.random.normal(ks[4], (planes, cout), jnp.float32)
        * (1.0 / jnp.sqrt(planes)),
        b3=jax.random.normal(ks[5], (1, cout), jnp.float32) * 0.05,
        g3=ones(cout), be3=zeros(cout),
    )


if __name__ == "__main__":
    planes = 8
    inplanes = planes * EXPANSION      # 32, so the identity shortcut is valid
    N, H, W = 2, 16, 16

    key = jax.random.PRNGKey(0)
    kx, kp = jax.random.split(key)
    x = jax.random.normal(kx, (N, inplanes, H, W), jnp.float32)  # NCHW (PyTorch)
    params = init_params(kp, inplanes, planes)

    out = jax.block_until_ready(bottleneck_forward(x, params))

    ref = reference_forward(x, params)
    err = float(jnp.max(jnp.abs(out - ref)))
    assert out.shape == x.shape, (out.shape, x.shape)
    assert err < 1e-2, f"max abs err vs reference: {err}"
    print("KERNEL_OK")
</pallas_src>

<mosaic_0001>
module attributes {stable_mosaic.version = 11 : i64} {
  func.func @bottleneck_kernel(%arg0: memref<2x16x16x32xf32, #tpu.memory_space<vmem>>, %arg1: memref<32x128xbf16, #tpu.memory_space<vmem>>, %arg2: memref<1x128xf32, #tpu.memory_space<vmem>>, %arg3: memref<1x128xf32, #tpu.memory_space<vmem>>, %arg4: memref<9x128x128xbf16, #tpu.memory_space<vmem>>, %arg5: memref<1x128xf32, #tpu.memory_space<vmem>>, %arg6: memref<1x128xf32, #tpu.memory_space<vmem>>, %arg7: memref<128x32xbf16, #tpu.memory_space<vmem>>, %arg8: memref<1x32xf32, #tpu.memory_space<vmem>>, %arg9: memref<1x32xf32, #tpu.memory_space<vmem>>, %arg10: memref<2x16x16x32xf32, #tpu.memory_space<vmem>>, %arg11: memref<2x18x24x128xf32, #tpu.memory_space<vmem>>) attributes {dimension_semantics = [], scalar_prefetch = 0 : i64, scratch_operands = 1 : i64, tpu.core_type = #tpu.core_type<tc>} {
    %c0 = arith.constant 0 : index
    %c0_0 = arith.constant 0 : index
    %c0_1 = arith.constant 0 : index
    %c0_2 = arith.constant 0 : index
    %0 = vector.load %arg0[%c0, %c0_0, %c0_1, %c0_2] : memref<2x16x16x32xf32, #tpu.memory_space<vmem>>, vector<2x16x16x32xf32>
    %1 = vector.shape_cast %0 : vector<2x16x16x32xf32> to vector<512x32xf32>
    %2 = arith.truncf %1 : vector<512x32xf32> to vector<512x32xbf16>
    %c0_3 = arith.constant 0 : index
    %c0_4 = arith.constant 0 : index
    %3 = vector.load %arg1[%c0_3, %c0_4] : memref<32x128xbf16, #tpu.memory_space<vmem>>, vector<32x128xbf16>
    %cst = arith.constant dense<0.000000e+00> : vector<512x128xf32>
    %4 = tpu.matmul %2, %3, %cst {dimension_numbers = #tpu.dot_dimension_numbers<[1], [0], [0], [1], [0, 0, 1, 1], [], []>} : vector<512x32xbf16>, vector<32x128xbf16>, vector<512x128xf32> -> vector<512x128xf32>
    %c0_5 = arith.constant 0 : index
    %c0_6 = arith.constant 0 : index
    %5 = vector.load %arg2[%c0_5, %c0_6] : memref<1x128xf32, #tpu.memory_space<vmem>>, vector<1x128xf32>
    %c0_7 = arith.constant 0 : index
    %c0_8 = arith.constant 0 : index
    %6 = vector.load %arg3[%c0_7, %c0_8] : memref<1x128xf32, #tpu.memory_space<vmem>>, vector<1x128xf32>
    %cst_9 = arith.constant dense<0.000000e+00> : vector<128xf32>
    %7 = vector.multi_reduction <add>, %4, %cst_9 [0] : vector<512x128xf32> to vector<128xf32>
    %8 = vector.shape_cast %7 : vector<128xf32> to vector<1x128xf32>
    %9 = arith.mulf %4, %4 : vector<512x128xf32>
    %cst_10 = arith.constant dense<0.000000e+00> : vector<128xf32>
    %10 = vector.multi_reduction <add>, %9, %cst_10 [0] : vector<512x128xf32> to vector<128xf32>
    %11 = vector.shape_cast %10 : vector<128xf32> to vector<1x128xf32>
    %cst_11 = arith.constant 0.001953125 : f32
    %12 = vector.broadcast %cst_11 : f32 to vector<1x128xf32>
    %13 = arith.mulf %8, %12 : vector<1x128xf32>
    %cst_12 = arith.constant 0.001953125 : f32
    %14 = vector.broadcast %cst_12 : f32 to vector<1x128xf32>
    %15 = arith.mulf %11, %14 : vector<1x128xf32>
    %16 = arith.mulf %13, %13 : vector<1x128xf32>
    %17 = arith.subf %15, %16 : vector<1x128xf32>
    %cst_13 = arith.constant 9.99999974E-6 : f32
    %18 = vector.broadcast %cst_13 : f32 to vector<1x128xf32>
    %19 = arith.addf %17, %18 : vector<1x128xf32>
    %20 = math.rsqrt %19 : vector<1x128xf32>
    %21 = arith.mulf %20, %5 : vector<1x128xf32>
    %22 = vector.broadcast %13 : vector<1x128xf32> to vector<512x128xf32>
    %23 = arith.subf %4, %22 : vector<512x128xf32>
    %24 = vector.broadcast %21 : vector<1x128xf32> to vector<512x128xf32>
    %25 = arith.mulf %23, %24 : vector<512x128xf32>
    %26 = vector.broadcast %6 : vector<1x128xf32> to vector<512x128xf32>
    %27 = arith.addf %25, %26 : vector<512x128xf32>
    %cst_14 = arith.constant 0.000000e+00 : f32
    %28 = vector.broadcast %cst_14 : f32 to vector<512x128xf32>
    %29 = arith.maximumf %27, %28 : vector<512x128xf32>
    %cst_15 = arith.constant 0.000000e+00 : f32
    %30 = vector.broadcast %cst_15 : f32 to vector<2x1x24x128xf32>
    %c0_16 = arith.constant 0 : index
    %c0_17 = arith.constant 0 : index
    %c0_18 = arith.constant 0 : index
    %c0_19 = arith.constant 0 : index
    %31 = vector.load %arg11[%c0_16, %c0_17, %c0_18, %c0_19] : memref<2x18x24x128xf32, #tpu.memory_space<vmem>>, vector<2x1x24x128xf32>
    tpu.vector_store %arg11[%c0_16, %c0_17, %c0_18, %c0_19], %30 {strides = array<i32>} : memref<2x18x24x128xf32, #tpu.memory_space<vmem>>, vector<2x1x24x128xf32>,
    %c0_20 = arith.constant 0 : index
    %c17 = arith.constant 17 : index
    %c0_21 = arith.constant 0 : index
    %c0_22 = arith.constant 0 : index
    %32 = vector.load %arg11[%c0_20, %c17, %c0_21, %c0_22] : memref<2x18x24x128xf32, #tpu.memory_space<vmem>>, vector<2x1x24x128xf32>
    tpu.vector_store %arg11[%c0_20, %c17, %c0_21, %c0_22], %30 {strides = array<i32>} : memref<2x18x24x128xf32, #tpu.memory_space<vmem>>, vector<2x1x24x128xf32>,
    %cst_23 = arith.constant 0.000000e+00 : f32
    %33 = vector.broadcast %cst_23 : f32 to vector<2x16x1x128xf32>
    %c0_24 = arith.constant 0 : index
    %c1 = arith.constant 1 : index
    %c0_25 = arith.constant 0 : index
    %c0_26 = arith.constant 0 : index
    %34 = vector.load %arg11[%c0_24, %c1, %c0_25, %c0_26] : memref<2x18x24x128xf32, #tpu.memory_space<vmem>>, vector<2x16x1x128xf32>
    tpu.vector_store %arg11[%c0_24, %c1, %c0_25, %c0_26], %33 {strides = array<i32>} : memref<2x18x24x128xf32, #tpu.memory_space<vmem>>, vector<2x16x1x128xf32>,
    %cst_27 = arith.constant 0.000000e+00 : f32
    %35 = vector.broadcast %cst_27 : f32 to vector<2x16x7x128xf32>
    %c0_28 = arith.constant 0 : index
    %c1_29 = arith.constant 1 : index
    %c17_30 = arith.constant 17 : index
    %c0_31 = arith.constant 0 : index
    %36 = vector.load %arg11[%c0_28, %c1_29, %c17_30, %c0_31] : memref<2x18x24x128xf32, #tpu.memory_space<vmem>>, vector<2x16x7x128xf32>
    tpu.vector_store %arg11[%c0_28, %c1_29, %c17_30, %c0_31], %35 {strides = array<i32>} : memref<2x18x24x128xf32, #tpu.memory_space<vmem>>, vector<2x16x7x128xf32>,
    %37 = vector.shape_cast %29 : vector<512x128xf32> to vector<2x16x16x128xf32>
    %c0_32 = arith.constant 0 : index
    %c1_33 = arith.constant 1 : index
    %c1_34 = arith.constant 1 : index
    %c0_35 = arith.constant 0 : index
    %38 = vector.load %arg11[%c0_32, %c1_33, %c1_34, %c0_35] : memref<2x18x24x128xf32, #tpu.memory_space<vmem>>, vector<2x16x16x128xf32>
    tpu.vector_store %arg11[%c0_32, %c1_33, %c1_34, %c0_35], %37 {strides = array<i32>} : memref<2x18x24x128xf32, #tpu.memory_space<vmem>>, vector<2x16x16x128xf32>,
    %cst_36 = arith.constant 0.000000e+00 : f32
    %39 = vector.broadcast %cst_36 : f32 to vector<512x128xf32>
    %c0_37 = arith.constant 0 : index
    %c0_38 = arith.constant 0 : index
    %c0_39 = arith.constant 0 : index
    %c0_40 = arith.constant 0 : index
    %40 = vector.load %arg11[%c0_37, %c0_38, %c0_39, %c0_40] : memref<2x18x24x128xf32, #tpu.memory_space<vmem>>, vector<2x16x16x128xf32>
    %41 = vector.shape_cast %40 : vector<2x16x16x128xf32> to vector<512x128xf32>
    %42 = arith.truncf %41 : vector<512x128xf32> to vector<512x128xbf16>
    %c0_41 = arith.constant 0 : index
    %c0_42 = arith.constant 0 : index
    %c0_43 = arith.constant 0 : index
    %43 = vector.load %arg4[%c0_41, %c0_42, %c0_43] : memref<9x128x128xbf16, #tpu.memory_space<vmem>>, vector<1x128x128xbf16>
    %44 = vector.shape_cast %43 : vector<1x128x128xbf16> to vector<128x128xbf16>
    %cst_44 = arith.constant dense<0.000000e+00> : vector<512x128xf32>
    %45 = tpu.matmul %42, %44, %cst_44 {dimension_numbers = #tpu.dot_dimension_numbers<[1], [0], [0], [1], [0, 0, 1, 1], [], []>} : vector<512x128xbf16>, vector<128x128xbf16>, vector<512x128xf32> -> vector<512x128xf32>
    %46 = arith.addf %39, %45 : vector<512x128xf32>
    %c0_45 = arith.constant 0 : index
    %c0_46 = arith.constant 0 : index
    %c1_47 = arith.constant 1 : index
    %c0_48 = arith.constant 0 : index
    %47 = vector.load %arg11[%c0_45, %c0_46, %c1_47, %c0_48] : memref<2x18x24x128xf32, #tpu.memory_space<vmem>>, vector<2x16x16x128xf32>
    %48 = vector.shape_cast %47 : vector<2x16x16x128xf32> to vector<512x128xf32>
    %49 = arith.truncf %48 : vector<512x128xf32> to vector<512x128xbf16>
    %c1_49 = arith.constant 1 : index
    %c0_50 = arith.constant 0 : index
    %c0_51 = arith.constant 0 : index
    %50 = vector.load %arg4[%c1_49, %c0_50, %c0_51] : memref<9x128x128xbf16, #tpu.memory_space<vmem>>, vector<1x128x128xbf16>
    %51 = vector.shape_cast %50 : vector<1x128x128xbf16> to vector<128x128xbf16>
    %cst_52 = arith.constant dense<0.000000e+00> : vector<512x128xf32>
    %52 = tpu.matmul %49, %51, %cst_52 {dimension_numbers = #tpu.dot_dimension_numbers<[1], [0], [0], [1], [0, 0, 1, 1], [], []>} : vector<512x128xbf16>, vector<128x128xbf16>, vector<512x128xf32> -> vector<512x128xf32>
    %53 = arith.addf %46, %52 : vector<512x128xf32>
    %c0_53 = arith.constant 0 : index
    %c0_54 = arith.constant 0 : index
    %c2 = arith.constant 2 : index
    %c0_55 = arith.constant 0 : index
    %54 = vector.load %arg11[%c0_53, %c0_54, %c2, %c0_55] : memref<2x18x24x128xf32, #tpu.memory_space<vmem>>, vector<2x16x16x128xf32>
    %55 = vector.shape_cast %54 : vector<2x16x16x128xf32> to vector<512x128xf32>
    %56 = arith.truncf %55 : vector<512x128xf32> to vector<512x128xbf16>
    %c2_56 = arith.constant 2 : index
    %c0_57 = arith.constant 0 : index
    %c0_58 = arith.constant 0 : index
    %57 = vector.load %arg4[%c2_56, %c0_57, %c0_58] : memref<9x128x128xbf16, #tpu.memory_space<vmem>>, vector<1x128x128xbf16>
    %58 = vector.shape_cast %57 : vector<1x128x128xbf16> to vector<128x128xbf16>
    %cst_59 = arith.constant dense<0.000000e+00> : vector<512x128xf32>
    %59 = tpu.matmul %56, %58, %cst_59 {dimension_numbers = #tpu.dot_dimension_numbers<[1], [0], [0], [1], [0, 0, 1, 1], [], []>} : vector<512x128xbf16>, vector<128x128xbf16>, vector<512x128xf32> -> vector<512x128xf32>
    %60 = arith.addf %53, %59 : vector<512x128xf32>
    %c0_60 = arith.constant 0 : index
    %c1_61 = arith.constant 1 : index
    %c0_62 = arith.constant 0 : index
    %c0_63 = arith.constant 0 : index
    %61 = vector.load %arg11[%c0_60, %c1_61, %c0_62, %c0_63] : memref<2x18x24x128xf32, #tpu.memory_space<vmem>>, vector<2x16x16x128xf32>
    %62 = vector.shape_cast %61 : vector<2x16x16x128xf32> to vector<512x128xf32>
    %63 = arith.truncf %62 : vector<512x128xf32> to vector<512x128xbf16>
    %c3 = arith.constant 3 : index
    %c0_64 = arith.constant 0 : index
    %c0_65 = arith.constant 0 : index
    %64 = vector.load %arg4[%c3, %c0_64, %c0_65] : memref<9x128x128xbf16, #tpu.memory_space<vmem>>, vector<1x128x128xbf16>
    %65 = vector.shape_cast %64 : vector<1x128x128xbf16> to vector<128x128xbf16>
    %cst_66 = arith.constant dense<0.000000e+00> : vector<512x128xf32>
    %66 = tpu.matmul %63, %65, %cst_66 {dimension_numbers = #tpu.dot_dimension_numbers<[1], [0], [0], [1], [0, 0, 1, 1], [], []>} : vector<512x128xbf16>, vector<128x128xbf16>, vector<512x128xf32> -> vector<512x128xf32>
    %67 = arith.addf %60, %66 : vector<512x128xf32>
    %c0_67 = arith.constant 0 : index
    %c1_68 = arith.constant 1 : index
    %c1_69 = arith.constant 1 : index
    %c0_70 = arith.constant 0 : index
    %68 = vector.load %arg11[%c0_67, %c1_68, %c1_69, %c0_70] : memref<2x18x24x128xf32, #tpu.memory_space<vmem>>, vector<2x16x16x128xf32>
    %69 = vector.shape_cast %68 : vector<2x16x16x128xf32> to vector<512x128xf32>
    %70 = arith.truncf %69 : vector<512x128xf32> to vector<512x128xbf16>
    %c4 = arith.constant 4 : index
    %c0_71 = arith.constant 0 : index
    %c0_72 = arith.constant 0 : index
    %71 = vector.load %arg4[%c4, %c0_71, %c0_72] : memref<9x128x128xbf16, #tpu.memory_space<vmem>>, vector<1x128x128xbf16>
    %72 = vector.shape_cast %71 : vector<1x128x128xbf16> to vector<128x128xbf16>
    %cst_73 = arith.constant dense<0.000000e+00> : vector<512x128xf32>
    %73 = tpu.matmul %70, %72, %cst_73 {dimension_numbers = #tpu.dot_dimension_numbers<[1], [0], [0], [1], [0, 0, 1, 1], [], []>} : vector<512x128xbf16>, vector<128x128xbf16>, vector<512x128xf32> -> vector<512x128xf32>
    %74 = arith.addf %67, %73 : vector<512x128xf32>
    %c0_74 = arith.constant 0 : index
    %c1_75 = arith.constant 1 : index
    %c2_76 = arith.constant 2 : index
    %c0_77 = arith.constant 0 : index
    %75 = vector.load %arg11[%c0_74, %c1_75, %c2_76, %c0_77] : memref<2x18x24x128xf32, #tpu.memory_space<vmem>>, vector<2x16x16x128xf32>
    %76 = vector.shape_cast %75 : vector<2x16x16x128xf32> to vector<512x128xf32>
    %77 = arith.truncf %76 : vector<512x128xf32> to vector<512x128xbf16>
    %c5 = arith.constant 5 : index
    %c0_78 = arith.constant 0 : index
    %c0_79 = arith.constant 0 : index
    %78 = vector.load %arg4[%c5, %c0_78, %c0_79] : memref<9x128x128xbf16, #tpu.memory_space<vmem>>, vector<1x128x128xbf16>
    %79 = vector.shape_cast %78 : vector<1x128x128xbf16> to vector<128x128xbf16>
    %cst_80 = arith.constant dense<0.000000e+00> : vector<512x128xf32>
    %80 = tpu.matmul %77, %79, %cst_80 {dimension_numbers = #tpu.dot_dimension_numbers<[1], [0], [0], [1], [0, 0, 1, 1], [], []>} : vector<512x128xbf16>, vector<128x128xbf16>, vector<512x128xf32> -> vector<512x128xf32>
    %81 = arith.addf %74, %80 : vector<512x128xf32>
    %c0_81 = arith.constant 0 : index
    %c2_82 = arith.constant 2 : index
    %c0_83 = arith.constant 0 : index
    %c0_84 = arith.constant 0 : index
    %82 = vector.load %arg11[%c0_81, %c2_82, %c0_83, %c0_84] : memref<2x18x24x128xf32, #tpu.memory_space<vmem>>, vector<2x16x16x128xf32>
    %83 = vector.shape_cast %82 : vector<2x16x16x128xf32> to vector<512x128xf32>
    %84 = arith.truncf %83 : vector<512x128xf32> to vector<512x128xbf16>
    %c6 = arith.constant 6 : index
    %c0_85 = arith.constant 0 : index
    %c0_86 = arith.constant 0 : index
    %85 = vector.load %arg4[%c6, %c0_85, %c0_86] : memref<9x128x128xbf16, #tpu.memory_space<vmem>>, vector<1x128x128xbf16>
    %86 = vector.shape_cast %85 : vector<1x128x128xbf16> to vector<128x128xbf16>
    %cst_87 = arith.constant dense<0.000000e+00> : vector<512x128xf32>
    %87 = tpu.matmul %84, %86, %cst_87 {dimension_numbers = #tpu.dot_dimension_numbers<[1], [0], [0], [1], [0, 0, 1, 1], [], []>} : vector<512x128xbf16>, vector<128x128xbf16>, vector<512x128xf32> -> vector<512x128xf32>
    %88 = arith.addf %81, %87 : vector<512x128xf32>
    %c0_88 = arith.constant 0 : index
    %c2_89 = arith.constant 2 : index
    %c1_90 = arith.constant 1 : index
    %c0_91 = arith.constant 0 : index
    %89 = vector.load %arg11[%c0_88, %c2_89, %c1_90, %c0_91] : memref<2x18x24x128xf32, #tpu.memory_space<vmem>>, vector<2x16x16x128xf32>
    %90 = vector.shape_cast %89 : vector<2x16x16x128xf32> to vector<512x128xf32>
    %91 = arith.truncf %90 : vector<512x128xf32> to vector<512x128xbf16>
    %c7 = arith.constant 7 : index
    %c0_92 = arith.constant 0 : index
    %c0_93 = arith.constant 0 : index
    %92 = vector.load %arg4[%c7, %c0_92, %c0_93] : memref<9x128x128xbf16, #tpu.memory_space<vmem>>, vector<1x128x128xbf16>
    %93 = vector.shape_cast %92 : vector<1x128x128xbf16> to vector<128x128xbf16>
    %cst_94 = arith.constant dense<0.000000e+00> : vector<512x128xf32>
    %94 = tpu.matmul %91, %93, %cst_94 {dimension_numbers = #tpu.dot_dimension_numbers<[1], [0], [0], [1], [0, 0, 1, 1], [], []>} : vector<512x128xbf16>, vector<128x128xbf16>, vector<512x128xf32> -> vector<512x128xf32>
    %95 = arith.addf %88, %94 : vector<512x128xf32>
    %c0_95 = arith.constant 0 : index
    %c2_96 = arith.constant 2 : index
    %c2_97 = arith.constant 2 : index
    %c0_98 = arith.constant 0 : index
    %96 = vector.load %arg11[%c0_95, %c2_96, %c2_97, %c0_98] : memref<2x18x24x128xf32, #tpu.memory_space<vmem>>, vector<2x16x16x128xf32>
    %97 = vector.shape_cast %96 : vector<2x16x16x128xf32> to vector<512x128xf32>
    %98 = arith.truncf %97 : vector<512x128xf32> to vector<512x128xbf16>
    %c8 = arith.constant 8 : index
    %c0_99 = arith.constant 0 : index
    %c0_100 = arith.constant 0 : index
    %99 = vector.load %arg4[%c8, %c0_99, %c0_100] : memref<9x128x128xbf16, #tpu.memory_space<vmem>>, vector<1x128x128xbf16>
    %100 = vector.shape_cast %99 : vector<1x128x128xbf16> to vector<128x128xbf16>
    %cst_101 = arith.constant dense<0.000000e+00> : vector<512x128xf32>
    %101 = tpu.matmul %98, %100, %cst_101 {dimension_numbers = #tpu.dot_dimension_numbers<[1], [0], [0], [1], [0, 0, 1, 1], [], []>} : vector<512x128xbf16>, vector<128x128xbf16>, vector<512x128xf32> -> vector<512x128xf32>
    %102 = arith.addf %95, %101 : vector<512x128xf32>
    %c0_102 = arith.constant 0 : index
    %c0_103 = arith.constant 0 : index
    %103 = vector.load %arg5[%c0_102, %c0_103] : memref<1x128xf32, #tpu.memory_space<vmem>>, vector<1x128xf32>
    %c0_104 = arith.constant 0 : index
    %c0_105 = arith.constant 0 : index
    %104 = vector.load %arg6[%c0_104, %c0_105] : memref<1x128xf32, #tpu.memory_space<vmem>>, vector<1x128xf32>
    %cst_106 = arith.constant dense<0.000000e+00> : vector<128xf32>
    %105 = vector.multi_reduction <add>, %102, %cst_106 [0] : vector<512x128xf32> to vector<128xf32>
    %106 = vector.shape_cast %105 : vector<128xf32> to vector<1x128xf32>
    %107 = arith.mulf %102, %102 : vector<512x128xf32>
    %cst_107 = arith.constant dense<0.000000e+00> : vector<128xf32>
    %108 = vector.multi_reduction <add>, %107, %cst_107 [0] : vector<512x128xf32> to vector<128xf32>
    %109 = vector.shape_cast %108 : vector<128xf32> to vector<1x128xf32>
    %cst_108 = arith.constant 0.001953125 : f32
    %110 = vector.broadcast %cst_108 : f32 to vector<1x128xf32>
    %111 = arith.mulf %106, %110 : vector<1x128xf32>
    %cst_109 = arith.constant 0.001953125 : f32
    %112 = vector.broadcast %cst_109 : f32 to vector<1x128xf32>
    %113 = arith.mulf %109, %112 : vector<1x128xf32>
    %114 = arith.mulf %111, %111 : vector<1x128xf32>
    %115 = arith.subf %113, %114 : vector<1x128xf32>
    %cst_110 = arith.constant 9.99999974E-6 : f32
    %116 = vector.broadcast %cst_110 : f32 to vector<1x128xf32>
    %117 = arith.addf %115, %116 : vector<1x128xf32>
    %118 = math.rsqrt %117 : vector<1x128xf32>
    %119 = arith.mulf %118, %103 : vector<1x128xf32>
    %120 = vector.broadcast %111 : vector<1x128xf32> to vector<512x128xf32>
    %121 = arith.subf %102, %120 : vector<512x128xf32>
    %122 = vector.broadcast %119 : vector<1x128xf32> to vector<512x128xf32>
    %123 = arith.mulf %121, %122 : vector<512x128xf32>
    %124 = vector.broadcast %104 : vector<1x128xf32> to vector<512x128xf32>
    %125 = arith.addf %123, %124 : vector<512x128xf32>
    %cst_111 = arith.constant 0.000000e+00 : f32
    %126 = vector.broadcast %cst_111 : f32 to vector<512x128xf32>
    %127 = arith.maximumf %125, %126 : vector<512x128xf32>
    %128 = arith.truncf %127 : vector<512x128xf32> to vector<512x128xbf16>
    %c0_112 = arith.constant 0 : index
    %c0_113 = arith.constant 0 : index
    %129 = vector.load %arg7[%c0_112, %c0_113] : memref<128x32xbf16, #tpu.memory_space<vmem>>, vector<128x32xbf16>
    %cst_114 = arith.constant dense<0.000000e+00> : vector<512x32xf32>
    %130 = tpu.matmul %128, %129, %cst_114 {dimension_numbers = #tpu.dot_dimension_numbers<[1], [0], [0], [1], [0, 0, 1, 1], [], []>} : vector<512x128xbf16>, vector<128x32xbf16>, vector<512x32xf32> -> vector<512x32xf32>
    %c0_115 = arith.constant 0 : index
    %c0_116 = arith.constant 0 : index
    %131 = vector.load %arg8[%c0_115, %c0_116] : memref<1x32xf32, #tpu.memory_space<vmem>>, vector<1x32xf32>
    %c0_117 = arith.constant 0 : index
    %c0_118 = arith.constant 0 : index
    %132 = vector.load %arg9[%c0_117, %c0_118] : memref<1x32xf32, #tpu.memory_space<vmem>>, vector<1x32xf32>
    %cst_119 = arith.constant dense<0.000000e+00> : vector<32xf32>
    %133 = vector.multi_reduction <add>, %130, %cst_119 [0] : vector<512x32xf32> to vector<32xf32>
    %134 = vector.shape_cast %133 : vector<32xf32> to vector<1x32xf32>
    %135 = arith.mulf %130, %130 : vector<512x32xf32>
    %cst_120 = arith.constant dense<0.000000e+00> : vector<32xf32>
    %136 = vector.multi_reduction <add>, %135, %cst_120 [0] : vector<512x32xf32> to vector<32xf32>
    %137 = vector.shape_cast %136 : vector<32xf32> to vector<1x32xf32>
    %cst_121 = arith.constant 0.001953125 : f32
    %138 = vector.broadcast %cst_121 : f32 to vector<1x32xf32>
    %139 = arith.mulf %134, %138 : vector<1x32xf32>
    %cst_122 = arith.constant 0.001953125 : f32
    %140 = vector.broadcast %cst_122 : f32 to vector<1x32xf32>
    %141 = arith.mulf %137, %140 : vector<1x32xf32>
    %142 = arith.mulf %139, %139 : vector<1x32xf32>
    %143 = arith.subf %141, %142 : vector<1x32xf32>
    %cst_123 = arith.constant 9.99999974E-6 : f32
    %144 = vector.broadcast %cst_123 : f32 to vector<1x32xf32>
    %145 = arith.addf %143, %144 : vector<1x32xf32>
    %146 = math.rsqrt %145 : vector<1x32xf32>
    %147 = arith.mulf %146, %131 : vector<1x32xf32>
    %148 = vector.broadcast %139 : vector<1x32xf32> to vector<512x32xf32>
    %149 = arith.subf %130, %148 : vector<512x32xf32>
    %150 = vector.broadcast %147 : vector<1x32xf32> to vector<512x32xf32>
    %151 = arith.mulf %149, %150 : vector<512x32xf32>
    %152 = vector.broadcast %132 : vector<1x32xf32> to vector<512x32xf32>
    %153 = arith.addf %151, %152 : vector<512x32xf32>
    %cst_124 = arith.constant 0.000000e+00 : f32
    %154 = vector.broadcast %cst_124 : f32 to vector<512x32xf32>
    %155 = arith.maximumf %153, %154 : vector<512x32xf32>
    %156 = arith.addf %155, %1 : vector<512x32xf32>
    %cst_125 = arith.constant 0.000000e+00 : f32
    %157 = vector.broadcast %cst_125 : f32 to vector<512x32xf32>
    %158 = arith.maximumf %156, %157 : vector<512x32xf32>
    %159 = vector.shape_cast %158 : vector<512x32xf32> to vector<2x16x16x32xf32>
    %c0_126 = arith.constant 0 : index
    %c0_127 = arith.constant 0 : index
    %c0_128 = arith.constant 0 : index
    %c0_129 = arith.constant 0 : index
    %160 = vector.load %arg10[%c0_126, %c0_127, %c0_128, %c0_129] : memref<2x16x16x32xf32, #tpu.memory_space<vmem>>, vector<2x16x16x32xf32>
    tpu.vector_store %arg10[%c0_126, %c0_127, %c0_128, %c0_129], %159 {strides = array<i32>} : memref<2x16x16x32xf32, #tpu.memory_space<vmem>>, vector<2x16x16x32xf32>,
    return
  }
}

</mosaic_0001>

<bundles_post_ra>
// kernel: tpu_custom_call.1
= control target key start
LH: loop header
LB: loop body
LE: loop exit
PB: predicated region body
PF: predicated region fallthrough
CT: control target
= control target key end

     0   :  { %15 = vsyncpa [#allocation4], 0  ;;  %s14401_s0 = inlined_call_operand.hbm [shape: f32[2,16,16,32], index: 0, kind: input, shape index: {}]   ;;  %s14402_s1 = inlined_call_operand.vmem [shape: bf16[32,128], index: 1, kind: input, shape index: {}]   ;;  %s14403_s2 = inlined_call_operand.vmem [shape: f32[1,128], index: 2, kind: input, shape index: {}]   ;;  %s14404_s3 = inlined_call_operand.vmem [shape: f32[1,128], index: 3, kind: input, shape index: {}]   ;;  %s14405_s4 = inlined_call_operand.hbm [shape: bf16[9,128,128], index: 4, kind: input, shape index: {}]   ;;  %s14406_s5 = inlined_call_operand.vmem [shape: f32[1,128], index: 5, kind: input, shape index: {}]   ;;  %s14407_s6 = inlined_call_operand.vmem [shape: f32[1,128], index: 6, kind: input, shape index: {}]   ;;  %s14408_s7 = inlined_call_operand.vmem [shape: bf16[128,32], index: 7, kind: input, shape index: {}]   ;;  %s14409_s8 = inlined_call_operand.vmem [shape: f32[1,32], index: 8, kind: input, shape index: {}]   ;;  %s14410_s9 = inlined_call_operand.vmem [shape: f32[1,32], index: 9, kind: input, shape index: {}]   ;;  %s14411_s10 = inlined_call_operand.hbm [shape: f32[2,16,16,32], index: 10, kind: output, shape index: {}]  }
   0x1   :  { %16 = vsyncpa [#allocation7], 0 }
   0x2   :  { %17 = vsyncpa [#allocation5], 0  ;;  %s9545_s13 = smov [#allocation3]   ;;  %s9473_s17 = scalar_lea.hbm %s14401_s0, 8192 }
   0x3   :  { %s23_s14 = sshll.u32 %s9545_s13, 4  ;;  %p9474_p0 = scmp.ne.s32.totalorder %s14401_s0, %s9473_s17  ;;  %s24_s14 = int_to_ptr.vmem [resolvable:$true] %s23_s14 }
   0x4   :  { %p9477_p1 = scmp.lt.u32.totalorder %s9473_s17, %s14401_s0 }
   0x6   :  { %p9479_p2 = pnand %p9477_p1, %p9474_p0 }
   0x8   :  { %9482 = shalt.err (!%p9479_p2)
}
   0x9   :  { %s9483_s22 = scalar_lea.vmem %s24_s14, 8192  ;;  %p9488_p4 = scmp.lt.s32.totalorder %s24_s14, %s24_s14 }
   0xa   :  { %p9484_p3 = scmp.ne.s32.totalorder %s24_s14, %s9483_s22  ;;  %p9489_p5 = scmp.lt.s32.totalorder %s9483_s22, %s9483_s22 }
   0xc   :  { %p9490_p6 = por %p9489_p5, %p9488_p4 }
   0xe   :  { %p9491_p7 = pnand %p9490_p6, %p9484_p3 }
  0x10   :  { %9494 = shalt.err (!%p9491_p7)
}
  0x11   :  { %s9546_s23 = smov 128   ;;  %s9547_s24 = smov 8  }
  0x12   :  { %29 = dma.hbm_to_vmem [thread:$0]  %s14401_s0, 8192, %s24_s14, [#allocation4], %s9546_s23, %s9546_s23, %s9547_s24  }
  0x13   :  { %s9548_s27 = smov [#allocation6]   ;;  %s9495_s11 = scalar_lea.hbm %s14405_s4, 9216 }
  0x14   :  { %s41_s28 = sshll.u32 %s9548_s27, 4  ;;  %p9496_p8 = scmp.ne.s32.totalorder %s14405_s4, %s9495_s11  ;;  %s42_s28 = int_to_ptr.vmem [resolvable:$true] %s41_s28 }
  0x15   :  { %p9499_p9 = scmp.lt.u32.totalorder %s9495_s11, %s14405_s4 }
  0x17   :  { %p9501_p10 = pnand %p9499_p9, %p9496_p8 }
  0x19   :  { %9504 = shalt.err (!%p9501_p10)
}
  0x1a   :  { %s9505_s17 = scalar_lea.vmem %s42_s28, 9216  ;;  %p9510_p12 = scmp.lt.s32.totalorder %s42_s28, %s42_s28 }
  0x1b   :  { %p9506_p11 = scmp.ne.s32.totalorder %s42_s28, %s9505_s17  ;;  %p9511_p13 = scmp.lt.s32.totalorder %s9505_s17, %s9505_s17 }
  0x1d   :  { %p9512_p0 = por %p9511_p13, %p9510_p12 }
  0x1f   :  { %p9513_p1 = pnand %p9512_p0, %p9506_p11 }
  0x21   :  { %9516 = shalt.err (!%p9513_p1)
}
  0x22   :  { %s9549_s0 = smov 64   ;;  %s9550_s14 = smov 4  }
  0x23   :  { %47 = dma.hbm_to_vmem [thread:$0]  %s14405_s4, 9216, %s42_s28, [#allocation7], %s9549_s0, %s9549_s0, %s9550_s14  }
  0x24   :  { %9539 = dma.done.wait [#allocation4], 8192  }
  0x25   :  { %9540 = vsyncadd [#allocation4], 4294959104 }
  0x26   :  { %9541 = dma.done.wait [#allocation7], 9216  }
  0x27   :  { %9542 = vsyncadd [#allocation7], 4294958080  ;;  %v9312_v0 = vld [vmem:[%s14402_s1] sm:$0xff]   ;;  %v9313_v1 = vld [vmem:[%s14402_s1 + $0x8] sm:$0xff]   ;;  %vm177_vm0 = vcmask 261120  }
  0x28   :  { %7908 = vmatprep.subr.bf16.mxu0 %v9312_v0  ;;  %v65_v2 = vld [vmem:[#allocation3] sm:$0xff]  ;;  %v66_v3 = vld [vmem:[#allocation3 + $0x8] sm:$0xff]  ;;  %v67_v5 = vld [vmem:[#allocation3 + $0x10] sm:$0xff] }
  0x29   :  { %7909 = vmatpush3.bf16.msra.mxu0 %v9312_v0  ;;  %v129_v4 = vpack.c.bf16 %v66_v3, %v65_v2  ;;  %v68_v6 = vld [vmem:[#allocation3 + $0x18] sm:$0xff]  ;;  %v69_v7 = vld [vmem:[#allocation3 + $0x20] sm:$0xff]  ;;  %v70_v8 = vld [vmem:[#allocation3 + $0x28] sm:$0xff] }
  0x2a   :  { %7910 = vmatprep.subr.bf16.mxu0 %v9313_v1  ;;  %v130_v9 = vpack.c.bf16 %v68_v6, %v67_v5  ;;  %v131_v10 = vpack.c.bf16 %v70_v8, %v69_v7  ;;  %v71_v11 = vld [vmem:[#allocation3 + $0x30] sm:$0xff]  ;;  %v72_v12 = vld [vmem:[#allocation3 + $0x38] sm:$0xff]  ;;  %v73_v13 = vld [vmem:[#allocation3 + $0x40] sm:$0xff] }
  0x2b   :  { %7912 = vmatprep.mubr.msk.bf16.mxu0 %vm177_vm0, %v129_v4  ;;  %v74_v14 = vld [vmem:[#allocation3 + $0x48] sm:$0xff]  ;;  %v132_v15 = vpack.c.bf16 %v72_v12, %v71_v11  ;;  %v75_v17 = vld [vmem:[#allocation3 + $0x50] sm:$0xff]  ;;  %v76_v18 = vld [vmem:[#allocation3 + $0x58] sm:$0xff] }
  0x2c   :  { %v133_v16 = vpack.c.bf16 %v74_v14, %v73_v13  ;;  %v77_v19 = vld [vmem:[#allocation3 + $0x60] sm:$0xff]  ;;  %v78_v20 = vld [vmem:[#allocation3 + $0x68] sm:$0xff]  ;;  %v134_v21 = vpack.c.bf16 %v76_v18, %v75_v17  ;;  %v79_v23 = vld [vmem:[#allocation3 + $0x70] sm:$0xff] }
  0x2d   :  { %7911 = vmatpush3.bf16.msra.mxu0 %v9313_v1  ;;  %v135_v22 = vpack.c.bf16 %v78_v20, %v77_v19  ;;  %v80_v24 = vld [vmem:[#allocation3 + $0x78] sm:$0xff]  ;;  %v81_v25 = vld [vmem:[#allocation3 + $0x80] sm:$0xff]  ;;  %v82_v26 = vld [vmem:[#allocation3 + $0x88] sm:$0xff] }
  0x2e   :  { %v136_v27 = vpack.c.bf16 %v80_v24, %v79_v23  ;;  %v137_v28 = vpack.c.bf16 %v82_v26, %v81_v25  ;;  %v83_v29 = vld [vmem:[#allocation3 + $0x90] sm:$0xff]  ;;  %v84_v30 = vld [vmem:[#allocation3 + $0x98] sm:$0xff]  ;;  %v85_v31 = vld [vmem:[#allocation3 + $0xa0] sm:$0xff] }
  0x2f   :  { %v86_v32 = vld [vmem:[#allocation3 + $0xa8] sm:$0xff]  ;;  %v138_v33 = vpack.c.bf16 %v84_v30, %v83_v29  ;;  %v87_v35 = vld [vmem:[#allocation3 + $0xb0] sm:$0xff]  ;;  %v88_v36 = vld [vmem:[#allocation3 + $0xb8] sm:$0xff] }
  0x30   :  { %7913 = vmatmul.mubr.msk.bf16.vlgmr.msra.gmra.mrb[0].mxu0 %vm177_vm0, %v130_v9  ;;  %v139_v34 = vpack.c.bf16 %v86_v32, %v85_v31  ;;  %v89_v37 = vld [vmem:[#allocation3 + $0xc0] sm:$0xff]  ;;  %v90_v38 = vld [vmem:[#allocation3 + $0xc8] sm:$0xff]  ;;  %v140_v39 = vpack.c.bf16 %v88_v36, %v87_v35  ;;  %v91_v41 = vld [vmem:[#allocation3 + $0xd0] sm:$0xff] }
  0x31   :  { %7916 = vmatprep.mubr.msk.bf16.mxu0 %vm177_vm0, %v131_v10  ;;  %v141_v40 = vpack.c.bf16 %v90_v38, %v89_v37  ;;  %v92_v42 = vld [vmem:[#allocation3 + $0xd8] sm:$0xff]  ;;  %v93_v43 = vld [vmem:[#allocation3 + $0xe0] sm:$0xff]  ;;  %v94_v44 = vld [vmem:[#allocation3 + $0xe8] sm:$0xff] }
  0x32   :  { %v142_v45 = vpack.c.bf16 %v92_v42, %v91_v41  ;;  %v143_v46 = vpack.c.bf16 %v94_v44, %v93_v43  ;;  %v95_v47 = vld [vmem:[#allocation3 + $0xf0] sm:$0xff]  ;;  %v96_v48 = vld [vmem:[#allocation3 + $0xf8] sm:$0xff]  ;;  %v97_v49 = vld [vmem:[#allocation3 + $0x100] sm:$0xff] }
  0x33   :  { %v98_v50 = vld [vmem:[#allocation3 + $0x108] sm:$0xff]  ;;  %v144_v51 = vpack.c.bf16 %v96_v48, %v95_v47  ;;  %v99_v53 = vld [vmem:[#allocation3 + $0x110] sm:$0xff]  ;;  %v100_v54 = vld [vmem:[#allocation3 + $0x118] sm:$0xff] }
  0x34   :  { %v145_v52 = vpack.c.bf16 %v98_v50, %v97_v49  ;;  %v101_v55 = vld [vmem:[#allocation3 + $0x120] sm:$0xff]  ;;  %v102_v56 = vld [vmem:[#allocation3 + $0x128] sm:$0xff]  ;;  %v146_v57 = vpack.c.bf16 %v100_v54, %v99_v53  ;;  %v103_v59 = vld [vmem:[#allocation3 + $0x130] sm:$0xff] }
  0x35   :  { %v147_v58 = vpack.c.bf16 %v102_v56, %v101_v55  ;;  %v104_v60 = vld [vmem:[#allocation3 + $0x138] sm:$0xff]  ;;  %v105_v61 = vld [vmem:[#allocation3 + $0x140] sm:$0xff]  ;;  %v106_v62 = vld [vmem:[#allocation3 + $0x148] sm:$0xff] }
  0x36   :  { %v148_v63 = vpack.c.bf16 %v104_v60, %v103_v59  ;;  %v149_v0 = vpack.c.bf16 %v106_v62, %v105_v61  ;;  %v107_v1 = vld [vmem:[#allocation3 + $0x150] sm:$0xff]  ;;  %v108_v2 = vld [vmem:[#allocation3 + $0x158] sm:$0xff]  ;;  %v109_v3 = vld [vmem:[#allocation3 + $0x160] sm:$0xff] }
  0x37   :  { %v110_v4 = vld [vmem:[#allocation3 + $0x168] sm:$0xff]  ;;  %v150_v5 = vpack.c.bf16 %v108_v2, %v107_v1  ;;  %v111_v7 = vld [vmem:[#allocation3 + $0x170] sm:$0xff]  ;;  %v112_v8 = vld [vmem:[#allocation3 + $0x178] sm:$0xff] }
  0x38   :  { %7917 = vmatmul.mubr.msk.bf16.gmra.mrb[4].mxu0 %vm177_vm0, %v132_v15  ;;  %v151_v6 = vpack.c.bf16 %v110_v4, %v109_v3  ;;  %v113_v9 = vld [vmem:[#allocation3 + $0x180] sm:$0xff]  ;;  %v114_v10 = vld [vmem:[#allocation3 + $0x188] sm:$0xff]  ;;  %v152_v11 = vpack.c.bf16 %v112_v8, %v111_v7  ;;  %v115_v13 = vld [vmem:[#allocation3 + $0x190] sm:$0xff] }
  0x39   :  { %7920 = vmatprep.mubr.msk.bf16.mxu0 %vm177_vm0, %v133_v16  ;;  %v153_v12 = vpack.c.bf16 %v114_v10, %v113_v9  ;;  %v116_v14 = vld [vmem:[#allocation3 + $0x198] sm:$0xff]  ;;  %v117_v15 = vld [vmem:[#allocation3 + $0x1a0] sm:$0xff]  ;;  %v118_v16 = vld [vmem:[#allocation3 + $0x1a8] sm:$0xff] }
  0x3a   :  { %v154_v17 = vpack.c.bf16 %v116_v14, %v115_v13  ;;  %v155_v18 = vpack.c.bf16 %v118_v16, %v117_v15  ;;  %v119_v19 = vld [vmem:[#allocation3 + $0x1b0] sm:$0xff]  ;;  %v120_v20 = vld [vmem:[#allocation3 + $0x1b8] sm:$0xff] }
  0x3b   :  { %v156_v23 = vpack.c.bf16 %v120_v20, %v119_v19  ;;  %v123_v25 = vld [vmem:[#allocation3 + $0x1d0] sm:$0xff]  ;;  %v124_v26 = vld [vmem:[#allocation3 + $0x1d8] sm:$0xff] }
  0x3c   :  { %v158_v29 = vpack.c.bf16 %v124_v26, %v123_v25  ;;  %v127_v31 = vld [vmem:[#allocation3 + $0x1f0] sm:$0xff]  ;;  %v128_v32 = vld [vmem:[#allocation3 + $0x1f8] sm:$0xff] }
  0x40   :  { %7921 = vmatmul.mubr.msk.bf16.gmra.mrb[8].mxu0 %vm177_vm0, %v134_v21  ;;  %v121_v21 = vld [vmem:[#allocation3 + $0x1c0] sm:$0xff] }
  0x41   :  { %7924 = vmatprep.mubr.msk.bf16.mxu0 %vm177_vm0, %v135_v22  ;;  %v122_v22 = vld [vmem:[#allocation3 + $0x1c8] sm:$0xff] }
  0x42   :  { %v157_v24 = vpack.c.bf16 %v122_v22, %v121_v21 }
  0x48   :  { %7925 = vmatmul.mubr.msk.bf16.gmra.mrb[12].mxu0 %vm177_vm0, %v136_v27  ;;  %v125_v27 = vld [vmem:[#allocation3 + $0x1e0] sm:$0xff] }
  0x49   :  { %7928 = vmatprep.mubr.msk.bf16.mxu0 %vm177_vm0, %v137_v28  ;;  %v126_v28 = vld [vmem:[#allocation3 + $0x1e8] sm:$0xff] }
  0x4a   :  { %v159_v30 = vpack.c.bf16 %v126_v28, %v125_v27 }
  0x50   :  { %7929 = vmatmul.mubr.msk.bf16.gmra.mrb[16].mxu0 %vm177_vm0, %v138_v33  ;;  %v160_v33 = vpack.c.bf16 %v128_v32, %v127_v31 }
  0x51   :  { %7932 = vmatprep.mubr.msk.bf16.mxu0 %vm177_vm0, %v139_v34 }
  0x58   :  { %7933 = vmatmul.mubr.msk.bf16.gmra.mrb[20].mxu0 %vm177_vm0, %v140_v39 }
  0x59   :  { %7936 = vmatprep.mubr.msk.bf16.mxu0 %vm177_vm0, %v141_v40 }
  0x60   :  { %7937 = vmatmul.mubr.msk.bf16.gmra.mrb[24].mxu0 %vm177_vm0, %v142_v45 }
  0x61   :  { %7940 = vmatprep.mubr.msk.bf16.mxu0 %vm177_vm0, %v143_v46 }
  0x68   :  { %7941 = vmatmul.mubr.msk.bf16.gmra.mrb[28].mxu0 %vm177_vm0, %v144_v51 }
  0x69   :  { %7944 = vmatprep.mubr.msk.bf16.mxu0 %vm177_vm0, %v145_v52 }
  0x70   :  { %7945 = vmatmul.mubr.msk.bf16.gmra.mrb[32].mxu0 %vm177_vm0, %v146_v57 }
  0x71   :  { %7948 = vmatprep.mubr.msk.bf16.mxu0 %vm177_vm0, %v147_v58 }
  0x78   :  { %7949 = vmatmul.mubr.msk.bf16.gmra.mrb[36].mxu0 %vm177_vm0, %v148_v63 }
  0x79   :  { %7952 = vmatprep.mubr.msk.bf16.mxu0 %vm177_vm0, %v149_v0 }
  0x80   :  { %7953 = vmatmul.mubr.msk.bf16.gmra.mrb[40].mxu0 %vm177_vm0, %v150_v5 }
  0x81   :  { %7956 = vmatprep.mubr.msk.bf16.mxu0 %vm177_vm0, %v151_v6 }
  0x88   :  { %7957 = vmatmul.mubr.msk.bf16.gmra.mrb[44].mxu0 %vm177_vm0, %v152_v11 }
  0x89   :  { %7960 = vmatprep.mubr.msk.bf16.mxu0 %vm177_vm0, %v153_v12 }
  0x90   :  { %7961 = vmatmul.mubr.msk.bf16.gmra.mrb[48].mxu0 %vm177_vm0, %v154_v17 }
  0x91   :  { %7964 = vmatprep.mubr.msk.bf16.mxu0 %vm177_vm0, %v155_v18 }
  0x98   :  { %7965 = vmatmul.mubr.msk.bf16.gmra.mrb[52].mxu0 %vm177_vm0, %v156_v23 }
  0x99   :  { %7968 = vmatprep.mubr.msk.bf16.mxu0 %vm177_vm0, %v157_v24 }
  0xa0   :  { %7969 = vmatmul.mubr.msk.bf16.gmra.mrb[56].mxu0 %vm177_vm0, %v158_v29 }
  0xa1   :  { %7972 = vmatprep.mubr.msk.bf16.mxu0 %vm177_vm0, %v159_v30 }
  0xa8   :  { %7973 = vmatmul.mubr.msk.bf16.gmra.mrb[60].mxu0 %vm177_vm0, %v160_v33 }
 0x103   :  { %v9673_v34 = vpop.f32.mrb[0].mxu0 }
 0x104   :  { %v9675_v35 = vpop.f32.mrb[1].mxu0  ;;  %v636_v41 = vmul.f32 %v9673_v34, %v9673_v34 }
 0x105   :  { %v9677_v36 = vpop.f32.mrb[2].mxu0  ;;  %v634_v38 = vmul.f32 %v9675_v35, %v9675_v35 }
 0x106   :  { %v9679_v37 = vpop.f32.mrb[3].mxu0  ;;  %v637_v44 = vmul.f32 %v9677_v36, %v9677_v36 }
 0x107   :  { %v565_v39 = vadd.f32 %v9679_v37, %v9675_v35  ;;  %v635_v40 = vmul.f32 %v9679_v37, %v9679_v37 }
 0x109   :  { %v566_v42 = vadd.f32 %v9673_v34, %v565_v39  ;;  %v698_v43 = vadd.f32 %v635_v40, %v634_v38 }
 0x10b   :  { %v699_v45 = vadd.f32 %v698_v43, %v636_v41  ;;  %v9692_v46 = vpop.f32.mrb[4].mxu0  ;;  %v567_v47 = vadd.f32 %v9677_v36, %v566_v42 }
 0x10c   :  { %v9695_v48 = vpop.f32.mrb[5].mxu0  ;;  %v640_v57 = vmul.f32 %v9692_v46, %v9692_v46 }
 0x10d   :  { %v568_v49 = vadd.f32 %v567_v47, %v9695_v48  ;;  %v638_v50 = vmul.f32 %v9695_v48, %v9695_v48  ;;  %v700_v51 = vadd.f32 %v699_v45, %v637_v44  ;;  %v9700_v52 = vpop.f32.mrb[6].mxu0 }
 0x10e   :  { %v9702_v53 = vpop.f32.mrb[7].mxu0  ;;  %v641_v60 = vmul.f32 %v9700_v52, %v9700_v52 }
 0x10f   :  { %v701_v54 = vadd.f32 %v700_v51, %v638_v50  ;;  %v569_v55 = vadd.f32 %v568_v49, %v9702_v53  ;;  %v639_v56 = vmul.f32 %v9702_v53, %v9702_v53 }
 0x111   :  { %v570_v58 = vadd.f32 %v9692_v46, %v569_v55  ;;  %v702_v59 = vadd.f32 %v701_v54, %v639_v56 }
 0x113   :  { %v703_v61 = vadd.f32 %v702_v59, %v640_v57  ;;  %v9712_v62 = vpop.f32.mrb[8].mxu0  ;;  %v571_v63 = vadd.f32 %v9700_v52, %v570_v58 }
 0x114   :  { %v9715_v0 = vpop.f32.mrb[9].mxu0  ;;  %v644_v9 = vmul.f32 %v9712_v62, %v9712_v62 }
 0x115   :  { %v572_v1 = vadd.f32 %v571_v63, %v9715_v0  ;;  %v642_v2 = vmul.f32 %v9715_v0, %v9715_v0  ;;  %v704_v3 = vadd.f32 %v703_v61, %v641_v60  ;;  %v9720_v4 = vpop.f32.mrb[10].mxu0 }
 0x116   :  { %v9722_v5 = vpop.f32.mrb[11].mxu0  ;;  %v645_v12 = vmul.f32 %v9720_v4, %v9720_v4 }
 0x117   :  { %v705_v6 = vadd.f32 %v704_v3, %v642_v2  ;;  %v573_v7 = vadd.f32 %v572_v1, %v9722_v5  ;;  %v643_v8 = vmul.f32 %v9722_v5, %v9722_v5 }
 0x119   :  { %v574_v10 = vadd.f32 %v9712_v62, %v573_v7  ;;  %v706_v11 = vadd.f32 %v705_v6, %v643_v8 }
 0x11b   :  { %v707_v13 = vadd.f32 %v706_v11, %v644_v9  ;;  %v9732_v14 = vpop.f32.mrb[12].mxu0  ;;  %v575_v15 = vadd.f32 %v9720_v4, %v574_v10 }
 0x11c   :  { %v9735_v16 = vpop.f32.mrb[13].mxu0  ;;  %v648_v25 = vmul.f32 %v9732_v14, %v9732_v14 }
 0x11d   :  { %v576_v17 = vadd.f32 %v575_v15, %v9735_v16  ;;  %v646_v18 = vmul.f32 %v9735_v16, %v9735_v16  ;;  %v708_v19 = vadd.f32 %v707_v13, %v645_v12  ;;  %v9740_v20 = vpop.f32.mrb[14].mxu0 }
 0x11e   :  { %v9742_v21 = vpop.f32.mrb[15].mxu0  ;;  %v649_v28 = vmul.f32 %v9740_v20, %v9740_v20 }
 0x11f   :  { %v709_v22 = vadd.f32 %v708_v19, %v646_v18  ;;  %v577_v23 = vadd.f32 %v576_v17, %v9742_v21  ;;  %v647_v24 = vmul.f32 %v9742_v21, %v9742_v21 }
 0x121   :  { %v578_v26 = vadd.f32 %v9732_v14, %v577_v23  ;;  %v710_v27 = vadd.f32 %v709_v22, %v647_v24 }
 0x123   :  { %v711_v29 = vadd.f32 %v710_v27, %v648_v25  ;;  %v9752_v30 = vpop.f32.mrb[16].mxu0  ;;  %v579_v31 = vadd.f32 %v9740_v20, %v578_v26 }
 0x124   :  { %v9755_v32 = vpop.f32.mrb[17].mxu0  ;;  %v652_v45 = vmul.f32 %v9752_v30, %v9752_v30 }
 0x125   :  { %v580_v33 = vadd.f32 %v579_v31, %v9755_v32  ;;  %v650_v38 = vmul.f32 %v9755_v32, %v9755_v32  ;;  %v712_v39 = vadd.f32 %v711_v29, %v649_v28  ;;  %v9760_v40 = vpop.f32.mrb[18].mxu0  ;;  %v9314_v28 = vld [vmem:[#allocation6 + $0x40] sm:$0xff]  }
 0x126   :  { %v9762_v41 = vpop.f32.mrb[19].mxu0  ;;  %v653_v50 = vmul.f32 %v9760_v40, %v9760_v40  ;;  %7976 = vmatprep.subr.bf16.mxu0 %v9314_v28 }
 0x127   :  { %v713_v42 = vadd.f32 %v712_v39, %v650_v38  ;;  %v581_v43 = vadd.f32 %v580_v33, %v9762_v41  ;;  %v651_v44 = vmul.f32 %v9762_v41, %v9762_v41  ;;  %7977 = vmatpush3.bf16.msra.mxu0 %v9314_v28 }
 0x129   :  { %v582_v47 = vadd.f32 %v9752_v30, %v581_v43  ;;  %v714_v49 = vadd.f32 %v713_v42, %v651_v44 }
 0x12b   :  { %v715_v51 = vadd.f32 %v714_v49, %v652_v45  ;;  %v9772_v54 = vpop.f32.mrb[20].mxu0  ;;  %v583_v55 = vadd.f32 %v9760_v40, %v582_v47  ;;  %v9316_v47 = vld [vmem:[#allocation6 + $0x48] sm:$0xff]  }
 0x12c   :  { %v9775_v56 = vpop.f32.mrb[21].mxu0  ;;  %v656_v3 = vmul.f32 %v9772_v54, %v9772_v54  ;;  %7978 = vmatprep.subr.bf16.mxu0 %v9316_v47 }
 0x12d   :  { %v584_v57 = vadd.f32 %v583_v55, %v9775_v56  ;;  %v654_v58 = vmul.f32 %v9775_v56, %v9775_v56  ;;  %v716_v59 = vadd.f32 %v715_v51, %v653_v50  ;;  %v9780_v60 = vpop.f32.mrb[22].mxu0  ;;  %7979 = vmatpush3.bf16.msra.mxu0 %v9316_v47 }
 0x12e   :  { %v9782_v61 = vpop.f32.mrb[23].mxu0  ;;  %v657_v8 = vmul.f32 %v9780_v60, %v9780_v60 }
 0x12f   :  { %v717_v63 = vadd.f32 %v716_v59, %v654_v58  ;;  %v585_v1 = vadd.f32 %v584_v57, %v9782_v61  ;;  %v655_v2 = vmul.f32 %v9782_v61, %v9782_v61 }
 0x131   :  { %v586_v6 = vadd.f32 %v9772_v54, %v585_v1  ;;  %v718_v7 = vadd.f32 %v717_v63, %v655_v2  ;;  %v9318_v63 = vld [vmem:[#allocation6 + $0x50] sm:$0xff]   ;;  %v9315_v1 = vld [vmem:[#allocation6 + $0xc0] sm:$0xff]  }
 0x132   :  { %7980 = vmatprep.subr.bf16.mxu0 %v9318_v63  ;;  %8776 = vmatprep.subr.bf16.mxu1 %v9315_v1 }
 0x133   :  { %v719_v9 = vadd.f32 %v718_v7, %v656_v3  ;;  %v9792_v10 = vpop.f32.mrb[24].mxu0  ;;  %v587_v11 = vadd.f32 %v9780_v60, %v586_v6  ;;  %7981 = vmatpush3.bf16.msra.mxu0 %v9318_v63  ;;  %8784 = vmatpush3.bf16.msra.mxu1 %v9315_v1  ;;  %v9864_v1 = vld [vmem:[#allocation6 + $0xd8] sm:$0xff]  }
 0x134   :  { %v9795_v12 = vpop.f32.mrb[25].mxu0  ;;  %v660_v25 = vmul.f32 %v9792_v10, %v9792_v10 }
 0x135   :  { %v588_v13 = vadd.f32 %v587_v11, %v9795_v12  ;;  %v658_v15 = vmul.f32 %v9795_v12, %v9795_v12  ;;  %v720_v17 = vadd.f32 %v719_v9, %v657_v8  ;;  %v9800_v18 = vpop.f32.mrb[26].mxu0 }
 0x136   :  { %v9802_v19 = vpop.f32.mrb[27].mxu0  ;;  %v661_v29 = vmul.f32 %v9800_v18, %v9800_v18 }
 0x137   :  { %v721_v22 = vadd.f32 %v720_v17, %v658_v15  ;;  %v589_v23 = vadd.f32 %v588_v13, %v9802_v19  ;;  %v659_v24 = vmul.f32 %v9802_v19, %v9802_v19  ;;  %v9320_v17 = vld [vmem:[#allocation6 + $0x58] sm:$0xff]  }
 0x138   :  { %7982 = vmatprep.subr.bf16.mxu0 %v9320_v17 }
 0x139   :  { %v590_v26 = vadd.f32 %v9792_v10, %v589_v23  ;;  %v722_v27 = vadd.f32 %v721_v22, %v659_v24  ;;  %v9317_v23 = vld [vmem:[#allocation6 + $0xc8] sm:$0xff]   ;;  %7983 = vmatpush3.bf16.msra.mxu0 %v9320_v17 }
 0x13a   :  { %8777 = vmatprep.subr.bf16.mxu1 %v9317_v23 }
 0x13b   :  { %v723_v31 = vadd.f32 %v722_v27, %v660_v25  ;;  %v9812_v33 = vpop.f32.mrb[28].mxu0  ;;  %v591_v38 = vadd.f32 %v9800_v18, %v590_v26  ;;  %8785 = vmatpush3.bf16.msra.mxu1 %v9317_v23  ;;  %v9326_v23 = vld [vmem:[#allocation6 + $0x70] sm:$0xff]  }
 0x13c   :  { %v9815_v39 = vpop.f32.mrb[29].mxu0  ;;  %v664_v57 = vmul.f32 %v9812_v33, %v9812_v33 }
 0x13d   :  { %v592_v42 = vadd.f32 %v591_v38, %v9815_v39  ;;  %v662_v43 = vmul.f32 %v9815_v39, %v9815_v39  ;;  %v724_v44 = vadd.f32 %v723_v31, %v661_v29  ;;  %v9820_v45 = vpop.f32.mrb[30].mxu0  ;;  %v9322_v31 = vld [vmem:[#allocation6 + $0x60] sm:$0xff]   ;;  %v9319_v38 = vld [vmem:[#allocation6 + $0xd0] sm:$0xff]  }
 0x13e   :  { %v9822_v49 = vpop.f32.mrb[31].mxu0  ;;  %v665_v2 = vmul.f32 %v9820_v45, %v9820_v45  ;;  %7984 = vmatprep.subr.bf16.mxu0 %v9322_v31  ;;  %8778 = vmatprep.subr.bf16.mxu1 %v9319_v38 }
 0x13f   :  { %v725_v50 = vadd.f32 %v724_v44, %v662_v43  ;;  %v593_v51 = vadd.f32 %v592_v42, %v9822_v49  ;;  %v663_v55 = vmul.f32 %v9822_v49, %v9822_v49  ;;  %7985 = vmatpush3.bf16.msra.mxu0 %v9322_v31  ;;  %8786 = vmatpush3.bf16.msra.mxu1 %v9319_v38 }
 0x140   :  { %8779 = vmatprep.subr.bf16.mxu1 %v9864_v1 }
 0x141   :  { %v594_v58 = vadd.f32 %v9812_v33, %v593_v51  ;;  %v726_v59 = vadd.f32 %v725_v50, %v663_v55 }
 0x143   :  { %v727_v3 = vadd.f32 %v726_v59, %v664_v57  ;;  %v9832_v6 = vpop.f32.mrb[32].mxu0  ;;  %v595_v7 = vadd.f32 %v9820_v45, %v594_v58  ;;  %v9324_v59 = vld [vmem:[#allocation6 + $0x68] sm:$0xff]   ;;  %8787 = vmatpush3.bf16.msra.mxu1 %v9864_v1 }
 0x144   :  { %v9835_v8 = vpop.f32.mrb[33].mxu0  ;;  %v668_v27 = vmul.f32 %v9832_v6, %v9832_v6  ;;  %7986 = vmatprep.subr.bf16.mxu0 %v9324_v59 }
 0x145   :  { %v596_v9 = vadd.f32 %v595_v7, %v9835_v8  ;;  %v666_v11 = vmul.f32 %v9835_v8, %v9835_v8  ;;  %v728_v13 = vadd.f32 %v727_v3, %v665_v2  ;;  %v9840_v15 = vpop.f32.mrb[34].mxu0  ;;  %7987 = vmatpush3.bf16.msra.mxu0 %v9324_v59 }
 0x146   :  { %v9842_v22 = vpop.f32.mrb[35].mxu0  ;;  %v669_v42 = vmul.f32 %v9840_v15, %v9840_v15  ;;  %7988 = vmatprep.subr.bf16.mxu0 %v9326_v23 }
 0x147   :  { %v729_v24 = vadd.f32 %v728_v13, %v666_v11  ;;  %v597_v25 = vadd.f32 %v596_v9, %v9842_v22  ;;  %v667_v26 = vmul.f32 %v9842_v22, %v9842_v22  ;;  %v9551_v9 = vmov 0.0  }
 0x148   :  { %1040 = vst [vmem:[#allocation2] sm:$0xff] %v9551_v9  ;;  %1041 = vst [vmem:[#allocation2 + $0x8] sm:$0xff] %v9551_v9 }
 0x149   :  { %v598_v28 = vadd.f32 %v9832_v6, %v597_v25  ;;  %v730_v29 = vadd.f32 %v729_v24, %v667_v26  ;;  %1042 = vst [vmem:[#allocation2 + $0x10] sm:$0xff] %v9551_v9  ;;  %1043 = vst [vmem:[#allocation2 + $0x1b0] sm:$0xff] %v9551_v9  ;;  %v9323_v24 = vld [vmem:[#allocation6 + $0xe0] sm:$0xff]   ;;  %7989 = vmatpush3.bf16.msra.mxu0 %v9326_v23  ;;  %v9329_v23 = vld [vmem:[#allocation6 + $0xf8] sm:$0xff]  }
 0x14a   :  { %1044 = vst [vmem:[#allocation2 + $0x1b8] sm:$0xff] %v9551_v9  ;;  %1045 = vst [vmem:[#allocation2 + $0x1c0] sm:$0xff] %v9551_v9  ;;  %8780 = vmatprep.subr.bf16.mxu1 %v9323_v24 }
 0x14b   :  { %v731_v43 = vadd.f32 %v730_v29, %v668_v27  ;;  %v9852_v44 = vpop.f32.mrb[36].mxu0  ;;  %v599_v47 = vadd.f32 %v9840_v15, %v598_v28  ;;  %1047 = vst [vmem:[#allocation2 + $0x198] sm:$0xff] %v9551_v9  ;;  %1048 = vst [vmem:[#allocation2 + $0x1a0] sm:$0xff] %v9551_v9  ;;  %8788 = vmatpush3.bf16.msra.mxu1 %v9323_v24 }
 0x14c   :  { %v9855_v50 = vpop.f32.mrb[37].mxu0  ;;  %1049 = vst [vmem:[#allocation2 + $0x1a8] sm:$0xff] %v9551_v9  ;;  %1050 = vst [vmem:[#allocation2 + $0x348] sm:$0xff] %v9551_v9  ;;  %v672_v11 = vmul.f32 %v9852_v44, %v9852_v44 }
 0x14d   :  { %v600_v51 = vadd.f32 %v599_v47, %v9855_v50  ;;  %v670_v55 = vmul.f32 %v9855_v50, %v9855_v50  ;;  %v732_v57 = vadd.f32 %v731_v43, %v669_v42  ;;  %v9860_v58 = vpop.f32.mrb[38].mxu0  ;;  %1051 = vst [vmem:[#allocation2 + $0x350] sm:$0xff] %v9551_v9  ;;  %1052 = vst [vmem:[#allocation2 + $0x358] sm:$0xff] %v9551_v9  ;;  %v9328_v47 = vld [vmem:[#allocation6 + $0x78] sm:$0xff]  }
 0x14e   :  { %14590 = vst [vmem:[#allocation12_spill] sm:$0xff] %v9860_v58  ;;  %v9862_v63 = vpop.f32.mrb[39].mxu0  ;;  %1054 = vst [vmem:[#allocation2 + $0x18] sm:$0x1] %v9551_v9  ;;  %v673_v25 = vmul.f32 %v9860_v58, %v9860_v58  ;;  %7990 = vmatprep.subr.bf16.mxu0 %v9328_v47 }
 0x14f   :  { %v9866_v2 = vadd.f32 %v732_v57, %v670_v55  ;;  %v9869_v3 = vadd.f32 %v600_v51, %v9862_v63  ;;  %v9873_v7 = vmul.f32 %v9862_v63, %v9862_v63  ;;  %1055 = vst [vmem:[#allocation2 + $0x30] sm:$0x1] %v9551_v9  ;;  %1056 = vst [vmem:[#allocation2 + $0x48] sm:$0x1] %v9551_v9  ;;  %v9325_v55 = vld [vmem:[#allocation6 + $0xe8] sm:$0xff]   ;;  %7991 = vmatpush3.bf16.msra.mxu0 %v9328_v47 }
 0x150   :  { %1057 = vst [vmem:[#allocation2 + $0x60] sm:$0x1] %v9551_v9  ;;  %1058 = vst [vmem:[#allocation2 + $0x78] sm:$0x1] %v9551_v9  ;;  %8781 = vmatprep.subr.bf16.mxu1 %v9325_v55 }
 0x151   :  { %1059 = vst [vmem:[#allocation2 + $0x90] sm:$0x1] %v9551_v9  ;;  %1060 = vst [vmem:[#allocation2 + $0xa8] sm:$0x1] %v9551_v9  ;;  %v602_v13 = vadd.f32 %v9852_v44, %v9869_v3  ;;  %v734_v17 = vadd.f32 %v9866_v2, %v9873_v7  ;;  %v1294_v2 = vld [vmem:[#allocation2 + $0x1] sm:$0xff]  ;;  %v1295_v3 = vld [vmem:[#allocation2 + $0x9] sm:$0xff]  ;;  %8789 = vmatpush3.bf16.msra.mxu1 %v9325_v55 }
 0x152   :  { %1061 = vst [vmem:[#allocation2 + $0xc0] sm:$0x1] %v9551_v9  ;;  %1062 = vst [vmem:[#allocation2 + $0xd8] sm:$0x1] %v9551_v9  ;;  %v1358_v7 = vpack.c.bf16 %v1295_v3, %v1294_v2 }
 0x153   :  { %1063 = vst [vmem:[#allocation2 + $0xf0] sm:$0x1] %v9551_v9  ;;  %1064 = vst [vmem:[#allocation2 + $0x108] sm:$0x1] %v9551_v9  ;;  %v735_v26 = vadd.f32 %v734_v17, %v672_v11  ;;  %v9961_v27 = vpop.f32.mrb[40].mxu0  ;;  %v603_v28 = vadd.f32 %v9860_v58, %v602_v13  ;;  %v9327_v17 = vld [vmem:[#allocation6 + $0xf0] sm:$0xff]  }
 0x154   :  { %1065 = vst [vmem:[#allocation2 + $0x120] sm:$0x1] %v9551_v9  ;;  %1066 = vst [vmem:[#allocation2 + $0x138] sm:$0x1] %v9551_v9  ;;  %v9964_v29 = vpop.f32.mrb[41].mxu0  ;;  %7992 = vmatprep.mubr.bf16.mxu0 %v1358_v7  ;;  %8782 = vmatprep.subr.bf16.mxu1 %v9327_v17 }
 0x155   :  { %1067 = vst [vmem:[#allocation2 + $0x150] sm:$0x1] %v9551_v9  ;;  %1068 = vst [vmem:[#allocation2 + $0x168] sm:$0x1] %v9551_v9  ;;  %v604_v31 = vadd.f32 %v603_v28, %v9964_v29  ;;  %v674_v38 = vmul.f32 %v9964_v29, %v9964_v29  ;;  %v736_v42 = vadd.f32 %v735_v26, %v673_v25  ;;  %v9969_v43 = vpop.f32.mrb[42].mxu0  ;;  %8790 = vmatpush3.bf16.msra.mxu1 %v9327_v17 }
 0x156   :  { %1069 = vst [vmem:[#allocation2 + $0x180] sm:$0x1] %v9551_v9  ;;  %1070 = vst [vmem:[#allocation2 + $0x1c8] sm:$0x1] %v9551_v9  ;;  %v9971_v51 = vpop.f32.mrb[43].mxu0  ;;  %v677_v24 = vmul.f32 %v9969_v43, %v9969_v43  ;;  %8783 = vmatprep.subr.bf16.mxu1 %v9329_v23 }
 0x157   :  { %1071 = vst [vmem:[#allocation2 + $0x1e0] sm:$0x1] %v9551_v9  ;;  %1072 = vst [vmem:[#allocation2 + $0x1f8] sm:$0x1] %v9551_v9  ;;  %v737_v57 = vadd.f32 %v736_v42, %v674_v38  ;;  %v605_v59 = vadd.f32 %v604_v31, %v9971_v51  ;;  %v675_v1 = vmul.f32 %v9971_v51, %v9971_v51 }
 0x158   :  { %1073 = vst [vmem:[#allocation2 + $0x210] sm:$0x1] %v9551_v9  ;;  %1074 = vst [vmem:[#allocation2 + $0x228] sm:$0x1] %v9551_v9 }
 0x159   :  { %1075 = vst [vmem:[#allocation2 + $0x240] sm:$0x1] %v9551_v9  ;;  %1076 = vst [vmem:[#allocation2 + $0x258] sm:$0x1] %v9551_v9  ;;  %v606_v11 = vadd.f32 %v9961_v27, %v605_v59  ;;  %v738_v13 = vadd.f32 %v737_v57, %v675_v1  ;;  %v9993_v59 = vld [vmem:[#allocation6 + $0x100] sm:$0xff]   ;;  %8791 = vmatpush3.bf16.msra.mxu1 %v9329_v23 }
 0x15a   :  { %1077 = vst [vmem:[#allocation2 + $0x270] sm:$0x1] %v9551_v9  ;;  %1078 = vst [vmem:[#allocation2 + $0x288] sm:$0x1] %v9551_v9  ;;  %8296 = vmatprep.subr.bf16.mxu1 %v9993_v59 }
 0x15b   :  { %1079 = vst [vmem:[#allocation2 + $0x2a0] sm:$0x1] %v9551_v9  ;;  %1080 = vst [vmem:[#allocation2 + $0x2b8] sm:$0x1] %v9551_v9  ;;  %v9981_v26 = vpop.f32.mrb[44].mxu0  ;;  %v607_v28 = vadd.f32 %v9969_v43, %v606_v11 }
 0x15c   :  { %1081 = vst [vmem:[#allocation2 + $0x2d0] sm:$0x1] %v9551_v9  ;;  %1082 = vst [vmem:[#allocation2 + $0x2e8] sm:$0x1] %v9551_v9  ;;  %v9984_v31 = vpop.f32.mrb[45].mxu0  ;;  %v680_v7 = vmul.f32 %v9981_v26, %v9981_v26 }
 0x15d   :  { %1083 = vst [vmem:[#allocation2 + $0x300] sm:$0x1] %v9551_v9  ;;  %1084 = vst [vmem:[#allocation2 + $0x318] sm:$0x1] %v9551_v9  ;;  %v608_v38 = vadd.f32 %v607_v28, %v9984_v31  ;;  %v678_v42 = vmul.f32 %v9984_v31, %v9984_v31  ;;  %v9989_v55 = vpop.f32.mrb[46].mxu0 }
 0x15e   :  { %1085 = vst [vmem:[#allocation2 + $0x330] sm:$0x1] %v9551_v9  ;;  %1086 = vst [vmem:[#allocation2 + $0x29] sm:$0x7f] %v9551_v9  ;;  %v9991_v57 = vpop.f32.mrb[47].mxu0 }
 0x15f   :  { %1087 = vst [vmem:[#allocation2 + $0x41] sm:$0x7f] %v9551_v9  ;;  %1088 = vst [vmem:[#allocation2 + $0x59] sm:$0x7f] %v9551_v9  ;;  %v609_v2 = vadd.f32 %v608_v38, %v9991_v57  ;;  %v679_v3 = vmul.f32 %v9991_v57, %v9991_v57 }
 0x160   :  { %1089 = vst [vmem:[#allocation2 + $0x71] sm:$0x7f] %v9551_v9  ;;  %1090 = vst [vmem:[#allocation2 + $0x89] sm:$0x7f] %v9551_v9 }
 0x161   :  { %1091 = vst [vmem:[#allocation2 + $0xa1] sm:$0x7f] %v9551_v9  ;;  %1092 = vst [vmem:[#allocation2 + $0xb9] sm:$0x7f] %v9551_v9 }
 0x162   :  { %1093 = vst [vmem:[#allocation2 + $0xd1] sm:$0x7f] %v9551_v9  ;;  %1094 = vst [vmem:[#allocation2 + $0xe9] sm:$0x7f] %v9551_v9 }
 0x163   :  { %1095 = vst [vmem:[#allocation2 + $0x101] sm:$0x7f] %v9551_v9  ;;  %1096 = vst [vmem:[#allocation2 + $0x119] sm:$0x7f] %v9551_v9 }
 0x164   :  { %1097 = vst [vmem:[#allocation2 + $0x131] sm:$0x7f] %v9551_v9  ;;  %1098 = vst [vmem:[#allocation2 + $0x149] sm:$0x7f] %v9551_v9 }
 0x165   :  { %1099 = vst [vmem:[#allocation2 + $0x161] sm:$0x7f] %v9551_v9  ;;  %1100 = vst [vmem:[#allocation2 + $0x179] sm:$0x7f] %v9551_v9 }
 0x166   :  { %1101 = vst [vmem:[#allocation2 + $0x191] sm:$0x7f] %v9551_v9  ;;  %1102 = vst [vmem:[#allocation2 + $0x1d9] sm:$0x7f] %v9551_v9 }
 0x167   :  { %1103 = vst [vmem:[#allocation2 + $0x1f1] sm:$0x7f] %v9551_v9  ;;  %1104 = vst [vmem:[#allocation2 + $0x209] sm:$0x7f] %v9551_v9 }
 0x168   :  { %1105 = vst [vmem:[#allocation2 + $0x221] sm:$0x7f] %v9551_v9  ;;  %1106 = vst [vmem:[#allocation2 + $0x239] sm:$0x7f] %v9551_v9 }
 0x169   :  { %1107 = vst [vmem:[#allocation2 + $0x251] sm:$0x7f] %v9551_v9  ;;  %1108 = vst [vmem:[#allocation2 + $0x269] sm:$0x7f] %v9551_v9 }
 0x16a   :  { %1109 = vst [vmem:[#allocation2 + $0x281] sm:$0x7f] %v9551_v9  ;;  %1110 = vst [vmem:[#allocation2 + $0x299] sm:$0x7f] %v9551_v9 }
 0x16b   :  { %1111 = vst [vmem:[#allocation2 + $0x2b1] sm:$0x7f] %v9551_v9  ;;  %1112 = vst [vmem:[#allocation2 + $0x2c9] sm:$0x7f] %v9551_v9 }
 0x16c   :  { %1113 = vst [vmem:[#allocation2 + $0x2e1] sm:$0x7f] %v9551_v9  ;;  %1114 = vst [vmem:[#allocation2 + $0x2f9] sm:$0x7f] %v9551_v9 }
 0x16d   :  { %1115 = vst [vmem:[#allocation2 + $0x311] sm:$0x7f] %v9551_v9  ;;  %1116 = vst [vmem:[#allocation2 + $0x329] sm:$0x7f] %v9551_v9 }
 0x16e   :  { %1117 = vst [vmem:[#allocation2 + $0x341] sm:$0x7f] %v9551_v9  ;;  %14591 = vst [vmem:[#allocation13_spill] sm:$0xff] %v9961_v27  ;;  %v676_v9 = vmul.f32 %v9961_v27, %v9961_v27 }
 0x16f   :  { %14592 = vst [vmem:[#allocation14_spill] sm:$0xff] %v9964_v29  ;;  %14593 = vst [vmem:[#allocation15_spill] sm:$0xff] %v9969_v43 }
 0x170   :  { %14594 = vst [vmem:[#allocation16_spill] sm:$0xff] %v9971_v51  ;;  %v739_v25 = vadd.f32 %v738_v13, %v676_v9  ;;  %14595 = vst [vmem:[#allocation17_spill] sm:$0xff] %v9981_v26  ;;  %v610_v9 = vadd.f32 %v9981_v26, %v609_v2  ;;  %v681_v13 = vmul.f32 %v9989_v55, %v9989_v55 }
 0x171   :  { %14596 = vst [vmem:[#allocation18_spill] sm:$0xff] %v9984_v31  ;;  %14597 = vst [vmem:[#allocation19_spill] sm:$0xff] %v9989_v55 }
 0x172   :  { %v740_v47 = vadd.f32 %v739_v25, %v677_v24  ;;  %14598 = vst [vmem:[#allocation20_spill] sm:$0xff] %v9991_v57  ;;  %14599 = vst [vmem:[#allocation21_spill] sm:$0xff] %v9993_v59  ;;  %v10004_v24 = vpop.f32.mrb[48].mxu0  ;;  %v611_v25 = vadd.f32 %v9989_v55, %v610_v9  ;;  %v838_v57 = vlaneseq }
 0x173   :  { %14600 = vst [vmem:[#allocation22_spill] sm:$0xff] %v10004_v24  ;;  %v10007_v28 = vpop.f32.mrb[49].mxu0  ;;  %v684_v9 = vmul.f32 %v10004_v24, %v10004_v24 }
 0x174   :  { %v741_v1 = vadd.f32 %v740_v47, %v678_v42  ;;  %14601 = vst [vmem:[#allocation23_spill] sm:$0xff] %v10007_v28  ;;  %v612_v38 = vadd.f32 %v611_v25, %v10007_v28  ;;  %v682_v42 = vmul.f32 %v10007_v28, %v10007_v28  ;;  %v839_v29 = vshrl.u32 %v838_v57, 7  ;;  %v10228_v57 = vld [vmem:[%s14404_s3] ss:$0 sm:$0xff] }
 0x176   :  { %v742_v11 = vadd.f32 %v741_v1, %v679_v3  ;;  %v10012_v1 = vpop.f32.mrb[50].mxu0  ;;  %v10087_v58 = vsub.s32 0, %v839_v29 }
 0x177   :  { %14602 = vst [vmem:[#allocation24_spill] sm:$0xff] %v10012_v1  ;;  %v10014_v23 = vpop.f32.mrb[51].mxu0  ;;  %v685_v59 = vmul.f32 %v10012_v1, %v10012_v1 }
 0x178   :  { %v743_v17 = vadd.f32 %v742_v11, %v680_v7  ;;  %14603 = vst [vmem:[#allocation25_spill] sm:$0xff] %v10014_v23  ;;  %v613_v3 = vadd.f32 %v612_v38, %v10014_v23  ;;  %v683_v7 = vmul.f32 %v10014_v23, %v10014_v23  ;;  %14614 = vst [vmem:[#allocation36_spill] sm:$0xff] %v10087_v58 }
 0x17a   :  { %v744_v47 = vadd.f32 %v743_v17, %v681_v13  ;;  %v614_v11 = vadd.f32 %v10004_v24, %v613_v3  ;;  %v10024_v17 = vpop.f32.mrb[52].mxu0 }
 0x17b   :  { %14604 = vst [vmem:[#allocation26_spill] sm:$0xff] %v10024_v17 }
 0x17c   :  { %v745_v2 = vadd.f32 %v744_v47, %v682_v42  ;;  %v615_v28 = vadd.f32 %v10012_v1, %v614_v11  ;;  %v10027_v42 = vpop.f32.mrb[53].mxu0  ;;  %v688_v11 = vmul.f32 %v10024_v17, %v10024_v17 }
 0x17d   :  { %14605 = vst [vmem:[#allocation27_spill] sm:$0xff] %v10027_v42  ;;  %v686_v47 = vmul.f32 %v10027_v42, %v10027_v42  ;;  %v10032_v55 = vpop.f32.mrb[54].mxu0 }
 0x17e   :  { %v746_v25 = vadd.f32 %v745_v2, %v683_v7  ;;  %v616_v38 = vadd.f32 %v615_v28, %v10027_v42  ;;  %14606 = vst [vmem:[#allocation28_spill] sm:$0xff] %v10032_v55  ;;  %v10034_v3 = vpop.f32.mrb[55].mxu0  ;;  %v689_v42 = vmul.f32 %v10032_v55, %v10032_v55 }
 0x17f   :  { %14607 = vst [vmem:[#allocation29_spill] sm:$0xff] %v10034_v3 }
 0x180   :  { %v747_v13 = vadd.f32 %v746_v25, %v684_v9  ;;  %v617_v7 = vadd.f32 %v616_v38, %v10034_v3  ;;  %v687_v9 = vmul.f32 %v10034_v3, %v10034_v3 }
 0x182   :  { %v748_v23 = vadd.f32 %v747_v13, %v685_v59  ;;  %v618_v25 = vadd.f32 %v10024_v17, %v617_v7  ;;  %v10044_v13 = vpop.f32.mrb[56].mxu0 }
 0x183   :  { %14608 = vst [vmem:[#allocation30_spill] sm:$0xff] %v10044_v13 }
 0x184   :  { %v749_v2 = vadd.f32 %v748_v23, %v686_v47  ;;  %v619_v1 = vadd.f32 %v10032_v55, %v618_v25  ;;  %v10047_v23 = vpop.f32.mrb[57].mxu0  ;;  %v692_v25 = vmul.f32 %v10044_v13, %v10044_v13 }
 0x185   :  { %14609 = vst [vmem:[#allocation31_spill] sm:$0xff] %v10047_v23  ;;  %v690_v47 = vmul.f32 %v10047_v23, %v10047_v23  ;;  %v10052_v24 = vpop.f32.mrb[58].mxu0 }
 0x186   :  { %v750_v28 = vadd.f32 %v749_v2, %v687_v9  ;;  %v620_v38 = vadd.f32 %v619_v1, %v10047_v23  ;;  %14610 = vst [vmem:[#allocation32_spill] sm:$0xff] %v10052_v24  ;;  %v10054_v7 = vpop.f32.mrb[59].mxu0  ;;  %v693_v23 = vmul.f32 %v10052_v24, %v10052_v24 }
 0x187   :  { %14611 = vst [vmem:[#allocation33_spill] sm:$0xff] %v10054_v7 }
 0x188   :  { %v751_v59 = vadd.f32 %v750_v28, %v688_v11  ;;  %v621_v9 = vadd.f32 %v620_v38, %v10054_v7  ;;  %v691_v11 = vmul.f32 %v10054_v7, %v10054_v7 }
 0x18a   :  { %v752_v3 = vadd.f32 %v751_v59, %v689_v42  ;;  %v622_v28 = vadd.f32 %v10044_v13, %v621_v9  ;;  %v10064_v59 = vpop.f32.mrb[60].mxu0 }
 0x18b   :  { %14612 = vst [vmem:[#allocation34_spill] sm:$0xff] %v10064_v59 }
 0x18c   :  { %v753_v2 = vadd.f32 %v752_v3, %v690_v47  ;;  %v623_v55 = vadd.f32 %v10052_v24, %v622_v28  ;;  %v10067_v3 = vpop.f32.mrb[61].mxu0  ;;  %v696_v28 = vmul.f32 %v10064_v59, %v10064_v59 }
 0x18d   :  { %14613 = vst [vmem:[#allocation35_spill] sm:$0xff] %v10067_v3  ;;  %v694_v47 = vmul.f32 %v10067_v3, %v10067_v3  ;;  %v10072_v17 = vpop.f32.mrb[62].mxu0 }
 0x18e   :  { %v754_v1 = vadd.f32 %v753_v2, %v691_v11  ;;  %v624_v38 = vadd.f32 %v623_v55, %v10067_v3  ;;  %v10074_v9 = vpop.f32.mrb[63].mxu0  ;;  %v697_v3 = vmul.f32 %v10072_v17, %v10072_v17 }
 0x190   :  { %v755_v42 = vadd.f32 %v754_v1, %v692_v25  ;;  %v625_v11 = vadd.f32 %v624_v38, %v10074_v9  ;;  %v695_v25 = vmul.f32 %v10074_v9, %v10074_v9 }
 0x192   :  { %v756_v7 = vadd.f32 %v755_v42, %v693_v23  ;;  %v626_v1 = vadd.f32 %v10064_v59, %v625_v11 }
 0x194   :  { %v757_v2 = vadd.f32 %v756_v7, %v694_v47  ;;  %v627_v23 = vadd.f32 %v10072_v17, %v626_v1 }
 0x196   :  { %v758_v55 = vadd.f32 %v757_v2, %v695_v25  ;;  %v628_v24 = vrot.slane %v627_v23, 4 }
 0x198   :  { %v759_v42 = vadd.f32 %v758_v55, %v696_v28  ;;  %v629_v7 = vadd.f32 %v628_v24, %v627_v23  ;;  %v563_v55 = vld [vmem:[%s14403_s2] sm:$0x1] }
 0x19a   :  { %v760_v13 = vadd.f32 %v759_v42, %v697_v3  ;;  %v630_v38 = vrot.slane %v629_v7, 2  ;;  %v14634_v3 = vld [vmem:[#allocation30_spill] sm:$0xff] }
 0x19b   :  { %v14637_v42 = vld [vmem:[#allocation34_spill] sm:$0xff] }
 0x19c   :  { %v761_v47 = vrot.slane %v760_v13, 4  ;;  %v631_v31 = vadd.f32 %v630_v38, %v629_v7  ;;  %v14616_v38 = vld [vmem:[#allocation14_spill] sm:$0xff]  ;;  %v14636_v7 = vld [vmem:[#allocation35_spill] sm:$0xff] }
 0x19e   :  { %v762_v26 = vadd.f32 %v761_v47, %v760_v13  ;;  %v632_v27 = vrot.slane %v631_v31, 1  ;;  %v14635_v13 = vld [vmem:[#allocation32_spill] sm:$0xff] }
 0x1a0   :  { %v763_v43 = vrot.slane %v762_v26, 2  ;;  %v633_v11 = vadd.f32 %v632_v27, %v631_v31  ;;  %v14631_v27 = vld [vmem:[#allocation28_spill] sm:$0xff] }
 0x1a2   :  { %v764_v51 = vadd.f32 %v763_v43, %v762_v26  ;;  %v10085_v59 = vmul.f32 0.001953125, %v633_v11  ;;  %v14617_v11 = vld [vmem:[#allocation16_spill] sm:$0xff]  ;;  %v14633_v43 = vld [vmem:[#allocation33_spill] sm:$0xff] }
 0x1a4   :  { %v765_v2 = vrot.slane %v764_v51, 1  ;;  %v769_v24 = vmul.f32 %v10085_v59, %v10085_v59  ;;  %v14638_v31 = vsub.f32 %v10074_v9, %v10085_v59  ;;  %v14639_v29 = vsub.f32 %v9675_v35, %v10085_v59 }
 0x1a5   :  { %v14642_v9 = vsub.f32 %v9677_v36, %v10085_v59 }
 0x1a6   :  { %v766_v25 = vadd.f32 %v765_v2, %v764_v51  ;;  %v14618_v2 = vld [vmem:[#allocation13_spill] sm:$0xff] }
 0x1a8   :  { %v768_v28 = vmul.f32 0.001953125, %v766_v25  ;;  %v14619_v25 = vld [vmem:[#allocation15_spill] sm:$0xff] }
 0x1aa   :  { %v770_v26 = vsub.f32 %v768_v28, %v769_v24  ;;  %v14641_v24 = vsub.f32 %v9673_v34, %v10085_v59 }
 0x1ac   :  { %v771_v47 = vadd.f32 1e-05, %v770_v26 }
 0x1ae   :  { %9394 = vrsqrt.f32 %v771_v47  ;;  %v14615_v47 = vld [vmem:[#allocation12_spill] sm:$0xff] }
 0x1b8   :  { %v9395_v28 = vpop.eup %9394 }
 0x1b9   :  { %v773_v23 = vmul.f32 %v9395_v28, %v563_v55 }
 0x1bb   :  { %v10223_v26 = vrot.slane %v773_v23, %v10087_v58  ;;  %v14640_v23 = vsub.f32 %v9679_v37, %v10085_v59 }
 0x1bd   :  { %v903_v51 = vmul.f32 %v10223_v26, %v14638_v31  ;;  %v10238_v55 = vmul.f32 %v10223_v26, %v14639_v29  ;;  %v10244_v28 = vmul.f32 %v10223_v26, %v14640_v23  ;;  %v10250_v1 = vmul.f32 %v10223_v26, %v14641_v24 }
 0x1be   :  { %v10256_v35 = vmul.f32 %v10223_v26, %v14642_v9  ;;  %v14643_v29 = vsub.f32 %v9695_v48, %v10085_v59  ;;  %v14644_v31 = vsub.f32 %v9702_v53, %v10085_v59  ;;  %v14645_v24 = vsub.f32 %v9692_v46, %v10085_v59 }
 0x1bf   :  { %v973_v23 = vadd.f32 %v10228_v57, %v903_v51  ;;  %v14646_v48 = vsub.f32 %v9700_v52, %v10085_v59  ;;  %v14647_v53 = vsub.f32 %v9715_v0, %v10085_v59  ;;  %v14648_v46 = vsub.f32 %v9722_v5, %v10085_v59 }
 0x1c0   :  { %v10262_v37 = vmul.f32 %v10223_v26, %v14643_v29  ;;  %v10268_v34 = vmul.f32 %v10223_v26, %v14644_v31  ;;  %v10274_v36 = vmul.f32 %v10223_v26, %v14645_v24  ;;  %v14649_v51 = vsub.f32 %v9712_v62, %v10085_v59 }
 0x1c1   :  { %v10281_v9 = vmul.f32 %v10223_v26, %v14646_v48  ;;  %v10287_v29 = vmul.f32 %v10223_v26, %v14647_v53  ;;  %v10293_v31 = vmul.f32 %v10223_v26, %v14648_v46  ;;  %v14650_v24 = vsub.f32 %v9720_v4, %v10085_v59 }
 0x1c2   :  { %v10299_v52 = vmul.f32 %v10223_v26, %v14649_v51  ;;  %v14651_v48 = vsub.f32 %v9735_v16, %v10085_v59  ;;  %v14652_v53 = vsub.f32 %v9742_v21, %v10085_v59  ;;  %v1037_v46 = vmax.f32 %v973_v23, 0.0 }
 0x1c3   :  { %v10305_v0 = vmul.f32 %v10223_v26, %v14650_v24  ;;  %v14653_v51 = vsub.f32 %v9732_v14, %v10085_v59  ;;  %v14654_v24 = vsub.f32 %v9740_v20, %v10085_v59  ;;  %v14656_v23 = vsub.f32 %v9762_v41, %v10085_v59 }
 0x1c4   :  { %v10311_v5 = vmul.f32 %v10223_v26, %v14651_v48  ;;  %v10317_v62 = vmul.f32 %v10223_v26, %v14652_v53  ;;  %v14655_v48 = vsub.f32 %v9755_v32, %v10085_v59  ;;  %v14657_v53 = vsub.f32 %v9752_v30, %v10085_v59  ;;  %1179 = vst [vmem:[#allocation2 + $0x321] sm:$0xff] %v1037_v46 }
 0x1c5   :  { %v10323_v4 = vmul.f32 %v10223_v26, %v14653_v51  ;;  %v10329_v16 = vmul.f32 %v10223_v26, %v14654_v24  ;;  %v10341_v14 = vmul.f32 %v10223_v26, %v14656_v23  ;;  %v14658_v51 = vsub.f32 %v9760_v40, %v10085_v59 }
 0x1c6   :  { %v10335_v21 = vmul.f32 %v10223_v26, %v14655_v48  ;;  %v10347_v20 = vmul.f32 %v10223_v26, %v14657_v53  ;;  %v14659_v24 = vsub.f32 %v9775_v56, %v10085_v59  ;;  %v14660_v48 = vsub.f32 %v9782_v61, %v10085_v59 }
 0x1c7   :  { %v10353_v32 = vmul.f32 %v10223_v26, %v14658_v51  ;;  %v14661_v23 = vsub.f32 %v9772_v54, %v10085_v59  ;;  %v14662_v53 = vsub.f32 %v9780_v60, %v10085_v59  ;;  %v14663_v46 = vsub.f32 %v9795_v12, %v10085_v59 }
 0x1c8   :  { %v10359_v41 = vmul.f32 %v10223_v26, %v14659_v24  ;;  %v10365_v30 = vmul.f32 %v10223_v26, %v14660_v48  ;;  %v14664_v51 = vsub.f32 %v9802_v19, %v10085_v59  ;;  %v14665_v24 = vsub.f32 %v9792_v10, %v10085_v59 }
 0x1c9   :  { %v10371_v40 = vmul.f32 %v10223_v26, %v14661_v23  ;;  %v10377_v56 = vmul.f32 %v10223_v26, %v14662_v53  ;;  %v10383_v61 = vmul.f32 %v10223_v26, %v14663_v46  ;;  %v14666_v48 = vsub.f32 %v9800_v18, %v10085_v59 }
 0x1ca   :  { %v10389_v54 = vmul.f32 %v10223_v26, %v14664_v51  ;;  %v10395_v60 = vmul.f32 %v10223_v26, %v14665_v24  ;;  %v14667_v23 = vsub.f32 %v9815_v39, %v10085_v59  ;;  %v14668_v53 = vsub.f32 %v9822_v49, %v10085_v59 }
 0x1cb   :  { %v10401_v12 = vmul.f32 %v10223_v26, %v14666_v48  ;;  %v14669_v46 = vsub.f32 %v9812_v33, %v10085_v59  ;;  %v14670_v51 = vsub.f32 %v9820_v45, %v10085_v59  ;;  %v14671_v24 = vsub.f32 %v9835_v8, %v10085_v59 }
 0x1cc   :  { %v10407_v19 = vmul.f32 %v10223_v26, %v14667_v23  ;;  %v10413_v10 = vmul.f32 %v10223_v26, %v14668_v53  ;;  %v14672_v48 = vsub.f32 %v9842_v22, %v10085_v59  ;;  %v14673_v23 = vsub.f32 %v9832_v6, %v10085_v59 }
 0x1cd   :  { %v10419_v18 = vmul.f32 %v10223_v26, %v14669_v46  ;;  %v10425_v39 = vmul.f32 %v10223_v26, %v14670_v51  ;;  %v10431_v49 = vmul.f32 %v10223_v26, %v14671_v24  ;;  %v14674_v53 = vsub.f32 %v9840_v15, %v10085_v59 }
 0x1ce   :  { %v10437_v33 = vmul.f32 %v10223_v26, %v14672_v48  ;;  %v10443_v45 = vmul.f32 %v10223_v26, %v14673_v23  ;;  %v14675_v46 = vsub.f32 %v9855_v50, %v10085_v59  ;;  %v14676_v51 = vsub.f32 %v9862_v63, %v10085_v59 }
 0x1cf   :  { %v10449_v8 = vmul.f32 %v10223_v26, %v14674_v53  ;;  %v14677_v24 = vsub.f32 %v9852_v44, %v10085_v59  ;;  %v14678_v48 = vsub.f32 %v14615_v47, %v10085_v59  ;;  %v14679_v23 = vsub.f32 %v14616_v38, %v10085_v59 }
 0x1d0   :  { %v10455_v22 = vmul.f32 %v10223_v26, %v14675_v46  ;;  %v10461_v6 = vmul.f32 %v10223_v26, %v14676_v51  ;;  %v14680_v53 = vsub.f32 %v14617_v11, %v10085_v59  ;;  %v14681_v46 = vsub.f32 %v14618_v2, %v10085_v59 }
 0x1d1   :  { %v10467_v15 = vmul.f32 %v10223_v26, %v14677_v24  ;;  %v10473_v50 = vmul.f32 %v10223_v26, %v14678_v48  ;;  %v10479_v63 = vmul.f32 %v10223_v26, %v14679_v23  ;;  %v14682_v51 = vsub.f32 %v14619_v25, %v10085_v59  ;;  %v14684_v24 = vld [vmem:[#allocation18_spill] sm:$0xff]  ;;  %v14687_v23 = vld [vmem:[#allocation20_spill] sm:$0xff] }
 0x1d2   :  { %v10485_v44 = vmul.f32 %v10223_v26, %v14680_v53  ;;  %v10491_v47 = vmul.f32 %v10223_v26, %v14681_v46  ;;  %v14685_v48 = vsub.f32 %v14684_v24, %v10085_v59  ;;  %v14688_v53 = vsub.f32 %v14687_v23, %v10085_v59  ;;  %v14690_v46 = vld [vmem:[#allocation17_spill] sm:$0xff] }
 0x1d3   :  { %v10497_v38 = vmul.f32 %v10223_v26, %v14682_v51  ;;  %v14691_v58 = vsub.f32 %v14690_v46, %v10085_v59  ;;  %v14693_v51 = vld [vmem:[#allocation19_spill] sm:$0xff] }
 0x1d4   :  { %v10503_v11 = vmul.f32 %v10223_v26, %v14685_v48  ;;  %v10509_v2 = vmul.f32 %v10223_v26, %v14688_v53  ;;  %v14696_v48 = vld [vmem:[#allocation23_spill] sm:$0xff]  ;;  %v14699_v53 = vld [vmem:[#allocation25_spill] sm:$0xff] }
 0x1d5   :  { %14683 = vst [vmem:[#allocation12_spill] sm:$0xff] %v10497_v38  ;;  %v10515_v25 = vmul.f32 %v10223_v26, %v14691_v58  ;;  %v14694_v38 = vsub.f32 %v14693_v51, %v10085_v59  ;;  %v14702_v58 = vld [vmem:[#allocation22_spill] sm:$0xff] }
 0x1d6   :  { %14686 = vst [vmem:[#allocation14_spill] sm:$0xff] %v10503_v11  ;;  %14689 = vst [vmem:[#allocation16_spill] sm:$0xff] %v10509_v2  ;;  %v14697_v11 = vsub.f32 %v14696_v48, %v10085_v59  ;;  %v14700_v2 = vsub.f32 %v14699_v53, %v10085_v59 }
 0x1d7   :  { %14692 = vst [vmem:[#allocation13_spill] sm:$0xff] %v10515_v25  ;;  %v10521_v24 = vmul.f32 %v10223_v26, %v14694_v38  ;;  %v14703_v25 = vsub.f32 %v14702_v58, %v10085_v59  ;;  %v14705_v38 = vld [vmem:[#allocation24_spill] sm:$0xff] }
 0x1d8   :  { %v10527_v23 = vmul.f32 %v10223_v26, %v14697_v11  ;;  %v10533_v46 = vmul.f32 %v10223_v26, %v14700_v2  ;;  %v14707_v11 = vld [vmem:[#allocation27_spill] sm:$0xff]  ;;  %v14710_v2 = vld [vmem:[#allocation29_spill] sm:$0xff] }
 0x1d9   :  { %14695 = vst [vmem:[#allocation15_spill] sm:$0xff] %v10521_v24  ;;  %v10539_v51 = vmul.f32 %v10223_v26, %v14703_v25  ;;  %v14706_v24 = vsub.f32 %v14705_v38, %v10085_v59  ;;  %v14712_v25 = vld [vmem:[#allocation26_spill] sm:$0xff] }
 0x1da   :  { %14698 = vst [vmem:[#allocation28_spill] sm:$0xff] %v10527_v23  ;;  %14701 = vst [vmem:[#allocation33_spill] sm:$0xff] %v10533_v46  ;;  %v14708_v23 = vsub.f32 %v14707_v11, %v10085_v59  ;;  %v14711_v46 = vsub.f32 %v14710_v2, %v10085_v59 }
 0x1db   :  { %14704 = vst [vmem:[#allocation30_spill] sm:$0xff] %v10539_v51  ;;  %v10545_v48 = vmul.f32 %v10223_v26, %v14706_v24  ;;  %v14713_v51 = vsub.f32 %v14712_v25, %v10085_v59  ;;  %v14714_v24 = vsub.f32 %v14631_v27, %v10085_v59 }
 0x1dc   :  { %v10551_v53 = vmul.f32 %v10223_v26, %v14708_v23  ;;  %v10557_v58 = vmul.f32 %v10223_v26, %v14711_v46  ;;  %v14715_v23 = vld [vmem:[#allocation31_spill] sm:$0xff]  ;;  %v14717_v46 = vsub.f32 %v14633_v43, %v10085_v59 }
 0x1dd   :  { %v10563_v38 = vmul.f32 %v10223_v26, %v14713_v51  ;;  %v10569_v11 = vmul.f32 %v10223_v26, %v14714_v24  ;;  %v14718_v51 = vsub.f32 %v14634_v3, %v10085_v59  ;;  %v14719_v24 = vsub.f32 %v14635_v13, %v10085_v59 }
 0x1de   :  { %14709 = vst [vmem:[#allocation32_spill] sm:$0xff] %v10551_v53  ;;  %v14716_v53 = vsub.f32 %v14715_v23, %v10085_v59  ;;  %v10581_v25 = vmul.f32 %v10223_v26, %v14717_v46  ;;  %v14721_v46 = vsub.f32 %v14637_v42, %v10085_v59  ;;  %v10623_v42 = vadd.f32 %v10228_v57, %v10250_v1 }
 0x1df   :  { %v10587_v27 = vmul.f32 %v10223_v26, %v14718_v51  ;;  %v10593_v23 = vmul.f32 %v10223_v26, %v14719_v24  ;;  %v14722_v51 = vsub.f32 %v10072_v17, %v10085_v59  ;;  %v10615_v24 = vadd.f32 %v10228_v57, %v10238_v55 }
 0x1e0   :  { %v10575_v2 = vmul.f32 %v10223_v26, %v14716_v53  ;;  %v14720_v53 = vsub.f32 %v14636_v7, %v10085_v59  ;;  %v10605_v3 = vmul.f32 %v10223_v26, %v14721_v46  ;;  %v10619_v7 = vadd.f32 %v10228_v57, %v10244_v28  ;;  %v14729_v46 = vld [vmem:[#allocation14_spill] sm:$0xff] }
 0x1e1   :  { %v10611_v13 = vmul.f32 %v10223_v26, %v14722_v51  ;;  %v10631_v17 = vadd.f32 %v10228_v57, %v10262_v37  ;;  %v10635_v59 = vadd.f32 %v10228_v57, %v10268_v34  ;;  %v10643_v1 = vadd.f32 %v10228_v57, %v10281_v9  ;;  %v14731_v51 = vld [vmem:[#allocation16_spill] sm:$0xff] }
 0x1e2   :  { %v10599_v43 = vmul.f32 %v10223_v26, %v14720_v53  ;;  %v10627_v53 = vadd.f32 %v10228_v57, %v10256_v35  ;;  %v10639_v26 = vadd.f32 %v10228_v57, %v10274_v36  ;;  %v10647_v55 = vadd.f32 %v10228_v57, %v10287_v29  ;;  %v10653_v35 = vld [vmem:[#allocation6] sm:$0xff]  }
 0x1e3   :  { %v10651_v28 = vadd.f32 %v10228_v57, %v10293_v31  ;;  %14723 = vst [vmem:[#allocation35_spill] sm:$0xff] %v10653_v35  ;;  %v10657_v37 = vadd.f32 %v10228_v57, %v10299_v52  ;;  %v10661_v34 = vadd.f32 %v10228_v57, %v10305_v0  ;;  %v10665_v36 = vadd.f32 %v10228_v57, %v10311_v5 }
 0x1e4   :  { %v10669_v9 = vadd.f32 %v10228_v57, %v10317_v62  ;;  %v10673_v29 = vadd.f32 %v10228_v57, %v10323_v4  ;;  %v10677_v31 = vadd.f32 %v10228_v57, %v10329_v16  ;;  %v10681_v52 = vadd.f32 %v10228_v57, %v10335_v21  ;;  %8056 = vmatprep.subr.bf16.mxu0 %v10653_v35  ;;  %v14733_v35 = vld [vmem:[#allocation13_spill] sm:$0xff] }
 0x1e5   :  { %v10685_v0 = vadd.f32 %v10228_v57, %v10341_v14  ;;  %v10690_v5 = vadd.f32 %v10228_v57, %v10347_v20  ;;  %v10694_v62 = vadd.f32 %v10228_v57, %v10353_v32  ;;  %v10698_v4 = vadd.f32 %v10228_v57, %v10359_v41 }
 0x1e6   :  { %v10702_v16 = vadd.f32 %v10228_v57, %v10365_v30  ;;  %v10706_v21 = vadd.f32 %v10228_v57, %v10371_v40  ;;  %v10710_v14 = vadd.f32 %v10228_v57, %v10377_v56  ;;  %v10714_v20 = vadd.f32 %v10228_v57, %v10383_v61 }
 0x1e7   :  { %v10718_v32 = vadd.f32 %v10228_v57, %v10389_v54  ;;  %v10722_v41 = vadd.f32 %v10228_v57, %v10395_v60  ;;  %v10726_v30 = vadd.f32 %v10228_v57, %v10401_v12  ;;  %v10730_v40 = vadd.f32 %v10228_v57, %v10407_v19 }
 0x1e8   :  { %v10734_v56 = vadd.f32 %v10228_v57, %v10413_v10  ;;  %v10738_v61 = vadd.f32 %v10228_v57, %v10419_v18  ;;  %v10742_v54 = vadd.f32 %v10228_v57, %v10425_v39  ;;  %v10746_v60 = vadd.f32 %v10228_v57, %v10431_v49 }
 0x1e9   :  { %v10750_v12 = vadd.f32 %v10228_v57, %v10437_v33  ;;  %v10754_v19 = vadd.f32 %v10228_v57, %v10443_v45  ;;  %v10758_v10 = vadd.f32 %v10228_v57, %v10449_v8  ;;  %v10762_v18 = vadd.f32 %v10228_v57, %v10455_v22 }
 0x1ea   :  { %14724 = vst [vmem:[#allocation34_spill] sm:$0xff] %v10734_v56  ;;  %v10766_v39 = vadd.f32 %v10228_v57, %v10461_v6  ;;  %v10770_v49 = vadd.f32 %v10228_v57, %v10467_v15  ;;  %v10774_v33 = vadd.f32 %v10228_v57, %v10473_v50  ;;  %v10778_v45 = vadd.f32 %v10228_v57, %v10479_v63  ;;  %v14727_v6 = vld [vmem:[#allocation12_spill] sm:$0xff] }
 0x1eb   :  { %v10782_v8 = vadd.f32 %v10228_v57, %v10485_v44  ;;  %v10786_v22 = vadd.f32 %v10228_v57, %v10491_v47  ;;  %v10790_v15 = vadd.f32 %v10228_v57, %v14727_v6  ;;  %v10794_v50 = vadd.f32 %v10228_v57, %v14729_v46 }
 0x1ec   :  { %v10798_v63 = vadd.f32 %v10228_v57, %v14731_v51  ;;  %v10802_v44 = vadd.f32 %v10228_v57, %v14733_v35  ;;  %v10822_v35 = vadd.f32 %v10228_v57, %v10545_v48  ;;  %v10842_v48 = vadd.f32 %v10228_v57, %v10575_v2 }
 0x1ed   :  { %14725 = vst [vmem:[#allocation18_spill] sm:$0xff] %v10782_v8  ;;  %14726 = vst [vmem:[#allocation20_spill] sm:$0xff] %v10786_v22  ;;  %v14735_v8 = vld [vmem:[#allocation15_spill] sm:$0xff]  ;;  %v14737_v22 = vld [vmem:[#allocation28_spill] sm:$0xff]  ;;  %v10862_v2 = vadd.f32 %v10228_v57, %v10605_v3  ;;  %v14750_v3 = vmax.f32 %v10661_v34, 0.0 }
 0x1ee   :  { %14728 = vst [vmem:[#allocation17_spill] sm:$0xff] %v10790_v15  ;;  %14730 = vst [vmem:[#allocation19_spill] sm:$0xff] %v10794_v50  ;;  %v10806_v47 = vadd.f32 %v10228_v57, %v14735_v8  ;;  %v10810_v6 = vadd.f32 %v10228_v57, %v14737_v22  ;;  %v14738_v15 = vld [vmem:[#allocation33_spill] sm:$0xff]  ;;  %v14739_v50 = vld [vmem:[#allocation30_spill] sm:$0xff]  ;;  %v10830_v22 = vadd.f32 %v10228_v57, %v10557_v58 }
 0x1ef   :  { %14732 = vst [vmem:[#allocation23_spill] sm:$0xff] %v10798_v63  ;;  %14734 = vst [vmem:[#allocation25_spill] sm:$0xff] %v10802_v44  ;;  %v10814_v46 = vadd.f32 %v10228_v57, %v14738_v15  ;;  %v10818_v51 = vadd.f32 %v10228_v57, %v14739_v50  ;;  %v14740_v44 = vld [vmem:[#allocation32_spill] sm:$0xff]  ;;  %v10834_v15 = vadd.f32 %v10228_v57, %v10563_v38 }
 0x1f0   :  { %14736 = vst [vmem:[#allocation22_spill] sm:$0xff] %v10806_v47  ;;  %v10826_v8 = vadd.f32 %v10228_v57, %v14740_v44  ;;  %v10838_v50 = vadd.f32 %v10228_v57, %v10569_v11  ;;  %v10846_v44 = vadd.f32 %v10228_v57, %v10581_v25  ;;  %v10850_v58 = vadd.f32 %v10228_v57, %v10587_v27 }
 0x1f1   :  { %v10854_v38 = vadd.f32 %v10228_v57, %v10593_v23  ;;  %v10858_v11 = vadd.f32 %v10228_v57, %v10599_v43  ;;  %14745 = vst [vmem:[#allocation31_spill] sm:$0xff] %v10862_v2  ;;  %v10866_v25 = vadd.f32 %v10228_v57, %v10611_v13  ;;  %v14472_v27 = vmax.f32 %v10619_v7, 0.0  ;;  %1129 = vst [vmem:[#allocation2 + $0x99] sm:$0xff] %v14750_v3 }
 0x1f2   :  { %14741 = vst [vmem:[#allocation24_spill] sm:$0xff] %v10846_v44  ;;  %14742 = vst [vmem:[#allocation27_spill] sm:$0xff] %v10850_v58  ;;  %v14471_v44 = vmax.f32 %v10615_v24, 0.0  ;;  %v14473_v58 = vmax.f32 %v10623_v42, 0.0  ;;  %v14474_v23 = vmax.f32 %v10627_v53, 0.0  ;;  %v14476_v57 = vmax.f32 %v10651_v28, 0.0 }
 0x1f3   :  { %14743 = vst [vmem:[#allocation29_spill] sm:$0xff] %v10854_v38  ;;  %14744 = vst [vmem:[#allocation26_spill] sm:$0xff] %v10858_v11  ;;  %v14475_v38 = vmax.f32 %v10631_v17, 0.0  ;;  %v14477_v13 = vmax.f32 %v10657_v37, 0.0  ;;  %v14479_v11 = vmax.f32 %v10681_v52, 0.0  ;;  %v14748_v43 = vmax.f32 %v10643_v1, 0.0 }
 0x1f4   :  { %1118 = vst [vmem:[#allocation2 + $0x19] sm:$0xff] %v14471_v44  ;;  %1119 = vst [vmem:[#allocation2 + $0x21] sm:$0xff] %v14472_v27  ;;  %v14746_v44 = vmax.f32 %v10635_v59, 0.0  ;;  %v14747_v27 = vmax.f32 %v10639_v26, 0.0  ;;  %v14754_v3 = vmax.f32 %v10685_v0, 0.0  ;;  %v1006_v2 = vmax.f32 %v10738_v61, 0.0 }
 0x1f5   :  { %1120 = vst [vmem:[#allocation2 + $0x31] sm:$0xff] %v14473_v58  ;;  %1121 = vst [vmem:[#allocation2 + $0x39] sm:$0xff] %v14474_v23  ;;  %v14478_v58 = vmax.f32 %v10677_v31, 0.0  ;;  %v14749_v23 = vmax.f32 %v10647_v55, 0.0  ;;  %v14768_v61 = vld [vmem:[#allocation19_spill] sm:$0xff] }
 0x1f6   :  { %1122 = vst [vmem:[#allocation2 + $0x49] sm:$0xff] %v14475_v38  ;;  %1123 = vst [vmem:[#allocation2 + $0x51] sm:$0xff] %v14746_v44  ;;  %v14480_v44 = vmax.f32 %v10694_v62, 0.0  ;;  %v14764_v38 = vld [vmem:[#allocation20_spill] sm:$0xff] }
 0x1f7   :  { %1124 = vst [vmem:[#allocation2 + $0x61] sm:$0xff] %v14747_v27  ;;  %1125 = vst [vmem:[#allocation2 + $0x69] sm:$0xff] %v14748_v43  ;;  %v14751_v43 = vmax.f32 %v10665_v36, 0.0  ;;  %v14482_v27 = vmax.f32 %v10714_v20, 0.0 }
 0x1f8   :  { %1126 = vst [vmem:[#allocation2 + $0x79] sm:$0xff] %v14749_v23  ;;  %1127 = vst [vmem:[#allocation2 + $0x81] sm:$0xff] %v14476_v57  ;;  %v14752_v23 = vmax.f32 %v10669_v9, 0.0  ;;  %v14753_v57 = vmax.f32 %v10673_v29, 0.0 }
 0x1f9   :  { %1128 = vst [vmem:[#allocation2 + $0x91] sm:$0xff] %v14477_v13  ;;  %1130 = vst [vmem:[#allocation2 + $0xa9] sm:$0xff] %v14751_v43  ;;  %v14481_v13 = vmax.f32 %v10710_v14, 0.0  ;;  %v14755_v43 = vmax.f32 %v10690_v5, 0.0 }
 0x1fa   :  { %1131 = vst [vmem:[#allocation2 + $0xb1] sm:$0xff] %v14752_v23  ;;  %1132 = vst [vmem:[#allocation2 + $0xc1] sm:$0xff] %v14753_v57  ;;  %v14483_v57 = vmax.f32 %v10726_v30, 0.0  ;;  %v14485_v23 = vmax.f32 %v10746_v60, 0.0 }
 0x1fb   :  { %1133 = vst [vmem:[#allocation2 + $0xc9] sm:$0xff] %v14478_v58  ;;  %1134 = vst [vmem:[#allocation2 + $0xd9] sm:$0xff] %v14479_v11  ;;  %v14756_v58 = vmax.f32 %v10698_v4, 0.0  ;;  %v14757_v11 = vmax.f32 %v10702_v16, 0.0 }
 0x1fc   :  { %1135 = vst [vmem:[#allocation2 + $0xe1] sm:$0xff] %v14754_v3  ;;  %1136 = vst [vmem:[#allocation2 + $0xf1] sm:$0xff] %v14755_v43  ;;  %v14758_v3 = vmax.f32 %v10706_v21, 0.0  ;;  %v1007_v43 = vmax.f32 %v10742_v54, 0.0  ;;  %v14763_v54 = vld [vmem:[#allocation18_spill] sm:$0xff] }
 0x1fd   :  { %1137 = vst [vmem:[#allocation2 + $0xf9] sm:$0xff] %v14480_v44  ;;  %1138 = vst [vmem:[#allocation2 + $0x109] sm:$0xff] %v14756_v58  ;;  %v14759_v58 = vmax.f32 %v10718_v32, 0.0  ;;  %v14770_v44 = vmax.f32 %v10758_v10, 0.0 }
 0x1fe   :  { %1139 = vst [vmem:[#allocation2 + $0x111] sm:$0xff] %v14757_v11  ;;  %1140 = vst [vmem:[#allocation2 + $0x121] sm:$0xff] %v14758_v3  ;;  %v14760_v11 = vmax.f32 %v10722_v41, 0.0  ;;  %v1039_v3 = vmax.f32 %v10866_v25, 0.0  ;;  %v14799_v25 = vmax.f32 %v10615_v24, 0.0  ;;  %v14806_v24 = vmax.f32 %v10643_v1, 0.0 }
 0x1ff   :  { %1141 = vst [vmem:[#allocation2 + $0x129] sm:$0xff] %v14481_v13  ;;  %1142 = vst [vmem:[#allocation2 + $0x139] sm:$0xff] %v14482_v27  ;;  %v14761_v13 = vmax.f32 %v10730_v40, 0.0  ;;  %v14762_v27 = vmax.f32 %v10734_v56, 0.0  ;;  %v14769_v56 = vld [vmem:[#allocation25_spill] sm:$0xff]  ;;  %v14812_v1 = vmax.f32 %v10661_v34, 0.0 }
 0x200   :  { %1143 = vst [vmem:[#allocation2 + $0x141] sm:$0xff] %v14759_v58  ;;  %1144 = vst [vmem:[#allocation2 + $0x151] sm:$0xff] %v14760_v11  ;;  %v14796_v58 = vmax.f32 %v10842_v48, 0.0  ;;  %v14817_v34 = vmax.f32 %v10681_v52, 0.0  ;;  %v14824_v52 = vmax.f32 %v10710_v14, 0.0  ;;  %v14829_v14 = vmax.f32 %v10730_v40, 0.0 }
 0x201   :  { %1145 = vst [vmem:[#allocation2 + $0x159] sm:$0xff] %v14483_v57  ;;  %1146 = vst [vmem:[#allocation2 + $0x169] sm:$0xff] %v14761_v13  ;;  %v14765_v57 = vmax.f32 %v10750_v12, 0.0  ;;  %v14766_v13 = vmax.f32 %v10754_v19, 0.0  ;;  %v9342_v40 = vld [vmem:[#allocation6 + $0x8] sm:$0xff]  }
 0x202   :  { %1147 = vst [vmem:[#allocation2 + $0x171] sm:$0xff] %v14762_v27  ;;  %1148 = vst [vmem:[#allocation2 + $0x181] sm:$0xff] %v1006_v2  ;;  %v14767_v27 = vld [vmem:[#allocation17_spill] sm:$0xff]  ;;  %v14774_v2 = vmax.f32 %v10774_v33, 0.0 }
 0x203   :  { %1149 = vst [vmem:[#allocation2 + $0x189] sm:$0xff] %v1007_v43  ;;  %1150 = vst [vmem:[#allocation2 + $0x1c9] sm:$0xff] %v14485_v23  ;;  %v14771_v43 = vmax.f32 %v10762_v18, 0.0  ;;  %v14772_v23 = vmax.f32 %v10766_v39, 0.0 }
 0x204   :  { %1151 = vst [vmem:[#allocation2 + $0x1d1] sm:$0xff] %v14765_v57  ;;  %1152 = vst [vmem:[#allocation2 + $0x1e1] sm:$0xff] %v14766_v13  ;;  %v14773_v57 = vmax.f32 %v10770_v49, 0.0  ;;  %v14778_v13 = vmax.f32 %v14767_v27, 0.0  ;;  %v14784_v27 = vmax.f32 %v10806_v47, 0.0  ;;  %v14791_v47 = vmax.f32 %v10822_v35, 0.0 }
 0x205   :  { %1153 = vst [vmem:[#allocation2 + $0x1e9] sm:$0xff] %v14770_v44  ;;  %1154 = vst [vmem:[#allocation2 + $0x1f9] sm:$0xff] %v14771_v43  ;;  %v14775_v44 = vmax.f32 %v10778_v45, 0.0  ;;  %v14776_v43 = vmax.f32 %v14763_v54, 0.0 }
 0x206   :  { %1155 = vst [vmem:[#allocation2 + $0x201] sm:$0xff] %v14772_v23  ;;  %1156 = vst [vmem:[#allocation2 + $0x211] sm:$0xff] %v14773_v57  ;;  %v14777_v23 = vmax.f32 %v14764_v38, 0.0  ;;  %v14782_v57 = vld [vmem:[#allocation24_spill] sm:$0xff]  ;;  %v14783_v38 = vld [vmem:[#allocation27_spill] sm:$0xff] }
 0x207   :  { %1157 = vst [vmem:[#allocation2 + $0x219] sm:$0xff] %v14774_v2  ;;  %1158 = vst [vmem:[#allocation2 + $0x229] sm:$0xff] %v14775_v44  ;;  %v14779_v2 = vmax.f32 %v14768_v61, 0.0  ;;  %v14780_v44 = vmax.f32 %v10798_v63, 0.0  ;;  %v14790_v63 = vld [vmem:[#allocation31_spill] sm:$0xff] }
 0x208   :  { %1159 = vst [vmem:[#allocation2 + $0x231] sm:$0xff] %v14776_v43  ;;  %1160 = vst [vmem:[#allocation2 + $0x241] sm:$0xff] %v14777_v23  ;;  %v14781_v43 = vmax.f32 %v14769_v56, 0.0  ;;  %v14789_v56 = vld [vmem:[#allocation26_spill] sm:$0xff]  ;;  %v1038_v11 = vmax.f32 %v14790_v63, 0.0  ;;  %v14797_v63 = vmax.f32 %v14782_v57, 0.0 }
 0x209   :  { %1161 = vst [vmem:[#allocation2 + $0x249] sm:$0xff] %v14778_v13  ;;  %1162 = vst [vmem:[#allocation2 + $0x259] sm:$0xff] %v14779_v2  ;;  %v14785_v13 = vmax.f32 %v10810_v6, 0.0  ;;  %v14786_v2 = vmax.f32 %v10814_v46, 0.0  ;;  %v14802_v23 = vmax.f32 %v10627_v53, 0.0  ;;  %v14804_v57 = vmax.f32 %v10635_v59, 0.0 }
 0x20a   :  { %1163 = vst [vmem:[#allocation2 + $0x261] sm:$0xff] %v14780_v44  ;;  %1164 = vst [vmem:[#allocation2 + $0x271] sm:$0xff] %v14781_v43  ;;  %v14787_v44 = vmax.f32 %v10818_v51, 0.0  ;;  %v14788_v43 = vld [vmem:[#allocation29_spill] sm:$0xff]  ;;  %v14809_v53 = vmax.f32 %v10647_v55, 0.0  ;;  %v14816_v55 = vmax.f32 %v10677_v31, 0.0 }
 0x20b   :  { %1165 = vst [vmem:[#allocation2 + $0x279] sm:$0xff] %v14784_v27  ;;  %1166 = vst [vmem:[#allocation2 + $0x289] sm:$0xff] %v14785_v13  ;;  %v14792_v27 = vmax.f32 %v10826_v8, 0.0  ;;  %v14793_v13 = vmax.f32 %v10830_v22, 0.0  ;;  %v14821_v31 = vmax.f32 %v10698_v4, 0.0  ;;  %v14826_v4 = vmax.f32 %v10718_v32, 0.0 }
 0x20c   :  { %1167 = vst [vmem:[#allocation2 + $0x291] sm:$0xff] %v14786_v2  ;;  %1168 = vst [vmem:[#allocation2 + $0x2a1] sm:$0xff] %v14787_v44  ;;  %v14794_v2 = vmax.f32 %v10834_v15, 0.0  ;;  %v14795_v44 = vmax.f32 %v10838_v50, 0.0  ;;  %v14833_v32 = vmax.f32 %v10750_v12, 0.0  ;;  %v14839_v12 = vmax.f32 %v10770_v49, 0.0 }
 0x20d   :  { %1169 = vst [vmem:[#allocation2 + $0x2a9] sm:$0xff] %v14791_v47  ;;  %1170 = vst [vmem:[#allocation2 + $0x2b9] sm:$0xff] %v14792_v27  ;;  %v14798_v47 = vmax.f32 %v14783_v38, 0.0  ;;  %v14800_v27 = vmax.f32 %v10619_v7, 0.0  ;;  %v14807_v7 = vmax.f32 %v14788_v43, 0.0  ;;  %v14848_v49 = vld [vmem:[#allocation23_spill] sm:$0xff] }
 0x20e   :  { %1171 = vst [vmem:[#allocation2 + $0x2c1] sm:$0xff] %v14793_v13  ;;  %1172 = vst [vmem:[#allocation2 + $0x2d1] sm:$0xff] %v14794_v2  ;;  %v14801_v2 = vmax.f32 %v10623_v42, 0.0  ;;  %v14808_v42 = vmax.f32 %v14789_v56, 0.0 }
 0x20f   :  { %1173 = vst [vmem:[#allocation2 + $0x2d9] sm:$0xff] %v14795_v44  ;;  %1174 = vst [vmem:[#allocation2 + $0x2e9] sm:$0xff] %v14796_v58  ;;  %v11049_v13 = vpack.c.bf16 %v14800_v27, %v14799_v25  ;;  %v14803_v58 = vmax.f32 %v10631_v17, 0.0  ;;  %v14810_v17 = vmax.f32 %v10651_v28, 0.0  ;;  %v14814_v25 = vmax.f32 %v10669_v9, 0.0  ;;  %v2631_v28 = vld [vmem:[#allocation2 + $0x1f8] sm:$0xff] }
 0x210   :  { %1175 = vst [vmem:[#allocation2 + $0x2f1] sm:$0xff] %v14797_v63  ;;  %1176 = vst [vmem:[#allocation2 + $0x301] sm:$0xff] %v14798_v47  ;;  %v11055_v44 = vpack.c.bf16 %v14802_v23, %v14801_v2  ;;  %v14805_v47 = vmax.f32 %v10639_v26, 0.0  ;;  %v14811_v26 = vmax.f32 %v10657_v37, 0.0  ;;  %v14813_v23 = vmax.f32 %v10665_v36, 0.0  ;;  %v2632_v37 = vld [vmem:[#allocation2 + $0x200] sm:$0xff] }
 0x211   :  { %v11061_v63 = vpack.c.bf16 %v14804_v57, %v14803_v58  ;;  %1177 = vst [vmem:[#allocation2 + $0x309] sm:$0xff] %v14807_v7  ;;  %1178 = vst [vmem:[#allocation2 + $0x319] sm:$0xff] %v14808_v42  ;;  %v11077_v59 = vpack.c.bf16 %v14810_v17, %v14809_v53  ;;  %7993 = vmatmul.mubr.bf16.vlgmr.msra.gmra.mrb[64].mxu0 %v11049_v13  ;;  %v2633_v2 = vld [vmem:[#allocation2 + $0x210] sm:$0xff]  ;;  %v14818_v58 = vmax.f32 %v10685_v0, 0.0  ;;  %v14819_v9 = vmax.f32 %v10690_v5, 0.0  ;;  %v2634_v5 = vld [vmem:[#allocation2 + $0x218] sm:$0xff] }
 0x212   :  { %v11067_v38 = vpack.c.bf16 %v14806_v24, %v14805_v47  ;;  %1180 = vst [vmem:[#allocation2 + $0x331] sm:$0xff] %v1038_v11  ;;  %1181 = vst [vmem:[#allocation2 + $0x339] sm:$0xff] %v1039_v3  ;;  %v11083_v57 = vpack.c.bf16 %v14812_v1, %v14811_v26  ;;  %v11089_v27 = vpack.c.bf16 %v14814_v25, %v14813_v23  ;;  %v14815_v3 = vmax.f32 %v10673_v29, 0.0  ;;  %v2635_v17 = vld [vmem:[#allocation2 + $0x228] sm:$0xff]  ;;  %v14830_v25 = vld [vmem:[#allocation34_spill] sm:$0xff] }
 0x213   :  { %v11102_v36 = vpack.c.bf16 %v14818_v58, %v14817_v34  ;;  %v14820_v47 = vmax.f32 %v10694_v62, 0.0  ;;  %v14822_v24 = vmax.f32 %v10702_v16, 0.0  ;;  %v14823_v42 = vmax.f32 %v10706_v21, 0.0  ;;  %7996 = vmatprep.mubr.bf16.mxu0 %v11055_v44  ;;  %v2636_v62 = vld [vmem:[#allocation2 + $0x230] sm:$0xff] }
 0x214   :  { %v11095_v11 = vpack.c.bf16 %v14816_v55, %v14815_v3  ;;  %v2677_v0 = vpack.c.bf16 %v2632_v37, %v2631_v28  ;;  %v14825_v26 = vmax.f32 %v10714_v20, 0.0  ;;  %v14827_v16 = vmax.f32 %v10722_v41, 0.0  ;;  %v9331_v37 = vld [vmem:[#allocation6 + $0x108] sm:$0xff]  }
 0x215   :  { %v11108_v29 = vpack.c.bf16 %v14820_v47, %v14819_v9  ;;  %v11114_v7 = vpack.c.bf16 %v14822_v24, %v14821_v31  ;;  %v11120_v53 = vpack.c.bf16 %v14824_v52, %v14823_v42  ;;  %v14828_v21 = vmax.f32 %v10726_v30, 0.0  ;;  %v14836_v9 = vld [vmem:[#allocation35_spill] sm:$0xff] }
 0x216   :  { %v11127_v1 = vpack.c.bf16 %v14826_v4, %v14825_v26  ;;  %v14831_v3 = vmax.f32 %v14830_v25, 0.0  ;;  %v2678_v28 = vpack.c.bf16 %v2634_v5, %v2633_v2  ;;  %v14832_v20 = vmax.f32 %v10746_v60, 0.0  ;;  %8057 = vmatpush3.bf16.msra.mxu0 %v14836_v9  ;;  %8268 = vmatprep.mubr.bf16.mxu1 %v2677_v0  ;;  %v14843_v0 = vld [vmem:[#allocation20_spill] sm:$0xff]  ;;  %v9343_v4 = vld [vmem:[#allocation6 + $0x10] sm:$0xff]  }
 0x217   :  { %v11133_v23 = vpack.c.bf16 %v14828_v21, %v14827_v16  ;;  %v14834_v41 = vmax.f32 %v10754_v19, 0.0  ;;  %v14835_v30 = vmax.f32 %v10758_v10, 0.0  ;;  %v2679_v47 = vpack.c.bf16 %v2636_v62, %v2635_v17  ;;  %v14850_v16 = vld [vmem:[#allocation21_spill] sm:$0xff]  ;;  %v14853_v21 = vld [vmem:[#allocation22_spill] sm:$0xff]  ;;  %8058 = vmatprep.subr.bf16.mxu0 %v9342_v40  ;;  %v2637_v9 = vld [vmem:[#allocation2 + $0x240] sm:$0xff] }
 0x218   :  { %v11139_v55 = vpack.c.bf16 %v14831_v3, %v14829_v14  ;;  %v11145_v34 = vpack.c.bf16 %v14833_v32, %v14832_v20  ;;  %v14837_v2 = vmax.f32 %v10762_v18, 0.0  ;;  %v14838_v31 = vmax.f32 %v10766_v39, 0.0  ;;  %8269 = vmatmul.mubr.bf16.vlgmr.msra.gmra.mrb[0].mxu1 %v2678_v28  ;;  %v14845_v18 = vld [vmem:[#allocation17_spill] sm:$0xff] }
 0x219   :  { %v11151_v58 = vpack.c.bf16 %v14835_v30, %v14834_v41  ;;  %v14840_v24 = vmax.f32 %v10774_v33, 0.0  ;;  %v14841_v10 = vmax.f32 %v10778_v45, 0.0  ;;  %v14842_v42 = vmax.f32 %v14763_v54, 0.0  ;;  %8297 = vmatpush3.bf16.msra.mxu1 %v14850_v16  ;;  %8272 = vmatprep.mubr.bf16.mxu1 %v2679_v47  ;;  %v14851_v45 = vld [vmem:[#allocation25_spill] sm:$0xff]  ;;  %v2642_v16 = vld [vmem:[#allocation2 + $0x278] sm:$0xff] }
 0x21a   :  { %v11158_v60 = vpack.c.bf16 %v14838_v31, %v14837_v2  ;;  %v14844_v5 = vmax.f32 %v14843_v0, 0.0  ;;  %v14846_v17 = vmax.f32 %v14845_v18, 0.0  ;;  %v14847_v62 = vmax.f32 %v14768_v61, 0.0  ;;  %8298 = vmatprep.subr.bf16.mxu1 %v9331_v37  ;;  %v9332_v61 = vld [vmem:[#allocation6 + $0x110] sm:$0xff]   ;;  %v2638_v47 = vld [vmem:[#allocation2 + $0x248] sm:$0xff]  ;;  %8059 = vmatpush3.bf16.msra.mxu0 %v9342_v40  ;;  %v2639_v40 = vld [vmem:[#allocation2 + $0x258] sm:$0xff] }
 0x21b   :  { %v11164_v19 = vpack.c.bf16 %v14840_v24, %v14839_v12  ;;  %v11170_v52 = vpack.c.bf16 %v14842_v42, %v14841_v10  ;;  %v14849_v26 = vmax.f32 %v14848_v49, 0.0  ;;  %v14852_v54 = vmax.f32 %v14851_v45, 0.0  ;;  %7997 = vmatmul.mubr.bf16.gmra.mrb[68].mxu0 %v11061_v63  ;;  %8060 = vmatprep.subr.bf16.mxu0 %v9343_v4  ;;  %v14866_v0 = vld [vmem:[#allocation27_spill] sm:$0xff]  ;;  %v9334_v49 = vld [vmem:[#allocation6 + $0x120] sm:$0xff]   ;;  %v9347_v45 = vld [vmem:[#allocation6 + $0x28] sm:$0xff]  }
 0x21c   :  { %v11176_v39 = vpack.c.bf16 %v14846_v17, %v14844_v5  ;;  %v14854_v14 = vmax.f32 %v14853_v21, 0.0  ;;  %v14855_v3 = vmax.f32 %v10810_v6, 0.0  ;;  %v14856_v28 = vmax.f32 %v10814_v46, 0.0  ;;  %8000 = vmatprep.mubr.bf16.mxu0 %v11067_v38 }
 0x21d   :  { %v11182_v33 = vpack.c.bf16 %v14849_v26, %v14847_v62  ;;  %v14857_v32 = vmax.f32 %v10818_v51, 0.0  ;;  %v14858_v41 = vmax.f32 %v10822_v35, 0.0  ;;  %v14859_v2 = vmax.f32 %v10826_v8, 0.0  ;;  %v14864_v35 = vld [vmem:[#allocation24_spill] sm:$0xff]  ;;  %8299 = vmatpush3.bf16.msra.mxu1 %v9331_v37  ;;  %v2641_v26 = vld [vmem:[#allocation2 + $0x270] sm:$0xff] }
 0x21e   :  { %v11189_v25 = vpack.c.bf16 %v14854_v14, %v14852_v54  ;;  %v11195_v20 = vpack.c.bf16 %v14856_v28, %v14855_v3  ;;  %v14860_v6 = vmax.f32 %v10830_v22, 0.0  ;;  %v14861_v46 = vmax.f32 %v10834_v15, 0.0  ;;  %v2640_v8 = vld [vmem:[#allocation2 + $0x260] sm:$0xff]  ;;  %v9345_v22 = vld [vmem:[#allocation6 + $0x18] sm:$0xff]   ;;  %8300 = vmatprep.subr.bf16.mxu1 %v9332_v61  ;;  %8061 = vmatpush3.bf16.msra.mxu0 %v9343_v4  ;;  %v2644_v37 = vld [vmem:[#allocation2 + $0x290] sm:$0xff] }
 0x21f   :  { %v11201_v30 = vpack.c.bf16 %v14858_v41, %v14857_v32  ;;  %v14862_v12 = vmax.f32 %v10838_v50, 0.0  ;;  %v14863_v51 = vmax.f32 %v10842_v48, 0.0  ;;  %v14865_v10 = vmax.f32 %v14864_v35, 0.0  ;;  %v9333_v48 = vld [vmem:[#allocation6 + $0x118] sm:$0xff]   ;;  %8062 = vmatprep.subr.bf16.mxu0 %v9345_v22  ;;  %v9346_v62 = vld [vmem:[#allocation6 + $0x20] sm:$0xff]   ;;  %v9335_v54 = vld [vmem:[#allocation6 + $0x128] sm:$0xff]  }
 0x220   :  { %v11207_v31 = vpack.c.bf16 %v14860_v6, %v14859_v2  ;;  %v14867_v5 = vmax.f32 %v14866_v0, 0.0  ;;  %v14868_v15 = vmax.f32 %v14788_v43, 0.0  ;;  %v2680_v50 = vpack.c.bf16 %v2638_v47, %v2637_v9  ;;  %v2643_v43 = vld [vmem:[#allocation2 + $0x288] sm:$0xff]  ;;  %v9348_v14 = vld [vmem:[#allocation6 + $0x30] sm:$0xff]   ;;  %v2645_v28 = vld [vmem:[#allocation2 + $0x2a0] sm:$0xff] }
 0x221   :  { %v11213_v24 = vpack.c.bf16 %v14862_v12, %v14861_v46  ;;  %v11219_v42 = vpack.c.bf16 %v14865_v10, %v14863_v51  ;;  %v2681_v17 = vpack.c.bf16 %v2640_v8, %v2639_v40  ;;  %8301 = vmatpush3.bf16.msra.mxu1 %v9332_v61  ;;  %v2682_v4 = vpack.c.bf16 %v2642_v16, %v2641_v26  ;;  %v9336_v3 = vld [vmem:[#allocation6 + $0x130] sm:$0xff]   ;;  %v2646_v61 = vld [vmem:[#allocation2 + $0x2a8] sm:$0xff]  ;;  %v2647_v32 = vld [vmem:[#allocation2 + $0x2b8] sm:$0xff] }
 0x222   :  { %v11226_v18 = vpack.c.bf16 %v14868_v15, %v14867_v5  ;;  %8273 = vmatmul.mubr.bf16.gmra.mrb[4].mxu1 %v2680_v50  ;;  %8302 = vmatprep.subr.bf16.mxu1 %v9333_v48  ;;  %v2683_v21 = vpack.c.bf16 %v2644_v37, %v2643_v43  ;;  %v2648_v41 = vld [vmem:[#allocation2 + $0x2c0] sm:$0xff]  ;;  %v9350_v9 = vld [vmem:[#allocation6 + $0x38] sm:$0xff]   ;;  %v2684_v47 = vpack.c.bf16 %v2646_v61, %v2645_v28  ;;  %v2649_v12 = vld [vmem:[#allocation2 + $0x2d0] sm:$0xff] }
 0x223   :  { %8276 = vmatprep.mubr.bf16.mxu1 %v2681_v17  ;;  %8063 = vmatpush3.bf16.msra.mxu0 %v9345_v22  ;;  %v9337_v2 = vld [vmem:[#allocation6 + $0x138] sm:$0xff]   ;;  %v2685_v6 = vpack.c.bf16 %v2648_v41, %v2647_v32  ;;  %v9338_v46 = vld [vmem:[#allocation6 + $0x140] sm:$0xff]   ;;  %v2651_v35 = vld [vmem:[#allocation2 + $0x2e8] sm:$0xff] }
 0x224   :  { %8001 = vmatmul.mubr.bf16.gmra.mrb[72].mxu0 %v11077_v59  ;;  %8064 = vmatprep.subr.bf16.mxu0 %v9346_v62  ;;  %v2650_v51 = vld [vmem:[#allocation2 + $0x2d8] sm:$0xff]  ;;  %v2652_v10 = vld [vmem:[#allocation2 + $0x2f0] sm:$0xff]  ;;  %v2653_v22 = vld [vmem:[#allocation2 + $0x300] sm:$0xff] }
 0x225   :  { %8004 = vmatprep.mubr.bf16.mxu0 %v11083_v57  ;;  %8303 = vmatpush3.bf16.msra.mxu1 %v9333_v48  ;;  %v2686_v40 = vpack.c.bf16 %v2650_v51, %v2649_v12  ;;  %v2687_v8 = vpack.c.bf16 %v2652_v10, %v2651_v35  ;;  %v2654_v0 = vld [vmem:[#allocation2 + $0x308] sm:$0xff]  ;;  %v2655_v5 = vld [vmem:[#allocation2 + $0x318] sm:$0xff]  ;;  %v2656_v15 = vld [vmem:[#allocation2 + $0x320] sm:$0xff] }
 0x226   :  { %8304 = vmatprep.subr.bf16.mxu1 %v9334_v49  ;;  %v2688_v50 = vpack.c.bf16 %v2654_v0, %v2653_v22  ;;  %v2689_v48 = vpack.c.bf16 %v2656_v15, %v2655_v5  ;;  %v2657_v17 = vld [vmem:[#allocation2 + $0x330] sm:$0xff]  ;;  %v1327_v16 = vld [vmem:[#allocation2 + $0x1b9] sm:$0xff]  ;;  %v9339_v37 = vld [vmem:[#allocation6 + $0x148] sm:$0xff]  }
 0x227   :  { %8065 = vmatpush3.bf16.msra.mxu0 %v9346_v62  ;;  %v2658_v62 = vld [vmem:[#allocation2 + $0x338] sm:$0xff]  ;;  %v9359_v61 = vld [vmem:[#allocation6 + $0x90] sm:$0xff]   ;;  %v1188_v41 = vld [vmem:[#allocation2 + $0x48] sm:$0xff] }
 0x228   :  { %8066 = vmatprep.subr.bf16.mxu0 %v9347_v45  ;;  %v1326_v26 = vld [vmem:[#allocation2 + $0x1b1] sm:$0xff]  ;;  %v3151_v51 = vld [vmem:[#allocation2 + $0x241] sm:$0xff]  ;;  %v3152_v35 = vld [vmem:[#allocation2 + $0x249] sm:$0xff] }
 0x229   :  { %8305 = vmatpush3.bf16.msra.mxu1 %v9334_v49  ;;  %v2690_v49 = vpack.c.bf16 %v2658_v62, %v2657_v17  ;;  %v1374_v43 = vpack.c.bf16 %v1327_v16, %v1326_v26  ;;  %v3153_v10 = vld [vmem:[#allocation2 + $0x259] sm:$0xff]  ;;  %v9363_v62 = vld [vmem:[#allocation6 + $0xa8] sm:$0xff]   ;;  %v3155_v26 = vld [vmem:[#allocation2 + $0x271] sm:$0xff] }
 0x22a   :  { %8277 = vmatmul.mubr.bf16.gmra.mrb[8].mxu1 %v2682_v4  ;;  %8306 = vmatprep.subr.bf16.mxu1 %v9335_v54  ;;  %v9344_v4 = vld [vmem:[#allocation6 + $0x158] sm:$0xff]   ;;  %v9362_v22 = vld [vmem:[#allocation6 + $0xa0] sm:$0xff]  }
 0x22b   :  { %8280 = vmatprep.mubr.bf16.mxu1 %v2683_v21  ;;  %8067 = vmatpush3.bf16.msra.mxu0 %v9347_v45  ;;  %v9340_v45 = vld [vmem:[#allocation6 + $0x150] sm:$0xff]   ;;  %v3148_v21 = vld [vmem:[#allocation2 + $0x219] sm:$0xff] }
 0x22c   :  { %8005 = vmatmul.mubr.bf16.gmra.mrb[76].mxu0 %v11089_v27  ;;  %8068 = vmatprep.subr.bf16.mxu0 %v9348_v14  ;;  %v1192_v5 = vld [vmem:[#allocation2 + $0x78] sm:$0xff]  ;;  %v1193_v15 = vld [vmem:[#allocation2 + $0x80] sm:$0xff] }
 0x22d   :  { %8008 = vmatprep.mubr.bf16.mxu0 %v11095_v11  ;;  %8307 = vmatpush3.bf16.msra.mxu1 %v9335_v54  ;;  %v3147_v54 = vld [vmem:[#allocation2 + $0x211] sm:$0xff]  ;;  %v11289_v17 = vpack.c.bf16 %v1193_v15, %v1192_v5  ;;  %v3156_v16 = vld [vmem:[#allocation2 + $0x279] sm:$0xff] }
 0x22e   :  { %8308 = vmatprep.subr.bf16.mxu1 %v9336_v3  ;;  %v3192_v28 = vpack.c.bf16 %v3148_v21, %v3147_v54  ;;  %v1204_v21 = vld [vmem:[#allocation2 + $0x108] sm:$0xff]  ;;  %v3172_v5 = vld [vmem:[#allocation2 + $0x339] sm:$0xff] }
 0x22f   :  { %8069 = vmatpush3.bf16.msra.mxu0 %v9348_v14  ;;  %v3149_v14 = vld [vmem:[#allocation2 + $0x229] sm:$0xff]  ;;  %v3623_v15 = vld [vmem:[#allocation2 + $0x1a] sm:$0xff] }
 0x230   :  { %8070 = vmatprep.subr.bf16.mxu0 %v9350_v9 }
 0x231   :  { %8309 = vmatpush3.bf16.msra.mxu1 %v9336_v3  ;;  %v3150_v3 = vld [vmem:[#allocation2 + $0x231] sm:$0xff] }
 0x232   :  { %8281 = vmatmul.mubr.bf16.gmra.mrb[12].mxu1 %v2684_v47  ;;  %8310 = vmatprep.subr.bf16.mxu1 %v9337_v2  ;;  %v3193_v32 = vpack.c.bf16 %v3150_v3, %v3149_v14  ;;  %v1190_v47 = vld [vmem:[#allocation2 + $0x60] sm:$0xff]  ;;  %v1205_v14 = vld [vmem:[#allocation2 + $0x110] sm:$0xff] }
 0x233   :  { %8284 = vmatprep.mubr.bf16.mxu1 %v2685_v6  ;;  %8071 = vmatpush3.bf16.msra.mxu0 %v9350_v9  ;;  %v1189_v9 = vld [vmem:[#allocation2 + $0x50] sm:$0xff]  ;;  %v1206_v3 = vld [vmem:[#allocation2 + $0x120] sm:$0xff] }
 0x234   :  { %8009 = vmatmul.mubr.bf16.gmra.mrb[80].mxu0 %v11102_v36  ;;  %v11283_v6 = vpack.c.bf16 %v1189_v9, %v1188_v41  ;;  %v3167_v41 = vld [vmem:[#allocation2 + $0x301] sm:$0xff]  ;;  %v3168_v9 = vld [vmem:[#allocation2 + $0x309] sm:$0xff] }
 0x235   :  { %8012 = vmatprep.mubr.bf16.mxu0 %v11108_v29  ;;  %8311 = vmatpush3.bf16.msra.mxu1 %v9337_v2  ;;  %v1191_v2 = vld [vmem:[#allocation2 + $0x68] sm:$0xff] }
 0x236   :  { %8376 = vmatprep.subr.bf16.mxu1 %v9338_v46  ;;  %v11285_v12 = vpack.c.bf16 %v1191_v2, %v1190_v47  ;;  %v3169_v47 = vld [vmem:[#allocation2 + $0x319] sm:$0xff]  ;;  %v3202_v2 = vpack.c.bf16 %v3168_v9, %v3167_v41 }
 0x237   :  { %v3636_v41 = vld [vmem:[#allocation2 + $0xb2] sm:$0xff] }
 0x23a   :  { %8285 = vmatmul.mubr.bf16.gmra.mrb[16].mxu1 %v2686_v40  ;;  %v3154_v40 = vld [vmem:[#allocation2 + $0x261] sm:$0xff] }
 0x23b   :  { %8288 = vmatprep.mubr.bf16.mxu1 %v2687_v8  ;;  %v3194_v8 = vpack.c.bf16 %v3152_v35, %v3151_v51  ;;  %v3195_v0 = vpack.c.bf16 %v3154_v40, %v3153_v10  ;;  %v1208_v51 = vld [vmem:[#allocation2 + $0x138] sm:$0xff]  ;;  %v1209_v35 = vld [vmem:[#allocation2 + $0x140] sm:$0xff]  ;;  %v1210_v10 = vld [vmem:[#allocation2 + $0x150] sm:$0xff] }
 0x23c   :  { %8013 = vmatmul.mubr.bf16.gmra.mrb[84].mxu0 %v11114_v7  ;;  %v1211_v40 = vld [vmem:[#allocation2 + $0x158] sm:$0xff] }
 0x23d   :  { %8016 = vmatprep.mubr.bf16.mxu0 %v11120_v53 }
 0x242   :  { %8289 = vmatmul.mubr.bf16.gmra.mrb[20].mxu1 %v2688_v50  ;;  %v1194_v50 = vld [vmem:[#allocation2 + $0x90] sm:$0xff] }
 0x243   :  { %8292 = vmatprep.mubr.bf16.mxu1 %v2689_v48  ;;  %v1195_v48 = vld [vmem:[#allocation2 + $0x98] sm:$0xff] }
 0x244   :  { %8017 = vmatmul.mubr.bf16.gmra.mrb[88].mxu0 %v11127_v1 }
 0x245   :  { %8020 = vmatprep.mubr.bf16.mxu0 %v11133_v23 }
 0x24a   :  { %8293 = vmatmul.mubr.bf16.gmra.mrb[24].mxu1 %v2690_v49  ;;  %v11291_v49 = vpack.c.bf16 %v1195_v48, %v1194_v50  ;;  %v3624_v50 = vld [vmem:[#allocation2 + $0x22] sm:$0xff] }
 0x24b   :  { %8312 = vmatprep.mubr.bf16.mxu1 %v11049_v13  ;;  %v9349_v13 = vld [vmem:[#allocation6 + $0x160] sm:$0xff]  }
 0x24c   :  { %8021 = vmatmul.mubr.bf16.gmra.mrb[92].mxu0 %v11139_v55 }
 0x24d   :  { %8024 = vmatprep.mubr.bf16.mxu0 %v1374_v43  ;;  %v3157_v43 = vld [vmem:[#allocation2 + $0x289] sm:$0xff] }
 0x252   :  { %8313 = vmatmul.mubr.bf16.vlgmr.msra.gmra.mrb[28].mxu1 %v11055_v44  ;;  %v9351_v44 = vld [vmem:[#allocation6 + $0x168] sm:$0xff]  }
 0x253   :  { %8377 = vmatpush3.bf16.msra.mxu1 %v9338_v46  ;;  %8316 = vmatprep.mubr.bf16.mxu1 %v11061_v63  ;;  %v9352_v63 = vld [vmem:[#allocation6 + $0x170] sm:$0xff]   ;;  %v9361_v46 = vld [vmem:[#allocation6 + $0x98] sm:$0xff]  }
 0x254   :  { %8378 = vmatprep.subr.bf16.mxu1 %v9339_v37  ;;  %8025 = vmatmul.mubr.bf16.gmra.mrb[96].mxu0 %v11145_v34  ;;  %v11272_v34 = vld [vmem:[#allocation2 + $0x321] sm:$0xff] }
 0x255   :  { %8028 = vmatprep.mubr.bf16.mxu0 %v11151_v58 }
 0x257   :  { %8379 = vmatpush3.bf16.msra.mxu1 %v9339_v37  ;;  %v3158_v37 = vld [vmem:[#allocation2 + $0x291] sm:$0xff] }
 0x258   :  { %8380 = vmatprep.subr.bf16.mxu1 %v9340_v45 }
 0x25a   :  { %8317 = vmatmul.mubr.bf16.gmra.mrb[32].mxu1 %v11067_v38  ;;  %v9353_v38 = vld [vmem:[#allocation6 + $0x178] sm:$0xff]  }
 0x25b   :  { %8320 = vmatprep.mubr.bf16.mxu1 %v11077_v59  ;;  %8381 = vmatpush3.bf16.msra.mxu1 %v9340_v45  ;;  %v11255_v59 = vld [vmem:[#allocation6 + $0x180] sm:$0xff]   ;;  %v3196_v45 = vpack.c.bf16 %v3156_v16, %v3155_v26  ;;  %v1213_v26 = vld [vmem:[#allocation2 + $0x170] sm:$0xff] }
 0x25c   :  { %8382 = vmatprep.subr.bf16.mxu1 %v9344_v4  ;;  %8029 = vmatmul.mubr.bf16.gmra.mrb[100].mxu0 %v11158_v60  ;;  %v3143_v60 = vld [vmem:[#allocation2 + $0x1e1] sm:$0xff] }
 0x25d   :  { %8032 = vmatprep.mubr.bf16.mxu0 %v11164_v19  ;;  %v3144_v19 = vld [vmem:[#allocation2 + $0x1e9] sm:$0xff] }
 0x25f   :  { %8383 = vmatpush3.bf16.msra.mxu1 %v9344_v4  ;;  %v9364_v4 = vld [vmem:[#allocation6 + $0xb0] sm:$0xff]  }
 0x260   :  { %8384 = vmatprep.subr.bf16.mxu1 %v9349_v13 }
 0x262   :  { %8321 = vmatmul.mubr.bf16.gmra.mrb[36].mxu1 %v11083_v57  ;;  %v9357_v57 = vld [vmem:[#allocation6 + $0x80] sm:$0xff]  }
 0x263   :  { %8324 = vmatprep.mubr.bf16.mxu1 %v11089_v27  ;;  %8385 = vmatpush3.bf16.msra.mxu1 %v9349_v13  ;;  %v3139_v27 = vld [vmem:[#allocation2 + $0x181] sm:$0xff]  ;;  %v3197_v13 = vpack.c.bf16 %v3158_v37, %v3157_v43  ;;  %v3625_v43 = vld [vmem:[#allocation2 + $0x32] sm:$0xff] }
 0x264   :  { %8386 = vmatprep.subr.bf16.mxu1 %v9351_v44  ;;  %8033 = vmatmul.mubr.bf16.gmra.mrb[104].mxu0 %v11170_v52  ;;  %v3145_v52 = vld [vmem:[#allocation2 + $0x1f9] sm:$0xff] }
 0x265   :  { %8036 = vmatprep.mubr.bf16.mxu0 %v11176_v39  ;;  %8136 = vmatprep.subr.bf16.mxu0 %v9357_v57  ;;  %v3146_v39 = vld [vmem:[#allocation2 + $0x201] sm:$0xff] }
 0x266   :  { %v3626_v37 = vld [vmem:[#allocation2 + $0x3a] sm:$0xff] }
 0x267   :  { %8387 = vmatpush3.bf16.msra.mxu1 %v9351_v44  ;;  %v1196_v44 = vld [vmem:[#allocation2 + $0xa8] sm:$0xff] }
 0x268   :  { %8388 = vmatprep.subr.bf16.mxu1 %v9352_v63 }
 0x26a   :  { %8325 = vmatmul.mubr.bf16.gmra.mrb[40].mxu1 %v11095_v11  ;;  %v3140_v11 = vld [vmem:[#allocation2 + $0x189] sm:$0xff] }
 0x26b   :  { %8328 = vmatprep.mubr.bf16.mxu1 %v11102_v36  ;;  %8389 = vmatpush3.bf16.msra.mxu1 %v9352_v63  ;;  %v3141_v36 = vld [vmem:[#allocation2 + $0x1c9] sm:$0xff] }
 0x26c   :  { %8390 = vmatprep.subr.bf16.mxu1 %v9353_v38  ;;  %8037 = vmatmul.mubr.bf16.gmra.mrb[108].mxu0 %v11182_v33  ;;  %v3190_v33 = vpack.c.bf16 %v3144_v19, %v3143_v60  ;;  %v1197_v63 = vld [vmem:[#allocation2 + $0xb0] sm:$0xff]  ;;  %v1200_v60 = vld [vmem:[#allocation2 + $0xd8] sm:$0xff]  ;;  %v1201_v19 = vld [vmem:[#allocation2 + $0xe0] sm:$0xff] }
 0x26d   :  { %8040 = vmatprep.mubr.bf16.mxu0 %v11189_v25  ;;  %v3191_v25 = vpack.c.bf16 %v3146_v39, %v3145_v52  ;;  %v1202_v52 = vld [vmem:[#allocation2 + $0xf0] sm:$0xff]  ;;  %v1203_v39 = vld [vmem:[#allocation2 + $0xf8] sm:$0xff] }
 0x26f   :  { %8391 = vmatpush3.bf16.msra.mxu1 %v9353_v38  ;;  %v1198_v38 = vld [vmem:[#allocation2 + $0xc0] sm:$0xff] }
 0x270   :  { %8456 = vmatprep.subr.bf16.mxu1 %v11255_v59 }
 0x272   :  { %8329 = vmatmul.mubr.bf16.gmra.mrb[44].mxu1 %v11108_v29  ;;  %v3142_v29 = vld [vmem:[#allocation2 + $0x1d1] sm:$0xff] }
 0x273   :  { %8332 = vmatprep.mubr.bf16.mxu1 %v11114_v7  ;;  %v3188_v7 = vpack.c.bf16 %v3140_v11, %v3139_v27  ;;  %v11295_v27 = vpack.c.bf16 %v1197_v63, %v1196_v44  ;;  %v9366_v11 = vld [vmem:[#allocation6 + $0xb8] sm:$0xff]   ;;  %v9355_v44 = vld [vmem:[#allocation6 + $0x188] sm:$0xff]  }
 0x274   :  { %8041 = vmatmul.mubr.bf16.gmra.mrb[112].mxu0 %v11195_v20  ;;  %v1184_v20 = vld [vmem:[#allocation2 + $0x18] sm:$0xff] }
 0x275   :  { %8044 = vmatprep.mubr.bf16.mxu0 %v11201_v30  ;;  %v1185_v30 = vld [vmem:[#allocation2 + $0x20] sm:$0xff] }
 0x27a   :  { %8333 = vmatmul.mubr.bf16.gmra.mrb[48].mxu1 %v11120_v53  ;;  %v3189_v53 = vpack.c.bf16 %v3142_v29, %v3141_v36  ;;  %v3159_v29 = vld [vmem:[#allocation2 + $0x2a1] sm:$0xff] }
 0x27b   :  { %8336 = vmatprep.mubr.bf16.mxu1 %v11127_v1  ;;  %v9400_v1 = vld [vmem:[#allocation2] sm:$0xff] }
 0x27c   :  { %8045 = vmatmul.mubr.bf16.gmra.mrb[116].mxu0 %v11207_v31  ;;  %v11274_v58 = vpack.c.bf16 %v9400_v1, %v9400_v1  ;;  %v1186_v31 = vld [vmem:[#allocation2 + $0x30] sm:$0xff]  ;;  %v3162_v1 = vld [vmem:[#allocation2 + $0x2c1] sm:$0xff] }
 0x27d   :  { %8048 = vmatprep.mubr.bf16.mxu0 %v11213_v24  ;;  %v1187_v24 = vld [vmem:[#allocation2 + $0x38] sm:$0xff] }
 0x282   :  { %8337 = vmatmul.mubr.bf16.gmra.mrb[52].mxu1 %v11133_v23  ;;  %v14869_v23 = vmax.f32 %v14789_v56, 0.0  ;;  %v11280_v56 = vpack.c.bf16 %v1187_v24, %v1186_v31  ;;  %v3164_v31 = vld [vmem:[#allocation2 + $0x2d9] sm:$0xff]  ;;  %v3165_v24 = vld [vmem:[#allocation2 + $0x2e9] sm:$0xff] }
 0x283   :  { %8340 = vmatprep.mubr.bf16.mxu1 %v11139_v55 }
 0x284   :  { %8049 = vmatmul.mubr.bf16.gmra.mrb[120].mxu0 %v11219_v42  ;;  %v1389_v55 = vpack.c.bf16 %v11272_v34, %v14869_v23  ;;  %v1247_v42 = vpack.c.bf16 %v1185_v30, %v1184_v20  ;;  %v11306_v20 = vpack.c.bf16 %v1203_v39, %v1202_v52  ;;  %v3163_v30 = vld [vmem:[#allocation2 + $0x2d1] sm:$0xff] }
 0x285   :  { %8052 = vmatprep.mubr.bf16.mxu0 %v11226_v18  ;;  %v9358_v18 = vld [vmem:[#allocation6 + $0x88] sm:$0xff]   ;;  %v9360_v39 = vld [vmem:[#allocation6 + $0x198] sm:$0xff]  }
 0x28a   :  { %8341 = vmatmul.mubr.bf16.gmra.mrb[56].mxu1 %v3188_v7  ;;  %v3160_v7 = vld [vmem:[#allocation2 + $0x2a9] sm:$0xff] }
 0x28b   :  { %8344 = vmatprep.mubr.bf16.mxu1 %v3189_v53  ;;  %v3161_v53 = vld [vmem:[#allocation2 + $0x2b9] sm:$0xff]  ;;  %v3198_v23 = vpack.c.bf16 %v3160_v7, %v3159_v29  ;;  %v1219_v29 = vld [vmem:[#allocation2 + $0x1e8] sm:$0xff] }
 0x28c   :  { %8053 = vmatmul.mubr.bf16.gmra.mrb[124].mxu0 %v1389_v55  ;;  %v3199_v55 = vpack.c.bf16 %v3162_v1, %v3161_v53  ;;  %v9356_v53 = vld [vmem:[#allocation6 + $0x190] sm:$0xff]  }
 0x28d   :  { %8072 = vmatprep.mubr.bf16.mxu0 %v11274_v58 }
 0x292   :  { %8345 = vmatmul.mubr.bf16.gmra.mrb[60].mxu1 %v3190_v33  ;;  %v11301_v33 = vpack.c.bf16 %v1201_v19, %v1200_v60  ;;  %v3631_v60 = vld [vmem:[#allocation2 + $0x7a] sm:$0xff]  ;;  %v3632_v19 = vld [vmem:[#allocation2 + $0x82] sm:$0xff] }
 0x293   :  { %8348 = vmatprep.mubr.bf16.mxu1 %v3191_v25  ;;  %v11303_v25 = vld [vmem:[#allocation6 + $0xc0] sm:$0xff]  }
 0x294   :  { %8073 = vmatmul.mubr.bf16.vlgmr.msra.gmra.mrb[64].mxu0 %v1247_v42  ;;  %v3166_v42 = vld [vmem:[#allocation2 + $0x2f1] sm:$0xff] }
 0x295   :  { %8076 = vmatprep.mubr.bf16.mxu0 %v11280_v56  ;;  %8137 = vmatpush3.bf16.msra.mxu0 %v9357_v57  ;;  %v1199_v57 = vld [vmem:[#allocation2 + $0xc8] sm:$0xff]  ;;  %v3201_v54 = vpack.c.bf16 %v3166_v42, %v3165_v24  ;;  %v1222_v24 = vld [vmem:[#allocation2 + $0x210] sm:$0xff]  ;;  %v1223_v42 = vld [vmem:[#allocation2 + $0x218] sm:$0xff] }
 0x296   :  { %8138 = vmatprep.subr.bf16.mxu0 %v9358_v18  ;;  %v11297_v36 = vpack.c.bf16 %v1199_v57, %v1198_v38  ;;  %v1216_v38 = vld [vmem:[#allocation2 + $0x1c8] sm:$0xff]  ;;  %v1217_v57 = vld [vmem:[#allocation2 + $0x1d0] sm:$0xff] }
 0x297   :  { %v1263_v7 = vpack.c.bf16 %v1217_v57, %v1216_v38  ;;  %v1231_v38 = vld [vmem:[#allocation2 + $0x278] sm:$0xff] }
 0x299   :  { %8139 = vmatpush3.bf16.msra.mxu0 %v9358_v18  ;;  %v3200_v18 = vpack.c.bf16 %v3164_v31, %v3163_v30  ;;  %v1220_v30 = vld [vmem:[#allocation2 + $0x1f8] sm:$0xff]  ;;  %v1221_v31 = vld [vmem:[#allocation2 + $0x200] sm:$0xff] }
 0x29a   :  { %8349 = vmatmul.mubr.bf16.gmra.mrb[0].mxu1 %v3192_v28  ;;  %8140 = vmatprep.subr.bf16.mxu0 %v9359_v61  ;;  %v1207_v28 = vld [vmem:[#allocation2 + $0x128] sm:$0xff] }
 0x29b   :  { %8352 = vmatprep.mubr.bf16.mxu1 %v3193_v32  ;;  %v11312_v32 = vpack.c.bf16 %v1207_v28, %v1206_v3  ;;  %v3634_v3 = vld [vmem:[#allocation2 + $0x9a] sm:$0xff]  ;;  %v3635_v28 = vld [vmem:[#allocation2 + $0xaa] sm:$0xff] }
 0x29c   :  { %8077 = vmatmul.mubr.bf16.gmra.mrb[68].mxu0 %v11283_v6 }
 0x29d   :  { %8080 = vmatprep.mubr.bf16.mxu0 %v11285_v12  ;;  %8141 = vmatpush3.bf16.msra.mxu0 %v9359_v61  ;;  %v11310_v61 = vpack.c.bf16 %v1205_v14, %v1204_v21  ;;  %v11348_v21 = vpack.c.bf16 %v1223_v42, %v1222_v24  ;;  %v3633_v14 = vld [vmem:[#allocation2 + $0x92] sm:$0xff]  ;;  %v1235_v24 = vld [vmem:[#allocation2 + $0x2a8] sm:$0xff] }
 0x29e   :  { %8142 = vmatprep.subr.bf16.mxu0 %v9361_v46  ;;  %v11352_v9 = vpack.c.bf16 %v3634_v3, %v3633_v14  ;;  %v3645_v14 = vld [vmem:[#allocation2 + $0x122] sm:$0xff]  ;;  %v3646_v3 = vld [vmem:[#allocation2 + $0x12a] sm:$0xff] }
 0x2a1   :  { %8143 = vmatpush3.bf16.msra.mxu0 %v9361_v46  ;;  %v3203_v46 = vpack.c.bf16 %v11272_v34, %v3169_v47  ;;  %v11323_v34 = vpack.c.bf16 %v3624_v50, %v3623_v15  ;;  %v9367_v47 = vld [vmem:[#allocation6 + $0x1a8] sm:$0xff]  }
 0x2a2   :  { %8353 = vmatmul.mubr.bf16.gmra.mrb[4].mxu1 %v3194_v8  ;;  %8144 = vmatprep.subr.bf16.mxu0 %v9362_v22  ;;  %v11317_v8 = vpack.c.bf16 %v1209_v35, %v1208_v51  ;;  %v1225_v51 = vld [vmem:[#allocation2 + $0x230] sm:$0xff]  ;;  %v1226_v35 = vld [vmem:[#allocation2 + $0x240] sm:$0xff] }
 0x2a3   :  { %8356 = vmatprep.mubr.bf16.mxu1 %v3195_v0  ;;  %v3171_v0 = vld [vmem:[#allocation2 + $0x331] sm:$0xff]  ;;  %v3637_v15 = vld [vmem:[#allocation2 + $0xc2] sm:$0xff] }
 0x2a4   :  { %8081 = vmatmul.mubr.bf16.gmra.mrb[72].mxu0 %v11289_v17  ;;  %v3204_v48 = vpack.c.bf16 %v3172_v5, %v3171_v0  ;;  %v9368_v0 = vld [vmem:[#allocation6 + $0x1b0] sm:$0xff]  }
 0x2a5   :  { %8084 = vmatprep.mubr.bf16.mxu0 %v11291_v49  ;;  %8145 = vmatpush3.bf16.msra.mxu0 %v9362_v22  ;;  %v11319_v22 = vpack.c.bf16 %v1211_v40, %v1210_v10  ;;  %v1227_v10 = vld [vmem:[#allocation2 + $0x248] sm:$0xff] }
 0x2a6   :  { %8146 = vmatprep.subr.bf16.mxu0 %v9363_v62  ;;  %v11360_v5 = vpack.c.bf16 %v1227_v10, %v1226_v35  ;;  %v3638_v50 = vld [vmem:[#allocation2 + $0xca] sm:$0xff]  ;;  %v1237_v35 = vld [vmem:[#allocation2 + $0x2c0] sm:$0xff] }
 0x2a7   :  { %v1238_v10 = vld [vmem:[#allocation2 + $0x2d0] sm:$0xff] }
 0x2a9   :  { %8147 = vmatpush3.bf16.msra.mxu0 %v9363_v62  ;;  %v1212_v62 = vld [vmem:[#allocation2 + $0x168] sm:$0xff] }
 0x2aa   :  { %8357 = vmatmul.mubr.bf16.gmra.mrb[8].mxu1 %v3196_v45  ;;  %8148 = vmatprep.subr.bf16.mxu0 %v9364_v4  ;;  %v11326_v16 = vpack.c.bf16 %v1213_v26, %v1212_v62  ;;  %v3627_v45 = vld [vmem:[#allocation2 + $0x4a] sm:$0xff]  ;;  %v3640_v62 = vld [vmem:[#allocation2 + $0xe2] sm:$0xff]  ;;  %v11364_v26 = vpack.c.bf16 %v3638_v50, %v3637_v15 }
 0x2ab   :  { %8360 = vmatprep.mubr.bf16.mxu1 %v3197_v13  ;;  %v11330_v13 = vpack.c.bf16 %v3626_v37, %v3625_v43  ;;  %v9369_v43 = vld [vmem:[#allocation6 + $0x1b8] sm:$0xff]  }
 0x2ac   :  { %8085 = vmatmul.mubr.bf16.gmra.mrb[76].mxu0 %v11295_v27 }
 0x2ad   :  { %8088 = vmatprep.mubr.bf16.mxu0 %v11297_v36  ;;  %8149 = vmatpush3.bf16.msra.mxu0 %v9364_v4  ;;  %v3628_v4 = vld [vmem:[#allocation2 + $0x52] sm:$0xff] }
 0x2ae   :  { %8150 = vmatprep.subr.bf16.mxu0 %v9366_v11  ;;  %v11332_v63 = vpack.c.bf16 %v3628_v4, %v3627_v45  ;;  %v1228_v45 = vld [vmem:[#allocation2 + $0x258] sm:$0xff]  ;;  %v1229_v4 = vld [vmem:[#allocation2 + $0x260] sm:$0xff] }
 0x2af   :  { %v11370_v57 = vpack.c.bf16 %v1229_v4, %v1228_v45  ;;  %v3652_v45 = vld [vmem:[#allocation2 + $0x172] sm:$0xff] }
 0x2b1   :  { %8151 = vmatpush3.bf16.msra.mxu0 %v9366_v11  ;;  %v1218_v11 = vld [vmem:[#allocation2 + $0x1e0] sm:$0xff] }
 0x2b2   :  { %8361 = vmatmul.mubr.bf16.gmra.mrb[12].mxu1 %v3198_v23  ;;  %8216 = vmatprep.subr.bf16.mxu0 %v11303_v25  ;;  %v11337_v1 = vpack.c.bf16 %v1219_v29, %v1218_v11  ;;  %v3629_v23 = vld [vmem:[#allocation2 + $0x62] sm:$0xff] }
 0x2b3   :  { %8364 = vmatprep.mubr.bf16.mxu1 %v3199_v55  ;;  %v3630_v55 = vld [vmem:[#allocation2 + $0x6a] sm:$0xff]  ;;  %v11372_v11 = vld [vmem:[#allocation6 + $0x1c0] sm:$0xff]  }
 0x2b4   :  { %8089 = vmatmul.mubr.bf16.gmra.mrb[80].mxu0 %v11301_v33  ;;  %v11340_v52 = vpack.c.bf16 %v3630_v55, %v3629_v23  ;;  %v3643_v23 = vld [vmem:[#allocation2 + $0x10a] sm:$0xff]  ;;  %v3644_v55 = vld [vmem:[#allocation2 + $0x112] sm:$0xff] }
 0x2b5   :  { %8092 = vmatprep.mubr.bf16.mxu0 %v11306_v20 }
 0x2ba   :  { %8365 = vmatmul.mubr.bf16.gmra.mrb[16].mxu1 %v3200_v18  ;;  %v11346_v18 = vpack.c.bf16 %v1221_v31, %v1220_v30  ;;  %v1233_v30 = vld [vmem:[#allocation2 + $0x290] sm:$0xff]  ;;  %v1234_v31 = vld [vmem:[#allocation2 + $0x2a0] sm:$0xff] }
 0x2bb   :  { %8368 = vmatprep.mubr.bf16.mxu1 %v3201_v54  ;;  %v9365_v54 = vld [vmem:[#allocation6 + $0x1a0] sm:$0xff]  }
 0x2bc   :  { %8093 = vmatmul.mubr.bf16.gmra.mrb[84].mxu0 %v11310_v61 }
 0x2bd   :  { %8096 = vmatprep.mubr.bf16.mxu0 %v11312_v32 }
 0x2c2   :  { %8369 = vmatmul.mubr.bf16.gmra.mrb[20].mxu1 %v3202_v2  ;;  %v11354_v2 = vpack.c.bf16 %v3636_v41, %v3635_v28  ;;  %v3647_v28 = vld [vmem:[#allocation2 + $0x13a] sm:$0xff]  ;;  %v3648_v41 = vld [vmem:[#allocation2 + $0x142] sm:$0xff] }
 0x2c3   :  { %8372 = vmatprep.mubr.bf16.mxu1 %v3203_v46  ;;  %v1224_v46 = vld [vmem:[#allocation2 + $0x228] sm:$0xff] }
 0x2c4   :  { %8097 = vmatmul.mubr.bf16.gmra.mrb[88].mxu0 %v11317_v8  ;;  %v11358_v40 = vpack.c.bf16 %v1225_v51, %v1224_v46  ;;  %v11393_v46 = vpack.c.bf16 %v3648_v41, %v3647_v28  ;;  %v1236_v51 = vld [vmem:[#allocation2 + $0x2b8] sm:$0xff]  ;;  %v2081_v28 = vld [vmem:[#allocation2 + $0x2] sm:$0xff]  ;;  %v2082_v41 = vld [vmem:[#allocation2 + $0xa] sm:$0xff] }
 0x2c5   :  { %8100 = vmatprep.mubr.bf16.mxu0 %v11319_v22  ;;  %v11397_v15 = vpack.c.bf16 %v1237_v35, %v1236_v51  ;;  %v1244_v35 = vld [vmem:[#allocation2 + $0x318] sm:$0xff] }
 0x2ca   :  { %8373 = vmatmul.mubr.bf16.gmra.mrb[24].mxu1 %v3204_v48  ;;  %v3639_v48 = vld [vmem:[#allocation2 + $0xda] sm:$0xff] }
 0x2cb   :  { %8392 = vmatprep.mubr.bf16.mxu1 %v11323_v34  ;;  %v11366_v37 = vpack.c.bf16 %v3640_v62, %v3639_v48  ;;  %v3649_v48 = vld [vmem:[#allocation2 + $0x152] sm:$0xff]  ;;  %v3650_v62 = vld [vmem:[#allocation2 + $0x15a] sm:$0xff] }
 0x2cc   :  { %8101 = vmatmul.mubr.bf16.gmra.mrb[92].mxu0 %v11326_v16  ;;  %v11403_v4 = vpack.c.bf16 %v3650_v62, %v3649_v48  ;;  %v3657_v62 = vld [vmem:[#allocation2 + $0x1e2] sm:$0xff] }
 0x2cd   :  { %8104 = vmatprep.mubr.bf16.mxu0 %v11274_v58 }
 0x2d2   :  { %8393 = vmatmul.mubr.bf16.vlgmr.msra.gmra.mrb[28].mxu1 %v11330_v13 }
 0x2d3   :  { %8457 = vmatpush3.bf16.msra.mxu1 %v11255_v59  ;;  %8396 = vmatprep.mubr.bf16.mxu1 %v11332_v63  ;;  %v11342_v59 = vpack.c.bf16 %v3632_v19, %v3631_v60  ;;  %v11381_v19 = vpack.c.bf16 %v3644_v55, %v3643_v23  ;;  %v1243_v23 = vld [vmem:[#allocation2 + $0x308] sm:$0xff] }
 0x2d4   :  { %8458 = vmatprep.subr.bf16.mxu1 %v9355_v44  ;;  %8105 = vmatmul.mubr.bf16.gmra.mrb[96].mxu0 %v1263_v7  ;;  %v3641_v7 = vld [vmem:[#allocation2 + $0xf2] sm:$0xff] }
 0x2d5   :  { %8108 = vmatprep.mubr.bf16.mxu0 %v11337_v1 }
 0x2d7   :  { %8459 = vmatpush3.bf16.msra.mxu1 %v9355_v44  ;;  %v1230_v44 = vld [vmem:[#allocation2 + $0x270] sm:$0xff] }
 0x2d8   :  { %8460 = vmatprep.subr.bf16.mxu1 %v9356_v53  ;;  %v11374_v29 = vpack.c.bf16 %v1231_v38, %v1230_v44  ;;  %v1240_v38 = vld [vmem:[#allocation2 + $0x2e8] sm:$0xff] }
 0x2da   :  { %8397 = vmatmul.mubr.bf16.gmra.mrb[32].mxu1 %v11340_v52 }
 0x2db   :  { %8400 = vmatprep.mubr.bf16.mxu1 %v11342_v59  ;;  %8461 = vmatpush3.bf16.msra.mxu1 %v9356_v53  ;;  %v3642_v53 = vld [vmem:[#allocation2 + $0xfa] sm:$0xff] }
 0x2dc   :  { %8462 = vmatprep.subr.bf16.mxu1 %v9360_v39  ;;  %8109 = vmatmul.mubr.bf16.gmra.mrb[100].mxu0 %v11346_v18  ;;  %v11378_v60 = vpack.c.bf16 %v3642_v53, %v3641_v7  ;;  %v1241_v7 = vld [vmem:[#allocation2 + $0x2f0] sm:$0xff]  ;;  %v1242_v53 = vld [vmem:[#allocation2 + $0x300] sm:$0xff] }
 0x2dd   :  { %8112 = vmatprep.mubr.bf16.mxu0 %v11348_v21  ;;  %v11409_v55 = vpack.c.bf16 %v1241_v7, %v1240_v38  ;;  %v3660_v38 = vld [vmem:[#allocation2 + $0x202] sm:$0xff] }
 0x2df   :  { %8463 = vmatpush3.bf16.msra.mxu1 %v9360_v39  ;;  %v1232_v39 = vld [vmem:[#allocation2 + $0x288] sm:$0xff] }
 0x2e0   :  { %8464 = vmatprep.subr.bf16.mxu1 %v9365_v54  ;;  %v11385_v42 = vpack.c.bf16 %v1233_v30, %v1232_v39  ;;  %v11411_v39 = vpack.c.bf16 %v1243_v23, %v1242_v53  ;;  %v3653_v30 = vld [vmem:[#allocation2 + $0x182] sm:$0xff]  ;;  %v3661_v23 = vld [vmem:[#allocation2 + $0x212] sm:$0xff] }
 0x2e2   :  { %8401 = vmatmul.mubr.bf16.gmra.mrb[36].mxu1 %v11352_v9 }
 0x2e3   :  { %8404 = vmatprep.mubr.bf16.mxu1 %v11354_v2  ;;  %8465 = vmatpush3.bf16.msra.mxu1 %v9365_v54  ;;  %v11387_v54 = vpack.c.bf16 %v1235_v24, %v1234_v31  ;;  %v3654_v31 = vld [vmem:[#allocation2 + $0x18a] sm:$0xff] }
 0x2e4   :  { %8466 = vmatprep.subr.bf16.mxu1 %v9367_v47  ;;  %8113 = vmatmul.mubr.bf16.gmra.mrb[104].mxu0 %v11358_v40  ;;  %v3655_v24 = vld [vmem:[#allocation2 + $0x1ca] sm:$0xff] }
 0x2e5   :  { %8116 = vmatprep.mubr.bf16.mxu0 %v11360_v5 }
 0x2e7   :  { %8467 = vmatpush3.bf16.msra.mxu1 %v9367_v47  ;;  %v11391_v47 = vpack.c.bf16 %v3646_v3, %v3645_v14  ;;  %v3656_v14 = vld [vmem:[#allocation2 + $0x1d2] sm:$0xff]  ;;  %v3702_v3 = vpack.c.bf16 %v3654_v31, %v3653_v30  ;;  %v3662_v30 = vld [vmem:[#allocation2 + $0x21a] sm:$0xff]  ;;  %v3663_v31 = vld [vmem:[#allocation2 + $0x22a] sm:$0xff] }
 0x2e8   :  { %8468 = vmatprep.subr.bf16.mxu1 %v9368_v0  ;;  %v11415_v51 = vpack.c.bf16 %v3656_v14, %v3655_v24  ;;  %v3664_v24 = vld [vmem:[#allocation2 + $0x232] sm:$0xff]  ;;  %v11430_v14 = vpack.c.bf16 %v3662_v30, %v3661_v23  ;;  %v9406_v30 = vld [vmem:[#allocation6 + $0xe8] sm:$0xff]  }
 0x2ea   :  { %8405 = vmatmul.mubr.bf16.gmra.mrb[40].mxu1 %v11364_v26 }
 0x2eb   :  { %8408 = vmatprep.mubr.bf16.mxu1 %v11366_v37  ;;  %8469 = vmatpush3.bf16.msra.mxu1 %v9368_v0  ;;  %v1239_v0 = vld [vmem:[#allocation2 + $0x2d8] sm:$0xff] }
 0x2ec   :  { %8470 = vmatprep.subr.bf16.mxu1 %v9369_v43  ;;  %8117 = vmatmul.mubr.bf16.gmra.mrb[108].mxu0 %v11370_v57  ;;  %v11399_v50 = vpack.c.bf16 %v1239_v0, %v1238_v10  ;;  %v1245_v10 = vld [vmem:[#allocation2 + $0x320] sm:$0xff]  ;;  %v2145_v0 = vpack.c.bf16 %v2082_v41, %v2081_v28  ;;  %v11432_v28 = vpack.c.bf16 %v3664_v24, %v3663_v31  ;;  %v9403_v41 = vld [vmem:[#allocation6 + $0xd0] sm:$0xff]  }
 0x2ed   :  { %8120 = vmatprep.mubr.bf16.mxu0 %v11374_v29  ;;  %v11418_v48 = vpack.c.bf16 %v1245_v10, %v1244_v35  ;;  %v3666_v35 = vld [vmem:[#allocation2 + $0x24a] sm:$0xff]  ;;  %v3668_v10 = vld [vmem:[#allocation2 + $0x262] sm:$0xff] }
 0x2ee   :  { %v9407_v24 = vld [vmem:[#allocation6 + $0xf0] sm:$0xff]  }
 0x2ef   :  { %8471 = vmatpush3.bf16.msra.mxu1 %v9369_v43  ;;  %v3651_v43 = vld [vmem:[#allocation2 + $0x16a] sm:$0xff] }
 0x2f0   :  { %8536 = vmatprep.subr.bf16.mxu1 %v11372_v11  ;;  %v11405_v44 = vpack.c.bf16 %v3652_v45, %v3651_v43  ;;  %v3658_v43 = vld [vmem:[#allocation2 + $0x1ea] sm:$0xff]  ;;  %v3659_v45 = vld [vmem:[#allocation2 + $0x1fa] sm:$0xff] }
 0x2f1   :  { %v11421_v7 = vpack.c.bf16 %v3658_v43, %v3657_v62  ;;  %v11423_v53 = vpack.c.bf16 %v3660_v38, %v3659_v45  ;;  %v9405_v43 = vld [vmem:[#allocation6 + $0xe0] sm:$0xff]   ;;  %v3669_v45 = vld [vmem:[#allocation2 + $0x272] sm:$0xff]  ;;  %v3671_v38 = vld [vmem:[#allocation2 + $0x28a] sm:$0xff] }
 0x2f2   :  { %8409 = vmatmul.mubr.bf16.gmra.mrb[44].mxu1 %v11378_v60 }
 0x2f3   :  { %8412 = vmatprep.mubr.bf16.mxu1 %v11381_v19 }
 0x2f4   :  { %8121 = vmatmul.mubr.bf16.gmra.mrb[112].mxu0 %v11385_v42 }
 0x2f5   :  { %8124 = vmatprep.mubr.bf16.mxu0 %v11387_v54 }
 0x2fa   :  { %8413 = vmatmul.mubr.bf16.gmra.mrb[48].mxu1 %v11391_v47 }
 0x2fb   :  { %8416 = vmatprep.mubr.bf16.mxu1 %v11393_v46 }
 0x2fc   :  { %8125 = vmatmul.mubr.bf16.gmra.mrb[116].mxu0 %v11397_v15 }
 0x2fd   :  { %8128 = vmatprep.mubr.bf16.mxu0 %v11399_v50 }
 0x302   :  { %8417 = vmatmul.mubr.bf16.gmra.mrb[52].mxu1 %v11403_v4 }
 0x303   :  { %8420 = vmatprep.mubr.bf16.mxu1 %v11405_v44 }
 0x304   :  { %8129 = vmatmul.mubr.bf16.gmra.mrb[120].mxu0 %v11409_v55 }
 0x305   :  { %8132 = vmatprep.mubr.bf16.mxu0 %v11411_v39 }
 0x30a   :  { %8421 = vmatmul.mubr.bf16.gmra.mrb[56].mxu1 %v3702_v3  ;;  %v9402_v3 = vld [vmem:[#allocation6 + $0xc8] sm:$0xff]  }
 0x30b   :  { %8424 = vmatprep.mubr.bf16.mxu1 %v11415_v51 }
 0x30c   :  { %8133 = vmatmul.mubr.bf16.gmra.mrb[124].mxu0 %v11418_v48 }
 0x30d   :  { %8152 = vmatprep.mubr.bf16.mxu0 %v2145_v0  ;;  %v9404_v0 = vld [vmem:[#allocation6 + $0xd8] sm:$0xff]  }
 0x312   :  { %8425 = vmatmul.mubr.bf16.gmra.mrb[60].mxu1 %v11421_v7 }
 0x313   :  { %8428 = vmatprep.mubr.bf16.mxu1 %v11423_v53 }
 0x314   :  { %8153 = vmatmul.mubr.bf16.vlgmr.msra.gmra.mrb[64].mxu0 %v11323_v34  ;;  %v3665_v34 = vld [vmem:[#allocation2 + $0x242] sm:$0xff] }
 0x315   :  { %8156 = vmatprep.mubr.bf16.mxu0 %v11330_v13  ;;  %8217 = vmatpush3.bf16.msra.mxu0 %v11303_v25  ;;  %v3667_v13 = vld [vmem:[#allocation2 + $0x25a] sm:$0xff]  ;;  %v11438_v25 = vpack.c.bf16 %v3666_v35, %v3665_v34 }
 0x316   :  { %8218 = vmatprep.subr.bf16.mxu0 %v9402_v3  ;;  %v11440_v62 = vpack.c.bf16 %v3668_v10, %v3667_v13  ;;  %v9408_v35 = vld [vmem:[#allocation6 + $0xf8] sm:$0xff]  }
 0x317   :  { %v3677_v10 = vld [vmem:[#allocation2 + $0x2d2] sm:$0xff] }
 0x319   :  { %8219 = vmatpush3.bf16.msra.mxu0 %v9402_v3  ;;  %v3673_v3 = vld [vmem:[#allocation2 + $0x2a2] sm:$0xff] }
 0x31a   :  { %8429 = vmatmul.mubr.bf16.gmra.mrb[0].mxu1 %v11430_v14  ;;  %8220 = vmatprep.subr.bf16.mxu0 %v9403_v41 }
 0x31b   :  { %8432 = vmatprep.mubr.bf16.mxu1 %v11432_v28 }
 0x31c   :  { %8157 = vmatmul.mubr.bf16.gmra.mrb[68].mxu0 %v11332_v63  ;;  %v3670_v63 = vld [vmem:[#allocation2 + $0x27a] sm:$0xff] }
 0x31d   :  { %8160 = vmatprep.mubr.bf16.mxu0 %v11340_v52  ;;  %8221 = vmatpush3.bf16.msra.mxu0 %v9403_v41  ;;  %v3672_v52 = vld [vmem:[#allocation2 + $0x292] sm:$0xff]  ;;  %v11446_v23 = vpack.c.bf16 %v3670_v63, %v3669_v45  ;;  %v3675_v41 = vld [vmem:[#allocation2 + $0x2ba] sm:$0xff]  ;;  %v3681_v63 = vld [vmem:[#allocation2 + $0x302] sm:$0xff] }
 0x31e   :  { %8222 = vmatprep.subr.bf16.mxu0 %v9404_v0  ;;  %v11448_v31 = vpack.c.bf16 %v3672_v52, %v3671_v38  ;;  %v3682_v38 = vld [vmem:[#allocation2 + $0x30a] sm:$0xff]  ;;  %v3683_v52 = vld [vmem:[#allocation2 + $0x31a] sm:$0xff] }
 0x321   :  { %8223 = vmatpush3.bf16.msra.mxu0 %v9404_v0  ;;  %v3678_v0 = vld [vmem:[#allocation2 + $0x2da] sm:$0xff] }
 0x322   :  { %8433 = vmatmul.mubr.bf16.gmra.mrb[4].mxu1 %v11438_v25  ;;  %8224 = vmatprep.subr.bf16.mxu0 %v9405_v43 }
 0x323   :  { %8436 = vmatprep.mubr.bf16.mxu1 %v11440_v62 }
 0x324   :  { %8161 = vmatmul.mubr.bf16.gmra.mrb[72].mxu0 %v11342_v59  ;;  %v3674_v59 = vld [vmem:[#allocation2 + $0x2aa] sm:$0xff] }
 0x325   :  { %8164 = vmatprep.mubr.bf16.mxu0 %v11352_v9  ;;  %8225 = vmatpush3.bf16.msra.mxu0 %v9405_v43  ;;  %v3676_v9 = vld [vmem:[#allocation2 + $0x2c2] sm:$0xff]  ;;  %v11454_v34 = vpack.c.bf16 %v3674_v59, %v3673_v3  ;;  %v3680_v43 = vld [vmem:[#allocation2 + $0x2f2] sm:$0xff]  ;;  %v3686_v3 = vld [vmem:[#allocation2 + $0x33a] sm:$0xff] }
 0x326   :  { %8226 = vmatprep.subr.bf16.mxu0 %v9406_v30  ;;  %v11456_v13 = vpack.c.bf16 %v3676_v9, %v3675_v41  ;;  %v2114_v41 = vld [vmem:[#allocation2 + $0x1ba] sm:$0xff]  ;;  %v9371_v9 = vld [vmem:[#allocation6 + $0x1c8] sm:$0xff]  }
 0x329   :  { %8227 = vmatpush3.bf16.msra.mxu0 %v9406_v30  ;;  %v3684_v30 = vld [vmem:[#allocation2 + $0x322] sm:$0xff] }
 0x32a   :  { %8437 = vmatmul.mubr.bf16.gmra.mrb[8].mxu1 %v11446_v23  ;;  %8228 = vmatprep.subr.bf16.mxu0 %v9407_v24 }
 0x32b   :  { %8440 = vmatprep.mubr.bf16.mxu1 %v11448_v31 }
 0x32c   :  { %8165 = vmatmul.mubr.bf16.gmra.mrb[76].mxu0 %v11354_v2  ;;  %v3679_v2 = vld [vmem:[#allocation2 + $0x2ea] sm:$0xff] }
 0x32d   :  { %8168 = vmatprep.mubr.bf16.mxu0 %v11364_v26  ;;  %8229 = vmatpush3.bf16.msra.mxu0 %v9407_v24  ;;  %v11462_v26 = vpack.c.bf16 %v3678_v0, %v3677_v10  ;;  %v11464_v45 = vpack.c.bf16 %v3680_v43, %v3679_v2  ;;  %v11472_v24 = vpack.c.bf16 %v3684_v30, %v3683_v52  ;;  %v2614_v2 = vld [vmem:[#allocation2 + $0xf8] sm:$0xff]  ;;  %v2616_v43 = vld [vmem:[#allocation2 + $0x110] sm:$0xff] }
 0x32e   :  { %8230 = vmatprep.subr.bf16.mxu0 %v9408_v35 }
 0x331   :  { %8231 = vmatpush3.bf16.msra.mxu0 %v9408_v35  ;;  %v2610_v35 = vld [vmem:[#allocation2 + $0xc8] sm:$0xff] }
 0x332   :  { %8441 = vmatmul.mubr.bf16.gmra.mrb[12].mxu1 %v11454_v34 }
 0x333   :  { %8444 = vmatprep.mubr.bf16.mxu1 %v11456_v13 }
 0x334   :  { %8169 = vmatmul.mubr.bf16.gmra.mrb[80].mxu0 %v11366_v37  ;;  %v11470_v37 = vpack.c.bf16 %v3682_v38, %v3681_v63  ;;  %v2618_v63 = vld [vmem:[#allocation2 + $0x128] sm:$0xff]  ;;  %v2620_v38 = vld [vmem:[#allocation2 + $0x140] sm:$0xff] }
 0x335   :  { %8172 = vmatprep.mubr.bf16.mxu0 %v11378_v60  ;;  %v3685_v60 = vld [vmem:[#allocation2 + $0x332] sm:$0xff] }
 0x336   :  { %v3718_v59 = vpack.c.bf16 %v3686_v3, %v3685_v60  ;;  %v2622_v60 = vld [vmem:[#allocation2 + $0x158] sm:$0xff]  ;;  %v2623_v3 = vld [vmem:[#allocation2 + $0x168] sm:$0xff] }
 0x33a   :  { %8445 = vmatmul.mubr.bf16.gmra.mrb[16].mxu1 %v11462_v26 }
 0x33b   :  { %8448 = vmatprep.mubr.bf16.mxu1 %v11464_v45 }
 0x33c   :  { %8173 = vmatmul.mubr.bf16.gmra.mrb[84].mxu0 %v11381_v19  ;;  %v2113_v19 = vld [vmem:[#allocation2 + $0x1b2] sm:$0xff] }
 0x33d   :  { %8176 = vmatprep.mubr.bf16.mxu0 %v11391_v47  ;;  %v2161_v47 = vpack.c.bf16 %v2114_v41, %v2113_v19  ;;  %v4652_v41 = vld [vmem:[#allocation2 + $0x31] sm:$0xff] }
 0x342   :  { %8449 = vmatmul.mubr.bf16.gmra.mrb[20].mxu1 %v11470_v37 }
 0x343   :  { %8452 = vmatprep.mubr.bf16.mxu1 %v11472_v24 }
 0x344   :  { %8177 = vmatmul.mubr.bf16.gmra.mrb[88].mxu0 %v11393_v46  ;;  %v9372_v46 = vld [vmem:[#allocation6 + $0x1d0] sm:$0xff]  }
 0x345   :  { %8180 = vmatprep.mubr.bf16.mxu0 %v11403_v4  ;;  %v2600_v4 = vld [vmem:[#allocation2 + $0x50] sm:$0xff] }
 0x34a   :  { %8453 = vmatmul.mubr.bf16.gmra.mrb[24].mxu1 %v3718_v59  ;;  %v2624_v59 = vld [vmem:[#allocation2 + $0x170] sm:$0xff] }
 0x34b   :  { %8472 = vmatprep.mubr.bf16.mxu1 %v11280_v56  ;;  %v9373_v56 = vld [vmem:[#allocation6 + $0x1d8] sm:$0xff]  }
 0x34c   :  { %8181 = vmatmul.mubr.bf16.gmra.mrb[92].mxu0 %v11405_v44 }
 0x34d   :  { %8184 = vmatprep.mubr.bf16.mxu0 %v2161_v47  ;;  %v4653_v47 = vld [vmem:[#allocation2 + $0x39] sm:$0xff] }
 0x352   :  { %8473 = vmatmul.mubr.bf16.vlgmr.msra.gmra.mrb[28].mxu1 %v11283_v6  ;;  %v9374_v6 = vld [vmem:[#allocation6 + $0x1e0] sm:$0xff]  }
 0x353   :  { %8537 = vmatpush3.bf16.msra.mxu1 %v11372_v11  ;;  %8476 = vmatprep.mubr.bf16.mxu1 %v11285_v12  ;;  %v9375_v12 = vld [vmem:[#allocation6 + $0x1e8] sm:$0xff]   ;;  %v9376_v11 = vld [vmem:[#allocation6 + $0x1f0] sm:$0xff]  }
 0x354   :  { %8538 = vmatprep.subr.bf16.mxu1 %v9371_v9  ;;  %8185 = vmatmul.mubr.bf16.gmra.mrb[96].mxu0 %v11415_v51 }
 0x355   :  { %8188 = vmatprep.mubr.bf16.mxu0 %v11421_v7  ;;  %v2601_v7 = vld [vmem:[#allocation2 + $0x60] sm:$0xff] }
 0x357   :  { %8539 = vmatpush3.bf16.msra.mxu1 %v9371_v9  ;;  %v2627_v9 = vld [vmem:[#allocation2 + $0x1c8] sm:$0xff] }
 0x358   :  { %8540 = vmatprep.subr.bf16.mxu1 %v9372_v46 }
 0x35a   :  { %8477 = vmatmul.mubr.bf16.gmra.mrb[32].mxu1 %v11289_v17  ;;  %v9377_v17 = vld [vmem:[#allocation6 + $0x1f8] sm:$0xff]  }
 0x35b   :  { %8480 = vmatprep.mubr.bf16.mxu1 %v11291_v49  ;;  %8541 = vmatpush3.bf16.msra.mxu1 %v9372_v46  ;;  %v11495_v49 = vld [vmem:[#allocation6 + $0x200] sm:$0xff]   ;;  %v2628_v46 = vld [vmem:[#allocation2 + $0x1d0] sm:$0xff] }
 0x35c   :  { %8542 = vmatprep.subr.bf16.mxu1 %v9373_v56  ;;  %8189 = vmatmul.mubr.bf16.gmra.mrb[100].mxu0 %v11423_v53  ;;  %v2602_v53 = vld [vmem:[#allocation2 + $0x68] sm:$0xff] }
 0x35d   :  { %8192 = vmatprep.mubr.bf16.mxu0 %v11430_v14  ;;  %v2604_v14 = vld [vmem:[#allocation2 + $0x80] sm:$0xff] }
 0x35f   :  { %8543 = vmatpush3.bf16.msra.mxu1 %v9373_v56  ;;  %v2675_v56 = vpack.c.bf16 %v2628_v46, %v2627_v9  ;;  %v4689_v9 = vld [vmem:[#allocation2 + $0x219] sm:$0xff] }
 0x360   :  { %8544 = vmatprep.subr.bf16.mxu1 %v9374_v6 }
 0x362   :  { %8481 = vmatmul.mubr.bf16.gmra.mrb[36].mxu1 %v11295_v27  ;;  %v4166_v27 = vld [vmem:[#allocation2 + $0x180] sm:$0xff] }
 0x363   :  { %8484 = vmatprep.mubr.bf16.mxu1 %v11297_v36  ;;  %8545 = vmatpush3.bf16.msra.mxu1 %v9374_v6  ;;  %v4167_v36 = vld [vmem:[#allocation2 + $0x188] sm:$0xff] }
 0x364   :  { %8546 = vmatprep.subr.bf16.mxu1 %v9375_v12  ;;  %8193 = vmatmul.mubr.bf16.gmra.mrb[104].mxu0 %v11432_v28  ;;  %v2662_v28 = vpack.c.bf16 %v2602_v53, %v2601_v7  ;;  %v4654_v6 = vld [vmem:[#allocation2 + $0x49] sm:$0xff]  ;;  %v9382_v7 = vld [vmem:[#allocation6 + $0x220] sm:$0xff]   ;;  %v4663_v53 = vld [vmem:[#allocation2 + $0xb1] sm:$0xff] }
 0x365   :  { %8196 = vmatprep.mubr.bf16.mxu0 %v11438_v25 }
 0x367   :  { %8547 = vmatpush3.bf16.msra.mxu1 %v9375_v12  ;;  %v4655_v12 = vld [vmem:[#allocation2 + $0x51] sm:$0xff] }
 0x368   :  { %8548 = vmatprep.subr.bf16.mxu1 %v9376_v11 }
 0x36a   :  { %8485 = vmatmul.mubr.bf16.gmra.mrb[40].mxu1 %v11301_v33  ;;  %v11508_v33 = vpack.c.bf16 %v4167_v36, %v4166_v27  ;;  %v9379_v27 = vld [vmem:[#allocation6 + $0x208] sm:$0xff]  }
 0x36b   :  { %8488 = vmatprep.mubr.bf16.mxu1 %v11306_v20  ;;  %8549 = vmatpush3.bf16.msra.mxu1 %v9376_v11  ;;  %v2595_v20 = vld [vmem:[#allocation2 + $0x18] sm:$0xff]  ;;  %v4657_v11 = vld [vmem:[#allocation2 + $0x69] sm:$0xff] }
 0x36c   :  { %8550 = vmatprep.subr.bf16.mxu1 %v9377_v17  ;;  %8197 = vmatmul.mubr.bf16.gmra.mrb[108].mxu0 %v11440_v62  ;;  %v2606_v62 = vld [vmem:[#allocation2 + $0x98] sm:$0xff] }
 0x36d   :  { %8200 = vmatprep.mubr.bf16.mxu0 %v11446_v23  ;;  %v2608_v23 = vld [vmem:[#allocation2 + $0xb0] sm:$0xff] }
 0x36f   :  { %8551 = vmatpush3.bf16.msra.mxu1 %v9377_v17  ;;  %v4717_v17 = vpack.c.bf16 %v4655_v12, %v4654_v6  ;;  %v4690_v6 = vld [vmem:[#allocation2 + $0x229] sm:$0xff]  ;;  %v4691_v12 = vld [vmem:[#allocation2 + $0x231] sm:$0xff] }
 0x370   :  { %8616 = vmatprep.subr.bf16.mxu1 %v11495_v49 }
 0x372   :  { %8489 = vmatmul.mubr.bf16.gmra.mrb[44].mxu1 %v11310_v61  ;;  %v2596_v61 = vld [vmem:[#allocation2 + $0x20] sm:$0xff] }
 0x373   :  { %8492 = vmatprep.mubr.bf16.mxu1 %v11312_v32  ;;  %v2659_v32 = vpack.c.bf16 %v2596_v61, %v2595_v20  ;;  %v2629_v20 = vld [vmem:[#allocation2 + $0x1e0] sm:$0xff]  ;;  %v2630_v61 = vld [vmem:[#allocation2 + $0x1e8] sm:$0xff] }
 0x374   :  { %8201 = vmatmul.mubr.bf16.gmra.mrb[112].mxu0 %v11448_v31 }
 0x375   :  { %8204 = vmatprep.mubr.bf16.mxu0 %v11454_v34 }
 0x37a   :  { %8493 = vmatmul.mubr.bf16.gmra.mrb[48].mxu1 %v11317_v8  ;;  %v2597_v8 = vld [vmem:[#allocation2 + $0x30] sm:$0xff] }
 0x37b   :  { %8496 = vmatprep.mubr.bf16.mxu1 %v11319_v22  ;;  %v2598_v22 = vld [vmem:[#allocation2 + $0x38] sm:$0xff] }
 0x37c   :  { %8205 = vmatmul.mubr.bf16.gmra.mrb[116].mxu0 %v11456_v13  ;;  %v2660_v44 = vpack.c.bf16 %v2598_v22, %v2597_v8  ;;  %v2612_v13 = vld [vmem:[#allocation2 + $0xe0] sm:$0xff] }
 0x37d   :  { %8208 = vmatprep.mubr.bf16.mxu0 %v11462_v26  ;;  %v4658_v8 = vld [vmem:[#allocation2 + $0x79] sm:$0xff]  ;;  %v4659_v22 = vld [vmem:[#allocation2 + $0x81] sm:$0xff] }
 0x382   :  { %8497 = vmatmul.mubr.bf16.gmra.mrb[52].mxu1 %v11326_v16  ;;  %v2599_v16 = vld [vmem:[#allocation2 + $0x48] sm:$0xff] }
 0x383   :  { %8500 = vmatprep.mubr.bf16.mxu1 %v11508_v33  ;;  %v2661_v51 = vpack.c.bf16 %v2600_v4, %v2599_v16  ;;  %v4660_v16 = vld [vmem:[#allocation2 + $0x91] sm:$0xff]  ;;  %v4719_v4 = vpack.c.bf16 %v4659_v22, %v4658_v8  ;;  %v4698_v22 = vld [vmem:[#allocation2 + $0x289] sm:$0xff] }
 0x384   :  { %8209 = vmatmul.mubr.bf16.gmra.mrb[120].mxu0 %v11464_v45 }
 0x385   :  { %8212 = vmatprep.mubr.bf16.mxu0 %v11470_v37  ;;  %v4199_v37 = vld [vmem:[#allocation2 + $0x338] sm:$0xff] }
 0x38a   :  { %8501 = vmatmul.mubr.bf16.gmra.mrb[56].mxu1 %v11274_v58 }
 0x38b   :  { %8504 = vmatprep.mubr.bf16.mxu1 %v11337_v1  ;;  %v2603_v1 = vld [vmem:[#allocation2 + $0x78] sm:$0xff] }
 0x38c   :  { %8213 = vmatmul.mubr.bf16.gmra.mrb[124].mxu0 %v11472_v24  ;;  %v2663_v25 = vpack.c.bf16 %v2604_v14, %v2603_v1  ;;  %v4664_v1 = vld [vmem:[#allocation2 + $0xc1] sm:$0xff]  ;;  %v4665_v14 = vld [vmem:[#allocation2 + $0xc9] sm:$0xff] }
 0x38d   :  { %8232 = vmatprep.mubr.bf16.mxu0 %v2659_v32  ;;  %v9380_v32 = vld [vmem:[#allocation6 + $0x210] sm:$0xff]  }
 0x392   :  { %8505 = vmatmul.mubr.bf16.gmra.mrb[60].mxu1 %v11346_v18  ;;  %v2605_v18 = vld [vmem:[#allocation2 + $0x90] sm:$0xff] }
 0x393   :  { %8508 = vmatprep.mubr.bf16.mxu1 %v11348_v21  ;;  %v2607_v21 = vld [vmem:[#allocation2 + $0xa8] sm:$0xff]  ;;  %v2664_v31 = vpack.c.bf16 %v2606_v62, %v2605_v18  ;;  %v4722_v18 = vpack.c.bf16 %v4665_v14, %v4664_v1  ;;  %v9384_v62 = vld [vmem:[#allocation6 + $0x230] sm:$0xff]   ;;  %v4705_v1 = vld [vmem:[#allocation2 + $0x2d9] sm:$0xff] }
 0x394   :  { %8233 = vmatmul.mubr.bf16.vlgmr.msra.gmra.mrb[64].mxu0 %v2660_v44  ;;  %v2665_v34 = vpack.c.bf16 %v2608_v23, %v2607_v21  ;;  %v9381_v44 = vld [vmem:[#allocation6 + $0x218] sm:$0xff]   ;;  %v4667_v23 = vld [vmem:[#allocation2 + $0xe1] sm:$0xff] }
 0x395   :  { %8236 = vmatprep.mubr.bf16.mxu0 %v2661_v51  ;;  %v4666_v21 = vld [vmem:[#allocation2 + $0xd9] sm:$0xff] }
 0x39a   :  { %8509 = vmatmul.mubr.bf16.gmra.mrb[0].mxu1 %v11358_v40  ;;  %v2609_v40 = vld [vmem:[#allocation2 + $0xc0] sm:$0xff] }
 0x39b   :  { %8512 = vmatprep.mubr.bf16.mxu1 %v11360_v5  ;;  %v2611_v5 = vld [vmem:[#allocation2 + $0xd8] sm:$0xff]  ;;  %v2666_v10 = vpack.c.bf16 %v2610_v35, %v2609_v40  ;;  %v4723_v40 = vpack.c.bf16 %v4667_v23, %v4666_v21  ;;  %v4706_v23 = vld [vmem:[#allocation2 + $0x2e9] sm:$0xff] }
 0x39c   :  { %8237 = vmatmul.mubr.bf16.gmra.mrb[68].mxu0 %v2662_v28  ;;  %v2667_v0 = vpack.c.bf16 %v2612_v13, %v2611_v5  ;;  %v9385_v35 = vld [vmem:[#allocation6 + $0x238] sm:$0xff]   ;;  %v4670_v13 = vld [vmem:[#allocation2 + $0x109] sm:$0xff] }
 0x39d   :  { %8240 = vmatprep.mubr.bf16.mxu0 %v2663_v25  ;;  %v9383_v25 = vld [vmem:[#allocation6 + $0x228] sm:$0xff]  }
 0x3a2   :  { %8513 = vmatmul.mubr.bf16.gmra.mrb[4].mxu1 %v11370_v57  ;;  %v2613_v57 = vld [vmem:[#allocation2 + $0xf0] sm:$0xff] }
 0x3a3   :  { %8516 = vmatprep.mubr.bf16.mxu1 %v11374_v29  ;;  %v2615_v29 = vld [vmem:[#allocation2 + $0x108] sm:$0xff]  ;;  %v2668_v26 = vpack.c.bf16 %v2614_v2, %v2613_v57 }
 0x3a4   :  { %8241 = vmatmul.mubr.bf16.gmra.mrb[72].mxu0 %v2664_v31  ;;  %v2669_v45 = vpack.c.bf16 %v2616_v43, %v2615_v29  ;;  %v4668_v31 = vld [vmem:[#allocation2 + $0xf1] sm:$0xff]  ;;  %v4673_v57 = vld [vmem:[#allocation2 + $0x129] sm:$0xff]  ;;  %v4674_v43 = vld [vmem:[#allocation2 + $0x139] sm:$0xff] }
 0x3a5   :  { %8244 = vmatprep.mubr.bf16.mxu0 %v2665_v34  ;;  %v4669_v34 = vld [vmem:[#allocation2 + $0xf9] sm:$0xff] }
 0x3a6   :  { %v4724_v5 = vpack.c.bf16 %v4669_v34, %v4668_v31  ;;  %v4707_v31 = vld [vmem:[#allocation2 + $0x2f1] sm:$0xff]  ;;  %v4708_v34 = vld [vmem:[#allocation2 + $0x301] sm:$0xff] }
 0x3aa   :  { %8517 = vmatmul.mubr.bf16.gmra.mrb[8].mxu1 %v11385_v42  ;;  %v2617_v42 = vld [vmem:[#allocation2 + $0x120] sm:$0xff] }
 0x3ab   :  { %8520 = vmatprep.mubr.bf16.mxu1 %v11387_v54  ;;  %v2619_v54 = vld [vmem:[#allocation2 + $0x138] sm:$0xff]  ;;  %v2670_v52 = vpack.c.bf16 %v2618_v63, %v2617_v42 }
 0x3ac   :  { %8245 = vmatmul.mubr.bf16.gmra.mrb[76].mxu0 %v2666_v10  ;;  %v2671_v30 = vpack.c.bf16 %v2620_v38, %v2619_v54  ;;  %v4671_v10 = vld [vmem:[#allocation2 + $0x111] sm:$0xff]  ;;  %v4677_v42 = vld [vmem:[#allocation2 + $0x159] sm:$0xff]  ;;  %v4678_v38 = vld [vmem:[#allocation2 + $0x169] sm:$0xff] }
 0x3ad   :  { %8248 = vmatprep.mubr.bf16.mxu0 %v2667_v0  ;;  %v4672_v0 = vld [vmem:[#allocation2 + $0x121] sm:$0xff]  ;;  %v4725_v2 = vpack.c.bf16 %v4671_v10, %v4670_v13 }
 0x3ae   :  { %v4726_v29 = vpack.c.bf16 %v4673_v57, %v4672_v0 }
 0x3b2   :  { %8521 = vmatmul.mubr.bf16.gmra.mrb[12].mxu1 %v11397_v15  ;;  %v4198_v15 = vld [vmem:[#allocation2 + $0x330] sm:$0xff] }
 0x3b3   :  { %8524 = vmatprep.mubr.bf16.mxu1 %v11399_v50  ;;  %v4232_v24 = vpack.c.bf16 %v4199_v37, %v4198_v15  ;;  %v2621_v50 = vld [vmem:[#allocation2 + $0x150] sm:$0xff] }
 0x3b4   :  { %8249 = vmatmul.mubr.bf16.gmra.mrb[80].mxu0 %v2668_v26  ;;  %v2672_v19 = vpack.c.bf16 %v2622_v60, %v2621_v50  ;;  %v4675_v26 = vld [vmem:[#allocation2 + $0x141] sm:$0xff]  ;;  %v4681_v15 = vld [vmem:[#allocation2 + $0x189] sm:$0xff]  ;;  %v4682_v50 = vld [vmem:[#allocation2 + $0x199] sm:$0xff] }
 0x3b5   :  { %8252 = vmatprep.mubr.bf16.mxu0 %v2669_v45  ;;  %v4676_v45 = vld [vmem:[#allocation2 + $0x151] sm:$0xff]  ;;  %v4727_v63 = vpack.c.bf16 %v4675_v26, %v4674_v43  ;;  %v4683_v60 = vld [vmem:[#allocation2 + $0x1a1] sm:$0xff]  ;;  %v4713_v26 = vld [vmem:[#allocation2 + $0x339] sm:$0xff] }
 0x3b6   :  { %v4728_v54 = vpack.c.bf16 %v4677_v42, %v4676_v45  ;;  %v4712_v43 = vld [vmem:[#allocation2 + $0x331] sm:$0xff] }
 0x3b7   :  { %v4746_v42 = vpack.c.bf16 %v4713_v26, %v4712_v43 }
 0x3ba   :  { %8525 = vmatmul.mubr.bf16.gmra.mrb[16].mxu1 %v11409_v55  ;;  %v2673_v55 = vpack.c.bf16 %v2624_v59, %v2623_v3  ;;  %v4731_v3 = vpack.c.bf16 %v4683_v60, %v4682_v50  ;;  %v4684_v59 = vld [vmem:[#allocation2 + $0x1e1] sm:$0xff] }
 0x3bb   :  { %8528 = vmatprep.mubr.bf16.mxu1 %v11411_v39  ;;  %v4716_v39 = vpack.c.bf16 %v4653_v47, %v4652_v41  ;;  %v4686_v41 = vld [vmem:[#allocation2 + $0x1f9] sm:$0xff]  ;;  %v4687_v47 = vld [vmem:[#allocation2 + $0x201] sm:$0xff] }
 0x3bc   :  { %8253 = vmatmul.mubr.bf16.gmra.mrb[84].mxu0 %v2670_v52  ;;  %v4679_v52 = vld [vmem:[#allocation2 + $0x171] sm:$0xff]  ;;  %v4733_v46 = vpack.c.bf16 %v4687_v47, %v4686_v41  ;;  %v5167_v50 = vld [vmem:[#allocation2 + $0x3a] sm:$0xff] }
 0x3bd   :  { %8256 = vmatprep.mubr.bf16.mxu0 %v2671_v30  ;;  %v4680_v30 = vld [vmem:[#allocation2 + $0x181] sm:$0xff]  ;;  %v4729_v37 = vpack.c.bf16 %v4679_v52, %v4678_v38  ;;  %v4714_v52 = vld [vmem:[#allocation2 + $0x349] sm:$0xff]  ;;  %v5169_v47 = vld [vmem:[#allocation2 + $0x52] sm:$0xff] }
 0x3be   :  { %v5168_v41 = vld [vmem:[#allocation2 + $0x4a] sm:$0xff] }
 0x3c2   :  { %8529 = vmatmul.mubr.bf16.gmra.mrb[20].mxu1 %v11418_v48  ;;  %v4656_v48 = vld [vmem:[#allocation2 + $0x61] sm:$0xff] }
 0x3c3   :  { %8532 = vmatprep.mubr.bf16.mxu1 %v4232_v24  ;;  %v4718_v36 = vpack.c.bf16 %v4657_v11, %v4656_v48  ;;  %v4730_v24 = vpack.c.bf16 %v4681_v15, %v4680_v30  ;;  %v4692_v48 = vld [vmem:[#allocation2 + $0x241] sm:$0xff]  ;;  %v4693_v11 = vld [vmem:[#allocation2 + $0x249] sm:$0xff]  ;;  %v4715_v30 = vld [vmem:[#allocation2 + $0x351] sm:$0xff] }
 0x3c4   :  { %8257 = vmatmul.mubr.bf16.gmra.mrb[88].mxu0 %v2672_v19  ;;  %v4685_v19 = vld [vmem:[#allocation2 + $0x1e9] sm:$0xff] }
 0x3c5   :  { %8260 = vmatprep.mubr.bf16.mxu0 %v2673_v55  ;;  %v4732_v55 = vpack.c.bf16 %v4685_v19, %v4684_v59 }
 0x3ca   :  { %8533 = vmatmul.mubr.bf16.gmra.mrb[24].mxu1 %v11274_v58  ;;  %v2676_v58 = vpack.c.bf16 %v2630_v61, %v2629_v20  ;;  %v4695_v20 = vld [vmem:[#allocation2 + $0x261] sm:$0xff]  ;;  %v4696_v61 = vld [vmem:[#allocation2 + $0x271] sm:$0xff] }
 0x3cb   :  { %8552 = vmatprep.mubr.bf16.mxu1 %v4716_v39  ;;  %v4688_v39 = vld [vmem:[#allocation2 + $0x211] sm:$0xff] }
 0x3cc   :  { %8261 = vmatmul.mubr.bf16.gmra.mrb[92].mxu0 %v11508_v33  ;;  %v4661_v33 = vld [vmem:[#allocation2 + $0x99] sm:$0xff] }
 0x3cd   :  { %8264 = vmatprep.mubr.bf16.mxu0 %v2675_v56  ;;  %v4720_v51 = vpack.c.bf16 %v4661_v33, %v4660_v16  ;;  %v4734_v56 = vpack.c.bf16 %v4689_v9, %v4688_v39  ;;  %v4699_v16 = vld [vmem:[#allocation2 + $0x291] sm:$0xff]  ;;  %v4700_v33 = vld [vmem:[#allocation2 + $0x2a1] sm:$0xff] }
 0x3ce   :  { %v5170_v39 = vld [vmem:[#allocation2 + $0x62] sm:$0xff]  ;;  %v5171_v9 = vld [vmem:[#allocation2 + $0x6a] sm:$0xff] }
 0x3d2   :  { %8553 = vmatmul.mubr.bf16.vlgmr.msra.gmra.mrb[28].mxu1 %v4717_v17  ;;  %v4735_v17 = vpack.c.bf16 %v4691_v12, %v4690_v6 }
 0x3d3   :  { %8617 = vmatpush3.bf16.msra.mxu1 %v11495_v49  ;;  %8556 = vmatprep.mubr.bf16.mxu1 %v4718_v36  ;;  %v4662_v49 = vld [vmem:[#allocation2 + $0xa9] sm:$0xff]  ;;  %v4694_v36 = vld [vmem:[#allocation2 + $0x259] sm:$0xff] }
 0x3d4   :  { %8618 = vmatprep.subr.bf16.mxu1 %v9379_v27  ;;  %8265 = vmatmul.mubr.bf16.gmra.mrb[96].mxu0 %v2676_v58  ;;  %v4721_v28 = vpack.c.bf16 %v4663_v53, %v4662_v49  ;;  %v4697_v58 = vld [vmem:[#allocation2 + $0x279] sm:$0xff]  ;;  %v4703_v49 = vld [vmem:[#allocation2 + $0x2c1] sm:$0xff]  ;;  %v4704_v53 = vld [vmem:[#allocation2 + $0x2d1] sm:$0xff] }
 0x3d5   :  { %v4738_v8 = vpack.c.bf16 %v4697_v58, %v4696_v61 }
 0x3d7   :  { %8619 = vmatpush3.bf16.msra.mxu1 %v9379_v27  ;;  %v4736_v27 = vpack.c.bf16 %v4693_v11, %v4692_v48 }
 0x3d8   :  { %8620 = vmatprep.subr.bf16.mxu1 %v9380_v32 }
 0x3da   :  { %8557 = vmatmul.mubr.bf16.gmra.mrb[32].mxu1 %v4719_v4  ;;  %v4701_v4 = vld [vmem:[#allocation2 + $0x2a9] sm:$0xff] }
 0x3db   :  { %8560 = vmatprep.mubr.bf16.mxu1 %v4720_v51  ;;  %8621 = vmatpush3.bf16.msra.mxu1 %v9380_v32  ;;  %v4737_v32 = vpack.c.bf16 %v4695_v20, %v4694_v36  ;;  %v4740_v51 = vpack.c.bf16 %v4701_v4, %v4700_v33  ;;  %v5174_v36 = vld [vmem:[#allocation2 + $0x92] sm:$0xff]  ;;  %v5175_v20 = vld [vmem:[#allocation2 + $0x9a] sm:$0xff]  ;;  %v5176_v33 = vld [vmem:[#allocation2 + $0xaa] sm:$0xff] }
 0x3dc   :  { %8622 = vmatprep.subr.bf16.mxu1 %v9381_v44  ;;  %v5234_v58 = vpack.c.bf16 %v5175_v20, %v5174_v36  ;;  %v5177_v4 = vld [vmem:[#allocation2 + $0xb2] sm:$0xff] }
 0x3df   :  { %8623 = vmatpush3.bf16.msra.mxu1 %v9381_v44  ;;  %v4739_v44 = vpack.c.bf16 %v4699_v16, %v4698_v22 }
 0x3e0   :  { %8624 = vmatprep.subr.bf16.mxu1 %v9382_v7 }
 0x3e2   :  { %8561 = vmatmul.mubr.bf16.gmra.mrb[36].mxu1 %v4721_v28  ;;  %v4742_v28 = vpack.c.bf16 %v4705_v1, %v4704_v53 }
 0x3e3   :  { %8564 = vmatprep.mubr.bf16.mxu1 %v4722_v18  ;;  %8625 = vmatpush3.bf16.msra.mxu1 %v9382_v7  ;;  %v4702_v7 = vld [vmem:[#allocation2 + $0x2b9] sm:$0xff] }
 0x3e4   :  { %8626 = vmatprep.subr.bf16.mxu1 %v9383_v25  ;;  %v4741_v14 = vpack.c.bf16 %v4703_v49, %v4702_v7  ;;  %v5235_v7 = vpack.c.bf16 %v5177_v4, %v5176_v33  ;;  %v5192_v33 = vld [vmem:[#allocation2 + $0x16a] sm:$0xff]  ;;  %v5193_v4 = vld [vmem:[#allocation2 + $0x172] sm:$0xff] }
 0x3e7   :  { %8627 = vmatpush3.bf16.msra.mxu1 %v9383_v25 }
 0x3e8   :  { %8628 = vmatprep.subr.bf16.mxu1 %v9384_v62 }
 0x3ea   :  { %8565 = vmatmul.mubr.bf16.gmra.mrb[40].mxu1 %v4723_v40  ;;  %v4709_v40 = vld [vmem:[#allocation2 + $0x309] sm:$0xff] }
 0x3eb   :  { %8568 = vmatprep.mubr.bf16.mxu1 %v4724_v5  ;;  %8629 = vmatpush3.bf16.msra.mxu1 %v9384_v62  ;;  %v4744_v5 = vpack.c.bf16 %v4709_v40, %v4708_v34  ;;  %v5182_v34 = vld [vmem:[#allocation2 + $0xf2] sm:$0xff]  ;;  %v5183_v40 = vld [vmem:[#allocation2 + $0xfa] sm:$0xff] }
 0x3ec   :  { %8630 = vmatprep.subr.bf16.mxu1 %v9385_v35 }
 0x3ef   :  { %8631 = vmatpush3.bf16.msra.mxu1 %v9385_v35  ;;  %v4743_v35 = vpack.c.bf16 %v4707_v31, %v4706_v23  ;;  %v5180_v23 = vld [vmem:[#allocation2 + $0xda] sm:$0xff]  ;;  %v5181_v31 = vld [vmem:[#allocation2 + $0xe2] sm:$0xff] }
 0x3f2   :  { %8569 = vmatmul.mubr.bf16.gmra.mrb[44].mxu1 %v4725_v2  ;;  %v4710_v2 = vld [vmem:[#allocation2 + $0x319] sm:$0xff] }
 0x3f3   :  { %8572 = vmatprep.mubr.bf16.mxu1 %v4726_v29  ;;  %v4711_v29 = vld [vmem:[#allocation2 + $0x321] sm:$0xff] }
 0x3f4   :  { %v4745_v45 = vpack.c.bf16 %v4711_v29, %v4710_v2 }
 0x3fa   :  { %8573 = vmatmul.mubr.bf16.gmra.mrb[48].mxu1 %v4727_v63 }
 0x3fb   :  { %8576 = vmatprep.mubr.bf16.mxu1 %v4728_v54 }
 0x402   :  { %8577 = vmatmul.mubr.bf16.gmra.mrb[52].mxu1 %v4729_v37  ;;  %v4747_v37 = vpack.c.bf16 %v4715_v30, %v4714_v52  ;;  %v5186_v52 = vld [vmem:[#allocation2 + $0x122] sm:$0xff]  ;;  %v5187_v30 = vld [vmem:[#allocation2 + $0x12a] sm:$0xff] }
 0x403   :  { %8580 = vmatprep.mubr.bf16.mxu1 %v4730_v24  ;;  %v5166_v24 = vld [vmem:[#allocation2 + $0x32] sm:$0xff] }
 0x404   :  { %v5230_v60 = vpack.c.bf16 %v5167_v50, %v5166_v24  ;;  %v5240_v24 = vpack.c.bf16 %v5187_v30, %v5186_v52  ;;  %v5199_v52 = vld [vmem:[#allocation2 + $0x1ea] sm:$0xff] }
 0x40a   :  { %8581 = vmatmul.mubr.bf16.gmra.mrb[56].mxu1 %v4731_v3 }
 0x40b   :  { %8584 = vmatprep.mubr.bf16.mxu1 %v4732_v55 }
 0x412   :  { %8585 = vmatmul.mubr.bf16.gmra.mrb[60].mxu1 %v4733_v46  ;;  %v5231_v46 = vpack.c.bf16 %v5169_v47, %v5168_v41 }
 0x413   :  { %8588 = vmatprep.mubr.bf16.mxu1 %v4734_v56  ;;  %v5232_v56 = vpack.c.bf16 %v5171_v9, %v5170_v39  ;;  %v5188_v39 = vld [vmem:[#allocation2 + $0x13a] sm:$0xff]  ;;  %v5189_v9 = vld [vmem:[#allocation2 + $0x142] sm:$0xff] }
 0x41a   :  { %8589 = vmatmul.mubr.bf16.gmra.mrb[0].mxu1 %v4735_v17  ;;  %v5172_v17 = vld [vmem:[#allocation2 + $0x7a] sm:$0xff] }
 0x41b   :  { %8592 = vmatprep.mubr.bf16.mxu1 %v4736_v27  ;;  %v5173_v27 = vld [vmem:[#allocation2 + $0x82] sm:$0xff] }
 0x41c   :  { %v5233_v61 = vpack.c.bf16 %v5173_v27, %v5172_v17  ;;  %v5241_v17 = vpack.c.bf16 %v5189_v9, %v5188_v39 }
 0x422   :  { %8593 = vmatmul.mubr.bf16.gmra.mrb[4].mxu1 %v4737_v32 }
 0x423   :  { %8596 = vmatprep.mubr.bf16.mxu1 %v4738_v8 }
 0x42a   :  { %8597 = vmatmul.mubr.bf16.gmra.mrb[8].mxu1 %v4739_v44  ;;  %v5178_v44 = vld [vmem:[#allocation2 + $0xc2] sm:$0xff] }
 0x42b   :  { %8600 = vmatprep.mubr.bf16.mxu1 %v4740_v51  ;;  %v5179_v51 = vld [vmem:[#allocation2 + $0xca] sm:$0xff] }
 0x42c   :  { %v5236_v49 = vpack.c.bf16 %v5179_v51, %v5178_v44  ;;  %v5194_v44 = vld [vmem:[#allocation2 + $0x182] sm:$0xff]  ;;  %v5195_v51 = vld [vmem:[#allocation2 + $0x18a] sm:$0xff] }
 0x42f   :  { %v11533_v25 = vpop.f32.mrb[100].mxu0 }
 0x430   :  { %v11535_v18 = vpop.f32.mrb[101].mxu0 }
 0x431   :  { %v11537_v62 = vpop.f32.mrb[102].mxu0 }
 0x432   :  { %8601 = vmatmul.mubr.bf16.gmra.mrb[12].mxu1 %v4741_v14  ;;  %v11539_v21 = vpop.f32.mrb[103].mxu0 }
 0x433   :  { %8604 = vmatprep.mubr.bf16.mxu1 %v4742_v28 }
 0x437   :  { %v11541_v13 = vpop.f32.mrb[104].mxu0 }
 0x438   :  { %v11543_v10 = vpop.f32.mrb[105].mxu0 }
 0x439   :  { %v11545_v0 = vpop.f32.mrb[106].mxu0 }
 0x43a   :  { %8605 = vmatmul.mubr.bf16.gmra.mrb[16].mxu1 %v4743_v35  ;;  %v11547_v57 = vpop.f32.mrb[107].mxu0  ;;  %v5237_v35 = vpack.c.bf16 %v5181_v31, %v5180_v23 }
 0x43b   :  { %8608 = vmatprep.mubr.bf16.mxu1 %v4744_v5  ;;  %v5238_v5 = vpack.c.bf16 %v5183_v40, %v5182_v34  ;;  %v5196_v40 = vld [vmem:[#allocation2 + $0x19a] sm:$0xff] }
 0x43f   :  { %v11549_v63 = vpop.f32.mrb[108].mxu0 }
 0x440   :  { %v11551_v54 = vpop.f32.mrb[109].mxu0 }
 0x441   :  { %v11553_v38 = vpop.f32.mrb[110].mxu0 }
 0x442   :  { %8609 = vmatmul.mubr.bf16.gmra.mrb[20].mxu1 %v4745_v45  ;;  %14870 = vst [vmem:[#allocation12_spill] sm:$0xff] %v11553_v38  ;;  %v11555_v15 = vpop.f32.mrb[111].mxu0  ;;  %v5184_v45 = vld [vmem:[#allocation2 + $0x10a] sm:$0xff] }
 0x443   :  { %8612 = vmatprep.mubr.bf16.mxu1 %v4746_v42  ;;  %14871 = vst [vmem:[#allocation14_spill] sm:$0xff] %v11555_v15  ;;  %v5185_v42 = vld [vmem:[#allocation2 + $0x112] sm:$0xff] }
 0x447   :  { %v11557_v3 = vpop.f32.mrb[112].mxu0 }
 0x448   :  { %14872 = vst [vmem:[#allocation16_spill] sm:$0xff] %v11557_v3  ;;  %v11559_v59 = vpop.f32.mrb[113].mxu0  ;;  %v5227_v3 = vld [vmem:[#allocation2 + $0x33a] sm:$0xff] }
 0x449   :  { %14873 = vst [vmem:[#allocation13_spill] sm:$0xff] %v11559_v59  ;;  %v11561_v19 = vpop.f32.mrb[114].mxu0  ;;  %v5226_v59 = vld [vmem:[#allocation2 + $0x332] sm:$0xff] }
 0x44a   :  { %8613 = vmatmul.mubr.bf16.gmra.mrb[24].mxu1 %v4747_v37  ;;  %14874 = vst [vmem:[#allocation15_spill] sm:$0xff] %v11561_v19  ;;  %v11563_v55 = vpop.f32.mrb[115].mxu0  ;;  %v5239_v37 = vpack.c.bf16 %v5185_v42, %v5184_v45  ;;  %v5198_v42 = vld [vmem:[#allocation2 + $0x1e2] sm:$0xff]  ;;  %v5260_v38 = vpack.c.bf16 %v5227_v3, %v5226_v59 }
 0x44b   :  { %8632 = vmatprep.mubr.bf16.mxu1 %v5230_v60  ;;  %14875 = vst [vmem:[#allocation28_spill] sm:$0xff] %v11563_v55  ;;  %v5246_v30 = vpack.c.bf16 %v5199_v52, %v5198_v42  ;;  %v5207_v42 = vld [vmem:[#allocation2 + $0x24a] sm:$0xff]  ;;  %v5225_v19 = vld [vmem:[#allocation2 + $0x322] sm:$0xff] }
 0x44f   :  { %v11565_v6 = vpop.f32.mrb[116].mxu0 }
 0x450   :  { %14876 = vst [vmem:[#allocation33_spill] sm:$0xff] %v11565_v6  ;;  %v11567_v12 = vpop.f32.mrb[117].mxu0 }
 0x451   :  { %14877 = vst [vmem:[#allocation30_spill] sm:$0xff] %v11567_v12  ;;  %v11569_v48 = vpop.f32.mrb[118].mxu0 }
 0x452   :  { %8633 = vmatmul.mubr.bf16.vlgmr.msra.gmra.mrb[28].mxu1 %v5231_v46  ;;  %14878 = vst [vmem:[#allocation32_spill] sm:$0xff] %v11569_v48  ;;  %v11571_v11 = vpop.f32.mrb[119].mxu0  ;;  %v5190_v46 = vld [vmem:[#allocation2 + $0x152] sm:$0xff]  ;;  %v5219_v48 = vld [vmem:[#allocation2 + $0x2da] sm:$0xff] }
 0x453   :  { %8636 = vmatprep.mubr.bf16.mxu1 %v5232_v56  ;;  %14879 = vst [vmem:[#allocation18_spill] sm:$0xff] %v11571_v11  ;;  %v5191_v56 = vld [vmem:[#allocation2 + $0x15a] sm:$0xff] }
 0x454   :  { %v5242_v27 = vpack.c.bf16 %v5191_v56, %v5190_v46  ;;  %v5200_v46 = vld [vmem:[#allocation2 + $0x1fa] sm:$0xff]  ;;  %v5201_v56 = vld [vmem:[#allocation2 + $0x202] sm:$0xff] }
 0x457   :  { %v11573_v32 = vpop.f32.mrb[120].mxu0 }
 0x458   :  { %14880 = vst [vmem:[#allocation19_spill] sm:$0xff] %v11573_v32  ;;  %v11575_v8 = vpop.f32.mrb[121].mxu0 }
 0x459   :  { %14881 = vst [vmem:[#allocation29_spill] sm:$0xff] %v11575_v8  ;;  %v11577_v22 = vpop.f32.mrb[122].mxu0 }
 0x45a   :  { %8637 = vmatmul.mubr.bf16.gmra.mrb[32].mxu1 %v5233_v61  ;;  %14882 = vst [vmem:[#allocation26_spill] sm:$0xff] %v11577_v22  ;;  %v11579_v16 = vpop.f32.mrb[123].mxu0  ;;  %v5215_v22 = vld [vmem:[#allocation2 + $0x2aa] sm:$0xff] }
 0x45b   :  { %8640 = vmatprep.mubr.bf16.mxu1 %v5234_v58  ;;  %14883 = vst [vmem:[#allocation31_spill] sm:$0xff] %v11579_v16 }
 0x45f   :  { %v11581_v53 = vpop.f32.mrb[124].mxu0 }
 0x460   :  { %14884 = vst [vmem:[#allocation34_spill] sm:$0xff] %v11581_v53  ;;  %v11583_v1 = vpop.f32.mrb[125].mxu0 }
 0x461   :  { %14885 = vst [vmem:[#allocation35_spill] sm:$0xff] %v11583_v1  ;;  %v11585_v14 = vpop.f32.mrb[126].mxu0 }
 0x462   :  { %8641 = vmatmul.mubr.bf16.gmra.mrb[36].mxu1 %v5235_v7  ;;  %14886 = vst [vmem:[#allocation20_spill] sm:$0xff] %v11585_v14  ;;  %v11587_v28 = vpop.f32.mrb[127].mxu0  ;;  %v5243_v7 = vpack.c.bf16 %v5193_v4, %v5192_v33  ;;  %v5247_v33 = vpack.c.bf16 %v5201_v56, %v5200_v46  ;;  %v5211_v14 = vld [vmem:[#allocation2 + $0x27a] sm:$0xff] }
 0x463   :  { %8644 = vmatprep.mubr.bf16.mxu1 %v5236_v49  ;;  %14887 = vst [vmem:[#allocation17_spill] sm:$0xff] %v11587_v28  ;;  %v5244_v49 = vpack.c.bf16 %v5195_v51, %v5194_v44 }
 0x467   :  { %v11589_v2 = vpop.f32.mrb[64].mxu0 }
 0x468   :  { %v11591_v29 = vpop.f32.mrb[65].mxu0 }
 0x469   :  { %v11593_v43 = vpop.f32.mrb[66].mxu0 }
 0x46a   :  { %8645 = vmatmul.mubr.bf16.gmra.mrb[40].mxu1 %v5237_v35  ;;  %v11595_v26 = vpop.f32.mrb[67].mxu0  ;;  %v5197_v35 = vld [vmem:[#allocation2 + $0x1a2] sm:$0xff] }
 0x46b   :  { %8648 = vmatprep.mubr.bf16.mxu1 %v5238_v5  ;;  %v5245_v45 = vpack.c.bf16 %v5197_v35, %v5196_v40  ;;  %v5204_v40 = vld [vmem:[#allocation2 + $0x22a] sm:$0xff]  ;;  %v5205_v35 = vld [vmem:[#allocation2 + $0x232] sm:$0xff] }
 0x46c   :  { %v5249_v52 = vpack.c.bf16 %v5205_v35, %v5204_v40 }
 0x46f   :  { %v11597_v50 = vpop.f32.mrb[68].mxu0 }
 0x470   :  { %v11599_v60 = vpop.f32.mrb[69].mxu0 }
 0x471   :  { %v11601_v41 = vpop.f32.mrb[70].mxu0 }
 0x472   :  { %8649 = vmatmul.mubr.bf16.gmra.mrb[44].mxu1 %v5239_v37  ;;  %v11603_v47 = vpop.f32.mrb[71].mxu0 }
 0x473   :  { %8652 = vmatprep.mubr.bf16.mxu1 %v5240_v24 }
 0x477   :  { %v11605_v36 = vpop.f32.mrb[72].mxu0 }
 0x478   :  { %v11607_v20 = vpop.f32.mrb[73].mxu0 }
 0x479   :  { %v11609_v61 = vpop.f32.mrb[74].mxu0 }
 0x47a   :  { %8653 = vmatmul.mubr.bf16.gmra.mrb[48].mxu1 %v5241_v17  ;;  %v11611_v58 = vpop.f32.mrb[75].mxu0  ;;  %v5202_v17 = vld [vmem:[#allocation2 + $0x212] sm:$0xff] }
 0x47b   :  { %8656 = vmatprep.mubr.bf16.mxu1 %v5242_v27  ;;  %v5203_v27 = vld [vmem:[#allocation2 + $0x21a] sm:$0xff] }
 0x47c   :  { %v5248_v4 = vpack.c.bf16 %v5203_v27, %v5202_v17  ;;  %v5208_v27 = vld [vmem:[#allocation2 + $0x25a] sm:$0xff] }
 0x47f   :  { %v11613_v23 = vpop.f32.mrb[76].mxu0 }
 0x480   :  { %v11615_v31 = vpop.f32.mrb[77].mxu0 }
 0x481   :  { %v11617_v34 = vpop.f32.mrb[78].mxu0 }
 0x482   :  { %8657 = vmatmul.mubr.bf16.gmra.mrb[52].mxu1 %v5243_v7  ;;  %v11619_v5 = vpop.f32.mrb[79].mxu0 }
 0x483   :  { %8660 = vmatprep.mubr.bf16.mxu1 %v5244_v49 }
 0x487   :  { %v11621_v37 = vpop.f32.mrb[80].mxu0 }
 0x488   :  { %v11623_v24 = vpop.f32.mrb[81].mxu0 }
 0x489   :  { %v11625_v39 = vpop.f32.mrb[82].mxu0 }
 0x48a   :  { %8661 = vmatmul.mubr.bf16.gmra.mrb[56].mxu1 %v5245_v45  ;;  %v11627_v9 = vpop.f32.mrb[83].mxu0  ;;  %v5206_v45 = vld [vmem:[#allocation2 + $0x242] sm:$0xff] }
 0x48b   :  { %8664 = vmatprep.mubr.bf16.mxu1 %v5246_v30  ;;  %v5250_v30 = vpack.c.bf16 %v5207_v42, %v5206_v45  ;;  %v5212_v42 = vld [vmem:[#allocation2 + $0x28a] sm:$0xff] }
 0x48f   :  { %v11629_v44 = vpop.f32.mrb[84].mxu0 }
 0x490   :  { %v11631_v51 = vpop.f32.mrb[85].mxu0 }
 0x491   :  { %v11633_v7 = vpop.f32.mrb[86].mxu0 }
 0x492   :  { %8665 = vmatmul.mubr.bf16.gmra.mrb[60].mxu1 %v5247_v33  ;;  %v11635_v49 = vpop.f32.mrb[87].mxu0  ;;  %v5209_v33 = vld [vmem:[#allocation2 + $0x262] sm:$0xff] }
 0x493   :  { %8668 = vmatprep.mubr.bf16.mxu1 %v5248_v4  ;;  %v5210_v4 = vld [vmem:[#allocation2 + $0x272] sm:$0xff]  ;;  %v5251_v1 = vpack.c.bf16 %v5209_v33, %v5208_v27  ;;  %v5217_v33 = vld [vmem:[#allocation2 + $0x2c2] sm:$0xff] }
 0x494   :  { %v5252_v53 = vpack.c.bf16 %v5211_v14, %v5210_v4  ;;  %v5218_v4 = vld [vmem:[#allocation2 + $0x2d2] sm:$0xff] }
 0x495   :  { %v5256_v6 = vpack.c.bf16 %v5219_v48, %v5218_v4  ;;  %v5229_v48 = vld [vmem:[#allocation2 + $0x352] sm:$0xff] }
 0x497   :  { %v11637_v28 = vpop.f32.mrb[88].mxu0 }
 0x498   :  { %v11639_v46 = vpop.f32.mrb[89].mxu0 }
 0x499   :  { %v11641_v56 = vpop.f32.mrb[90].mxu0 }
 0x49a   :  { %8669 = vmatmul.mubr.bf16.gmra.mrb[0].mxu1 %v5249_v52  ;;  %v11643_v17 = vpop.f32.mrb[91].mxu0  ;;  %v5213_v52 = vld [vmem:[#allocation2 + $0x292] sm:$0xff] }
 0x49b   :  { %8672 = vmatprep.mubr.bf16.mxu1 %v5250_v30  ;;  %v5214_v30 = vld [vmem:[#allocation2 + $0x2a2] sm:$0xff]  ;;  %v5253_v8 = vpack.c.bf16 %v5213_v52, %v5212_v42  ;;  %v5220_v42 = vld [vmem:[#allocation2 + $0x2ea] sm:$0xff] }
 0x49c   :  { %v5254_v32 = vpack.c.bf16 %v5215_v22, %v5214_v30  ;;  %v5221_v22 = vld [vmem:[#allocation2 + $0x2f2] sm:$0xff]  ;;  %v5222_v52 = vld [vmem:[#allocation2 + $0x302] sm:$0xff]  ;;  %v5223_v30 = vld [vmem:[#allocation2 + $0x30a] sm:$0xff] }
 0x49d   :  { %v5258_v55 = vpack.c.bf16 %v5223_v30, %v5222_v52 }
 0x49f   :  { %v11645_v16 = vpop.f32.mrb[92].mxu0 }
 0x4a0   :  { %v11647_v40 = vpop.f32.mrb[93].mxu0 }
 0x4a1   :  { %v11649_v35 = vpop.f32.mrb[94].mxu0 }
 0x4a2   :  { %8673 = vmatmul.mubr.bf16.gmra.mrb[4].mxu1 %v5251_v1  ;;  %v11651_v45 = vpop.f32.mrb[95].mxu0 }
 0x4a3   :  { %8676 = vmatprep.mubr.bf16.mxu1 %v5252_v53  ;;  %v5216_v53 = vld [vmem:[#allocation2 + $0x2ba] sm:$0xff] }
 0x4a4   :  { %v5255_v12 = vpack.c.bf16 %v5217_v33, %v5216_v53  ;;  %v5228_v53 = vld [vmem:[#allocation2 + $0x34a] sm:$0xff] }
 0x4a7   :  { %v11653_v11 = vpop.f32.mrb[96].mxu0 }
 0x4a8   :  { %v11655_v14 = vpop.f32.mrb[97].mxu0 }
 0x4a9   :  { %v11657_v1 = vpop.f32.mrb[98].mxu0 }
 0x4aa   :  { %8677 = vmatmul.mubr.bf16.gmra.mrb[8].mxu1 %v5253_v8  ;;  %v11659_v27 = vpop.f32.mrb[99].mxu0  ;;  %v5257_v8 = vpack.c.bf16 %v5221_v22, %v5220_v42 }
 0x4ab   :  { %8680 = vmatprep.mubr.bf16.mxu1 %v5254_v32  ;;  %v5224_v32 = vld [vmem:[#allocation2 + $0x31a] sm:$0xff] }
 0x4ac   :  { %v5259_v15 = vpack.c.bf16 %v5225_v19, %v5224_v32 }
 0x4b2   :  { %8681 = vmatmul.mubr.bf16.gmra.mrb[12].mxu1 %v5255_v12  ;;  %v5261_v12 = vpack.c.bf16 %v5229_v48, %v5228_v53 }
 0x4b3   :  { %8684 = vmatprep.mubr.bf16.mxu1 %v5256_v6  ;;  %v9386_v6 = vld [vmem:[%s14408_s7] sm:$0xff]  }
 0x4b4   :  { %8696 = vmatprep.subr.bf16.mxu0 %v9386_v6 }
 0x4b5   :  { %8697 = vmatpush3.bf16.msra.mxu0 %v9386_v6 }
 0x4ba   :  { %8685 = vmatmul.mubr.bf16.gmra.mrb[16].mxu1 %v5257_v8 }
 0x4bb   :  { %8688 = vmatprep.mubr.bf16.mxu1 %v5258_v55  ;;  %v9387_v55 = vld [vmem:[%s14408_s7 + $0x8] sm:$0xff]  }
 0x4bc   :  { %8698 = vmatprep.subr.bf16.mxu0 %v9387_v55 }
 0x4bd   :  { %8699 = vmatpush3.bf16.msra.mxu0 %v9387_v55 }
 0x4c2   :  { %8689 = vmatmul.mubr.bf16.gmra.mrb[20].mxu1 %v5259_v15 }
 0x4c3   :  { %8692 = vmatprep.mubr.bf16.mxu1 %v5260_v38  ;;  %v9388_v38 = vld [vmem:[%s14408_s7 + $0x10] sm:$0xff]  }
 0x4c4   :  { %8700 = vmatprep.subr.bf16.mxu0 %v9388_v38 }
 0x4c5   :  { %8701 = vmatpush3.bf16.msra.mxu0 %v9388_v38 }
 0x4ca   :  { %8693 = vmatmul.mubr.bf16.gmra.mrb[24].mxu1 %v5261_v12 }
 0x525   :  { %v8634_v15 = vpop.f32.mrb[28].mxu1 }
 0x526   :  { %v11671_v3 = vadd.f32 %v8634_v15, %v11589_v2  ;;  %v5361_v59 = vpop.f32.mrb[29].mxu1 }
 0x527   :  { %v11674_v19 = vadd.f32 %v5361_v59, %v11591_v29  ;;  %v8635_v33 = vpop.f32.mrb[30].mxu1 }
 0x528   :  { %v11677_v4 = vadd.f32 %v8635_v33, %v11593_v43  ;;  %v5364_v42 = vpop.f32.mrb[31].mxu1  ;;  %v5753_v29 = vmul.f32 %v11671_v3, %v11671_v3 }
 0x529   :  { %v11680_v22 = vadd.f32 %v5364_v42, %v11595_v26  ;;  %v5751_v52 = vmul.f32 %v11674_v19, %v11674_v19 }
 0x52a   :  { %v5754_v48 = vmul.f32 %v11677_v4, %v11677_v4 }
 0x52b   :  { %v5682_v2 = vadd.f32 %v11680_v22, %v11674_v19  ;;  %v5752_v30 = vmul.f32 %v11680_v22, %v11680_v22 }
 0x52d   :  { %v5683_v8 = vadd.f32 %v11671_v3, %v5682_v2  ;;  %v5815_v43 = vadd.f32 %v5752_v30, %v5751_v52  ;;  %v8638_v32 = vpop.f32.mrb[32].mxu1 }
 0x52e   :  { %v11692_v53 = vadd.f32 %v8638_v32, %v11597_v50  ;;  %v5377_v26 = vpop.f32.mrb[33].mxu1 }
 0x52f   :  { %v5816_v12 = vadd.f32 %v5815_v43, %v5753_v29  ;;  %v11697_v6 = vadd.f32 %v5377_v26, %v11599_v60  ;;  %v5684_v55 = vadd.f32 %v11677_v4, %v5683_v8  ;;  %v8639_v38 = vpop.f32.mrb[34].mxu1 }
 0x530   :  { %v11701_v15 = vadd.f32 %v8639_v38, %v11601_v41  ;;  %v5380_v59 = vpop.f32.mrb[35].mxu1  ;;  %v5757_v41 = vmul.f32 %v11692_v53, %v11692_v53 }
 0x531   :  { %v5685_v33 = vadd.f32 %v11697_v6, %v5684_v55  ;;  %v5755_v50 = vmul.f32 %v11697_v6, %v11697_v6  ;;  %v5817_v42 = vadd.f32 %v5816_v12, %v5754_v48  ;;  %v11707_v52 = vadd.f32 %v5380_v59, %v11603_v47 }
 0x532   :  { %v5758_v47 = vmul.f32 %v11701_v15, %v11701_v15 }
 0x533   :  { %v5818_v2 = vadd.f32 %v5817_v42, %v5755_v50  ;;  %v5686_v60 = vadd.f32 %v11707_v52, %v5685_v33  ;;  %v5756_v30 = vmul.f32 %v11707_v52, %v11707_v52 }
 0x535   :  { %v5687_v29 = vadd.f32 %v11692_v53, %v5686_v60  ;;  %v5819_v8 = vadd.f32 %v5818_v2, %v5756_v30  ;;  %v8642_v43 = vpop.f32.mrb[36].mxu1 }
 0x536   :  { %v11716_v32 = vadd.f32 %v8642_v43, %v11605_v36  ;;  %v5393_v26 = vpop.f32.mrb[37].mxu1 }
 0x537   :  { %v5820_v48 = vadd.f32 %v5819_v8, %v5757_v41  ;;  %v11721_v12 = vadd.f32 %v5393_v26, %v11607_v20  ;;  %v5688_v55 = vadd.f32 %v11701_v15, %v5687_v29  ;;  %v8643_v38 = vpop.f32.mrb[38].mxu1 }
 0x538   :  { %v11725_v59 = vadd.f32 %v8643_v38, %v11609_v61  ;;  %v5396_v33 = vpop.f32.mrb[39].mxu1  ;;  %v5761_v61 = vmul.f32 %v11716_v32, %v11716_v32 }
 0x539   :  { %v5689_v50 = vadd.f32 %v11721_v12, %v5688_v55  ;;  %v5759_v36 = vmul.f32 %v11721_v12, %v11721_v12  ;;  %v5821_v42 = vadd.f32 %v5820_v48, %v5758_v47  ;;  %v11731_v2 = vadd.f32 %v5396_v33, %v11611_v58 }
 0x53a   :  { %v5762_v58 = vmul.f32 %v11725_v59, %v11725_v59 }
 0x53b   :  { %v5822_v60 = vadd.f32 %v5821_v42, %v5759_v36  ;;  %v5690_v20 = vadd.f32 %v11731_v2, %v5689_v50  ;;  %v5760_v30 = vmul.f32 %v11731_v2, %v11731_v2 }
 0x53d   :  { %v5691_v41 = vadd.f32 %v11716_v32, %v5690_v20  ;;  %v5823_v29 = vadd.f32 %v5822_v60, %v5760_v30  ;;  %v8646_v8 = vpop.f32.mrb[40].mxu1 }
 0x53e   :  { %v11740_v43 = vadd.f32 %v8646_v8, %v11613_v23  ;;  %v5409_v26 = vpop.f32.mrb[41].mxu1 }
 0x53f   :  { %v5824_v47 = vadd.f32 %v5823_v29, %v5761_v61  ;;  %v11745_v48 = vadd.f32 %v5409_v26, %v11615_v31  ;;  %v5692_v55 = vadd.f32 %v11725_v59, %v5691_v41  ;;  %v8647_v38 = vpop.f32.mrb[42].mxu1 }
 0x540   :  { %v11749_v33 = vadd.f32 %v8647_v38, %v11617_v34  ;;  %v5412_v50 = vpop.f32.mrb[43].mxu1  ;;  %v5765_v34 = vmul.f32 %v11740_v43, %v11740_v43 }
 0x541   :  { %v5693_v36 = vadd.f32 %v11745_v48, %v5692_v55  ;;  %v5763_v23 = vmul.f32 %v11745_v48, %v11745_v48  ;;  %v5825_v42 = vadd.f32 %v5824_v47, %v5762_v58  ;;  %v11755_v60 = vadd.f32 %v5412_v50, %v11619_v5 }
 0x542   :  { %v5766_v5 = vmul.f32 %v11749_v33, %v11749_v33 }
 0x543   :  { %v5826_v20 = vadd.f32 %v5825_v42, %v5763_v23  ;;  %v5694_v31 = vadd.f32 %v11755_v60, %v5693_v36  ;;  %v5764_v30 = vmul.f32 %v11755_v60, %v11755_v60 }
 0x545   :  { %v5695_v61 = vadd.f32 %v11740_v43, %v5694_v31  ;;  %v5827_v41 = vadd.f32 %v5826_v20, %v5764_v30  ;;  %v8650_v29 = vpop.f32.mrb[44].mxu1 }
 0x546   :  { %v11764_v8 = vadd.f32 %v8650_v29, %v11621_v37  ;;  %v5425_v26 = vpop.f32.mrb[45].mxu1 }
 0x547   :  { %v5828_v58 = vadd.f32 %v5827_v41, %v5765_v34  ;;  %v11769_v47 = vadd.f32 %v5425_v26, %v11623_v24  ;;  %v5696_v55 = vadd.f32 %v11749_v33, %v5695_v61  ;;  %v8651_v38 = vpop.f32.mrb[46].mxu1 }
 0x548   :  { %v11773_v50 = vadd.f32 %v8651_v38, %v11625_v39  ;;  %v5428_v36 = vpop.f32.mrb[47].mxu1  ;;  %v5769_v39 = vmul.f32 %v11764_v8, %v11764_v8 }
 0x549   :  { %v5697_v23 = vadd.f32 %v11769_v47, %v5696_v55  ;;  %v5767_v37 = vmul.f32 %v11769_v47, %v11769_v47  ;;  %v5829_v42 = vadd.f32 %v5828_v58, %v5766_v5  ;;  %v11779_v20 = vadd.f32 %v5428_v36, %v11627_v9 }
 0x54a   :  { %v5770_v9 = vmul.f32 %v11773_v50, %v11773_v50 }
 0x54b   :  { %v5830_v31 = vadd.f32 %v5829_v42, %v5767_v37  ;;  %v5698_v24 = vadd.f32 %v11779_v20, %v5697_v23  ;;  %v5768_v30 = vmul.f32 %v11779_v20, %v11779_v20 }
 0x54d   :  { %v5699_v34 = vadd.f32 %v11764_v8, %v5698_v24  ;;  %v5831_v61 = vadd.f32 %v5830_v31, %v5768_v30  ;;  %v8654_v41 = vpop.f32.mrb[48].mxu1 }
 0x54e   :  { %v11788_v29 = vadd.f32 %v8654_v41, %v11629_v44  ;;  %v5441_v26 = vpop.f32.mrb[49].mxu1 }
 0x54f   :  { %v5832_v5 = vadd.f32 %v5831_v61, %v5769_v39  ;;  %v11793_v58 = vadd.f32 %v5441_v26, %v11631_v51  ;;  %v5700_v55 = vadd.f32 %v11773_v50, %v5699_v34  ;;  %v8655_v38 = vpop.f32.mrb[50].mxu1 }
 0x550   :  { %v11797_v36 = vadd.f32 %v8655_v38, %v11633_v7  ;;  %v5444_v23 = vpop.f32.mrb[51].mxu1  ;;  %v5773_v7 = vmul.f32 %v11788_v29, %v11788_v29 }
 0x551   :  { %v5701_v37 = vadd.f32 %v11793_v58, %v5700_v55  ;;  %v5771_v44 = vmul.f32 %v11793_v58, %v11793_v58  ;;  %v5833_v42 = vadd.f32 %v5832_v5, %v5770_v9  ;;  %v11803_v31 = vadd.f32 %v5444_v23, %v11635_v49 }
 0x552   :  { %v5774_v49 = vmul.f32 %v11797_v36, %v11797_v36 }
 0x553   :  { %v5834_v24 = vadd.f32 %v5833_v42, %v5771_v44  ;;  %v5702_v51 = vadd.f32 %v11803_v31, %v5701_v37  ;;  %v5772_v30 = vmul.f32 %v11803_v31, %v11803_v31 }
 0x555   :  { %v5703_v39 = vadd.f32 %v11788_v29, %v5702_v51  ;;  %v5835_v34 = vadd.f32 %v5834_v24, %v5772_v30  ;;  %v8658_v61 = vpop.f32.mrb[52].mxu1 }
 0x556   :  { %v11812_v41 = vadd.f32 %v8658_v61, %v11637_v28  ;;  %v5457_v26 = vpop.f32.mrb[53].mxu1 }
 0x557   :  { %v5836_v9 = vadd.f32 %v5835_v34, %v5773_v7  ;;  %v11817_v5 = vadd.f32 %v5457_v26, %v11639_v46  ;;  %v5704_v55 = vadd.f32 %v11797_v36, %v5703_v39  ;;  %v8659_v38 = vpop.f32.mrb[54].mxu1 }
 0x558   :  { %v11821_v23 = vadd.f32 %v8659_v38, %v11641_v56  ;;  %v5460_v37 = vpop.f32.mrb[55].mxu1  ;;  %v5777_v56 = vmul.f32 %v11812_v41, %v11812_v41 }
 0x559   :  { %v5705_v44 = vadd.f32 %v11817_v5, %v5704_v55  ;;  %v5775_v28 = vmul.f32 %v11817_v5, %v11817_v5  ;;  %v5837_v42 = vadd.f32 %v5836_v9, %v5774_v49  ;;  %v11827_v24 = vadd.f32 %v5460_v37, %v11643_v17 }
 0x55a   :  { %v5778_v17 = vmul.f32 %v11821_v23, %v11821_v23 }
 0x55b   :  { %v5838_v51 = vadd.f32 %v5837_v42, %v5775_v28  ;;  %v5706_v46 = vadd.f32 %v11827_v24, %v5705_v44  ;;  %v5776_v30 = vmul.f32 %v11827_v24, %v11827_v24  ;;  %v9390_v28 = vld [vmem:[%s14408_s7 + $0x20] sm:$0xff]  }
 0x55d   :  { %v5707_v7 = vadd.f32 %v11812_v41, %v5706_v46  ;;  %v5839_v39 = vadd.f32 %v5838_v51, %v5776_v30  ;;  %v8662_v34 = vpop.f32.mrb[56].mxu1 }
 0x55e   :  { %v11836_v61 = vadd.f32 %v8662_v34, %v11645_v16  ;;  %v5473_v26 = vpop.f32.mrb[57].mxu1  ;;  %v9389_v16 = vld [vmem:[%s14408_s7 + $0x18] sm:$0xff]  }
 0x55f   :  { %v5840_v49 = vadd.f32 %v5839_v39, %v5777_v56  ;;  %v11841_v9 = vadd.f32 %v5473_v26, %v11647_v40  ;;  %v5708_v55 = vadd.f32 %v11821_v23, %v5707_v7  ;;  %v8663_v38 = vpop.f32.mrb[58].mxu1  ;;  %8702 = vmatprep.subr.bf16.mxu0 %v9389_v16  ;;  %v9391_v7 = vld [vmem:[%s14408_s7 + $0x28] sm:$0xff]  }
 0x560   :  { %v11845_v37 = vadd.f32 %v8663_v38, %v11649_v35  ;;  %v5476_v44 = vpop.f32.mrb[59].mxu1  ;;  %8703 = vmatpush3.bf16.msra.mxu0 %v9389_v16  ;;  %v5781_v39 = vmul.f32 %v11836_v61, %v11836_v61 }
 0x561   :  { %v5709_v42 = vadd.f32 %v11841_v9, %v5708_v55  ;;  %v5779_v40 = vmul.f32 %v11841_v9, %v11841_v9  ;;  %v5841_v51 = vadd.f32 %v5840_v49, %v5778_v17  ;;  %v11857_v46 = vadd.f32 %v5476_v44, %v11651_v45  ;;  %8704 = vmatprep.subr.bf16.mxu0 %v9390_v28 }
 0x562   :  { %v5782_v55 = vmul.f32 %v11845_v37, %v11845_v37 }
 0x563   :  { %v5842_v35 = vadd.f32 %v5841_v51, %v5779_v40  ;;  %v5710_v30 = vadd.f32 %v11857_v46, %v5709_v42  ;;  %v5780_v56 = vmul.f32 %v11857_v46, %v11857_v46 }
 0x564   :  { %8705 = vmatpush3.bf16.msra.mxu0 %v9390_v28 }
 0x565   :  { %v5711_v34 = vadd.f32 %v11836_v61, %v5710_v30  ;;  %v5843_v45 = vadd.f32 %v5842_v35, %v5780_v56  ;;  %v8666_v26 = vpop.f32.mrb[60].mxu1  ;;  %8706 = vmatprep.subr.bf16.mxu0 %v9391_v7 }
 0x566   :  { %v11869_v17 = vadd.f32 %v8666_v26, %v11653_v11  ;;  %v5489_v49 = vpop.f32.mrb[61].mxu1  ;;  %v9392_v11 = vld [vmem:[%s14408_s7 + $0x30] sm:$0xff]  }
 0x567   :  { %v5844_v38 = vadd.f32 %v5843_v45, %v5781_v39  ;;  %v11874_v44 = vadd.f32 %v5489_v49, %v11655_v14  ;;  %v5712_v16 = vadd.f32 %v11845_v37, %v5711_v34  ;;  %v8667_v42 = vpop.f32.mrb[62].mxu1  ;;  %v9393_v34 = vld [vmem:[%s14408_s7 + $0x38] sm:$0xff]  }
 0x568   :  { %14888 = vst [vmem:[#allocation23_spill] sm:$0xff] %v11869_v17  ;;  %v11878_v40 = vadd.f32 %v8667_v42, %v11657_v1  ;;  %v5492_v51 = vpop.f32.mrb[63].mxu1  ;;  %8707 = vmatpush3.bf16.msra.mxu0 %v9391_v7  ;;  %v5785_v45 = vmul.f32 %v11869_v17, %v11869_v17 }
 0x569   :  { %v5713_v35 = vadd.f32 %v11874_v44, %v5712_v16  ;;  %v5783_v30 = vmul.f32 %v11874_v44, %v11874_v44  ;;  %v5845_v14 = vadd.f32 %v5844_v38, %v5782_v55  ;;  %v11887_v56 = vadd.f32 %v5492_v51, %v11659_v27  ;;  %8708 = vmatprep.subr.bf16.mxu0 %v9392_v11 }
 0x56a   :  { %14889 = vst [vmem:[#allocation21_spill] sm:$0xff] %v11878_v40  ;;  %v5786_v16 = vmul.f32 %v11878_v40, %v11878_v40 }
 0x56b   :  { %v5846_v39 = vadd.f32 %v5845_v14, %v5783_v30  ;;  %v5714_v28 = vadd.f32 %v11887_v56, %v5713_v35  ;;  %v5784_v1 = vmul.f32 %v11887_v56, %v11887_v56 }
 0x56c   :  { %8709 = vmatpush3.bf16.msra.mxu0 %v9392_v11 }
 0x56d   :  { %v5715_v26 = vadd.f32 %v11869_v17, %v5714_v28  ;;  %v5847_v49 = vadd.f32 %v5846_v39, %v5784_v1  ;;  %v8670_v27 = vpop.f32.mrb[0].mxu1  ;;  %8710 = vmatprep.subr.bf16.mxu0 %v9393_v34  ;;  %v14926_v17 = vld [vmem:[#allocation20_spill] sm:$0xff] }
 0x56e   :  { %v11899_v55 = vadd.f32 %v8670_v27, %v11533_v25  ;;  %v5505_v38 = vpop.f32.mrb[1].mxu1 }
 0x56f   :  { %v5848_v7 = vadd.f32 %v5847_v49, %v5785_v45  ;;  %v11904_v42 = vadd.f32 %v5505_v38, %v11535_v18  ;;  %v5716_v51 = vadd.f32 %v11878_v40, %v5715_v26  ;;  %v8671_v35 = vpop.f32.mrb[2].mxu1 }
 0x570   :  { %14890 = vst [vmem:[#allocation25_spill] sm:$0xff] %v11899_v55  ;;  %v11908_v30 = vadd.f32 %v8671_v35, %v11537_v62  ;;  %v5508_v14 = vpop.f32.mrb[3].mxu1  ;;  %8711 = vmatpush3.bf16.msra.mxu0 %v9393_v34  ;;  %v5789_v62 = vmul.f32 %v11899_v55, %v11899_v55 }
 0x571   :  { %14891 = vst [vmem:[#allocation22_spill] sm:$0xff] %v11904_v42  ;;  %v5717_v25 = vadd.f32 %v11904_v42, %v5716_v51  ;;  %v5787_v39 = vmul.f32 %v11904_v42, %v11904_v42  ;;  %v5849_v28 = vadd.f32 %v5848_v7, %v5786_v16  ;;  %v11914_v1 = vadd.f32 %v5508_v14, %v11539_v21 }
 0x572   :  { %14892 = vst [vmem:[#allocation24_spill] sm:$0xff] %v11908_v30  ;;  %v5790_v21 = vmul.f32 %v11908_v30, %v11908_v30 }
 0x573   :  { %14893 = vst [vmem:[#allocation27_spill] sm:$0xff] %v11914_v1  ;;  %v5850_v18 = vadd.f32 %v5849_v28, %v5787_v39  ;;  %v5718_v45 = vadd.f32 %v11914_v1, %v5717_v25  ;;  %v5788_v11 = vmul.f32 %v11914_v1, %v11914_v1 }
 0x575   :  { %v5719_v26 = vadd.f32 %v11899_v55, %v5718_v45  ;;  %v5851_v49 = vadd.f32 %v5850_v18, %v5788_v11  ;;  %v8674_v27 = vpop.f32.mrb[4].mxu1  ;;  %v14918_v55 = vld [vmem:[#allocation26_spill] sm:$0xff] }
 0x576   :  { %v11923_v38 = vadd.f32 %v8674_v27, %v11541_v13  ;;  %v5521_v16 = vpop.f32.mrb[5].mxu1 }
 0x577   :  { %v5852_v7 = vadd.f32 %v5851_v49, %v5789_v62  ;;  %v11928_v51 = vadd.f32 %v5521_v16, %v11543_v10  ;;  %v5720_v34 = vadd.f32 %v11908_v30, %v5719_v26  ;;  %v8675_v35 = vpop.f32.mrb[6].mxu1 }
 0x578   :  { %14894 = vst [vmem:[#allocation37_spill] sm:$0xff] %v11923_v38  ;;  %v11932_v14 = vadd.f32 %v8675_v35, %v11545_v0  ;;  %v5524_v25 = vpop.f32.mrb[7].mxu1  ;;  %v5793_v0 = vmul.f32 %v11923_v38, %v11923_v38 }
 0x579   :  { %14895 = vst [vmem:[#allocation38_spill] sm:$0xff] %v11928_v51  ;;  %v5721_v39 = vadd.f32 %v11928_v51, %v5720_v34  ;;  %v5791_v13 = vmul.f32 %v11928_v51, %v11928_v51  ;;  %v5853_v28 = vadd.f32 %v5852_v7, %v5790_v21  ;;  %v11938_v18 = vadd.f32 %v5524_v25, %v11547_v57  ;;  %v14900_v25 = vld [vmem:[#allocation12_spill] sm:$0xff] }
 0x57a   :  { %14896 = vst [vmem:[#allocation39_spill] sm:$0xff] %v11932_v14  ;;  %v5794_v57 = vmul.f32 %v11932_v14, %v11932_v14 }
 0x57b   :  { %14897 = vst [vmem:[#allocation40_spill] sm:$0xff] %v11938_v18  ;;  %v5854_v45 = vadd.f32 %v5853_v28, %v5791_v13  ;;  %v5722_v10 = vadd.f32 %v11938_v18, %v5721_v39  ;;  %v5792_v11 = vmul.f32 %v11938_v18, %v11938_v18 }
 0x57d   :  { %v5723_v62 = vadd.f32 %v11923_v38, %v5722_v10  ;;  %v5855_v26 = vadd.f32 %v5854_v45, %v5792_v11  ;;  %v8678_v49 = vpop.f32.mrb[8].mxu1  ;;  %v14902_v10 = vld [vmem:[#allocation14_spill] sm:$0xff]  ;;  %v14910_v38 = vld [vmem:[#allocation32_spill] sm:$0xff] }
 0x57e   :  { %v11947_v27 = vadd.f32 %v8678_v49, %v11549_v63  ;;  %v5537_v16 = vpop.f32.mrb[9].mxu1 }
 0x57f   :  { %v5856_v21 = vadd.f32 %v5855_v26, %v5793_v0  ;;  %v11952_v7 = vadd.f32 %v5537_v16, %v11551_v54  ;;  %v5724_v34 = vadd.f32 %v11932_v14, %v5723_v62  ;;  %v8679_v35 = vpop.f32.mrb[10].mxu1 }
 0x580   :  { %14898 = vst [vmem:[#allocation41_spill] sm:$0xff] %v11947_v27  ;;  %v11956_v39 = vadd.f32 %v8679_v35, %v14900_v25  ;;  %v5540_v13 = vpop.f32.mrb[11].mxu1  ;;  %v5797_v26 = vmul.f32 %v11947_v27, %v11947_v27  ;;  %v14903_v35 = vld [vmem:[#allocation16_spill] sm:$0xff] }
 0x581   :  { %14899 = vst [vmem:[#allocation42_spill] sm:$0xff] %v11952_v7  ;;  %v5725_v28 = vadd.f32 %v11952_v7, %v5724_v34  ;;  %v5795_v63 = vmul.f32 %v11952_v7, %v11952_v7  ;;  %v5857_v45 = vadd.f32 %v5856_v21, %v5794_v57  ;;  %v11962_v11 = vadd.f32 %v5540_v13, %v14902_v10  ;;  %v14905_v7 = vld [vmem:[#allocation15_spill] sm:$0xff] }
 0x582   :  { %14901 = vst [vmem:[#allocation12_spill] sm:$0xff] %v11956_v39  ;;  %v5798_v21 = vmul.f32 %v11956_v39, %v11956_v39 }
 0x583   :  { %v5858_v0 = vadd.f32 %v5857_v45, %v5795_v63  ;;  %v5726_v54 = vadd.f32 %v11962_v11, %v5725_v28  ;;  %v5796_v62 = vmul.f32 %v11962_v11, %v11962_v11  ;;  %v14904_v63 = vld [vmem:[#allocation13_spill] sm:$0xff] }
 0x585   :  { %v5727_v49 = vadd.f32 %v11947_v27, %v5726_v54  ;;  %v5859_v16 = vadd.f32 %v5858_v0, %v5796_v62  ;;  %v8682_v34 = vpop.f32.mrb[12].mxu1 }
 0x586   :  { %v11971_v25 = vadd.f32 %v8682_v34, %v14903_v35  ;;  %v5553_v57 = vpop.f32.mrb[13].mxu1  ;;  %v14906_v35 = vld [vmem:[#allocation28_spill] sm:$0xff] }
 0x587   :  { %v5860_v13 = vadd.f32 %v5859_v16, %v5797_v26  ;;  %v11976_v28 = vadd.f32 %v5553_v57, %v14904_v63  ;;  %v5728_v45 = vadd.f32 %v11956_v39, %v5727_v49  ;;  %v8683_v10 = vpop.f32.mrb[14].mxu1 }
 0x588   :  { %v11980_v14 = vadd.f32 %v8683_v10, %v14905_v7  ;;  %v5556_v54 = vpop.f32.mrb[15].mxu1  ;;  %v5801_v7 = vmul.f32 %v11971_v25, %v11971_v25  ;;  %v14907_v10 = vld [vmem:[#allocation33_spill] sm:$0xff] }
 0x589   :  { %v5729_v0 = vadd.f32 %v11976_v28, %v5728_v45  ;;  %v5799_v62 = vmul.f32 %v11976_v28, %v11976_v28  ;;  %v5861_v34 = vadd.f32 %v5860_v13, %v5798_v21  ;;  %v11986_v27 = vadd.f32 %v5556_v54, %v14906_v35 }
 0x58a   :  { %v5802_v13 = vmul.f32 %v11980_v14, %v11980_v14 }
 0x58b   :  { %v5862_v26 = vadd.f32 %v5861_v34, %v5799_v62  ;;  %v5730_v16 = vadd.f32 %v11986_v27, %v5729_v0  ;;  %v5800_v49 = vmul.f32 %v11986_v27, %v11986_v27  ;;  %v14909_v62 = vld [vmem:[#allocation30_spill] sm:$0xff] }
 0x58d   :  { %v5731_v57 = vadd.f32 %v11971_v25, %v5730_v16  ;;  %v5863_v63 = vadd.f32 %v5862_v26, %v5800_v49  ;;  %v8686_v45 = vpop.f32.mrb[16].mxu1 }
 0x58e   :  { %v11995_v39 = vadd.f32 %v8686_v45, %v14907_v10  ;;  %v5569_v21 = vpop.f32.mrb[17].mxu1  ;;  %v14912_v10 = vld [vmem:[#allocation18_spill] sm:$0xff] }
 0x58f   :  { %v5864_v54 = vadd.f32 %v5863_v63, %v5801_v7  ;;  %v12000_v0 = vadd.f32 %v5569_v21, %v14909_v62  ;;  %v5732_v34 = vadd.f32 %v11980_v14, %v5731_v57  ;;  %v8687_v35 = vpop.f32.mrb[18].mxu1 }
 0x590   :  { %14908 = vst [vmem:[#allocation14_spill] sm:$0xff] %v11995_v39  ;;  %v12004_v18 = vadd.f32 %v8687_v35, %v14910_v38  ;;  %v5572_v16 = vpop.f32.mrb[19].mxu1  ;;  %v5805_v38 = vmul.f32 %v11995_v39, %v11995_v39  ;;  %v14914_v35 = vld [vmem:[#allocation19_spill] sm:$0xff] }
 0x591   :  { %v5733_v26 = vadd.f32 %v12000_v0, %v5732_v34  ;;  %v5803_v49 = vmul.f32 %v12000_v0, %v12000_v0  ;;  %v5865_v45 = vadd.f32 %v5864_v54, %v5802_v13  ;;  %v12010_v51 = vadd.f32 %v5572_v16, %v14912_v10 }
 0x592   :  { %14911 = vst [vmem:[#allocation16_spill] sm:$0xff] %v12004_v18  ;;  %v5806_v54 = vmul.f32 %v12004_v18, %v12004_v18 }
 0x593   :  { %14913 = vst [vmem:[#allocation13_spill] sm:$0xff] %v12010_v51  ;;  %v5866_v7 = vadd.f32 %v5865_v45, %v5803_v49  ;;  %v5734_v63 = vadd.f32 %v12010_v51, %v5733_v26  ;;  %v5804_v57 = vmul.f32 %v12010_v51, %v12010_v51  ;;  %v14916_v49 = vld [vmem:[#allocation29_spill] sm:$0xff] }
 0x595   :  { %v5735_v21 = vadd.f32 %v11995_v39, %v5734_v63  ;;  %v5867_v62 = vadd.f32 %v5866_v7, %v5804_v57  ;;  %v8690_v34 = vpop.f32.mrb[20].mxu1 }
 0x596   :  { %v12019_v30 = vadd.f32 %v8690_v34, %v14914_v35  ;;  %v5585_v13 = vpop.f32.mrb[21].mxu1  ;;  %v14920_v35 = vld [vmem:[#allocation31_spill] sm:$0xff] }
 0x597   :  { %v5868_v16 = vadd.f32 %v5867_v62, %v5805_v38  ;;  %v12024_v26 = vadd.f32 %v5585_v13, %v14916_v49  ;;  %v5736_v45 = vadd.f32 %v12004_v18, %v5735_v21  ;;  %v8691_v10 = vpop.f32.mrb[22].mxu1 }
 0x598   :  { %14915 = vst [vmem:[#allocation15_spill] sm:$0xff] %v12019_v30  ;;  %v12028_v1 = vadd.f32 %v8691_v10, %v14918_v55  ;;  %v5588_v63 = vpop.f32.mrb[23].mxu1  ;;  %v5809_v55 = vmul.f32 %v12019_v30, %v12019_v30  ;;  %v14922_v10 = vld [vmem:[#allocation34_spill] sm:$0xff] }
 0x599   :  { %14917 = vst [vmem:[#allocation28_spill] sm:$0xff] %v12024_v26  ;;  %v5737_v7 = vadd.f32 %v12024_v26, %v5736_v45  ;;  %v5807_v57 = vmul.f32 %v12024_v26, %v12024_v26  ;;  %v5869_v34 = vadd.f32 %v5868_v16, %v5806_v54  ;;  %v12034_v42 = vadd.f32 %v5588_v63, %v14920_v35 }
 0x59a   :  { %14919 = vst [vmem:[#allocation33_spill] sm:$0xff] %v12028_v1  ;;  %v5810_v16 = vmul.f32 %v12028_v1, %v12028_v1 }
 0x59b   :  { %14921 = vst [vmem:[#allocation30_spill] sm:$0xff] %v12034_v42  ;;  %v5870_v38 = vadd.f32 %v5869_v34, %v5807_v57  ;;  %v5738_v62 = vadd.f32 %v12034_v42, %v5737_v7  ;;  %v5808_v21 = vmul.f32 %v12034_v42, %v12034_v42  ;;  %v14924_v57 = vld [vmem:[#allocation35_spill] sm:$0xff] }
 0x59d   :  { %v5739_v13 = vadd.f32 %v12019_v30, %v5738_v62  ;;  %v5871_v49 = vadd.f32 %v5870_v38, %v5808_v21  ;;  %v8694_v45 = vpop.f32.mrb[24].mxu1 }
 0x59e   :  { %v12043_v40 = vadd.f32 %v8694_v45, %v14922_v10  ;;  %v5601_v54 = vpop.f32.mrb[25].mxu1  ;;  %v14928_v10 = vld [vmem:[#allocation17_spill] sm:$0xff] }
 0x59f   :  { %v5872_v63 = vadd.f32 %v5871_v49, %v5809_v55  ;;  %v12048_v7 = vadd.f32 %v5601_v54, %v14924_v57  ;;  %v5740_v34 = vadd.f32 %v12028_v1, %v5739_v13  ;;  %v8695_v35 = vpop.f32.mrb[26].mxu1 }
 0x5a0   :  { %14923 = vst [vmem:[#allocation32_spill] sm:$0xff] %v12043_v40  ;;  %v12052_v42 = vadd.f32 %v8695_v35, %v14926_v17  ;;  %v5604_v62 = vpop.f32.mrb[27].mxu1  ;;  %v5813_v17 = vmul.f32 %v12043_v40, %v12043_v40 }
 0x5a1   :  { %14925 = vst [vmem:[#allocation18_spill] sm:$0xff] %v12048_v7  ;;  %v5741_v38 = vadd.f32 %v12048_v7, %v5740_v34  ;;  %v5811_v21 = vmul.f32 %v12048_v7, %v12048_v7  ;;  %v5873_v45 = vadd.f32 %v5872_v63, %v5810_v16  ;;  %v12058_v30 = vadd.f32 %v5604_v62, %v14928_v10 }
 0x5a2   :  { %14927 = vst [vmem:[#allocation19_spill] sm:$0xff] %v12052_v42  ;;  %v5814_v34 = vmul.f32 %v12052_v42, %v12052_v42 }
 0x5a3   :  { %v5874_v55 = vadd.f32 %v5873_v45, %v5811_v21  ;;  %v5742_v49 = vadd.f32 %v12058_v30, %v5741_v38  ;;  %v5812_v13 = vmul.f32 %v12058_v30, %v12058_v30 }
 0x5a5   :  { %v5743_v54 = vadd.f32 %v12043_v40, %v5742_v49  ;;  %v5875_v57 = vadd.f32 %v5874_v55, %v5812_v13 }
 0x5a7   :  { %v5744_v16 = vadd.f32 %v12052_v42, %v5743_v54  ;;  %v5876_v63 = vadd.f32 %v5875_v57, %v5813_v17  ;;  %v14945_v17 = vld [vmem:[#allocation40_spill] sm:$0xff] }
 0x5a9   :  { %v5745_v35 = vrot.slane %v5744_v16, 4  ;;  %v5877_v62 = vadd.f32 %v5876_v63, %v5814_v34 }
 0x5ab   :  { %v5746_v21 = vadd.f32 %v5745_v35, %v5744_v16  ;;  %v5878_v45 = vrot.slane %v5877_v62, 4  ;;  %v14938_v16 = vld [vmem:[#allocation21_spill] sm:$0xff] }
 0x5ad   :  { %v5747_v38 = vrot.slane %v5746_v21, 2  ;;  %v5879_v10 = vadd.f32 %v5878_v45, %v5877_v62 }
 0x5af   :  { %v5748_v7 = vadd.f32 %v5747_v38, %v5746_v21  ;;  %v5880_v1 = vrot.slane %v5879_v10, 2  ;;  %v14943_v21 = vld [vmem:[#allocation36_spill] sm:$0xff] }
 0x5b1   :  { %v5749_v26 = vrot.slane %v5748_v7, 1  ;;  %v5881_v18 = vadd.f32 %v5880_v1, %v5879_v10  ;;  %v14929_v10 = vld [vmem:[#allocation13_spill] sm:$0xff]  ;;  %v14937_v1 = vld [vmem:[#allocation23_spill] sm:$0xff] }
 0x5b3   :  { %v5750_v39 = vadd.f32 %v5749_v26, %v5748_v7  ;;  %v5882_v51 = vrot.slane %v5881_v18, 1 }
 0x5b5   :  { %v5883_v49 = vadd.f32 %v5882_v51, %v5881_v18  ;;  %v12069_v55 = vmul.f32 0.001953125, %v5750_v39  ;;  %v14939_v39 = vld [vmem:[#allocation22_spill] sm:$0xff]  ;;  %v14940_v18 = vld [vmem:[#allocation27_spill] sm:$0xff]  ;;  %v14941_v51 = vld [vmem:[#allocation25_spill] sm:$0xff] }
 0x5b7   :  { %v5885_v13 = vmul.f32 0.001953125, %v5883_v49  ;;  %v5886_v54 = vmul.f32 %v12069_v55, %v12069_v55  ;;  %v5925_v63 = vsub.f32 %v14937_v1, %v12069_v55  ;;  %v5926_v7 = vsub.f32 %v14938_v16, %v12069_v55  ;;  %v14944_v16 = vld [vmem:[#allocation38_spill] sm:$0xff] }
 0x5b8   :  { %v5928_v38 = vsub.f32 %v14940_v18, %v12069_v55  ;;  %v5929_v45 = vsub.f32 %v14941_v51, %v12069_v55  ;;  %v5931_v40 = vsub.f32 %v14944_v16, %v12069_v55  ;;  %v5932_v42 = vsub.f32 %v14945_v17, %v12069_v55  ;;  %v14947_v18 = vld [vmem:[#allocation39_spill] sm:$0xff]  ;;  %v14948_v51 = vld [vmem:[#allocation42_spill] sm:$0xff] }
 0x5b9   :  { %v5887_v57 = vsub.f32 %v5885_v13, %v5886_v54  ;;  %v5680_v54 = vld [vmem:[%s14406_s5] sm:$0x1]  ;;  %v5934_v35 = vsub.f32 %v14947_v18, %v12069_v55  ;;  %v5935_v13 = vsub.f32 %v14948_v51, %v12069_v55  ;;  %v14951_v16 = vsub.f32 %v12058_v30, %v12069_v55 }
 0x5ba   :  { %v14954_v51 = vsub.f32 %v11680_v22, %v12069_v55  ;;  %v14958_v22 = vsub.f32 %v11707_v52, %v12069_v55 }
 0x5bb   :  { %v5888_v34 = vadd.f32 1e-05, %v5887_v57 }
 0x5bd   :  { %9396 = vrsqrt.f32 %v5888_v34  ;;  %v5927_v34 = vsub.f32 %v14939_v39, %v12069_v55  ;;  %v14946_v39 = vld [vmem:[#allocation37_spill] sm:$0xff] }
 0x5be   :  { %v5933_v57 = vsub.f32 %v14946_v39, %v12069_v55  ;;  %v14953_v39 = vsub.f32 %v11674_v19, %v12069_v55  ;;  %v14957_v19 = vsub.f32 %v11697_v6, %v12069_v55 }
 0x5c7   :  { %v9397_v26 = vpop.eup %9396 }
 0x5c8   :  { %v5890_v62 = vmul.f32 %v9397_v26, %v5680_v54  ;;  %v14942_v26 = vld [vmem:[#allocation24_spill] sm:$0xff] }
 0x5c9   :  { %v5930_v54 = vsub.f32 %v14942_v26, %v12069_v55  ;;  %v14949_v26 = vld [vmem:[#allocation41_spill] sm:$0xff] }
 0x5ca   :  { %v12191_v1 = vrot.slane %v5890_v62, %v14943_v21  ;;  %v5937_v49 = vsub.f32 %v14949_v26, %v12069_v55  ;;  %v14950_v62 = vld [vmem:[#allocation12_spill] sm:$0xff] }
 0x5cb   :  { %v5938_v21 = vsub.f32 %v14950_v62, %v12069_v55  ;;  %v14955_v62 = vsub.f32 %v11671_v3, %v12069_v55  ;;  %v14959_v3 = vsub.f32 %v11692_v53, %v12069_v55 }
 0x5cc   :  { %v12211_v17 = vmul.f32 %v12191_v1, %v14951_v16  ;;  %v12217_v18 = vmul.f32 %v12191_v1, %v14953_v39  ;;  %v12223_v26 = vmul.f32 %v12191_v1, %v14954_v51  ;;  %v14956_v16 = vsub.f32 %v11677_v4, %v12069_v55 }
 0x5cd   :  { %v5961_v30 = vmul.f32 %v12191_v1, %v14955_v62  ;;  %v12237_v39 = vmul.f32 %v12191_v1, %v14957_v19  ;;  %v12243_v51 = vmul.f32 %v12191_v1, %v14958_v22  ;;  %v12249_v62 = vmul.f32 %v12191_v1, %v14959_v3 }
 0x5ce   :  { %14952 = vst [vmem:[#allocation29_spill] sm:$0xff] %v12211_v17  ;;  %v5962_v17 = vmul.f32 %v12191_v1, %v14956_v16  ;;  %v14960_v4 = vsub.f32 %v11701_v15, %v12069_v55  ;;  %v14961_v16 = vsub.f32 %v11721_v12, %v12069_v55  ;;  %v14962_v19 = vsub.f32 %v11731_v2, %v12069_v55 }
 0x5cf   :  { %v14963_v22 = vsub.f32 %v11716_v32, %v12069_v55  ;;  %v14964_v3 = vsub.f32 %v11725_v59, %v12069_v55 }
 0x5d0   :  { %v12255_v6 = vmul.f32 %v12191_v1, %v14960_v4  ;;  %v12261_v52 = vmul.f32 %v12191_v1, %v14961_v16  ;;  %v12267_v53 = vmul.f32 %v12191_v1, %v14962_v19  ;;  %v14965_v4 = vsub.f32 %v11745_v48, %v12069_v55 }
 0x5d1   :  { %v12273_v15 = vmul.f32 %v12191_v1, %v14963_v22  ;;  %v12279_v12 = vmul.f32 %v12191_v1, %v14964_v3  ;;  %v14966_v16 = vsub.f32 %v11755_v60, %v12069_v55  ;;  %v14967_v19 = vsub.f32 %v11740_v43, %v12069_v55 }
 0x5d2   :  { %v12285_v2 = vmul.f32 %v12191_v1, %v14965_v4  ;;  %v14968_v22 = vsub.f32 %v11749_v33, %v12069_v55  ;;  %v14969_v3 = vsub.f32 %v11769_v47, %v12069_v55  ;;  %v14970_v4 = vsub.f32 %v11779_v20, %v12069_v55 }
 0x5d3   :  { %v12291_v32 = vmul.f32 %v12191_v1, %v14966_v16  ;;  %v12297_v59 = vmul.f32 %v12191_v1, %v14967_v19  ;;  %v14971_v16 = vsub.f32 %v11764_v8, %v12069_v55  ;;  %v14972_v19 = vsub.f32 %v11773_v50, %v12069_v55 }
 0x5d4   :  { %v12303_v48 = vmul.f32 %v12191_v1, %v14968_v22  ;;  %v12309_v60 = vmul.f32 %v12191_v1, %v14969_v3  ;;  %v12315_v43 = vmul.f32 %v12191_v1, %v14970_v4  ;;  %v14973_v22 = vsub.f32 %v11793_v58, %v12069_v55 }
 0x5d5   :  { %v12321_v33 = vmul.f32 %v12191_v1, %v14971_v16  ;;  %v12327_v47 = vmul.f32 %v12191_v1, %v14972_v19  ;;  %v14974_v3 = vsub.f32 %v11803_v31, %v12069_v55  ;;  %v14975_v4 = vsub.f32 %v11788_v29, %v12069_v55 }
 0x5d6   :  { %v12333_v20 = vmul.f32 %v12191_v1, %v14973_v22  ;;  %v14976_v16 = vsub.f32 %v11797_v36, %v12069_v55  ;;  %v14977_v19 = vsub.f32 %v11817_v5, %v12069_v55  ;;  %v14978_v22 = vsub.f32 %v11827_v24, %v12069_v55 }
 0x5d7   :  { %v12339_v8 = vmul.f32 %v12191_v1, %v14974_v3  ;;  %v12345_v50 = vmul.f32 %v12191_v1, %v14975_v4  ;;  %v14979_v3 = vsub.f32 %v11812_v41, %v12069_v55  ;;  %v14980_v4 = vsub.f32 %v11821_v23, %v12069_v55 }
 0x5d8   :  { %v12351_v58 = vmul.f32 %v12191_v1, %v14976_v16  ;;  %v12357_v31 = vmul.f32 %v12191_v1, %v14977_v19  ;;  %v12363_v29 = vmul.f32 %v12191_v1, %v14978_v22  ;;  %v14981_v16 = vsub.f32 %v11841_v9, %v12069_v55 }
 0x5d9   :  { %v12369_v36 = vmul.f32 %v12191_v1, %v14979_v3  ;;  %v12375_v5 = vmul.f32 %v12191_v1, %v14980_v4  ;;  %v14982_v19 = vsub.f32 %v11857_v46, %v12069_v55  ;;  %v14983_v22 = vsub.f32 %v11836_v61, %v12069_v55 }
 0x5da   :  { %v12381_v24 = vmul.f32 %v12191_v1, %v14981_v16  ;;  %v14984_v3 = vsub.f32 %v11845_v37, %v12069_v55  ;;  %v14985_v4 = vsub.f32 %v11874_v44, %v12069_v55  ;;  %v14986_v16 = vsub.f32 %v11887_v56, %v12069_v55 }
 0x5db   :  { %v12387_v41 = vmul.f32 %v12191_v1, %v14982_v19  ;;  %v12393_v23 = vmul.f32 %v12191_v1, %v14983_v22  ;;  %v12414_v19 = vmul.f32 %v12191_v1, %v5925_v63  ;;  %v12417_v37 = vmul.f32 %v12191_v1, %v5926_v7 }
 0x5dc   :  { %v12399_v9 = vmul.f32 %v12191_v1, %v14984_v3  ;;  %v12405_v46 = vmul.f32 %v12191_v1, %v14985_v4  ;;  %v12411_v61 = vmul.f32 %v12191_v1, %v14986_v16  ;;  %v12420_v22 = vmul.f32 %v12191_v1, %v5927_v34 }
 0x5dd   :  { %v12423_v44 = vmul.f32 %v12191_v1, %v5928_v38  ;;  %v12426_v3 = vmul.f32 %v12191_v1, %v5929_v45  ;;  %v12429_v56 = vmul.f32 %v12191_v1, %v5930_v54  ;;  %v12432_v4 = vmul.f32 %v12191_v1, %v5931_v40 }
 0x5de   :  { %v12435_v63 = vmul.f32 %v12191_v1, %v5932_v42  ;;  %v12438_v7 = vmul.f32 %v12191_v1, %v5933_v57  ;;  %v12441_v34 = vmul.f32 %v12191_v1, %v5934_v35  ;;  %v12444_v38 = vmul.f32 %v12191_v1, %v5935_v13 }
 0x5df   :  { %v14987_v45 = vsub.f32 %v11962_v11, %v12069_v55  ;;  %v12453_v40 = vmul.f32 %v12191_v1, %v5937_v49  ;;  %v12456_v42 = vmul.f32 %v12191_v1, %v5938_v21  ;;  %v14988_v57 = vsub.f32 %v11976_v28, %v12069_v55  ;;  %v12479_v21 = vld [vmem:[%s14407_s6] ss:$0 sm:$0xff] }
 0x5e0   :  { %v14990_v13 = vsub.f32 %v11986_v27, %v12069_v55  ;;  %v14992_v16 = vsub.f32 %v11971_v25, %v12069_v55  ;;  %v14994_v28 = vsub.f32 %v11980_v14, %v12069_v55  ;;  %v14996_v27 = vsub.f32 %v12000_v0, %v12069_v55 }
 0x5e1   :  { %v12450_v54 = vmul.f32 %v12191_v1, %v14987_v45  ;;  %v12462_v35 = vmul.f32 %v12191_v1, %v14988_v57  ;;  %v14998_v25 = vsub.f32 %v14929_v10, %v12069_v55 }
 0x5e2   :  { %v12468_v11 = vmul.f32 %v12191_v1, %v14990_v13  ;;  %v12474_v49 = vmul.f32 %v12191_v1, %v14992_v16  ;;  %v12485_v45 = vmul.f32 %v12191_v1, %v14994_v28  ;;  %v12491_v57 = vmul.f32 %v12191_v1, %v14996_v27  ;;  %v15000_v16 = vld [vmem:[#allocation14_spill] sm:$0xff]  ;;  %v15003_v28 = vld [vmem:[#allocation16_spill] sm:$0xff] }
 0x5e3   :  { %14989 = vst [vmem:[#allocation26_spill] sm:$0xff] %v12462_v35  ;;  %v12497_v13 = vmul.f32 %v12191_v1, %v14998_v25  ;;  %v15006_v27 = vld [vmem:[#allocation28_spill] sm:$0xff]  ;;  %v15009_v25 = vld [vmem:[#allocation30_spill] sm:$0xff] }
 0x5e4   :  { %14991 = vst [vmem:[#allocation31_spill] sm:$0xff] %v12468_v11  ;;  %14993 = vst [vmem:[#allocation34_spill] sm:$0xff] %v12474_v49  ;;  %v15001_v49 = vsub.f32 %v15000_v16, %v12069_v55 }
 0x5e5   :  { %14995 = vst [vmem:[#allocation35_spill] sm:$0xff] %v12485_v45  ;;  %14997 = vst [vmem:[#allocation20_spill] sm:$0xff] %v12491_v57  ;;  %v15004_v45 = vsub.f32 %v15003_v28, %v12069_v55  ;;  %v15007_v57 = vsub.f32 %v15006_v27, %v12069_v55 }
 0x5e6   :  { %14999 = vst [vmem:[#allocation17_spill] sm:$0xff] %v12497_v13  ;;  %v12503_v14 = vmul.f32 %v12191_v1, %v15001_v49  ;;  %v15010_v13 = vsub.f32 %v15009_v25, %v12069_v55  ;;  %v15012_v49 = vld [vmem:[#allocation15_spill] sm:$0xff] }
 0x5e7   :  { %v12509_v0 = vmul.f32 %v12191_v1, %v15004_v45  ;;  %v12515_v10 = vmul.f32 %v12191_v1, %v15007_v57  ;;  %v15015_v45 = vld [vmem:[#allocation33_spill] sm:$0xff]  ;;  %v15018_v57 = vld [vmem:[#allocation18_spill] sm:$0xff] }
 0x5e8   :  { %15002 = vst [vmem:[#allocation13_spill] sm:$0xff] %v12503_v14  ;;  %v12521_v16 = vmul.f32 %v12191_v1, %v15010_v13  ;;  %v15013_v14 = vsub.f32 %v15012_v49, %v12069_v55  ;;  %v15021_v13 = vld [vmem:[#allocation32_spill] sm:$0xff] }
 0x5e9   :  { %15005 = vst [vmem:[#allocation23_spill] sm:$0xff] %v12509_v0  ;;  %15008 = vst [vmem:[#allocation21_spill] sm:$0xff] %v12515_v10  ;;  %v15016_v0 = vsub.f32 %v15015_v45, %v12069_v55  ;;  %v15019_v10 = vsub.f32 %v15018_v57, %v12069_v55  ;;  %v6030_v57 = vadd.f32 %v12479_v21, %v12223_v26 }
 0x5ea   :  { %15011 = vst [vmem:[#allocation22_spill] sm:$0xff] %v12521_v16  ;;  %v12527_v28 = vmul.f32 %v12191_v1, %v15013_v14  ;;  %v15022_v16 = vsub.f32 %v15021_v13, %v12069_v55  ;;  %v15024_v14 = vld [vmem:[#allocation19_spill] sm:$0xff]  ;;  %v6034_v13 = vadd.f32 %v12479_v21, %v12243_v51  ;;  %v6038_v51 = vadd.f32 %v12479_v21, %v12267_v53 }
 0x5eb   :  { %v12533_v27 = vmul.f32 %v12191_v1, %v15016_v0  ;;  %v12539_v25 = vmul.f32 %v12191_v1, %v15019_v10  ;;  %v6031_v0 = vadd.f32 %v12479_v21, %v5961_v30  ;;  %v6029_v10 = vadd.f32 %v12479_v21, %v12217_v18 }
 0x5ec   :  { %15014 = vst [vmem:[#allocation27_spill] sm:$0xff] %v12527_v28  ;;  %v12545_v49 = vmul.f32 %v12191_v1, %v15022_v16  ;;  %v15025_v28 = vsub.f32 %v15024_v14, %v12069_v55  ;;  %v6033_v16 = vadd.f32 %v12479_v21, %v12237_v39  ;;  %v6035_v55 = vadd.f32 %v12479_v21, %v12249_v62 }
 0x5ed   :  { %15017 = vst [vmem:[#allocation25_spill] sm:$0xff] %v12533_v27  ;;  %15020 = vst [vmem:[#allocation24_spill] sm:$0xff] %v12539_v25  ;;  %v6032_v27 = vadd.f32 %v12479_v21, %v5962_v17  ;;  %v6095_v30 = vmax.f32 %v6031_v0, 0.0  ;;  %v6094_v14 = vmax.f32 %v6030_v57, 0.0  ;;  %v6037_v39 = vadd.f32 %v12479_v21, %v12261_v52 }
 0x5ee   :  { %15023 = vst [vmem:[#allocation38_spill] sm:$0xff] %v12545_v49  ;;  %v12551_v45 = vmul.f32 %v12191_v1, %v15025_v28  ;;  %v6036_v1 = vadd.f32 %v12479_v21, %v12255_v6  ;;  %v6093_v28 = vmax.f32 %v6029_v10, 0.0  ;;  %v6097_v18 = vmax.f32 %v6033_v16, 0.0 }
 0x5ef   :  { %v6096_v17 = vmax.f32 %v6032_v27, 0.0  ;;  %v6099_v49 = vmax.f32 %v6035_v55, 0.0  ;;  %v6039_v6 = vadd.f32 %v12479_v21, %v12273_v15  ;;  %v6040_v27 = vadd.f32 %v12479_v21, %v12279_v12 }
 0x5f0   :  { %15026 = vst [vmem:[#allocation40_spill] sm:$0xff] %v12551_v45  ;;  %v6098_v45 = vmax.f32 %v6034_v13, 0.0  ;;  %v6100_v26 = vmax.f32 %v6036_v1, 0.0  ;;  %v6157_v11 = vpack.c.bf16 %v6094_v14, %v6093_v28  ;;  %v6101_v0 = vmax.f32 %v6037_v39, 0.0 }
 0x5f1   :  { %v6158_v25 = vpack.c.bf16 %v6096_v17, %v6095_v30  ;;  %v6102_v10 = vmax.f32 %v6038_v51, 0.0  ;;  %v6041_v57 = vadd.f32 %v12479_v21, %v12285_v2  ;;  %v6042_v52 = vadd.f32 %v12479_v21, %v12291_v32 }
 0x5f2   :  { %v6159_v62 = vpack.c.bf16 %v6098_v45, %v6097_v18  ;;  %v6160_v35 = vpack.c.bf16 %v6100_v26, %v6099_v49  ;;  %8712 = vmatprep.mubr.bf16.mxu0 %v6157_v11  ;;  %v6103_v16 = vmax.f32 %v6039_v6, 0.0  ;;  %v6104_v53 = vmax.f32 %v6040_v27, 0.0 }
 0x5f3   :  { %8713 = vmatmul.mubr.bf16.vlgmr.msra.gmra.mrb[128].mxu0 %v6158_v25  ;;  %v6043_v49 = vadd.f32 %v12479_v21, %v12297_v59  ;;  %v6044_v15 = vadd.f32 %v12479_v21, %v12303_v48  ;;  %v6161_v12 = vpack.c.bf16 %v6102_v10, %v6101_v0  ;;  %v6105_v11 = vmax.f32 %v6041_v57, 0.0 }
 0x5f4   :  { %8716 = vmatprep.mubr.bf16.mxu0 %v6159_v62  ;;  %v6106_v45 = vmax.f32 %v6042_v52, 0.0  ;;  %v6045_v13 = vadd.f32 %v12479_v21, %v12309_v60  ;;  %v6162_v2 = vpack.c.bf16 %v6104_v53, %v6103_v16  ;;  %v6046_v32 = vadd.f32 %v12479_v21, %v12315_v43 }
 0x5f5   :  { %v6107_v55 = vmax.f32 %v6043_v49, 0.0  ;;  %v6108_v1 = vmax.f32 %v6044_v15, 0.0  ;;  %v6047_v59 = vadd.f32 %v12479_v21, %v12321_v33  ;;  %v6048_v48 = vadd.f32 %v12479_v21, %v12327_v47 }
 0x5f6   :  { %v6163_v25 = vpack.c.bf16 %v6106_v45, %v6105_v11  ;;  %v6109_v30 = vmax.f32 %v6045_v13, 0.0  ;;  %v6110_v28 = vmax.f32 %v6046_v32, 0.0  ;;  %v6049_v60 = vadd.f32 %v12479_v21, %v12333_v20 }
 0x5f7   :  { %v12591_v17 = vpack.c.bf16 %v6108_v1, %v6107_v55  ;;  %v6050_v14 = vadd.f32 %v12479_v21, %v12339_v8  ;;  %v6111_v18 = vmax.f32 %v6047_v59, 0.0  ;;  %v6112_v26 = vmax.f32 %v6048_v48, 0.0 }
 0x5f8   :  { %v6051_v43 = vadd.f32 %v12479_v21, %v12345_v50  ;;  %v6052_v33 = vadd.f32 %v12479_v21, %v12351_v58  ;;  %v12601_v39 = vpack.c.bf16 %v6110_v28, %v6109_v30  ;;  %v6113_v47 = vmax.f32 %v6049_v60, 0.0 }
 0x5f9   :  { %v6114_v51 = vmax.f32 %v6050_v14, 0.0  ;;  %v6053_v62 = vadd.f32 %v12479_v21, %v12357_v31  ;;  %v12605_v6 = vpack.c.bf16 %v6112_v26, %v6111_v18  ;;  %v6054_v8 = vadd.f32 %v12479_v21, %v12363_v29 }
 0x5fa   :  { %v6115_v20 = vmax.f32 %v6051_v43, 0.0  ;;  %v6116_v27 = vmax.f32 %v6052_v33, 0.0  ;;  %v6055_v58 = vadd.f32 %v12479_v21, %v12369_v36  ;;  %v6056_v10 = vadd.f32 %v12479_v21, %v12375_v5 }
 0x5fb   :  { %8717 = vmatmul.mubr.bf16.gmra.mrb[132].mxu0 %v6160_v35  ;;  %v12609_v0 = vpack.c.bf16 %v6114_v51, %v6113_v47  ;;  %v6117_v50 = vmax.f32 %v6053_v62, 0.0  ;;  %v6118_v31 = vmax.f32 %v6054_v8, 0.0  ;;  %v6057_v52 = vadd.f32 %v12479_v21, %v12381_v24  ;;  %v15027_v8 = vld [vmem:[#allocation26_spill] sm:$0xff] }
 0x5fc   :  { %8720 = vmatprep.mubr.bf16.mxu0 %v6161_v12  ;;  %v12615_v57 = vpack.c.bf16 %v6116_v27, %v6115_v20  ;;  %v6058_v29 = vadd.f32 %v12479_v21, %v12387_v41  ;;  %v6119_v35 = vmax.f32 %v6055_v58, 0.0  ;;  %v6120_v16 = vmax.f32 %v6056_v10, 0.0 }
 0x5fd   :  { %v6059_v53 = vadd.f32 %v12479_v21, %v12393_v23  ;;  %v6060_v36 = vadd.f32 %v12479_v21, %v12399_v9  ;;  %v12625_v49 = vpack.c.bf16 %v6118_v31, %v6117_v50  ;;  %v6121_v5 = vmax.f32 %v6057_v52, 0.0  ;;  %v15028_v31 = vld [vmem:[#allocation31_spill] sm:$0xff] }
 0x5fe   :  { %v6122_v15 = vmax.f32 %v6058_v29, 0.0  ;;  %v6061_v12 = vadd.f32 %v12479_v21, %v12405_v46  ;;  %v12629_v11 = vpack.c.bf16 %v6120_v16, %v6119_v35  ;;  %v6062_v41 = vadd.f32 %v12479_v21, %v12411_v61  ;;  %v15029_v35 = vld [vmem:[#allocation34_spill] sm:$0xff]  ;;  %v15030_v16 = vld [vmem:[#allocation35_spill] sm:$0xff] }
 0x5ff   :  { %v6123_v24 = vmax.f32 %v6059_v53, 0.0  ;;  %v6124_v45 = vmax.f32 %v6060_v36, 0.0  ;;  %v6063_v9 = vadd.f32 %v12479_v21, %v12414_v19  ;;  %v6064_v55 = vadd.f32 %v12479_v21, %v12417_v37 }
 0x600   :  { %v12633_v13 = vpack.c.bf16 %v6122_v15, %v6121_v5  ;;  %v6125_v23 = vmax.f32 %v6061_v12, 0.0  ;;  %v6126_v32 = vmax.f32 %v6062_v41, 0.0  ;;  %v6065_v46 = vadd.f32 %v12479_v21, %v12420_v22  ;;  %v15031_v5 = vld [vmem:[#allocation20_spill] sm:$0xff]  ;;  %v15032_v12 = vld [vmem:[#allocation17_spill] sm:$0xff] }
 0x601   :  { %v12639_v1 = vpack.c.bf16 %v6124_v45, %v6123_v24  ;;  %v6066_v30 = vadd.f32 %v12479_v21, %v12423_v44  ;;  %v6127_v59 = vmax.f32 %v6063_v9, 0.0  ;;  %v6128_v61 = vmax.f32 %v6064_v55, 0.0  ;;  %v15034_v55 = vld [vmem:[#allocation23_spill] sm:$0xff] }
 0x602   :  { %v6067_v48 = vadd.f32 %v12479_v21, %v12426_v3  ;;  %v6068_v19 = vadd.f32 %v12479_v21, %v12429_v56  ;;  %v12649_v28 = vpack.c.bf16 %v6126_v32, %v6125_v23  ;;  %v6129_v37 = vmax.f32 %v6065_v46, 0.0  ;;  %v15033_v23 = vld [vmem:[#allocation13_spill] sm:$0xff] }
 0x603   :  { %8721 = vmatmul.mubr.bf16.gmra.mrb[136].mxu0 %v6162_v2  ;;  %v6130_v60 = vmax.f32 %v6066_v30, 0.0  ;;  %v6069_v14 = vadd.f32 %v12479_v21, %v12432_v4  ;;  %v12653_v22 = vpack.c.bf16 %v6128_v61, %v6127_v59  ;;  %v6070_v26 = vadd.f32 %v12479_v21, %v12435_v63  ;;  %v15035_v59 = vld [vmem:[#allocation21_spill] sm:$0xff] }
 0x604   :  { %8724 = vmatprep.mubr.bf16.mxu0 %v6163_v25  ;;  %v6131_v44 = vmax.f32 %v6067_v48, 0.0  ;;  %v6132_v18 = vmax.f32 %v6068_v19, 0.0  ;;  %v6071_v56 = vadd.f32 %v12479_v21, %v12438_v7  ;;  %v6072_v2 = vadd.f32 %v12479_v21, %v12441_v34 }
 0x605   :  { %v12657_v3 = vpack.c.bf16 %v6130_v60, %v6129_v37  ;;  %v6133_v43 = vmax.f32 %v6069_v14, 0.0  ;;  %v6134_v4 = vmax.f32 %v6070_v26, 0.0  ;;  %v6073_v25 = vadd.f32 %v12479_v21, %v12444_v38  ;;  %v15036_v60 = vld [vmem:[#allocation22_spill] sm:$0xff] }
 0x606   :  { %v12663_v33 = vpack.c.bf16 %v6132_v18, %v6131_v44  ;;  %v6074_v47 = vadd.f32 %v12479_v21, %v12450_v54  ;;  %v6135_v51 = vmax.f32 %v6071_v56, 0.0  ;;  %v6136_v63 = vmax.f32 %v6072_v2, 0.0  ;;  %v15037_v18 = vld [vmem:[#allocation27_spill] sm:$0xff] }
 0x607   :  { %v6075_v62 = vadd.f32 %v12479_v21, %v12453_v40  ;;  %v6076_v7 = vadd.f32 %v12479_v21, %v12456_v42  ;;  %v6177_v20 = vpack.c.bf16 %v6134_v4, %v6133_v43  ;;  %v6137_v27 = vmax.f32 %v6073_v25, 0.0  ;;  %v15038_v43 = vld [vmem:[#allocation25_spill] sm:$0xff]  ;;  %v15039_v25 = vld [vmem:[#allocation24_spill] sm:$0xff] }
 0x608   :  { %v6138_v34 = vmax.f32 %v6074_v47, 0.0  ;;  %v6077_v50 = vadd.f32 %v12479_v21, %v15027_v8  ;;  %v6178_v58 = vpack.c.bf16 %v6136_v63, %v6135_v51  ;;  %v6078_v54 = vadd.f32 %v12479_v21, %v15028_v31  ;;  %v15040_v51 = vld [vmem:[#allocation29_spill] sm:$0xff]  ;;  %v15042_v8 = vld [vmem:[#allocation40_spill] sm:$0xff] }
 0x609   :  { %v6139_v10 = vmax.f32 %v6075_v62, 0.0  ;;  %v6140_v38 = vmax.f32 %v6076_v7, 0.0  ;;  %v6079_v40 = vadd.f32 %v12479_v21, %v15029_v35  ;;  %v6080_v42 = vadd.f32 %v12479_v21, %v15030_v16 }
 0x60a   :  { %v6179_v52 = vpack.c.bf16 %v6138_v34, %v6137_v27  ;;  %v6141_v29 = vmax.f32 %v6077_v50, 0.0  ;;  %v6142_v36 = vmax.f32 %v6078_v54, 0.0  ;;  %v6081_v15 = vadd.f32 %v12479_v21, %v15031_v5  ;;  %v15041_v27 = vld [vmem:[#allocation38_spill] sm:$0xff] }
 0x60b   :  { %8725 = vmatmul.mubr.bf16.gmra.mrb[140].mxu0 %v12591_v17  ;;  %v6180_v53 = vpack.c.bf16 %v6140_v38, %v6139_v10  ;;  %v6082_v24 = vadd.f32 %v12479_v21, %v15032_v12  ;;  %v6143_v45 = vmax.f32 %v6079_v40, 0.0  ;;  %v6144_v41 = vmax.f32 %v6080_v42, 0.0 }
 0x60c   :  { %8728 = vmatprep.mubr.bf16.mxu0 %v12601_v39  ;;  %v6083_v9 = vadd.f32 %v12479_v21, %v15033_v23  ;;  %v6084_v32 = vadd.f32 %v12479_v21, %v15034_v55  ;;  %v6181_v46 = vpack.c.bf16 %v6142_v36, %v6141_v29  ;;  %v6145_v17 = vmax.f32 %v6081_v15, 0.0 }
 0x60d   :  { %v6146_v30 = vmax.f32 %v6082_v24, 0.0  ;;  %v6085_v61 = vadd.f32 %v12479_v21, %v15035_v59  ;;  %v6182_v48 = vpack.c.bf16 %v6144_v41, %v6143_v45  ;;  %v6086_v39 = vadd.f32 %v12479_v21, %v15036_v60 }
 0x60e   :  { %v6147_v19 = vmax.f32 %v6083_v9, 0.0  ;;  %v6148_v37 = vmax.f32 %v6084_v32, 0.0  ;;  %v6087_v26 = vadd.f32 %v12479_v21, %v15037_v18  ;;  %v6088_v56 = vadd.f32 %v12479_v21, %v15038_v43 }
 0x60f   :  { %v6183_v14 = vpack.c.bf16 %v6146_v30, %v6145_v17  ;;  %v6149_v44 = vmax.f32 %v6085_v61, 0.0  ;;  %v6150_v4 = vmax.f32 %v6086_v39, 0.0  ;;  %v6089_v47 = vadd.f32 %v12479_v21, %v15039_v25 }
 0x610   :  { %v6184_v2 = vpack.c.bf16 %v6148_v37, %v6147_v19  ;;  %v6090_v63 = vadd.f32 %v12479_v21, %v15040_v51  ;;  %v6151_v62 = vmax.f32 %v6087_v26, 0.0  ;;  %v6152_v7 = vmax.f32 %v6088_v56, 0.0 }
 0x611   :  { %v6091_v34 = vadd.f32 %v12479_v21, %v15041_v27  ;;  %v6092_v50 = vadd.f32 %v12479_v21, %v15042_v8  ;;  %v6185_v10 = vpack.c.bf16 %v6150_v4, %v6149_v44  ;;  %v6153_v38 = vmax.f32 %v6089_v47, 0.0 }
 0x612   :  { %v6154_v31 = vmax.f32 %v6090_v63, 0.0  ;;  %v6186_v54 = vpack.c.bf16 %v6152_v7, %v6151_v62 }
 0x613   :  { %8729 = vmatmul.mubr.bf16.gmra.mrb[144].mxu0 %v12605_v6  ;;  %v6155_v29 = vmax.f32 %v6091_v34, 0.0  ;;  %v6156_v35 = vmax.f32 %v6092_v50, 0.0 }
 0x614   :  { %8732 = vmatprep.mubr.bf16.mxu0 %v12609_v0  ;;  %v6187_v40 = vpack.c.bf16 %v6154_v31, %v6153_v38 }
 0x615   :  { %v6188_v16 = vpack.c.bf16 %v6156_v35, %v6155_v29 }
 0x61b   :  { %8733 = vmatmul.mubr.bf16.gmra.mrb[148].mxu0 %v12615_v57 }
 0x61c   :  { %8736 = vmatprep.mubr.bf16.mxu0 %v12625_v49 }
 0x623   :  { %8737 = vmatmul.mubr.bf16.gmra.mrb[152].mxu0 %v12629_v11 }
 0x624   :  { %8740 = vmatprep.mubr.bf16.mxu0 %v12633_v13 }
 0x62b   :  { %8741 = vmatmul.mubr.bf16.gmra.mrb[156].mxu0 %v12639_v1 }
 0x62c   :  { %8744 = vmatprep.mubr.bf16.mxu0 %v12649_v28 }
 0x633   :  { %8745 = vmatmul.mubr.bf16.gmra.mrb[160].mxu0 %v12653_v22 }
 0x634   :  { %8748 = vmatprep.mubr.bf16.mxu0 %v12657_v3 }
 0x63b   :  { %8749 = vmatmul.mubr.bf16.gmra.mrb[164].mxu0 %v12663_v33 }
 0x63c   :  { %8752 = vmatprep.mubr.bf16.mxu0 %v6177_v20 }
 0x643   :  { %8753 = vmatmul.mubr.bf16.gmra.mrb[168].mxu0 %v6178_v58 }
 0x644   :  { %8756 = vmatprep.mubr.bf16.mxu0 %v6179_v52 }
 0x64b   :  { %8757 = vmatmul.mubr.bf16.gmra.mrb[172].mxu0 %v6180_v53 }
 0x64c   :  { %8760 = vmatprep.mubr.bf16.mxu0 %v6181_v46 }
 0x653   :  { %8761 = vmatmul.mubr.bf16.gmra.mrb[176].mxu0 %v6182_v48 }
 0x654   :  { %8764 = vmatprep.mubr.bf16.mxu0 %v6183_v14 }
 0x65b   :  { %8765 = vmatmul.mubr.bf16.gmra.mrb[180].mxu0 %v6184_v2 }
 0x65c   :  { %8768 = vmatprep.mubr.bf16.mxu0 %v6185_v10 }
 0x663   :  { %8769 = vmatmul.mubr.bf16.gmra.mrb[184].mxu0 %v6186_v54 }
 0x664   :  { %8772 = vmatprep.mubr.bf16.mxu0 %v6187_v40 }
 0x66b   :  { %8773 = vmatmul.mubr.bf16.gmra.mrb[188].mxu0 %v6188_v16 }
 0x6c6   :  { %v12718_v21 = vpop.f32.mrb[128].mxu0 }
 0x6c7   :  { %v12720_v6 = vpop.f32.mrb[129].mxu0  ;;  %v6679_v11 = vmul.f32 %v12718_v21, %v12718_v21  ;;  %v6547_v3 = vsel %vm177_vm0, %v12718_v21, 0.0 }
 0x6c8   :  { %v6677_v0 = vmul.f32 %v12720_v6, %v12720_v6  ;;  %v12724_v57 = vpop.f32.mrb[130].mxu0  ;;  %v6544_v13 = vsel %vm177_vm0, %v12720_v6, 0.0 }
 0x6c9   :  { %v12726_v49 = vpop.f32.mrb[131].mxu0  ;;  %v6680_v20 = vmul.f32 %v12724_v57, %v12724_v57  ;;  %v6744_v53 = vsel %vm177_vm0, %v6679_v11, 0.0  ;;  %v6549_v36 = vsel %vm177_vm0, %v12724_v57, 0.0 }
 0x6ca   :  { %v6545_v1 = vsel %vm177_vm0, %v12726_v49, 0.0  ;;  %v6678_v28 = vmul.f32 %v12726_v49, %v12726_v49  ;;  %v6741_v33 = vsel %vm177_vm0, %v6677_v0, 0.0 }
 0x6cb   :  { %v6546_v22 = vadd.f32 %v6545_v1, %v6544_v13  ;;  %v6746_v45 = vsel %vm177_vm0, %v6680_v20, 0.0 }
 0x6cc   :  { %v6742_v58 = vsel %vm177_vm0, %v6678_v28, 0.0 }
 0x6cd   :  { %v6548_v52 = vadd.f32 %v6547_v3, %v6546_v22  ;;  %v6743_v42 = vadd.f32 %v6742_v58, %v6741_v33 }
 0x6ce   :  { %v12745_v5 = vpop.f32.mrb[132].mxu0 }
 0x6cf   :  { %v6745_v15 = vadd.f32 %v6744_v53, %v6743_v42  ;;  %v12747_v12 = vpop.f32.mrb[133].mxu0  ;;  %v6550_v24 = vadd.f32 %v6549_v36, %v6548_v52  ;;  %v6683_v17 = vmul.f32 %v12745_v5, %v12745_v5  ;;  %v6555_v37 = vsel %vm177_vm0, %v12745_v5, 0.0 }
 0x6d0   :  { %v6551_v41 = vsel %vm177_vm0, %v12747_v12, 0.0  ;;  %v6681_v23 = vmul.f32 %v12747_v12, %v12747_v12  ;;  %v12754_v9 = vpop.f32.mrb[134].mxu0 }
 0x6d1   :  { %v6552_v55 = vadd.f32 %v6551_v41, %v6550_v24  ;;  %v6747_v32 = vadd.f32 %v6746_v45, %v6745_v15  ;;  %v12756_v46 = vpop.f32.mrb[135].mxu0  ;;  %v6684_v60 = vmul.f32 %v12754_v9, %v12754_v9  ;;  %v6752_v18 = vsel %vm177_vm0, %v6683_v17, 0.0 }
 0x6d2   :  { %v6748_v30 = vsel %vm177_vm0, %v6681_v23, 0.0  ;;  %v6553_v59 = vsel %vm177_vm0, %v12756_v46, 0.0  ;;  %v6682_v61 = vmul.f32 %v12756_v46, %v12756_v46  ;;  %v6557_v26 = vsel %vm177_vm0, %v12754_v9, 0.0 }
 0x6d3   :  { %v6749_v48 = vadd.f32 %v6748_v30, %v6747_v32  ;;  %v6554_v19 = vadd.f32 %v6553_v59, %v6552_v55  ;;  %v6754_v25 = vsel %vm177_vm0, %v6684_v60, 0.0 }
 0x6d4   :  { %v6750_v39 = vsel %vm177_vm0, %v6682_v61, 0.0 }
 0x6d5   :  { %v6556_v14 = vadd.f32 %v6555_v37, %v6554_v19  ;;  %v6751_v44 = vadd.f32 %v6750_v39, %v6749_v48 }
 0x6d6   :  { %v12773_v43 = vpop.f32.mrb[136].mxu0 }
 0x6d7   :  { %v6753_v56 = vadd.f32 %v6752_v18, %v6751_v44  ;;  %v12775_v2 = vpop.f32.mrb[137].mxu0  ;;  %v6558_v4 = vadd.f32 %v6557_v26, %v6556_v14  ;;  %v6687_v34 = vmul.f32 %v12773_v43, %v12773_v43  ;;  %v6563_v54 = vsel %vm177_vm0, %v12773_v43, 0.0 }
 0x6d8   :  { %v6559_v47 = vsel %vm177_vm0, %v12775_v2, 0.0  ;;  %v6685_v51 = vmul.f32 %v12775_v2, %v12775_v2  ;;  %v12782_v63 = vpop.f32.mrb[138].mxu0 }
 0x6d9   :  { %v6560_v62 = vadd.f32 %v6559_v47, %v6558_v4  ;;  %v6755_v7 = vadd.f32 %v6754_v25, %v6753_v56  ;;  %v12784_v27 = vpop.f32.mrb[139].mxu0  ;;  %v6688_v29 = vmul.f32 %v12782_v63, %v12782_v63  ;;  %v6760_v0 = vsel %vm177_vm0, %v6687_v34, 0.0 }
 0x6da   :  { %v6756_v8 = vsel %vm177_vm0, %v6685_v51, 0.0  ;;  %v6561_v50 = vsel %vm177_vm0, %v12784_v27, 0.0  ;;  %v6686_v10 = vmul.f32 %v12784_v27, %v12784_v27  ;;  %v6565_v11 = vsel %vm177_vm0, %v12782_v63, 0.0 }
 0x6db   :  { %v6757_v38 = vadd.f32 %v6756_v8, %v6755_v7  ;;  %v6562_v31 = vadd.f32 %v6561_v50, %v6560_v62  ;;  %v6762_v3 = vsel %vm177_vm0, %v6688_v29, 0.0 }
 0x6dc   :  { %v6758_v35 = vsel %vm177_vm0, %v6686_v10, 0.0 }
 0x6dd   :  { %v6564_v40 = vadd.f32 %v6563_v54, %v6562_v31  ;;  %v6759_v16 = vadd.f32 %v6758_v35, %v6757_v38 }
 0x6de   :  { %v12801_v13 = vpop.f32.mrb[140].mxu0 }
 0x6df   :  { %v6761_v1 = vadd.f32 %v6760_v0, %v6759_v16  ;;  %v12803_v28 = vpop.f32.mrb[141].mxu0  ;;  %v6566_v22 = vadd.f32 %v6565_v11, %v6564_v40  ;;  %v6691_v36 = vmul.f32 %v12801_v13, %v12801_v13  ;;  %v6571_v55 = vsel %vm177_vm0, %v12801_v13, 0.0 }
 0x6e0   :  { %v6567_v33 = vsel %vm177_vm0, %v12803_v28, 0.0  ;;  %v6689_v20 = vmul.f32 %v12803_v28, %v12803_v28  ;;  %v12810_v58 = vpop.f32.mrb[142].mxu0 }
 0x6e1   :  { %v6568_v52 = vadd.f32 %v6567_v33, %v6566_v22  ;;  %v6763_v42 = vadd.f32 %v6762_v3, %v6761_v1  ;;  %v12812_v53 = vpop.f32.mrb[143].mxu0  ;;  %v6692_v32 = vmul.f32 %v12810_v58, %v12810_v58  ;;  %v6768_v61 = vsel %vm177_vm0, %v6691_v36, 0.0 }
 0x6e2   :  { %v6764_v15 = vsel %vm177_vm0, %v6689_v20, 0.0  ;;  %v6569_v24 = vsel %vm177_vm0, %v12812_v53, 0.0  ;;  %v6690_v45 = vmul.f32 %v12812_v53, %v12812_v53  ;;  %v6573_v48 = vsel %vm177_vm0, %v12810_v58, 0.0 }
 0x6e3   :  { %v6765_v41 = vadd.f32 %v6764_v15, %v6763_v42  ;;  %v6570_v23 = vadd.f32 %v6569_v24, %v6568_v52  ;;  %v6770_v14 = vsel %vm177_vm0, %v6692_v32, 0.0 }
 0x6e4   :  { %v6766_v17 = vsel %vm177_vm0, %v6690_v45, 0.0 }
 0x6e5   :  { %v6572_v30 = vadd.f32 %v6571_v55, %v6570_v23  ;;  %v6767_v59 = vadd.f32 %v6766_v17, %v6765_v41 }
 0x6e6   :  { %v12829_v19 = vpop.f32.mrb[144].mxu0 }
 0x6e7   :  { %v6769_v37 = vadd.f32 %v6768_v61, %v6767_v59  ;;  %v12831_v60 = vpop.f32.mrb[145].mxu0  ;;  %v6574_v39 = vadd.f32 %v6573_v48, %v6572_v30  ;;  %v6695_v47 = vmul.f32 %v12829_v19, %v12829_v19  ;;  %v6579_v50 = vsel %vm177_vm0, %v12829_v19, 0.0 }
 0x6e8   :  { %v6575_v44 = vsel %vm177_vm0, %v12831_v60, 0.0  ;;  %v6693_v18 = vmul.f32 %v12831_v60, %v12831_v60  ;;  %v12838_v26 = vpop.f32.mrb[146].mxu0 }
 0x6e9   :  { %v6576_v56 = vadd.f32 %v6575_v44, %v6574_v39  ;;  %v6771_v4 = vadd.f32 %v6770_v14, %v6769_v37  ;;  %v12840_v25 = vpop.f32.mrb[147].mxu0  ;;  %v6696_v10 = vmul.f32 %v12838_v26, %v12838_v26  ;;  %v6776_v29 = vsel %vm177_vm0, %v6695_v47, 0.0 }
 0x6ea   :  { %v6772_v51 = vsel %vm177_vm0, %v6693_v18, 0.0  ;;  %v6577_v62 = vsel %vm177_vm0, %v12840_v25, 0.0  ;;  %v6694_v7 = vmul.f32 %v12840_v25, %v12840_v25  ;;  %v6581_v35 = vsel %vm177_vm0, %v12838_v26, 0.0 }
 0x6eb   :  { %v6773_v34 = vadd.f32 %v6772_v51, %v6771_v4  ;;  %v6578_v8 = vadd.f32 %v6577_v62, %v6576_v56  ;;  %v6778_v1 = vsel %vm177_vm0, %v6696_v10, 0.0 }
 0x6ec   :  { %v6774_v38 = vsel %vm177_vm0, %v6694_v7, 0.0 }
 0x6ed   :  { %v6580_v31 = vadd.f32 %v6579_v50, %v6578_v8  ;;  %v6775_v54 = vadd.f32 %v6774_v38, %v6773_v34 }
 0x6ee   :  { %v12857_v40 = vpop.f32.mrb[148].mxu0 }
 0x6ef   :  { %v6777_v16 = vadd.f32 %v6776_v29, %v6775_v54  ;;  %v12859_v0 = vpop.f32.mrb[149].mxu0  ;;  %v6582_v11 = vadd.f32 %v6581_v35, %v6580_v31  ;;  %v6699_v36 = vmul.f32 %v12857_v40, %v12857_v40  ;;  %v6587_v55 = vsel %vm177_vm0, %v12857_v40, 0.0 }
 0x6f0   :  { %v6583_v22 = vsel %vm177_vm0, %v12859_v0, 0.0  ;;  %v6697_v3 = vmul.f32 %v12859_v0, %v12859_v0  ;;  %v12866_v33 = vpop.f32.mrb[150].mxu0 }
 0x6f1   :  { %v6584_v20 = vadd.f32 %v6583_v22, %v6582_v11  ;;  %v6779_v52 = vadd.f32 %v6778_v1, %v6777_v16  ;;  %v12868_v42 = vpop.f32.mrb[151].mxu0  ;;  %v6700_v32 = vmul.f32 %v12866_v33, %v12866_v33  ;;  %v6784_v61 = vsel %vm177_vm0, %v6699_v36, 0.0 }
 0x6f2   :  { %v6780_v15 = vsel %vm177_vm0, %v6697_v3, 0.0  ;;  %v6585_v24 = vsel %vm177_vm0, %v12868_v42, 0.0  ;;  %v6698_v45 = vmul.f32 %v12868_v42, %v12868_v42  ;;  %v6589_v48 = vsel %vm177_vm0, %v12866_v33, 0.0 }
 0x6f3   :  { %v6781_v41 = vadd.f32 %v6780_v15, %v6779_v52  ;;  %v6586_v23 = vadd.f32 %v6585_v24, %v6584_v20  ;;  %v6786_v18 = vsel %vm177_vm0, %v6700_v32, 0.0 }
 0x6f4   :  { %v6782_v17 = vsel %vm177_vm0, %v6698_v45, 0.0 }
 0x6f5   :  { %v6588_v30 = vadd.f32 %v6587_v55, %v6586_v23  ;;  %v6783_v59 = vadd.f32 %v6782_v17, %v6781_v41 }
 0x6f6   :  { %v12885_v37 = vpop.f32.mrb[152].mxu0 }
 0x6f7   :  { %v6785_v39 = vadd.f32 %v6784_v61, %v6783_v59  ;;  %v12887_v14 = vpop.f32.mrb[153].mxu0  ;;  %v6590_v44 = vadd.f32 %v6589_v48, %v6588_v30  ;;  %v6703_v34 = vmul.f32 %v12885_v37, %v12885_v37  ;;  %v6595_v54 = vsel %vm177_vm0, %v12885_v37, 0.0 }
 0x6f8   :  { %v6591_v56 = vsel %vm177_vm0, %v12887_v14, 0.0  ;;  %v6701_v4 = vmul.f32 %v12887_v14, %v12887_v14  ;;  %v12894_v47 = vpop.f32.mrb[154].mxu0 }
 0x6f9   :  { %v6592_v51 = vadd.f32 %v6591_v56, %v6590_v44  ;;  %v6787_v62 = vadd.f32 %v6786_v18, %v6785_v39  ;;  %v12896_v7 = vpop.f32.mrb[155].mxu0  ;;  %v6704_v29 = vmul.f32 %v12894_v47, %v12894_v47  ;;  %v6792_v1 = vsel %vm177_vm0, %v6703_v34, 0.0 }
 0x6fa   :  { %v6788_v8 = vsel %vm177_vm0, %v6701_v4, 0.0  ;;  %v6593_v50 = vsel %vm177_vm0, %v12896_v7, 0.0  ;;  %v6702_v10 = vmul.f32 %v12896_v7, %v12896_v7  ;;  %v6597_v22 = vsel %vm177_vm0, %v12894_v47, 0.0 }
 0x6fb   :  { %v6789_v38 = vadd.f32 %v6788_v8, %v6787_v62  ;;  %v6594_v31 = vadd.f32 %v6593_v50, %v6592_v51  ;;  %v6794_v15 = vsel %vm177_vm0, %v6704_v29, 0.0 }
 0x6fc   :  { %v6790_v35 = vsel %vm177_vm0, %v6702_v10, 0.0 }
 0x6fd   :  { %v6596_v16 = vadd.f32 %v6595_v54, %v6594_v31  ;;  %v6791_v11 = vadd.f32 %v6790_v35, %v6789_v38 }
 0x6fe   :  { %v12913_v3 = vpop.f32.mrb[156].mxu0 }
 0x6ff   :  { %v6793_v20 = vadd.f32 %v6792_v1, %v6791_v11  ;;  %v12915_v52 = vpop.f32.mrb[157].mxu0  ;;  %v6598_v36 = vadd.f32 %v6597_v22, %v6596_v16  ;;  %v6707_v17 = vmul.f32 %v12913_v3, %v12913_v3  ;;  %v6603_v44 = vsel %vm177_vm0, %v12913_v3, 0.0 }
 0x700   :  { %v6599_v24 = vsel %vm177_vm0, %v12915_v52, 0.0  ;;  %v6705_v45 = vmul.f32 %v12915_v52, %v12915_v52  ;;  %v12922_v41 = vpop.f32.mrb[158].mxu0 }
 0x701   :  { %v6600_v23 = vadd.f32 %v6599_v24, %v6598_v36  ;;  %v6795_v55 = vadd.f32 %v6794_v15, %v6793_v20  ;;  %v12924_v32 = vpop.f32.mrb[159].mxu0  ;;  %v6708_v18 = vmul.f32 %v12922_v41, %v12922_v41  ;;  %v6800_v62 = vsel %vm177_vm0, %v6707_v17, 0.0 }
 0x702   :  { %v6796_v30 = vsel %vm177_vm0, %v6705_v45, 0.0  ;;  %v6601_v59 = vsel %vm177_vm0, %v12924_v32, 0.0  ;;  %v6706_v61 = vmul.f32 %v12924_v32, %v12924_v32  ;;  %v6605_v34 = vsel %vm177_vm0, %v12922_v41, 0.0 }
 0x703   :  { %v6797_v48 = vadd.f32 %v6796_v30, %v6795_v55  ;;  %v6602_v39 = vadd.f32 %v6601_v59, %v6600_v23  ;;  %v6802_v31 = vsel %vm177_vm0, %v6708_v18, 0.0 }
 0x704   :  { %v6798_v56 = vsel %vm177_vm0, %v6706_v61, 0.0 }
 0x705   :  { %v6604_v4 = vadd.f32 %v6603_v44, %v6602_v39  ;;  %v6799_v51 = vadd.f32 %v6798_v56, %v6797_v48 }
 0x706   :  { %v12941_v8 = vpop.f32.mrb[160].mxu0 }
 0x707   :  { %v6801_v50 = vadd.f32 %v6800_v62, %v6799_v51  ;;  %v12943_v10 = vpop.f32.mrb[161].mxu0  ;;  %v6606_v38 = vadd.f32 %v6605_v34, %v6604_v4  ;;  %v6711_v22 = vmul.f32 %v12941_v8, %v12941_v8  ;;  %v6611_v23 = vsel %vm177_vm0, %v12941_v8, 0.0 }
 0x708   :  { %v6607_v54 = vsel %vm177_vm0, %v12943_v10, 0.0  ;;  %v6709_v29 = vmul.f32 %v12943_v10, %v12943_v10  ;;  %v12950_v35 = vpop.f32.mrb[162].mxu0 }
 0x709   :  { %v6608_v16 = vadd.f32 %v6607_v54, %v6606_v38  ;;  %v6803_v11 = vadd.f32 %v6802_v31, %v6801_v50  ;;  %v12952_v1 = vpop.f32.mrb[163].mxu0  ;;  %v6712_v55 = vmul.f32 %v12950_v35, %v12950_v35  ;;  %v6808_v61 = vsel %vm177_vm0, %v6711_v22, 0.0 }
 0x70a   :  { %v6804_v20 = vsel %vm177_vm0, %v6709_v29, 0.0  ;;  %v6609_v36 = vsel %vm177_vm0, %v12952_v1, 0.0  ;;  %v6710_v15 = vmul.f32 %v12952_v1, %v12952_v1  ;;  %v6613_v48 = vsel %vm177_vm0, %v12950_v35, 0.0 }
 0x70b   :  { %v6805_v24 = vadd.f32 %v6804_v20, %v6803_v11  ;;  %v6610_v45 = vadd.f32 %v6609_v36, %v6608_v16  ;;  %v6810_v4 = vsel %vm177_vm0, %v6712_v55, 0.0 }
 0x70c   :  { %v6806_v17 = vsel %vm177_vm0, %v6710_v15, 0.0 }
 0x70d   :  { %v6612_v30 = vadd.f32 %v6611_v23, %v6610_v45  ;;  %v6807_v59 = vadd.f32 %v6806_v17, %v6805_v24 }
 0x70e   :  { %v12969_v39 = vpop.f32.mrb[164].mxu0 }
 0x70f   :  { %v6809_v44 = vadd.f32 %v6808_v61, %v6807_v59  ;;  %v12971_v18 = vpop.f32.mrb[165].mxu0  ;;  %v6614_v56 = vadd.f32 %v6613_v48, %v6612_v30  ;;  %v6715_v54 = vmul.f32 %v12969_v39, %v12969_v39  ;;  %v6619_v36 = vsel %vm177_vm0, %v12969_v39, 0.0 }
 0x710   :  { %v6615_v51 = vsel %vm177_vm0, %v12971_v18, 0.0  ;;  %v6713_v62 = vmul.f32 %v12971_v18, %v12971_v18  ;;  %v12978_v34 = vpop.f32.mrb[166].mxu0 }
 0x711   :  { %v6616_v50 = vadd.f32 %v6615_v51, %v6614_v56  ;;  %v6811_v38 = vadd.f32 %v6810_v4, %v6809_v44  ;;  %v12980_v31 = vpop.f32.mrb[167].mxu0  ;;  %v6716_v15 = vmul.f32 %v12978_v34, %v12978_v34  ;;  %v6816_v55 = vsel %vm177_vm0, %v6715_v54, 0.0 }
 0x712   :  { %v6812_v29 = vsel %vm177_vm0, %v6713_v62, 0.0  ;;  %v6617_v16 = vsel %vm177_vm0, %v12980_v31, 0.0  ;;  %v6714_v11 = vmul.f32 %v12980_v31, %v12980_v31  ;;  %v6621_v17 = vsel %vm177_vm0, %v12978_v34, 0.0 }
 0x713   :  { %v6813_v22 = vadd.f32 %v6812_v29, %v6811_v38  ;;  %v6618_v20 = vadd.f32 %v6617_v16, %v6616_v50  ;;  %v6818_v44 = vsel %vm177_vm0, %v6716_v15, 0.0 }
 0x714   :  { %v6814_v24 = vsel %vm177_vm0, %v6714_v11, 0.0 }
 0x715   :  { %v6620_v45 = vadd.f32 %v6619_v36, %v6618_v20  ;;  %v6815_v23 = vadd.f32 %v6814_v24, %v6813_v22 }
 0x716   :  { %v12997_v30 = vpop.f32.mrb[168].mxu0 }
 0x717   :  { %15043 = vst [vmem:[#allocation37_spill] sm:$0xff] %v12997_v30  ;;  %v6817_v59 = vadd.f32 %v6816_v55, %v6815_v23  ;;  %v12999_v61 = vpop.f32.mrb[169].mxu0  ;;  %v6622_v48 = vadd.f32 %v6621_v17, %v6620_v45  ;;  %v6719_v54 = vmul.f32 %v12997_v30, %v12997_v30  ;;  %v6627_v36 = vsel %vm177_vm0, %v12997_v30, 0.0 }
 0x718   :  { %15044 = vst [vmem:[#allocation39_spill] sm:$0xff] %v12999_v61  ;;  %v6623_v56 = vsel %vm177_vm0, %v12999_v61, 0.0  ;;  %v6717_v4 = vmul.f32 %v12999_v61, %v12999_v61  ;;  %v13006_v51 = vpop.f32.mrb[170].mxu0 }
 0x719   :  { %15045 = vst [vmem:[#allocation42_spill] sm:$0xff] %v13006_v51  ;;  %v6624_v62 = vadd.f32 %v6623_v56, %v6622_v48  ;;  %v6819_v50 = vadd.f32 %v6818_v44, %v6817_v59  ;;  %v13008_v38 = vpop.f32.mrb[171].mxu0  ;;  %v6720_v15 = vmul.f32 %v13006_v51, %v13006_v51  ;;  %v6824_v55 = vsel %vm177_vm0, %v6719_v54, 0.0 }
 0x71a   :  { %15046 = vst [vmem:[#allocation41_spill] sm:$0xff] %v13008_v38  ;;  %v6820_v29 = vsel %vm177_vm0, %v6717_v4, 0.0  ;;  %v6625_v16 = vsel %vm177_vm0, %v13008_v38, 0.0  ;;  %v6718_v11 = vmul.f32 %v13008_v38, %v13008_v38  ;;  %v6629_v17 = vsel %vm177_vm0, %v13006_v51, 0.0 }
 0x71b   :  { %v6821_v22 = vadd.f32 %v6820_v29, %v6819_v50  ;;  %v6626_v20 = vadd.f32 %v6625_v16, %v6624_v62  ;;  %v6826_v4 = vsel %vm177_vm0, %v6720_v15, 0.0 }
 0x71c   :  { %v6822_v24 = vsel %vm177_vm0, %v6718_v11, 0.0 }
 0x71d   :  { %v6628_v45 = vadd.f32 %v6627_v36, %v6626_v20  ;;  %v6823_v23 = vadd.f32 %v6822_v24, %v6821_v22 }
 0x71e   :  { %v13025_v59 = vpop.f32.mrb[172].mxu0 }
 0x71f   :  { %15047 = vst [vmem:[#allocation12_spill] sm:$0xff] %v13025_v59  ;;  %v6825_v48 = vadd.f32 %v6824_v55, %v6823_v23  ;;  %v13027_v44 = vpop.f32.mrb[173].mxu0  ;;  %v6630_v56 = vadd.f32 %v6629_v17, %v6628_v45  ;;  %v6723_v22 = vmul.f32 %v13025_v59, %v13025_v59  ;;  %v6635_v23 = vsel %vm177_vm0, %v13025_v59, 0.0 }
 0x720   :  { %15048 = vst [vmem:[#allocation14_spill] sm:$0xff] %v13027_v44  ;;  %v6631_v62 = vsel %vm177_vm0, %v13027_v44, 0.0  ;;  %v6721_v50 = vmul.f32 %v13027_v44, %v13027_v44  ;;  %v13034_v29 = vpop.f32.mrb[174].mxu0 }
 0x721   :  { %15049 = vst [vmem:[#allocation16_spill] sm:$0xff] %v13034_v29  ;;  %v6632_v54 = vadd.f32 %v6631_v62, %v6630_v56  ;;  %v6827_v16 = vadd.f32 %v6826_v4, %v6825_v48  ;;  %v13036_v11 = vpop.f32.mrb[175].mxu0  ;;  %v6724_v55 = vmul.f32 %v13034_v29, %v13034_v29  ;;  %v6832_v4 = vsel %vm177_vm0, %v6723_v22, 0.0 }
 0x722   :  { %15050 = vst [vmem:[#allocation28_spill] sm:$0xff] %v13036_v11  ;;  %v6828_v20 = vsel %vm177_vm0, %v6721_v50, 0.0  ;;  %v6633_v36 = vsel %vm177_vm0, %v13036_v11, 0.0  ;;  %v6722_v15 = vmul.f32 %v13036_v11, %v13036_v11  ;;  %v6637_v62 = vsel %vm177_vm0, %v13034_v29, 0.0 }
 0x723   :  { %v6829_v24 = vadd.f32 %v6828_v20, %v6827_v16  ;;  %v6634_v45 = vadd.f32 %v6633_v36, %v6632_v54  ;;  %v6834_v20 = vsel %vm177_vm0, %v6724_v55, 0.0 }
 0x724   :  { %v6830_v17 = vsel %vm177_vm0, %v6722_v15, 0.0 }
 0x725   :  { %v6636_v48 = vadd.f32 %v6635_v23, %v6634_v45  ;;  %v6831_v56 = vadd.f32 %v6830_v17, %v6829_v24 }
 0x726   :  { %v13053_v50 = vpop.f32.mrb[176].mxu0 }
 0x727   :  { %15051 = vst [vmem:[#allocation30_spill] sm:$0xff] %v13053_v50  ;;  %v6833_v11 = vadd.f32 %v6832_v4, %v6831_v56  ;;  %v13055_v16 = vpop.f32.mrb[177].mxu0  ;;  %v6638_v54 = vadd.f32 %v6637_v62, %v6636_v48  ;;  %v6727_v17 = vmul.f32 %v13053_v50, %v13053_v50 }
 0x728   :  { %15052 = vst [vmem:[#allocation15_spill] sm:$0xff] %v13055_v16  ;;  %v6639_v36 = vsel %vm177_vm0, %v13055_v16, 0.0  ;;  %v6725_v15 = vmul.f32 %v13055_v16, %v13055_v16  ;;  %v13062_v24 = vpop.f32.mrb[178].mxu0  ;;  %v6643_v16 = vsel %vm177_vm0, %v13053_v50, 0.0 }
 0x729   :  { %15053 = vst [vmem:[#allocation33_spill] sm:$0xff] %v13062_v24  ;;  %v6640_v22 = vadd.f32 %v6639_v36, %v6638_v54  ;;  %v6835_v45 = vadd.f32 %v6834_v20, %v6833_v11  ;;  %v13064_v23 = vpop.f32.mrb[179].mxu0  ;;  %v6728_v11 = vmul.f32 %v13062_v24, %v13062_v24  ;;  %v6645_v29 = vsel %vm177_vm0, %v13062_v24, 0.0 }
 0x72a   :  { %15054 = vst [vmem:[#allocation18_spill] sm:$0xff] %v13064_v23  ;;  %v6836_v56 = vsel %vm177_vm0, %v6725_v15, 0.0  ;;  %v6641_v55 = vsel %vm177_vm0, %v13064_v23, 0.0  ;;  %v6726_v48 = vmul.f32 %v13064_v23, %v13064_v23  ;;  %v6840_v15 = vsel %vm177_vm0, %v6727_v17, 0.0 }
 0x72b   :  { %v6837_v4 = vadd.f32 %v6836_v56, %v6835_v45  ;;  %v6642_v62 = vadd.f32 %v6641_v55, %v6640_v22  ;;  %v6842_v56 = vsel %vm177_vm0, %v6728_v11, 0.0 }
 0x72c   :  { %v6838_v54 = vsel %vm177_vm0, %v6726_v48, 0.0 }
 0x72d   :  { %v6644_v20 = vadd.f32 %v6643_v16, %v6642_v62  ;;  %v6839_v36 = vadd.f32 %v6838_v54, %v6837_v4 }
 0x72e   :  { %v13081_v59 = vpop.f32.mrb[180].mxu0 }
 0x72f   :  { %15055 = vst [vmem:[#allocation32_spill] sm:$0xff] %v13081_v59  ;;  %v6841_v23 = vadd.f32 %v6840_v15, %v6839_v36  ;;  %v13083_v45 = vpop.f32.mrb[181].mxu0  ;;  %v6646_v22 = vadd.f32 %v6645_v29, %v6644_v20  ;;  %v6731_v54 = vmul.f32 %v13081_v59, %v13081_v59 }
 0x730   :  { %15056 = vst [vmem:[#allocation19_spill] sm:$0xff] %v13083_v45  ;;  %v6647_v55 = vsel %vm177_vm0, %v13083_v45, 0.0  ;;  %v6729_v16 = vmul.f32 %v13083_v45, %v13083_v45  ;;  %v13090_v48 = vpop.f32.mrb[182].mxu0  ;;  %v6651_v45 = vsel %vm177_vm0, %v13081_v59, 0.0 }
 0x731   :  { %15057 = vst [vmem:[#allocation26_spill] sm:$0xff] %v13090_v48  ;;  %v6648_v17 = vadd.f32 %v6647_v55, %v6646_v22  ;;  %v6843_v4 = vadd.f32 %v6842_v56, %v6841_v23  ;;  %v13092_v62 = vpop.f32.mrb[183].mxu0  ;;  %v6732_v23 = vmul.f32 %v13090_v48, %v13090_v48  ;;  %v6653_v24 = vsel %vm177_vm0, %v13090_v48, 0.0 }
 0x732   :  { %15058 = vst [vmem:[#allocation31_spill] sm:$0xff] %v13092_v62  ;;  %v6844_v36 = vsel %vm177_vm0, %v6729_v16, 0.0  ;;  %v6649_v29 = vsel %vm177_vm0, %v13092_v62, 0.0  ;;  %v6730_v11 = vmul.f32 %v13092_v62, %v13092_v62  ;;  %v6848_v16 = vsel %vm177_vm0, %v6731_v54, 0.0 }
 0x733   :  { %v6845_v20 = vadd.f32 %v6844_v36, %v6843_v4  ;;  %v6650_v15 = vadd.f32 %v6649_v29, %v6648_v17  ;;  %v6850_v36 = vsel %vm177_vm0, %v6732_v23, 0.0 }
 0x734   :  { %v6846_v22 = vsel %vm177_vm0, %v6730_v11, 0.0 }
 0x735   :  { %v6652_v56 = vadd.f32 %v6651_v45, %v6650_v15  ;;  %v6847_v55 = vadd.f32 %v6846_v22, %v6845_v20 }
 0x736   :  { %v13109_v50 = vpop.f32.mrb[184].mxu0 }
 0x737   :  { %15059 = vst [vmem:[#allocation34_spill] sm:$0xff] %v13109_v50  ;;  %v6849_v62 = vadd.f32 %v6848_v16, %v6847_v55  ;;  %v13111_v4 = vpop.f32.mrb[185].mxu0  ;;  %v6654_v17 = vadd.f32 %v6653_v24, %v6652_v56  ;;  %v6735_v22 = vmul.f32 %v13109_v50, %v13109_v50 }
 0x738   :  { %15060 = vst [vmem:[#allocation35_spill] sm:$0xff] %v13111_v4  ;;  %v6655_v29 = vsel %vm177_vm0, %v13111_v4, 0.0  ;;  %v6733_v45 = vmul.f32 %v13111_v4, %v13111_v4  ;;  %v13118_v11 = vpop.f32.mrb[186].mxu0  ;;  %v6659_v4 = vsel %vm177_vm0, %v13109_v50, 0.0 }
 0x739   :  { %15061 = vst [vmem:[#allocation20_spill] sm:$0xff] %v13118_v11  ;;  %v6656_v54 = vadd.f32 %v6655_v29, %v6654_v17  ;;  %v6851_v20 = vadd.f32 %v6850_v36, %v6849_v62  ;;  %v13120_v15 = vpop.f32.mrb[187].mxu0  ;;  %v6736_v62 = vmul.f32 %v13118_v11, %v13118_v11  ;;  %v6661_v48 = vsel %vm177_vm0, %v13118_v11, 0.0 }
 0x73a   :  { %15062 = vst [vmem:[#allocation17_spill] sm:$0xff] %v13120_v15  ;;  %v6852_v55 = vsel %vm177_vm0, %v6733_v45, 0.0  ;;  %v6657_v24 = vsel %vm177_vm0, %v13120_v15, 0.0  ;;  %v6734_v23 = vmul.f32 %v13120_v15, %v13120_v15  ;;  %v6856_v45 = vsel %vm177_vm0, %v6735_v22, 0.0 }
 0x73b   :  { %v6853_v56 = vadd.f32 %v6852_v55, %v6851_v20  ;;  %v6658_v16 = vadd.f32 %v6657_v24, %v6656_v54  ;;  %v6858_v55 = vsel %vm177_vm0, %v6736_v62, 0.0 }
 0x73c   :  { %v6854_v17 = vsel %vm177_vm0, %v6734_v23, 0.0 }
 0x73d   :  { %v6660_v36 = vadd.f32 %v6659_v4, %v6658_v16  ;;  %v6855_v29 = vadd.f32 %v6854_v17, %v6853_v56 }
 0x73e   :  { %v13137_v59 = vpop.f32.mrb[188].mxu0 }
 0x73f   :  { %15063 = vst [vmem:[#allocation13_spill] sm:$0xff] %v13137_v59  ;;  %v6857_v15 = vadd.f32 %v6856_v45, %v6855_v29  ;;  %v13139_v20 = vpop.f32.mrb[189].mxu0  ;;  %v6662_v54 = vadd.f32 %v6661_v48, %v6660_v36  ;;  %v6739_v17 = vmul.f32 %v13137_v59, %v13137_v59 }
 0x740   :  { %15064 = vst [vmem:[#allocation23_spill] sm:$0xff] %v13139_v20  ;;  %v6663_v24 = vsel %vm177_vm0, %v13139_v20, 0.0  ;;  %v6737_v4 = vmul.f32 %v13139_v20, %v13139_v20  ;;  %v13146_v23 = vpop.f32.mrb[190].mxu0  ;;  %v6667_v20 = vsel %vm177_vm0, %v13137_v59, 0.0 }
 0x741   :  { %15065 = vst [vmem:[#allocation21_spill] sm:$0xff] %v13146_v23  ;;  %v6664_v22 = vadd.f32 %v6663_v24, %v6662_v54  ;;  %v6859_v56 = vadd.f32 %v6858_v55, %v6857_v15  ;;  %v13148_v16 = vpop.f32.mrb[191].mxu0  ;;  %v6740_v15 = vmul.f32 %v13146_v23, %v13146_v23  ;;  %v6669_v11 = vsel %vm177_vm0, %v13146_v23, 0.0 }
 0x742   :  { %v6860_v29 = vsel %vm177_vm0, %v6737_v4, 0.0  ;;  %v6665_v48 = vsel %vm177_vm0, %v13148_v16, 0.0  ;;  %v6738_v62 = vmul.f32 %v13148_v16, %v13148_v16  ;;  %v6864_v4 = vsel %vm177_vm0, %v6739_v17, 0.0 }
 0x743   :  { %v6861_v36 = vadd.f32 %v6860_v29, %v6859_v56  ;;  %v6666_v45 = vadd.f32 %v6665_v48, %v6664_v22  ;;  %v6866_v56 = vsel %vm177_vm0, %v6740_v15, 0.0 }
 0x744   :  { %v6862_v54 = vsel %vm177_vm0, %v6738_v62, 0.0 }
 0x745   :  { %v6668_v55 = vadd.f32 %v6667_v20, %v6666_v45  ;;  %v6863_v24 = vadd.f32 %v6862_v54, %v6861_v36 }
 0x747   :  { %v6670_v50 = vadd.f32 %v6669_v11, %v6668_v55  ;;  %v6865_v44 = vadd.f32 %v6864_v4, %v6863_v24  ;;  %v13307_v4 = vld [vmem:[%s14410_s9] ss:$0 sm:$0xff]  ;;  %s9552_s9 = smov [#allocation8]  }
 0x748   :  { %s7344_s4 = sshll.u32 %s9552_s9, 4  ;;  %s7345_s4 = int_to_ptr.vmem [resolvable:$true] %s7344_s4 }
 0x749   :  { %v6671_v22 = vrot.slane %v6670_v50, 4  ;;  %v6867_v29 = vadd.f32 %v6866_v56, %v6865_v44  ;;  %v15087_v44 = vld [vmem:[#allocation13_spill] sm:$0xff]  ;;  %s9517_s2 = scalar_lea.vmem %s7345_s4, 8192  ;;  %p9522_p3 = scmp.lt.s32.totalorder %s7345_s4, %s7345_s4 }
 0x74a   :  { %p9518_p2 = scmp.ne.s32.totalorder %s7345_s4, %s9517_s2  ;;  %p9523_p4 = scmp.lt.s32.totalorder %s9517_s2, %s9517_s2 }
 0x74b   :  { %v6672_v48 = vadd.f32 %v6671_v22, %v6670_v50  ;;  %v6868_v59 = vrot.slane %v6867_v29, 4  ;;  %v6542_v22 = vld [vmem:[%s14409_s8] sm:$0x1]  ;;  %v15086_v50 = vld [vmem:[#allocation23_spill] sm:$0xff] }
 0x74c   :  { %p9524_p5 = por %p9523_p4, %p9522_p3 }
 0x74d   :  { %v6673_v51 = vrot.slane %v6672_v48, 2  ;;  %v6869_v30 = vadd.f32 %v6868_v59, %v6867_v29 }
 0x74e   :  { %p9525_p6 = pnand %p9524_p5, %p9518_p2 }
 0x74f   :  { %v6674_v38 = vadd.f32 %v6673_v51, %v6672_v48  ;;  %v6870_v61 = vrot.slane %v6869_v30, 2  ;;  %v15085_v51 = vld [vmem:[#allocation20_spill] sm:$0xff] }
 0x750   :  { %v15089_v48 = vld [vmem:[#allocation36_spill] sm:$0xff] }
 0x751   :  { %v6675_v62 = vrot.slane %v6674_v38, 1  ;;  %v6871_v20 = vadd.f32 %v6870_v61, %v6869_v30  ;;  %v15083_v61 = vld [vmem:[#allocation17_spill] sm:$0xff]  ;;  %v15084_v30 = vld [vmem:[#allocation34_spill] sm:$0xff] }
 0x753   :  { %v6676_v36 = vadd.f32 %v6675_v62, %v6674_v38  ;;  %v6872_v45 = vrot.slane %v6871_v20, 1  ;;  %v15067_v62 = vld [vmem:[#allocation41_spill] sm:$0xff] }
 0x754   :  { %v15088_v38 = vld [vmem:[#allocation21_spill] sm:$0xff] }
 0x755   :  { %v6873_v17 = vadd.f32 %v6872_v45, %v6871_v20  ;;  %v13166_v54 = vmul.f32 0.001953125, %v6676_v36  ;;  %v15068_v20 = vld [vmem:[#allocation37_spill] sm:$0xff]  ;;  %v15069_v36 = vld [vmem:[#allocation42_spill] sm:$0xff] }
 0x756   :  { %v15070_v45 = vld [vmem:[#allocation14_spill] sm:$0xff] }
 0x757   :  { %v6875_v23 = vmul.f32 0.001953125, %v6873_v17  ;;  %v6876_v11 = vmul.f32 %v13166_v54, %v13166_v54  ;;  %v15090_v24 = vsub.f32 %v13148_v16, %v13166_v54  ;;  %v15091_v15 = vsub.f32 %v12720_v6, %v13166_v54 }
 0x758   :  { %v15094_v16 = vsub.f32 %v12724_v57, %v13166_v54 }
 0x759   :  { %v6877_v59 = vsub.f32 %v6875_v23, %v6876_v11 }
 0x75b   :  { %v6878_v29 = vadd.f32 1e-05, %v6877_v59  ;;  %v15066_v59 = vld [vmem:[#allocation39_spill] sm:$0xff] }
 0x75d   :  { %9398 = vrsqrt.f32 %v6878_v29 }
 0x767   :  { %v9399_v29 = vpop.eup %9398 }
 0x768   :  { %v6880_v23 = vmul.f32 %v9399_v29, %v6542_v22  ;;  %v15093_v29 = vsub.f32 %v12718_v21, %v13166_v54 }
 0x76a   :  { %v13302_v17 = vrot.slane %v6880_v23, %v15089_v48  ;;  %v15092_v23 = vsub.f32 %v12726_v49, %v13166_v54 }
 0x76c   :  { %v7010_v55 = vmul.f32 %v13302_v17, %v15090_v24  ;;  %v13317_v22 = vmul.f32 %v13302_v17, %v15091_v15  ;;  %v13323_v48 = vmul.f32 %v13302_v17, %v15092_v23  ;;  %v13329_v11 = vmul.f32 %v13302_v17, %v15093_v29 }
 0x76d   :  { %v13335_v6 = vmul.f32 %v13302_v17, %v15094_v16  ;;  %v15095_v15 = vsub.f32 %v12747_v12, %v13166_v54  ;;  %v15096_v24 = vsub.f32 %v12756_v46, %v13166_v54  ;;  %v15097_v23 = vsub.f32 %v12745_v5, %v13166_v54 }
 0x76e   :  { %v7080_v29 = vadd.f32 %v13307_v4, %v7010_v55  ;;  %v15098_v12 = vsub.f32 %v12754_v9, %v13166_v54  ;;  %v15099_v46 = vsub.f32 %v12775_v2, %v13166_v54  ;;  %v15100_v5 = vsub.f32 %v12784_v27, %v13166_v54 }
 0x76f   :  { %v13341_v49 = vmul.f32 %v13302_v17, %v15095_v15  ;;  %v13347_v21 = vmul.f32 %v13302_v17, %v15096_v24  ;;  %v13353_v57 = vmul.f32 %v13302_v17, %v15097_v23  ;;  %v15101_v55 = vsub.f32 %v12773_v43, %v13166_v54 }
 0x770   :  { %v13360_v16 = vmul.f32 %v13302_v17, %v15098_v12  ;;  %v13366_v15 = vmul.f32 %v13302_v17, %v15099_v46  ;;  %v13372_v24 = vmul.f32 %v13302_v17, %v15100_v5  ;;  %v15102_v23 = vsub.f32 %v12782_v63, %v13166_v54 }
 0x771   :  { %v13378_v9 = vmul.f32 %v13302_v17, %v15101_v55  ;;  %v15103_v12 = vsub.f32 %v12803_v28, %v13166_v54  ;;  %v15104_v46 = vsub.f32 %v12812_v53, %v13166_v54  ;;  %v7144_v5 = vmax.f32 %v7080_v29, 0.0 }
 0x772   :  { %v13384_v2 = vmul.f32 %v13302_v17, %v15102_v23  ;;  %v15105_v55 = vsub.f32 %v12801_v13, %v13166_v54  ;;  %v15106_v23 = vsub.f32 %v12810_v58, %v13166_v54  ;;  %v15108_v29 = vsub.f32 %v12840_v25, %v13166_v54 }
 0x773   :  { %v13390_v27 = vmul.f32 %v13302_v17, %v15103_v12  ;;  %v13396_v43 = vmul.f32 %v13302_v17, %v15104_v46  ;;  %v15107_v12 = vsub.f32 %v12831_v60, %v13166_v54  ;;  %v15109_v46 = vsub.f32 %v12829_v19, %v13166_v54 }
 0x774   :  { %v13402_v63 = vmul.f32 %v13302_v17, %v15105_v55  ;;  %v13408_v28 = vmul.f32 %v13302_v17, %v15106_v23  ;;  %v13420_v13 = vmul.f32 %v13302_v17, %v15108_v29  ;;  %v15110_v55 = vsub.f32 %v12838_v26, %v13166_v54 }
 0x775   :  { %v13414_v53 = vmul.f32 %v13302_v17, %v15107_v12  ;;  %v13426_v58 = vmul.f32 %v13302_v17, %v15109_v46  ;;  %v15111_v23 = vsub.f32 %v12859_v0, %v13166_v54  ;;  %v9409_v12 = vld [vmem:[#allocation3 + $0x1e8] sm:$0xff]  ;;  %v15112_v19 = vsub.f32 %v12868_v42, %v13166_v54 }
 0x776   :  { %v13432_v60 = vmul.f32 %v13302_v17, %v15110_v55  ;;  %v7208_v29 = vadd.f32 %v9409_v12, %v7144_v5  ;;  %v15113_v26 = vsub.f32 %v12857_v40, %v13166_v54  ;;  %v15114_v0 = vsub.f32 %v12866_v33, %v13166_v54 }
 0x777   :  { %v13438_v25 = vmul.f32 %v13302_v17, %v15111_v23  ;;  %v13444_v46 = vmul.f32 %v13302_v17, %v15112_v19  ;;  %v15115_v5 = vsub.f32 %v12887_v14, %v13166_v54  ;;  %v15116_v12 = vsub.f32 %v12896_v7, %v13166_v54 }
 0x778   :  { %v13450_v55 = vmul.f32 %v13302_v17, %v15113_v26  ;;  %v13456_v23 = vmul.f32 %v13302_v17, %v15114_v0  ;;  %v15117_v19 = vsub.f32 %v12885_v37, %v13166_v54  ;;  %v15118_v26 = vsub.f32 %v12894_v47, %v13166_v54 }
 0x779   :  { %v13462_v42 = vmul.f32 %v13302_v17, %v15115_v5  ;;  %v13468_v40 = vmul.f32 %v13302_v17, %v15116_v12  ;;  %v7272_v0 = vmax.f32 %v7208_v29, 0.0  ;;  %v15119_v5 = vsub.f32 %v12915_v52, %v13166_v54 }
 0x77a   :  { %v13474_v33 = vmul.f32 %v13302_v17, %v15117_v19  ;;  %v13480_v14 = vmul.f32 %v13302_v17, %v15118_v26  ;;  %v15120_v12 = vsub.f32 %v12924_v32, %v13166_v54  ;;  %v15121_v19 = vsub.f32 %v12913_v3, %v13166_v54 }
 0x77b   :  { %v13486_v7 = vmul.f32 %v13302_v17, %v15119_v5  ;;  %v15122_v29 = vsub.f32 %v12922_v41, %v13166_v54  ;;  %v15123_v26 = vsub.f32 %v12943_v10, %v13166_v54  ;;  %v15124_v5 = vsub.f32 %v12952_v1, %v13166_v54  ;;  %7336 = vst.msk [vmem:[#allocation8 + $0x1e8] sm:$0xff] %vm177_vm0, %v7272_v0 }
 0x77c   :  { %v13492_v37 = vmul.f32 %v13302_v17, %v15120_v12  ;;  %v13498_v47 = vmul.f32 %v13302_v17, %v15121_v19  ;;  %v15125_v12 = vsub.f32 %v12941_v8, %v13166_v54  ;;  %v15126_v10 = vsub.f32 %v12950_v35, %v13166_v54 }
 0x77d   :  { %v13504_v52 = vmul.f32 %v13302_v17, %v15122_v29  ;;  %v13510_v32 = vmul.f32 %v13302_v17, %v15123_v26  ;;  %v13516_v3 = vmul.f32 %v13302_v17, %v15124_v5  ;;  %v15127_v1 = vsub.f32 %v12971_v18, %v13166_v54 }
 0x77e   :  { %v13522_v41 = vmul.f32 %v13302_v17, %v15125_v12  ;;  %v13529_v19 = vmul.f32 %v13302_v17, %v15126_v10  ;;  %v15128_v8 = vsub.f32 %v12980_v31, %v13166_v54  ;;  %v15129_v0 = vsub.f32 %v12969_v39, %v13166_v54 }
 0x77f   :  { %v13535_v29 = vmul.f32 %v13302_v17, %v15127_v1  ;;  %v15130_v5 = vsub.f32 %v12978_v34, %v13166_v54  ;;  %v15131_v12 = vsub.f32 %v15066_v59, %v13166_v54  ;;  %v15132_v10 = vsub.f32 %v15067_v62, %v13166_v54 }
 0x780   :  { %v13541_v26 = vmul.f32 %v13302_v17, %v15128_v8  ;;  %v13547_v35 = vmul.f32 %v13302_v17, %v15129_v0  ;;  %v15133_v1 = vsub.f32 %v15068_v20, %v13166_v54  ;;  %v15134_v8 = vsub.f32 %v15069_v36, %v13166_v54 }
 0x781   :  { %v13553_v18 = vmul.f32 %v13302_v17, %v15130_v5  ;;  %v13559_v31 = vmul.f32 %v13302_v17, %v15131_v12  ;;  %v13565_v39 = vmul.f32 %v13302_v17, %v15132_v10  ;;  %v15135_v0 = vsub.f32 %v15070_v45, %v13166_v54  ;;  %v15137_v5 = vld [vmem:[#allocation28_spill] sm:$0xff] }
 0x782   :  { %v13571_v34 = vmul.f32 %v13302_v17, %v15133_v1  ;;  %v13577_v59 = vmul.f32 %v13302_v17, %v15134_v8  ;;  %v15138_v12 = vsub.f32 %v15137_v5, %v13166_v54  ;;  %v15140_v10 = vld [vmem:[#allocation12_spill] sm:$0xff] }
 0x783   :  { %v13583_v62 = vmul.f32 %v13302_v17, %v15135_v0  ;;  %v15141_v1 = vsub.f32 %v15140_v10, %v13166_v54  ;;  %v15143_v8 = vld [vmem:[#allocation16_spill] sm:$0xff]  ;;  %v15146_v0 = vld [vmem:[#allocation15_spill] sm:$0xff] }
 0x784   :  { %v13589_v20 = vmul.f32 %v13302_v17, %v15138_v12  ;;  %v15144_v56 = vsub.f32 %v15143_v8, %v13166_v54  ;;  %v15149_v12 = vld [vmem:[#allocation18_spill] sm:$0xff] }
 0x785   :  { %15136 = vst [vmem:[#allocation22_spill] sm:$0xff] %v13583_v62  ;;  %v13595_v36 = vmul.f32 %v13302_v17, %v15141_v1  ;;  %v15147_v62 = vsub.f32 %v15146_v0, %v13166_v54  ;;  %v15152_v1 = vld [vmem:[#allocation30_spill] sm:$0xff] }
 0x786   :  { %15139 = vst [vmem:[#allocation27_spill] sm:$0xff] %v13589_v20  ;;  %v13601_v45 = vmul.f32 %v13302_v17, %v15144_v56  ;;  %v15150_v20 = vsub.f32 %v15149_v12, %v13166_v54  ;;  %v15155_v56 = vld [vmem:[#allocation33_spill] sm:$0xff] }
 0x787   :  { %15142 = vst [vmem:[#allocation25_spill] sm:$0xff] %v13595_v36  ;;  %v13607_v5 = vmul.f32 %v13302_v17, %v15147_v62  ;;  %v15153_v36 = vsub.f32 %v15152_v1, %v13166_v54  ;;  %v15158_v62 = vld [vmem:[#allocation19_spill] sm:$0xff] }
 0x788   :  { %15145 = vst [vmem:[#allocation24_spill] sm:$0xff] %v13601_v45  ;;  %v13613_v10 = vmul.f32 %v13302_v17, %v15150_v20  ;;  %v15156_v45 = vsub.f32 %v15155_v56, %v13166_v54  ;;  %v15161_v20 = vld [vmem:[#allocation31_spill] sm:$0xff] }
 0x789   :  { %15148 = vst [vmem:[#allocation29_spill] sm:$0xff] %v13607_v5  ;;  %v13619_v8 = vmul.f32 %v13302_v17, %v15153_v36  ;;  %v15159_v5 = vsub.f32 %v15158_v62, %v13166_v54  ;;  %v15163_v36 = vld [vmem:[#allocation32_spill] sm:$0xff] }
 0x78a   :  { %15151 = vst [vmem:[#allocation38_spill] sm:$0xff] %v13613_v10  ;;  %v13625_v0 = vmul.f32 %v13302_v17, %v15156_v45  ;;  %v15162_v10 = vsub.f32 %v15161_v20, %v13166_v54  ;;  %v15165_v45 = vld [vmem:[#allocation26_spill] sm:$0xff] }
 0x78b   :  { %15154 = vst [vmem:[#allocation40_spill] sm:$0xff] %v13619_v8  ;;  %v13631_v12 = vmul.f32 %v13302_v17, %v15159_v5  ;;  %v15164_v8 = vsub.f32 %v15163_v36, %v13166_v54  ;;  %v15167_v5 = vld [vmem:[#allocation35_spill] sm:$0xff] }
 0x78c   :  { %15157 = vst [vmem:[#allocation39_spill] sm:$0xff] %v13625_v0  ;;  %v13637_v1 = vmul.f32 %v13302_v17, %v15162_v10  ;;  %v15166_v0 = vsub.f32 %v15165_v45, %v13166_v54  ;;  %v15169_v10 = vsub.f32 %v15083_v61, %v13166_v54 }
 0x78d   :  { %15160 = vst [vmem:[#allocation41_spill] sm:$0xff] %v13631_v12  ;;  %v13643_v56 = vmul.f32 %v13302_v17, %v15164_v8  ;;  %v15168_v12 = vsub.f32 %v15167_v5, %v13166_v54  ;;  %v15170_v8 = vsub.f32 %v15084_v30, %v13166_v54 }
 0x78e   :  { %v13649_v62 = vmul.f32 %v13302_v17, %v15166_v0  ;;  %v13661_v36 = vmul.f32 %v13302_v17, %v15169_v10  ;;  %v15171_v0 = vsub.f32 %v15085_v51, %v13166_v54  ;;  %v15173_v10 = vsub.f32 %v15087_v44, %v13166_v54 }
 0x78f   :  { %v13655_v20 = vmul.f32 %v13302_v17, %v15168_v12  ;;  %v13667_v45 = vmul.f32 %v13302_v17, %v15170_v8  ;;  %v15172_v12 = vsub.f32 %v15086_v50, %v13166_v54  ;;  %v15174_v8 = vsub.f32 %v15088_v38, %v13166_v54 }
 0x790   :  { %v13673_v5 = vmul.f32 %v13302_v17, %v15171_v0  ;;  %v13685_v30 = vmul.f32 %v13302_v17, %v15173_v10  ;;  %v13695_v0 = vadd.f32 %v13307_v4, %v13317_v22  ;;  %v13699_v50 = vadd.f32 %v13307_v4, %v13323_v48  ;;  %v15185_v10 = vld [vmem:[#allocation25_spill] sm:$0xff] }
 0x791   :  { %v13679_v61 = vmul.f32 %v13302_v17, %v15172_v12  ;;  %v13691_v51 = vmul.f32 %v13302_v17, %v15174_v8  ;;  %v13703_v44 = vadd.f32 %v13307_v4, %v13329_v11  ;;  %v13707_v12 = vadd.f32 %v13307_v4, %v13335_v6  ;;  %v15187_v8 = vld [vmem:[#allocation24_spill] sm:$0xff] }
 0x792   :  { %v13711_v54 = vadd.f32 %v13307_v4, %v13341_v49  ;;  %v13715_v38 = vadd.f32 %v13307_v4, %v13347_v21  ;;  %v13719_v17 = vadd.f32 %v13307_v4, %v13353_v57  ;;  %v13723_v11 = vadd.f32 %v13307_v4, %v13360_v16 }
 0x793   :  { %v13727_v22 = vadd.f32 %v13307_v4, %v13366_v15  ;;  %v13731_v48 = vadd.f32 %v13307_v4, %v13372_v24  ;;  %v13735_v6 = vadd.f32 %v13307_v4, %v13378_v9  ;;  %v13739_v49 = vadd.f32 %v13307_v4, %v13384_v2 }
 0x794   :  { %v13743_v21 = vadd.f32 %v13307_v4, %v13390_v27  ;;  %v13747_v57 = vadd.f32 %v13307_v4, %v13396_v43  ;;  %v13751_v16 = vadd.f32 %v13307_v4, %v13402_v63  ;;  %v13755_v15 = vadd.f32 %v13307_v4, %v13408_v28 }
 0x795   :  { %v13759_v24 = vadd.f32 %v13307_v4, %v13414_v53  ;;  %v13763_v9 = vadd.f32 %v13307_v4, %v13420_v13  ;;  %v13767_v2 = vadd.f32 %v13307_v4, %v13426_v58  ;;  %v13771_v27 = vadd.f32 %v13307_v4, %v13432_v60 }
 0x796   :  { %v13775_v43 = vadd.f32 %v13307_v4, %v13438_v25  ;;  %v13779_v63 = vadd.f32 %v13307_v4, %v13444_v46  ;;  %v13783_v28 = vadd.f32 %v13307_v4, %v13450_v55  ;;  %v13787_v53 = vadd.f32 %v13307_v4, %v13456_v23 }
 0x797   :  { %v13791_v13 = vadd.f32 %v13307_v4, %v13462_v42  ;;  %v13795_v58 = vadd.f32 %v13307_v4, %v13468_v40  ;;  %v13799_v60 = vadd.f32 %v13307_v4, %v13474_v33  ;;  %v13803_v25 = vadd.f32 %v13307_v4, %v13480_v14 }
 0x798   :  { %v13807_v46 = vadd.f32 %v13307_v4, %v13486_v7  ;;  %v13811_v55 = vadd.f32 %v13307_v4, %v13492_v37  ;;  %v13815_v23 = vadd.f32 %v13307_v4, %v13498_v47  ;;  %v13819_v42 = vadd.f32 %v13307_v4, %v13504_v52 }
 0x799   :  { %v13823_v40 = vadd.f32 %v13307_v4, %v13510_v32  ;;  %v13827_v33 = vadd.f32 %v13307_v4, %v13516_v3  ;;  %v13831_v14 = vadd.f32 %v13307_v4, %v13522_v41  ;;  %v13835_v7 = vadd.f32 %v13307_v4, %v13529_v19 }
 0x79a   :  { %v13839_v37 = vadd.f32 %v13307_v4, %v13535_v29  ;;  %v13843_v47 = vadd.f32 %v13307_v4, %v13541_v26  ;;  %v13847_v52 = vadd.f32 %v13307_v4, %v13547_v35  ;;  %v13851_v32 = vadd.f32 %v13307_v4, %v13553_v18  ;;  %v15181_v26 = vld [vmem:[#allocation22_spill] sm:$0xff]  ;;  %v15183_v18 = vld [vmem:[#allocation27_spill] sm:$0xff] }
 0x79b   :  { %15175 = vst [vmem:[#allocation37_spill] sm:$0xff] %v13823_v40  ;;  %15176 = vst [vmem:[#allocation42_spill] sm:$0xff] %v13827_v33  ;;  %v13855_v3 = vadd.f32 %v13307_v4, %v13559_v31  ;;  %v13859_v41 = vadd.f32 %v13307_v4, %v13565_v39  ;;  %v13863_v19 = vadd.f32 %v13307_v4, %v13571_v34 }
 0x79c   :  { %15177 = vst [vmem:[#allocation14_spill] sm:$0xff] %v13831_v14  ;;  %15178 = vst [vmem:[#allocation17_spill] sm:$0xff] %v13835_v7  ;;  %v13867_v29 = vadd.f32 %v13307_v4, %v13577_v59  ;;  %v13871_v35 = vadd.f32 %v13307_v4, %v15181_v26  ;;  %v13875_v31 = vadd.f32 %v13307_v4, %v15183_v18 }
 0x79d   :  { %15179 = vst [vmem:[#allocation34_spill] sm:$0xff] %v13863_v19  ;;  %v13879_v39 = vadd.f32 %v13307_v4, %v15185_v10  ;;  %v13883_v34 = vadd.f32 %v13307_v4, %v15187_v8  ;;  %v15189_v19 = vld [vmem:[#allocation29_spill] sm:$0xff] }
 0x79e   :  { %15180 = vst [vmem:[#allocation20_spill] sm:$0xff] %v13867_v29  ;;  %15182 = vst [vmem:[#allocation23_spill] sm:$0xff] %v13871_v35  ;;  %v13887_v59 = vadd.f32 %v13307_v4, %v15189_v19  ;;  %v15191_v29 = vld [vmem:[#allocation38_spill] sm:$0xff]  ;;  %v15193_v35 = vld [vmem:[#allocation40_spill] sm:$0xff]  ;;  %v13907_v19 = vadd.f32 %v13307_v4, %v13637_v1  ;;  %v13927_v1 = vadd.f32 %v13307_v4, %v13667_v45  ;;  %v15217_v45 = vmax.f32 %v13707_v12, 0.0 }
 0x79f   :  { %15184 = vst [vmem:[#allocation13_spill] sm:$0xff] %v13875_v31  ;;  %15186 = vst [vmem:[#allocation21_spill] sm:$0xff] %v13879_v39  ;;  %v13891_v26 = vadd.f32 %v13307_v4, %v15191_v29  ;;  %v13895_v18 = vadd.f32 %v13307_v4, %v15193_v35  ;;  %v15195_v31 = vld [vmem:[#allocation39_spill] sm:$0xff]  ;;  %v15196_v39 = vld [vmem:[#allocation41_spill] sm:$0xff]  ;;  %v13911_v29 = vadd.f32 %v13307_v4, %v13643_v56  ;;  %v15221_v12 = vmax.f32 %v13723_v11, 0.0 }
 0x7a0   :  { %15188 = vst [vmem:[#allocation36_spill] sm:$0xff] %v13883_v34  ;;  %15190 = vst [vmem:[#allocation28_spill] sm:$0xff] %v13887_v59  ;;  %v13899_v10 = vadd.f32 %v13307_v4, %v15195_v31  ;;  %v13903_v8 = vadd.f32 %v13307_v4, %v15196_v39  ;;  %v13915_v35 = vadd.f32 %v13307_v4, %v13649_v62  ;;  %v15210_v34 = vmov %v13927_v1 }
 0x7a1   :  { %15192 = vst [vmem:[#allocation12_spill] sm:$0xff] %v13891_v26  ;;  %15194 = vst [vmem:[#allocation16_spill] sm:$0xff] %v13895_v18  ;;  %v13919_v31 = vadd.f32 %v13307_v4, %v13655_v20  ;;  %v13923_v39 = vadd.f32 %v13307_v4, %v13661_v36  ;;  %v13931_v56 = vadd.f32 %v13307_v4, %v13673_v5  ;;  %v15214_v5 = vmax.f32 %v13695_v0, 0.0 }
 0x7a2   :  { %15197 = vst [vmem:[#allocation15_spill] sm:$0xff] %v13903_v8  ;;  %15200 = vst [vmem:[#allocation33_spill] sm:$0xff] %v13927_v1  ;;  %v13935_v62 = vadd.f32 %v13307_v4, %v13679_v61  ;;  %v13939_v20 = vadd.f32 %v13307_v4, %v13685_v30  ;;  %v13943_v36 = vadd.f32 %v13307_v4, %v13691_v51  ;;  %v9410_v8 = vld [vmem:[#allocation3] sm:$0xff]  ;;  %v9411_v61 = vld [vmem:[#allocation3 + $0x8] sm:$0xff]  ;;  %v15218_v0 = vmax.f32 %v13711_v54, 0.0 }
 0x7a3   :  { %15198 = vst [vmem:[#allocation18_spill] sm:$0xff] %v13919_v31  ;;  %15199 = vst [vmem:[#allocation30_spill] sm:$0xff] %v13923_v39  ;;  %v15211_v59 = vmov %v13931_v56  ;;  %v9412_v30 = vld [vmem:[#allocation3 + $0x10] sm:$0xff]  ;;  %v9413_v51 = vld [vmem:[#allocation3 + $0x18] sm:$0xff]  ;;  %v15222_v54 = vmax.f32 %v13727_v22, 0.0  ;;  %v15225_v11 = vmax.f32 %v13739_v49, 0.0 }
 0x7a4   :  { %15201 = vst [vmem:[#allocation19_spill] sm:$0xff] %v13931_v56  ;;  %15202 = vst [vmem:[#allocation31_spill] sm:$0xff] %v13935_v62  ;;  %v15204_v39 = vld [vmem:[#allocation34_spill] sm:$0xff]  ;;  %v15212_v26 = vmov %v13935_v62  ;;  %v14010_v56 = vadd.f32 %v9410_v8, %v15214_v5  ;;  %v15215_v62 = vmax.f32 %v13699_v50, 0.0  ;;  %v14022_v18 = vadd.f32 %v9413_v51, %v15217_v45  ;;  %v9414_v1 = vld [vmem:[#allocation3 + $0x20] sm:$0xff] }
 0x7a5   :  { %15203 = vst [vmem:[#allocation32_spill] sm:$0xff] %v13939_v20  ;;  %v15205_v40 = vld [vmem:[#allocation20_spill] sm:$0xff]  ;;  %v15206_v33 = vld [vmem:[#allocation23_spill] sm:$0xff]  ;;  %v15216_v20 = vmax.f32 %v13703_v44, 0.0  ;;  %v14026_v8 = vadd.f32 %v9414_v1, %v15218_v0  ;;  %v9415_v5 = vld [vmem:[#allocation3 + $0x28] sm:$0xff]  ;;  %v15219_v50 = vmax.f32 %v13715_v38, 0.0 }
 0x7a6   :  { %v15207_v14 = vld [vmem:[#allocation13_spill] sm:$0xff]  ;;  %v14014_v31 = vadd.f32 %v9411_v61, %v15215_v62  ;;  %v9416_v61 = vld [vmem:[#allocation3 + $0x30] sm:$0xff]  ;;  %v15220_v44 = vmax.f32 %v13719_v17, 0.0  ;;  %v9418_v51 = vld [vmem:[#allocation3 + $0x40] sm:$0xff]  ;;  %v15223_v38 = vmax.f32 %v13731_v48, 0.0  ;;  %v15224_v17 = vmax.f32 %v13735_v6, 0.0 }
 0x7a7   :  { %v14018_v4 = vadd.f32 %v9412_v30, %v15216_v20  ;;  %v14030_v62 = vadd.f32 %v9415_v5, %v15219_v50  ;;  %v9417_v30 = vld [vmem:[#allocation3 + $0x38] sm:$0xff]  ;;  %v14042_v1 = vadd.f32 %v9418_v51, %v15222_v54  ;;  %v9419_v0 = vld [vmem:[#allocation3 + $0x48] sm:$0xff]  ;;  %v9420_v50 = vld [vmem:[#allocation3 + $0x50] sm:$0xff]  ;;  %v15226_v22 = vmax.f32 %v13743_v21, 0.0 }
 0x7a8   :  { %v14034_v20 = vadd.f32 %v9416_v61, %v15220_v44  ;;  %v14038_v45 = vadd.f32 %v9417_v30, %v15221_v12  ;;  %v14046_v5 = vadd.f32 %v9419_v0, %v15223_v38  ;;  %v14050_v61 = vadd.f32 %v9420_v50, %v15224_v17  ;;  %v9421_v44 = vld [vmem:[#allocation3 + $0x58] sm:$0xff]  ;;  %v9422_v12 = vld [vmem:[#allocation3 + $0x60] sm:$0xff]  ;;  %v9423_v54 = vld [vmem:[#allocation3 + $0x68] sm:$0xff] }
 0x7a9   :  { %v14054_v30 = vadd.f32 %v9421_v44, %v15225_v11  ;;  %v14058_v51 = vadd.f32 %v9422_v12, %v15226_v22  ;;  %v15227_v48 = vmax.f32 %v13747_v57, 0.0  ;;  %v9424_v38 = vld [vmem:[#allocation3 + $0x70] sm:$0xff]  ;;  %v15228_v6 = vmax.f32 %v13751_v16, 0.0  ;;  %v9425_v17 = vld [vmem:[#allocation3 + $0x78] sm:$0xff]  ;;  %v9426_v11 = vld [vmem:[#allocation3 + $0x80] sm:$0xff] }
 0x7aa   :  { %v15209_v7 = vld [vmem:[#allocation30_spill] sm:$0xff]  ;;  %v15229_v49 = vmax.f32 %v13755_v15, 0.0  ;;  %v15230_v21 = vmax.f32 %v13759_v24, 0.0  ;;  %v9427_v22 = vld [vmem:[#allocation3 + $0x88] sm:$0xff]  ;;  %v15231_v57 = vmax.f32 %v13763_v9, 0.0  ;;  %v15232_v16 = vmax.f32 %v13767_v2, 0.0 }
 0x7ab   :  { %v14062_v0 = vadd.f32 %v9423_v54, %v15227_v48  ;;  %v14066_v50 = vadd.f32 %v9424_v38, %v15228_v6  ;;  %v9428_v48 = vld [vmem:[#allocation3 + $0x90] sm:$0xff]  ;;  %v9429_v6 = vld [vmem:[#allocation3 + $0x98] sm:$0xff]  ;;  %v15233_v15 = vmax.f32 %v13771_v27, 0.0  ;;  %v15234_v24 = vmax.f32 %v13775_v43, 0.0 }
 0x7ac   :  { %v14070_v44 = vadd.f32 %v9425_v17, %v15229_v49  ;;  %v14074_v12 = vadd.f32 %v9426_v11, %v15230_v21  ;;  %v14078_v54 = vadd.f32 %v9427_v22, %v15231_v57  ;;  %v14082_v38 = vadd.f32 %v9428_v48, %v15232_v16  ;;  %v9430_v49 = vld [vmem:[#allocation3 + $0xa0] sm:$0xff]  ;;  %v9431_v21 = vld [vmem:[#allocation3 + $0xa8] sm:$0xff]  ;;  %v9432_v57 = vld [vmem:[#allocation3 + $0xb0] sm:$0xff] }
 0x7ad   :  { %v14086_v17 = vadd.f32 %v9429_v6, %v15233_v15  ;;  %v14090_v11 = vadd.f32 %v9430_v49, %v15234_v24  ;;  %v15235_v9 = vmax.f32 %v13779_v63, 0.0  ;;  %v15236_v2 = vmax.f32 %v13783_v28, 0.0  ;;  %v9433_v16 = vld [vmem:[#allocation3 + $0xb8] sm:$0xff]  ;;  %v9434_v15 = vld [vmem:[#allocation3 + $0xc0] sm:$0xff]  ;;  %v9435_v24 = vld [vmem:[#allocation3 + $0xc8] sm:$0xff] }
 0x7ae   :  { %v15237_v27 = vmax.f32 %v13787_v53, 0.0  ;;  %v15238_v43 = vmax.f32 %v13791_v13, 0.0  ;;  %v15239_v63 = vmax.f32 %v13795_v58, 0.0  ;;  %v15240_v28 = vmax.f32 %v13799_v60, 0.0 }
 0x7af   :  { %v14094_v22 = vadd.f32 %v9431_v21, %v15235_v9  ;;  %v14098_v48 = vadd.f32 %v9432_v57, %v15236_v2  ;;  %v9436_v9 = vld [vmem:[#allocation3 + $0xd0] sm:$0xff]  ;;  %v9437_v2 = vld [vmem:[#allocation3 + $0xd8] sm:$0xff]  ;;  %v15241_v53 = vmax.f32 %v13803_v25, 0.0  ;;  %v15243_v13 = vmax.f32 %v13807_v46, 0.0 }
 0x7b0   :  { %v14102_v6 = vadd.f32 %v9433_v16, %v15237_v27  ;;  %v14106_v49 = vadd.f32 %v9434_v15, %v15238_v43  ;;  %v14110_v21 = vadd.f32 %v9435_v24, %v15239_v63  ;;  %v14114_v57 = vadd.f32 %v9436_v9, %v15240_v28  ;;  %v9438_v27 = vld [vmem:[#allocation3 + $0xe0] sm:$0xff]  ;;  %v9439_v43 = vld [vmem:[#allocation3 + $0xe8] sm:$0xff]  ;;  %v9440_v63 = vld [vmem:[#allocation3 + $0xf0] sm:$0xff] }
 0x7b1   :  { %v14118_v16 = vadd.f32 %v9437_v2, %v15241_v53  ;;  %v14122_v15 = vadd.f32 %v9438_v27, %v15243_v13  ;;  %v15245_v58 = vmax.f32 %v13811_v55, 0.0  ;;  %v15247_v60 = vmax.f32 %v13815_v23, 0.0  ;;  %v9441_v28 = vld [vmem:[#allocation3 + $0xf8] sm:$0xff]  ;;  %v9442_v53 = vld [vmem:[#allocation3 + $0x100] sm:$0xff]  ;;  %v9443_v13 = vld [vmem:[#allocation3 + $0x108] sm:$0xff] }
 0x7b2   :  { %v15249_v25 = vmax.f32 %v13819_v42, 0.0 }
 0x7b3   :  { %15242 = vst [vmem:[#allocation26_spill] sm:$0xff] %v14118_v16  ;;  %15244 = vst [vmem:[#allocation35_spill] sm:$0xff] %v14122_v15  ;;  %v14126_v24 = vadd.f32 %v9439_v43, %v15245_v58  ;;  %v14130_v9 = vadd.f32 %v9440_v63, %v15247_v60  ;;  %v15250_v16 = vld [vmem:[#allocation37_spill] sm:$0xff]  ;;  %v15252_v15 = vld [vmem:[#allocation42_spill] sm:$0xff] }
 0x7b4   :  { %v14134_v2 = vadd.f32 %v9441_v28, %v15249_v25  ;;  %v15251_v46 = vmax.f32 %v15250_v16, 0.0  ;;  %v15253_v55 = vmax.f32 %v15252_v15, 0.0  ;;  %v9444_v58 = vld [vmem:[#allocation3 + $0x110] sm:$0xff]  ;;  %v9445_v60 = vld [vmem:[#allocation3 + $0x118] sm:$0xff]  ;;  %v9446_v25 = vld [vmem:[#allocation3 + $0x120] sm:$0xff]  ;;  %v15258_v16 = vmax.f32 %v13839_v37, 0.0 }
 0x7b5   :  { %15246 = vst [vmem:[#allocation22_spill] sm:$0xff] %v14126_v24  ;;  %15248 = vst [vmem:[#allocation27_spill] sm:$0xff] %v14130_v9  ;;  %v15254_v24 = vld [vmem:[#allocation14_spill] sm:$0xff]  ;;  %v15256_v9 = vld [vmem:[#allocation17_spill] sm:$0xff]  ;;  %v15259_v15 = vmax.f32 %v13843_v47, 0.0  ;;  %v15262_v37 = vmax.f32 %v13855_v3, 0.0 }
 0x7b6   :  { %v14138_v27 = vadd.f32 %v9442_v53, %v15251_v46  ;;  %v14142_v43 = vadd.f32 %v9443_v13, %v15253_v55  ;;  %v15255_v23 = vmax.f32 %v15254_v24, 0.0  ;;  %v15257_v42 = vmax.f32 %v15256_v9, 0.0  ;;  %v9447_v46 = vld [vmem:[#allocation3 + $0x128] sm:$0xff]  ;;  %v9448_v55 = vld [vmem:[#allocation3 + $0x130] sm:$0xff] }
 0x7b7   :  { %v14154_v53 = vadd.f32 %v9446_v25, %v15258_v16  ;;  %v14158_v13 = vadd.f32 %v9447_v46, %v15259_v15  ;;  %v15260_v24 = vmax.f32 %v13847_v52, 0.0  ;;  %v15261_v9 = vmax.f32 %v13851_v32, 0.0  ;;  %v9451_v16 = vld [vmem:[#allocation3 + $0x148] sm:$0xff]  ;;  %v9452_v15 = vld [vmem:[#allocation3 + $0x150] sm:$0xff] }
 0x7b8   :  { %v14146_v63 = vadd.f32 %v9444_v58, %v15255_v23  ;;  %v14150_v28 = vadd.f32 %v9445_v60, %v15257_v42  ;;  %v9449_v23 = vld [vmem:[#allocation3 + $0x138] sm:$0xff]  ;;  %v9450_v42 = vld [vmem:[#allocation3 + $0x140] sm:$0xff]  ;;  %v15263_v47 = vmax.f32 %v13859_v41, 0.0  ;;  %v15265_v52 = vmax.f32 %v15204_v39, 0.0 }
 0x7b9   :  { %v14162_v58 = vadd.f32 %v9448_v55, %v15260_v24  ;;  %v14166_v60 = vadd.f32 %v9449_v23, %v15261_v9  ;;  %v14170_v25 = vadd.f32 %v9450_v42, %v15262_v37  ;;  %v9453_v24 = vld [vmem:[#allocation3 + $0x158] sm:$0xff]  ;;  %v15267_v32 = vmax.f32 %v15205_v40, 0.0  ;;  %v9454_v9 = vld [vmem:[#allocation3 + $0x160] sm:$0xff]  ;;  %v9455_v37 = vld [vmem:[#allocation3 + $0x168] sm:$0xff] }
 0x7ba   :  { %v14174_v46 = vadd.f32 %v9451_v16, %v15263_v47  ;;  %v14178_v55 = vadd.f32 %v9452_v15, %v15265_v52  ;;  %v15269_v3 = vmax.f32 %v15206_v33, 0.0  ;;  %v15271_v41 = vmax.f32 %v15207_v14, 0.0  ;;  %v9456_v47 = vld [vmem:[#allocation3 + $0x170] sm:$0xff]  ;;  %v9457_v52 = vld [vmem:[#allocation3 + $0x178] sm:$0xff] }
 0x7bb   :  { %v14182_v23 = vadd.f32 %v9453_v24, %v15267_v32  ;;  %v9458_v32 = vld [vmem:[#allocation3 + $0x180] sm:$0xff] }
 0x7bc   :  { %15264 = vst [vmem:[#allocation25_spill] sm:$0xff] %v14174_v46  ;;  %15266 = vst [vmem:[#allocation24_spill] sm:$0xff] %v14178_v55  ;;  %v14186_v42 = vadd.f32 %v9454_v9, %v15269_v3  ;;  %v14190_v16 = vadd.f32 %v9455_v37, %v15271_v41  ;;  %v15273_v46 = vld [vmem:[#allocation21_spill] sm:$0xff]  ;;  %v15275_v55 = vld [vmem:[#allocation36_spill] sm:$0xff] }
 0x7bd   :  { %15268 = vst [vmem:[#allocation29_spill] sm:$0xff] %v14182_v23  ;;  %v15274_v39 = vmax.f32 %v15273_v46, 0.0  ;;  %v15276_v40 = vmax.f32 %v15275_v55, 0.0  ;;  %v15278_v23 = vld [vmem:[#allocation28_spill] sm:$0xff]  ;;  %v9459_v3 = vld [vmem:[#allocation3 + $0x188] sm:$0xff]  ;;  %v9460_v41 = vld [vmem:[#allocation3 + $0x190] sm:$0xff] }
 0x7be   :  { %15270 = vst [vmem:[#allocation38_spill] sm:$0xff] %v14186_v42  ;;  %15272 = vst [vmem:[#allocation40_spill] sm:$0xff] %v14190_v16  ;;  %v15279_v33 = vmax.f32 %v15278_v23, 0.0  ;;  %v15280_v42 = vld [vmem:[#allocation12_spill] sm:$0xff]  ;;  %v15284_v55 = vmax.f32 %v13899_v10, 0.0  ;;  %v15290_v10 = vmax.f32 %v13915_v35, 0.0 }
 0x7bf   :  { %v14194_v15 = vadd.f32 %v9456_v47, %v15274_v39  ;;  %v14198_v24 = vadd.f32 %v9457_v52, %v15276_v40  ;;  %v15281_v14 = vmax.f32 %v15280_v42, 0.0  ;;  %v15282_v16 = vld [vmem:[#allocation16_spill] sm:$0xff]  ;;  %v9461_v39 = vld [vmem:[#allocation3 + $0x198] sm:$0xff]  ;;  %v15288_v42 = vmax.f32 %v13907_v19, 0.0 }
 0x7c0   :  { %v14202_v9 = vadd.f32 %v9458_v32, %v15279_v33  ;;  %v15283_v46 = vmax.f32 %v15282_v16, 0.0  ;;  %v14214_v52 = vadd.f32 %v9461_v39, %v15284_v55  ;;  %v9462_v40 = vld [vmem:[#allocation3 + $0x1a0] sm:$0xff]  ;;  %v9463_v33 = vld [vmem:[#allocation3 + $0x1a8] sm:$0xff]  ;;  %v15289_v16 = vmax.f32 %v13911_v29, 0.0 }
 0x7c1   :  { %15277 = vst [vmem:[#allocation39_spill] sm:$0xff] %v14198_v24  ;;  %v14206_v37 = vadd.f32 %v9459_v3, %v15281_v14  ;;  %v15286_v24 = vld [vmem:[#allocation15_spill] sm:$0xff]  ;;  %v14222_v3 = vadd.f32 %v9463_v33, %v15288_v42  ;;  %v9464_v14 = vld [vmem:[#allocation3 + $0x1b0] sm:$0xff]  ;;  %v9466_v55 = vld [vmem:[#allocation3 + $0x1c0] sm:$0xff]  ;;  %v15294_v19 = vmax.f32 %v15209_v7, 0.0  ;;  %v15295_v29 = vmax.f32 %v15210_v34, 0.0 }
 0x7c2   :  { %v14210_v47 = vadd.f32 %v9460_v41, %v15283_v46  ;;  %15285 = vst [vmem:[#allocation41_spill] sm:$0xff] %v14214_v52  ;;  %v15287_v23 = vmax.f32 %v15286_v24, 0.0  ;;  %v14226_v41 = vadd.f32 %v9464_v14, %v15289_v16  ;;  %v9465_v46 = vld [vmem:[#allocation3 + $0x1b8] sm:$0xff]  ;;  %v15291_v52 = vld [vmem:[#allocation18_spill] sm:$0xff]  ;;  %v15296_v35 = vmax.f32 %v15211_v59, 0.0 }
 0x7c3   :  { %v14230_v39 = vadd.f32 %v9465_v46, %v15290_v10  ;;  %v15292_v24 = vmax.f32 %v15291_v52, 0.0  ;;  %v9468_v42 = vld [vmem:[#allocation3 + $0x1d0] sm:$0xff]  ;;  %v9469_v16 = vld [vmem:[#allocation3 + $0x1d8] sm:$0xff]  ;;  %v9470_v10 = vld [vmem:[#allocation3 + $0x1e0] sm:$0xff]  ;;  %v15297_v52 = vmax.f32 %v15212_v26, 0.0  ;;  %v15300_v34 = vmax.f32 %v13943_v36, 0.0 }
 0x7c4   :  { %v14218_v32 = vadd.f32 %v9462_v40, %v15287_v23  ;;  %v9467_v23 = vld [vmem:[#allocation3 + $0x1c8] sm:$0xff]  ;;  %v14242_v14 = vadd.f32 %v9468_v42, %v15295_v29  ;;  %v14246_v46 = vadd.f32 %v9469_v16, %v15296_v35  ;;  %v7211_v29 = vmax.f32 %v14010_v56, 0.0 }
 0x7c5   :  { %v14234_v40 = vadd.f32 %v9466_v55, %v15292_v24  ;;  %v14238_v33 = vadd.f32 %v9467_v23, %v15294_v19  ;;  %v14250_v55 = vadd.f32 %v9470_v10, %v15297_v52  ;;  %v9471_v24 = vld [vmem:[#allocation3 + $0x1f0] sm:$0xff]  ;;  %v9472_v19 = vld [vmem:[#allocation3 + $0x1f8] sm:$0xff]  ;;  %v7212_v59 = vmax.f32 %v14014_v31, 0.0 }
 0x7c6   :  { %v14258_v42 = vadd.f32 %v9472_v19, %v15300_v34  ;;  %v7213_v16 = vmax.f32 %v14018_v4, 0.0  ;;  %v7214_v26 = vmax.f32 %v14022_v18, 0.0  ;;  %v7215_v35 = vmax.f32 %v14026_v8, 0.0  ;;  %7275 = vst.msk [vmem:[#allocation8] sm:$0xff] %vm177_vm0, %v7211_v29 }
 0x7c7   :  { %15293 = vst [vmem:[#allocation34_spill] sm:$0xff] %v14234_v40  ;;  %v15298_v40 = vld [vmem:[#allocation32_spill] sm:$0xff]  ;;  %v7216_v10 = vmax.f32 %v14030_v62, 0.0  ;;  %v7218_v52 = vmax.f32 %v14038_v45, 0.0  ;;  %v7219_v36 = vmax.f32 %v14042_v1, 0.0  ;;  %v7221_v56 = vmax.f32 %v14050_v61, 0.0 }
 0x7c8   :  { %v15299_v7 = vmax.f32 %v15298_v40, 0.0  ;;  %v7217_v40 = vmax.f32 %v14034_v20, 0.0  ;;  %7276 = vst.msk [vmem:[#allocation8 + $0x8] sm:$0xff] %vm177_vm0, %v7212_v59  ;;  %7277 = vst.msk [vmem:[#allocation8 + $0x10] sm:$0xff] %vm177_vm0, %v7213_v16  ;;  %v7222_v18 = vmax.f32 %v14054_v30, 0.0  ;;  %v7223_v31 = vmax.f32 %v14058_v51, 0.0 }
 0x7c9   :  { %v7224_v4 = vmax.f32 %v14062_v0, 0.0  ;;  %v7225_v8 = vmax.f32 %v14066_v50, 0.0  ;;  %7278 = vst.msk [vmem:[#allocation8 + $0x18] sm:$0xff] %vm177_vm0, %v7214_v26  ;;  %7279 = vst.msk [vmem:[#allocation8 + $0x20] sm:$0xff] %vm177_vm0, %v7215_v35  ;;  %v7226_v62 = vmax.f32 %v14070_v44, 0.0  ;;  %v7227_v20 = vmax.f32 %v14074_v12, 0.0 }
 0x7ca   :  { %v14254_v23 = vadd.f32 %v9471_v24, %v15299_v7  ;;  %v7220_v24 = vmax.f32 %v14046_v5, 0.0  ;;  %7280 = vst.msk [vmem:[#allocation8 + $0x28] sm:$0xff] %vm177_vm0, %v7216_v10  ;;  %7281 = vst.msk [vmem:[#allocation8 + $0x30] sm:$0xff] %vm177_vm0, %v7217_v40  ;;  %v7228_v45 = vmax.f32 %v14078_v54, 0.0  ;;  %v7229_v1 = vmax.f32 %v14082_v38, 0.0  ;;  %v15301_v54 = vld [vmem:[#allocation26_spill] sm:$0xff] }
 0x7cb   :  { %7282 = vst.msk [vmem:[#allocation8 + $0x38] sm:$0xff] %vm177_vm0, %v7218_v52  ;;  %7283 = vst.msk [vmem:[#allocation8 + $0x40] sm:$0xff] %vm177_vm0, %v7219_v36  ;;  %v7230_v5 = vmax.f32 %v14086_v17, 0.0  ;;  %v7231_v61 = vmax.f32 %v14090_v11, 0.0  ;;  %v7232_v30 = vmax.f32 %v14094_v22, 0.0  ;;  %v7233_v51 = vmax.f32 %v14098_v48, 0.0 }
 0x7cc   :  { %7284 = vst.msk [vmem:[#allocation8 + $0x48] sm:$0xff] %vm177_vm0, %v7220_v24  ;;  %7285 = vst.msk [vmem:[#allocation8 + $0x50] sm:$0xff] %vm177_vm0, %v7221_v56  ;;  %v7234_v0 = vmax.f32 %v14102_v6, 0.0  ;;  %v7235_v50 = vmax.f32 %v14106_v49, 0.0  ;;  %v7236_v44 = vmax.f32 %v14110_v21, 0.0  ;;  %v7237_v12 = vmax.f32 %v14114_v57, 0.0 }
 0x7cd   :  { %7286 = vst.msk [vmem:[#allocation8 + $0x58] sm:$0xff] %vm177_vm0, %v7222_v18  ;;  %7287 = vst.msk [vmem:[#allocation8 + $0x60] sm:$0xff] %vm177_vm0, %v7223_v31  ;;  %v7238_v38 = vmax.f32 %v15301_v54, 0.0  ;;  %v15302_v17 = vld [vmem:[#allocation35_spill] sm:$0xff]  ;;  %v15303_v22 = vld [vmem:[#allocation22_spill] sm:$0xff]  ;;  %v7242_v21 = vmax.f32 %v14134_v2, 0.0 }
 0x7ce   :  { %7288 = vst.msk [vmem:[#allocation8 + $0x68] sm:$0xff] %vm177_vm0, %v7224_v4  ;;  %7289 = vst.msk [vmem:[#allocation8 + $0x70] sm:$0xff] %vm177_vm0, %v7225_v8  ;;  %v7239_v11 = vmax.f32 %v15302_v17, 0.0  ;;  %v7240_v48 = vmax.f32 %v15303_v22, 0.0  ;;  %v15304_v6 = vld [vmem:[#allocation27_spill] sm:$0xff]  ;;  %v7243_v57 = vmax.f32 %v14138_v27, 0.0 }
 0x7cf   :  { %7290 = vst.msk [vmem:[#allocation8 + $0x78] sm:$0xff] %vm177_vm0, %v7226_v62  ;;  %7291 = vst.msk [vmem:[#allocation8 + $0x80] sm:$0xff] %vm177_vm0, %v7227_v20  ;;  %v7241_v49 = vmax.f32 %v15304_v6, 0.0  ;;  %v7244_v7 = vmax.f32 %v14142_v43, 0.0  ;;  %v7245_v19 = vmax.f32 %v14146_v63, 0.0  ;;  %v7246_v34 = vmax.f32 %v14150_v28, 0.0 }
 0x7d0   :  { %7292 = vst.msk [vmem:[#allocation8 + $0x88] sm:$0xff] %vm177_vm0, %v7228_v45  ;;  %7293 = vst.msk [vmem:[#allocation8 + $0x90] sm:$0xff] %vm177_vm0, %v7229_v1  ;;  %v7247_v29 = vmax.f32 %v14154_v53, 0.0  ;;  %v7248_v2 = vmax.f32 %v14158_v13, 0.0  ;;  %v7249_v27 = vmax.f32 %v14162_v58, 0.0  ;;  %v7250_v43 = vmax.f32 %v14166_v60, 0.0 }
 0x7d1   :  { %7294 = vst.msk [vmem:[#allocation8 + $0x98] sm:$0xff] %vm177_vm0, %v7230_v5  ;;  %7295 = vst.msk [vmem:[#allocation8 + $0xa0] sm:$0xff] %vm177_vm0, %v7231_v61  ;;  %v7251_v63 = vmax.f32 %v14170_v25, 0.0  ;;  %v15305_v59 = vld [vmem:[#allocation25_spill] sm:$0xff]  ;;  %v15306_v16 = vld [vmem:[#allocation24_spill] sm:$0xff]  ;;  %v7257_v25 = vmax.f32 %v14194_v15, 0.0 }
 0x7d2   :  { %7296 = vst.msk [vmem:[#allocation8 + $0xa8] sm:$0xff] %vm177_vm0, %v7232_v30  ;;  %7297 = vst.msk [vmem:[#allocation8 + $0xb0] sm:$0xff] %vm177_vm0, %v7233_v51  ;;  %v7252_v28 = vmax.f32 %v15305_v59, 0.0  ;;  %v7253_v53 = vmax.f32 %v15306_v16, 0.0  ;;  %v15307_v13 = vld [vmem:[#allocation29_spill] sm:$0xff]  ;;  %v15308_v26 = vld [vmem:[#allocation38_spill] sm:$0xff] }
 0x7d3   :  { %7298 = vst.msk [vmem:[#allocation8 + $0xb8] sm:$0xff] %vm177_vm0, %v7234_v0  ;;  %7299 = vst.msk [vmem:[#allocation8 + $0xc0] sm:$0xff] %vm177_vm0, %v7235_v50  ;;  %v7254_v58 = vmax.f32 %v15307_v13, 0.0  ;;  %v7255_v35 = vmax.f32 %v15308_v26, 0.0  ;;  %v15309_v10 = vld [vmem:[#allocation40_spill] sm:$0xff]  ;;  %v15310_v40 = vld [vmem:[#allocation39_spill] sm:$0xff] }
 0x7d4   :  { %7300 = vst.msk [vmem:[#allocation8 + $0xc8] sm:$0xff] %vm177_vm0, %v7236_v44  ;;  %7301 = vst.msk [vmem:[#allocation8 + $0xd0] sm:$0xff] %vm177_vm0, %v7237_v12  ;;  %v7256_v60 = vmax.f32 %v15309_v10, 0.0  ;;  %v7258_v52 = vmax.f32 %v15310_v40, 0.0  ;;  %v7259_v36 = vmax.f32 %v14202_v9, 0.0  ;;  %v7260_v24 = vmax.f32 %v14206_v37, 0.0 }
 0x7d5   :  { %7302 = vst.msk [vmem:[#allocation8 + $0xd8] sm:$0xff] %vm177_vm0, %v7238_v38  ;;  %7303 = vst.msk [vmem:[#allocation8 + $0xe0] sm:$0xff] %vm177_vm0, %v7239_v11  ;;  %v7261_v56 = vmax.f32 %v14210_v47, 0.0  ;;  %v15311_v15 = vld [vmem:[#allocation41_spill] sm:$0xff]  ;;  %v7263_v31 = vmax.f32 %v14218_v32, 0.0  ;;  %v7264_v9 = vmax.f32 %v14222_v3, 0.0 }
 0x7d6   :  { %7304 = vst.msk [vmem:[#allocation8 + $0xe8] sm:$0xff] %vm177_vm0, %v7240_v48  ;;  %7305 = vst.msk [vmem:[#allocation8 + $0xf0] sm:$0xff] %vm177_vm0, %v7241_v49  ;;  %v7262_v18 = vmax.f32 %v15311_v15, 0.0  ;;  %v7265_v37 = vmax.f32 %v14226_v41, 0.0  ;;  %v7266_v47 = vmax.f32 %v14230_v39, 0.0  ;;  %v15312_v4 = vld [vmem:[#allocation34_spill] sm:$0xff] }
 0x7d7   :  { %7306 = vst.msk [vmem:[#allocation8 + $0xf8] sm:$0xff] %vm177_vm0, %v7242_v21  ;;  %7307 = vst.msk [vmem:[#allocation8 + $0x100] sm:$0xff] %vm177_vm0, %v7243_v57  ;;  %v7267_v8 = vmax.f32 %v15312_v4, 0.0  ;;  %v7268_v62 = vmax.f32 %v14238_v33, 0.0  ;;  %v7269_v32 = vmax.f32 %v14242_v14, 0.0  ;;  %v7270_v3 = vmax.f32 %v14246_v46, 0.0 }
 0x7d8   :  { %7308 = vst.msk [vmem:[#allocation8 + $0x108] sm:$0xff] %vm177_vm0, %v7244_v7  ;;  %7309 = vst.msk [vmem:[#allocation8 + $0x110] sm:$0xff] %vm177_vm0, %v7245_v19  ;;  %v7271_v41 = vmax.f32 %v14250_v55, 0.0  ;;  %v7273_v39 = vmax.f32 %v14254_v23, 0.0  ;;  %v7274_v20 = vmax.f32 %v14258_v42, 0.0 }
 0x7d9   :  { %7310 = vst.msk [vmem:[#allocation8 + $0x118] sm:$0xff] %vm177_vm0, %v7246_v34  ;;  %7311 = vst.msk [vmem:[#allocation8 + $0x120] sm:$0xff] %vm177_vm0, %v7247_v29 }
 0x7da   :  { %7312 = vst.msk [vmem:[#allocation8 + $0x128] sm:$0xff] %vm177_vm0, %v7248_v2  ;;  %7313 = vst.msk [vmem:[#allocation8 + $0x130] sm:$0xff] %vm177_vm0, %v7249_v27 }
 0x7db   :  { %7314 = vst.msk [vmem:[#allocation8 + $0x138] sm:$0xff] %vm177_vm0, %v7250_v43  ;;  %7315 = vst.msk [vmem:[#allocation8 + $0x140] sm:$0xff] %vm177_vm0, %v7251_v63 }
 0x7dc   :  { %7316 = vst.msk [vmem:[#allocation8 + $0x148] sm:$0xff] %vm177_vm0, %v7252_v28  ;;  %7317 = vst.msk [vmem:[#allocation8 + $0x150] sm:$0xff] %vm177_vm0, %v7253_v53 }
 0x7dd   :  { %7318 = vst.msk [vmem:[#allocation8 + $0x158] sm:$0xff] %vm177_vm0, %v7254_v58  ;;  %7319 = vst.msk [vmem:[#allocation8 + $0x160] sm:$0xff] %vm177_vm0, %v7255_v35 }
 0x7de   :  { %7320 = vst.msk [vmem:[#allocation8 + $0x168] sm:$0xff] %vm177_vm0, %v7256_v60  ;;  %7321 = vst.msk [vmem:[#allocation8 + $0x170] sm:$0xff] %vm177_vm0, %v7257_v25 }
 0x7df   :  { %7322 = vst.msk [vmem:[#allocation8 + $0x178] sm:$0xff] %vm177_vm0, %v7258_v52  ;;  %7323 = vst.msk [vmem:[#allocation8 + $0x180] sm:$0xff] %vm177_vm0, %v7259_v36 }
 0x7e0   :  { %7324 = vst.msk [vmem:[#allocation8 + $0x188] sm:$0xff] %vm177_vm0, %v7260_v24  ;;  %7325 = vst.msk [vmem:[#allocation8 + $0x190] sm:$0xff] %vm177_vm0, %v7261_v56 }
 0x7e1   :  { %7326 = vst.msk [vmem:[#allocation8 + $0x198] sm:$0xff] %vm177_vm0, %v7262_v18  ;;  %7327 = vst.msk [vmem:[#allocation8 + $0x1a0] sm:$0xff] %vm177_vm0, %v7263_v31 }
 0x7e2   :  { %7328 = vst.msk [vmem:[#allocation8 + $0x1a8] sm:$0xff] %vm177_vm0, %v7264_v9  ;;  %7329 = vst.msk [vmem:[#allocation8 + $0x1b0] sm:$0xff] %vm177_vm0, %v7265_v37 }
 0x7e3   :  { %7330 = vst.msk [vmem:[#allocation8 + $0x1b8] sm:$0xff] %vm177_vm0, %v7266_v47  ;;  %7331 = vst.msk [vmem:[#allocation8 + $0x1c0] sm:$0xff] %vm177_vm0, %v7267_v8 }
 0x7e4   :  { %7332 = vst.msk [vmem:[#allocation8 + $0x1c8] sm:$0xff] %vm177_vm0, %v7268_v62  ;;  %7333 = vst.msk [vmem:[#allocation8 + $0x1d0] sm:$0xff] %vm177_vm0, %v7269_v32 }
 0x7e5   :  { %7334 = vst.msk [vmem:[#allocation8 + $0x1d8] sm:$0xff] %vm177_vm0, %v7270_v3  ;;  %7335 = vst.msk [vmem:[#allocation8 + $0x1e0] sm:$0xff] %vm177_vm0, %v7271_v41 }
 0x7e6   :  { %7337 = vst.msk [vmem:[#allocation8 + $0x1f0] sm:$0xff] %vm177_vm0, %v7273_v39  ;;  %7338 = vst.msk [vmem:[#allocation8 + $0x1f8] sm:$0xff] %vm177_vm0, %v7274_v20 }
 0x7e7   :  { %9528 = shalt.err (!%p9525_p6)
}
 0x7e8   :  { %s9529_s27 = scalar_lea.hbm %s14411_s10, 8192 }
 0x7e9   :  { %p9530_p7 = scmp.ne.s32.totalorder %s14411_s10, %s9529_s27  ;;  %p9533_p8 = scmp.lt.u32.totalorder %s9529_s27, %s14411_s10 }
 0x7eb   :  { %p9535_p9 = pnand %p9533_p8, %p9530_p7 }
 0x7ed   :  { %9538 = shalt.err (!%p9535_p9)
}
 0x7ee   :  { %7350 = dma.vmem_to_hbm [thread:$0]  %s7345_s4, 8192, %s14411_s10, [#allocation5], %s9546_s23, %s9546_s23, %s9547_s24  }
 0x7ef   :  { %9543 = dma.done.wait [#allocation5], 8192  }
 0x7f0   :  { %9544 = vsyncadd [#allocation5], 4294959104 }
 0x7f1   :  { %7354 = vsyncpa [#allocation4], 1 }
 0x7f2   :  { %7355 = vsyncpa [#allocation7], 1 }
 0x7f3   :  { %7356 = vsyncpa [#allocation5], 1 }

</bundles_post_ra>
